<compile_context>
chip_gen: v5e
topology: v5e:2x2
jax: 0.10.0
libtpu: 0.0.40
codegen_flags: <defaults>
</compile_context>

<pallas_src>
import functools

import jax
import jax.numpy as jnp
from jax import lax
from jax.experimental import pallas as pl
from jax.experimental.pallas import tpu as pltpu


def _round_up(v, m):
    return ((v + m - 1) // m) * m


# ---------------------------------------------------------------------------
# Fused kernel: one (batch element, D-tile) step of the whole _DenseLayer.
# ---------------------------------------------------------------------------
def _dense_layer_kernel(x_hbm, s1_ref, b1_ref, w1_ref, s2_ref, b2_ref, w2_ref,
                        o_ref, xbuf, u_scr, dma_sem,
                        *, D, H, W, Wp, tile_d, copy_d, cmid, cout):
    n = pl.program_id(0)
    dt = pl.program_id(1)

    halo_d = tile_d + 2
    m_pad = tile_d * (H + 2) * Wp
    rows = tile_d * H * W

    d0 = dt * tile_d
    src_d0 = jnp.clip(d0 - 1, 0, D - copy_d)

    # ---- manual DMA of the clamped D-halo window of the UNPADDED activation.
    # TODO(synk): double-buffer this copy across grid steps to hide its latency.
    cp = pltpu.make_async_copy(x_hbm.at[n, pl.ds(src_d0, copy_d)], xbuf,
                               dma_sem.at[0])
    cp.start()

    # ---- zero u_scr's halo shell while the DMA is in flight; this is what
    #      reproduces conv2's "zero-pad AFTER relu2" semantics (plus the
    #      lane-alignment padding columns W+2..Wp).
    zrow = jnp.zeros((halo_d, 1, Wp, cmid), jnp.bfloat16)
    u_scr[:, 0:1, :, :] = zrow
    u_scr[:, H + 1:H + 2, :, :] = zrow
    u_scr[:, :, 0:1, :] = jnp.zeros((halo_d, H + 2, 1, cmid), jnp.bfloat16)
    u_scr[:, :, W + 1:Wp, :] = jnp.zeros(
        (halo_d, H + 2, Wp - (W + 1), cmid), jnp.bfloat16)

    s1 = s1_ref[...]
    b1 = b1_ref[...]
    s2 = s2_ref[...]
    b2 = b2_ref[...]
    w1 = w1_ref[...]

    cp.wait()

    # ---- bottleneck, one D plane at a time: bn1 -> relu -> conv1 -> bn2 -> relu
    #      (only real HxW rows; no H/W halo recompute, no masking on the VPU).
    def plane_body(pz, carry):
        dcoord = d0 - 1 + pz                       # global D index of this plane
        valid = jnp.logical_and(dcoord >= 0, dcoord < D)
        bi = jnp.clip(dcoord - src_d0, 0, copy_d - 1)
        xp = xbuf[bi]                                               # (H*W, cin)
        a = jnp.maximum(xp * s1 + b1, 0.0)                          # bn1 + relu
        t = jnp.dot(a, w1, preferred_element_type=jnp.float32)      # conv1 (f32)
        u = jnp.maximum(t * s2 + b2, 0.0)                           # bn2 + relu
        u = jnp.where(valid, u, 0.0)                # D-face zero padding
        u_scr[pl.ds(pz, 1), pl.ds(1, H), pl.ds(1, W), :] = (
            u.reshape(1, H, W, cmid).astype(jnp.bfloat16))
        return carry

    lax.fori_loop(0, halo_d, plane_body, 0)

    # ---- conv2: kd taps in the matmul K dim (3 dots), (kh,kw) x Cout in N.
    y9 = None
    for kd in range(3):
        lhs = u_scr[kd:kd + tile_d].reshape(m_pad, cmid)            # bf16
        part = jnp.dot(lhs, w2_ref[kd], preferred_element_type=jnp.float32)
        y9 = part if y9 is None else y9 + part

    # ---- shift-add the 9 (kh, kw) column groups over the padded H/W extent.
    y9 = y9.reshape(tile_d, H + 2, Wp, 9 * cout)
    acc = None
    for kh in range(3):
        for kw in range(3):
            tap = kh * 3 + kw
            term = y9[:, kh:kh + H, kw:kw + W, tap * cout:(tap + 1) * cout]
            acc = term if acc is None else acc + term

    # ---- lane-dense, channels-first store: (rows, cout) -> (cout, rows).
    o_ref[0] = jnp.transpose(acc.reshape(rows, cout), (1, 0)).astype(o_ref.dtype)


# ---------------------------------------------------------------------------
# Per-generation VMEM budget and D-tile selection
# ---------------------------------------------------------------------------
def _vmem_budget_bytes():
    cap = None
    try:
        cap = getattr(pltpu.get_tpu_info(), "vmem_capacity_bytes", None)
    except Exception:
        cap = None
    if not cap:
        cap = 64 * 1024 * 1024               # conservative: v7x physical VMEM
    return int(min(cap - 16 * 1024 * 1024, 100 * 1024 * 1024))


def _pick_tile_d(D, H, W, cin, cmid, cout, budget):
    """Largest divisor of D whose working set fits the VMEM budget."""
    Wp = _round_up(W + 2, 8)
    cands = [t for t in range(1, D + 1)
             if D % t == 0 and (t == D or (t * H * W) % 128 == 0)]
    best = cands[0]
    for t in cands:
        copy_d = min(t + 2, D)
        est = (copy_d * H * W * cin * 4                      # xbuf (f32)
               + (t + 2) * (H + 2) * Wp * cmid * 2           # u_scr (bf16)
               + 2 * cout * t * H * W * 4                    # out block (dbl-buf)
               + 3 * t * (H + 2) * Wp * 9 * cout * 4         # y9 / shift-add temps
               + (cin * cmid * 4 + 3 * cmid * 9 * cout * 2)) # weights
        if est * 3 // 2 <= budget and t >= best:
            best = t
    return best


# ---------------------------------------------------------------------------
# Wrapper: full _DenseLayer forward (eval mode), NCDHW in / NCDHW out
# ---------------------------------------------------------------------------
def dense_layer_forward(x_or_list, params, *, tile_d=None):
    # the PyTorch module accepts a Tensor or a list of prev_features
    if isinstance(x_or_list, (list, tuple)):
        x_ncdhw = jnp.concatenate(x_or_list, axis=1)
    else:
        x_ncdhw = x_or_list

    N, cin, D, H, W = x_ncdhw.shape
    cmid = params["w1"].shape[1]
    cout = params["w2"].shape[-1] // 9
    Wp = _round_up(W + 2, 8)
    budget = _vmem_budget_bytes()
    if tile_d is None:
        tile_d = _pick_tile_d(D, H, W, cin, cmid, cout, budget)
    assert D % tile_d == 0
    num_dt = D // tile_d
    tile_rows = tile_d * H * W
    copy_d = min(tile_d + 2, D)

    # channels-last with H*W flattened (no jnp.pad HBM pass; D-halo is DMA'd
    # and zero-padded inside the kernel).
    x = jnp.transpose(x_ncdhw, (0, 2, 3, 4, 1)).reshape(N, D, H * W, cin)
    x = x.astype(jnp.float32)

    kernel = functools.partial(
        _dense_layer_kernel, D=D, H=H, W=W, Wp=Wp, tile_d=tile_d,
        copy_d=copy_d, cmid=cmid, cout=cout)

    m_pad = tile_d * (H + 2) * Wp
    flops = N * num_dt * ((tile_d + 2) * 2 * H * W * cin * cmid
                          + 3 * 2 * m_pad * cmid * 9 * cout)
    bytes_accessed = (N * num_dt * copy_d * H * W * cin * 4
                      + N * cout * D * H * W * 4
                      + cin * cmid * 4 + 3 * cmid * 9 * cout * 2)
    cost = pl.CostEstimate(flops=int(flops), transcendentals=0,
                           bytes_accessed=int(bytes_accessed))

    out = pl.pallas_call(
        kernel,
        out_shape=jax.ShapeDtypeStruct((N, cout, D * H * W), jnp.float32),
        grid_spec=pltpu.PrefetchScalarGridSpec(
            num_scalar_prefetch=0,
            grid=(N, num_dt),
            in_specs=[
                pl.BlockSpec(memory_space=pl.ANY),         # activation stays in HBM
                pl.BlockSpec((1, cin), lambda n, d: (0, 0)),
                pl.BlockSpec((1, cin), lambda n, d: (0, 0)),
                pl.BlockSpec((cin, cmid), lambda n, d: (0, 0)),
                pl.BlockSpec((1, cmid), lambda n, d: (0, 0)),
                pl.BlockSpec((1, cmid), lambda n, d: (0, 0)),
                pl.BlockSpec((3, cmid, 9 * cout), lambda n, d: (0, 0, 0)),
            ],
            out_specs=pl.BlockSpec((1, cout, tile_rows),
                                   lambda n, d: (n, 0, d)),
            scratch_shapes=[
                pltpu.VMEM((copy_d, H * W, cin), jnp.float32),          # x halo tile
                pltpu.VMEM((tile_d + 2, H + 2, Wp, cmid), jnp.bfloat16),  # u buffer
                pltpu.SemaphoreType.DMA((1,)),
            ],
        ),
        compiler_params=pltpu.CompilerParams(
            dimension_semantics=("parallel", "parallel"),
            vmem_limit_bytes=budget),
        cost_estimate=cost,
    )(x, params["s1"], params["b1"], params["w1"],
      params["s2"], params["b2"], params["w2"])

    # lane-dense channels-first output -> NCDHW needs only a reshape.
    # TODO(synk): emit bf16 here if the downstream DenseNet concat tolerates it.
    return out.reshape(N, cout, D, H, W)


# ---------------------------------------------------------------------------
# Pure-JAX f32 reference (lax.conv) for correctness checking
# ---------------------------------------------------------------------------
def reference_forward(x, p):
    def bn(v, scale, bias):
        return v * scale.reshape(1, -1, 1, 1, 1) + bias.reshape(1, -1, 1, 1, 1)

    a = jnp.maximum(bn(x, p["s1"][0], p["b1"][0]), 0.0)
    t = lax.conv_general_dilated(
        a, p["w1_oidhw"], window_strides=(1, 1, 1), padding="VALID",
        dimension_numbers=("NCDHW", "OIDHW", "NCDHW"))
    u = jnp.maximum(bn(t, p["s2"][0], p["b2"][0]), 0.0)
    y = lax.conv_general_dilated(
        u, p["w2_oidhw"], window_strides=(1, 1, 1), padding=((1, 1),) * 3,
        dimension_numbers=("NCDHW", "OIDHW", "NCDHW"))
    return y


def make_params(key, num_input_features, growth_rate, bn_size):
    cin = num_input_features
    cmid = bn_size * growth_rate
    cout = growth_rate
    eps = 1e-5
    ks = jax.random.split(key, 10)

    # BatchNorm1 (eval): fold running stats + affine into scale/bias
    g1 = jax.random.uniform(ks[0], (cin,), jnp.float32, 0.5, 1.5)
    be1 = jax.random.normal(ks[1], (cin,), jnp.float32) * 0.1
    rm1 = jax.random.normal(ks[2], (cin,), jnp.float32) * 0.1
    rv1 = jax.random.uniform(ks[3], (cin,), jnp.float32, 0.5, 1.5)
    s1 = g1 / jnp.sqrt(rv1 + eps)
    b1 = be1 - rm1 * s1

    # BatchNorm2
    g2 = jax.random.uniform(ks[4], (cmid,), jnp.float32, 0.5, 1.5)
    be2 = jax.random.normal(ks[5], (cmid,), jnp.float32) * 0.1
    rm2 = jax.random.normal(ks[6], (cmid,), jnp.float32) * 0.1
    rv2 = jax.random.uniform(ks[7], (cmid,), jnp.float32, 0.5, 1.5)
    s2 = g2 / jnp.sqrt(rv2 + eps)
    b2 = be2 - rm2 * s2

    # conv1 weight: PyTorch (Cmid, Cin, 1, 1, 1)
    w1_oidhw = (jax.random.normal(ks[8], (cmid, cin, 1, 1, 1), jnp.float32)
                * (1.0 / jnp.sqrt(cin)))
    # conv2 weight: PyTorch (Cout, Cmid, 3, 3, 3)
    w2_oidhw = (jax.random.normal(ks[9], (cout, cmid, 3, 3, 3), jnp.float32)
                * (1.0 / jnp.sqrt(cmid * 27)))

    # Kernel layouts:
    #   conv1 as (Cin, Cmid) f32 (K=cin tiny, kept full precision),
    #   conv2 as (kd, Cmid, 9*Cout) bf16 with column index (kh*3+kw)*Cout + co
    #   matching the kernel's kd-tap matmuls + (kh,kw) shift-add.
    w1_cm = jnp.transpose(w1_oidhw[:, :, 0, 0, 0], (1, 0))
    w2_k = jnp.transpose(w2_oidhw, (2, 1, 3, 4, 0)).reshape(3, cmid, 9 * cout)

    return {
        "s1": s1.reshape(1, cin), "b1": b1.reshape(1, cin),
        "s2": s2.reshape(1, cmid), "b2": b2.reshape(1, cmid),
        "w1": w1_cm.astype(jnp.float32),
        "w2": w2_k.astype(jnp.bfloat16),
        # f32 reference layouts
        "w1_oidhw": w1_oidhw,
        "w2_oidhw": w2_oidhw,
    }


if __name__ == "__main__":
    # _DenseLayer(num_input_features=8, growth_rate=8, bn_size=4, drop_rate=0.0)
    num_input_features, growth_rate, bn_size = 8, 8, 4
    N, D, H, W = 2, 8, 8, 8

    key = jax.random.PRNGKey(0)
    kx, kp = jax.random.split(key)
    x = jax.random.normal(kx, (N, num_input_features, D, H, W), jnp.float32)
    params = make_params(kp, num_input_features, growth_rate, bn_size)

    out = jax.block_until_ready(dense_layer_forward(x, params))
    ref = jax.block_until_ready(reference_forward(x, params))

    assert out.shape == (N, growth_rate, D, H, W), out.shape
    # conv2 operands in bf16 (f32 accumulation) -> loosened tolerance vs f32 ref.
    if not jnp.allclose(out, ref, atol=3e-2, rtol=3e-2):
        max_err = float(jnp.max(jnp.abs(out - ref)))
        raise AssertionError(f"Pallas output mismatch, max abs err = {max_err}")
    print("KERNEL_OK")
</pallas_src>

<mosaic_0001>
module attributes {stable_mosaic.version = 11 : i64} {
  func.func @_dense_layer_kernel(%arg0: i32, %arg1: i32, %arg2: memref<2x8x64x8xf32, #tpu.memory_space<any>>, %arg3: memref<1x8xf32, #tpu.memory_space<vmem>>, %arg4: memref<1x8xf32, #tpu.memory_space<vmem>>, %arg5: memref<8x32xf32, #tpu.memory_space<vmem>>, %arg6: memref<1x32xf32, #tpu.memory_space<vmem>>, %arg7: memref<1x32xf32, #tpu.memory_space<vmem>>, %arg8: memref<3x32x72xbf16, #tpu.memory_space<vmem>>, %arg9: memref<1x8x512xf32, #tpu.memory_space<vmem>>, %arg10: memref<8x64x8xf32, #tpu.memory_space<vmem>>, %arg11: memref<10x10x16x32xbf16, #tpu.memory_space<vmem>>, %arg12: memref<1x!tpu.dma_semaphore, #tpu.memory_space<semaphore_mem>>) attributes {dimension_semantics = [#tpu.dimension_semantics<parallel>, #tpu.dimension_semantics<parallel>], iteration_bounds = array<i64: 2, 1>, scalar_prefetch = 0 : i64, scratch_operands = 3 : i64, tpu.core_type = #tpu.core_type<tc>, window_params = [{}, {pipeline_mode = #tpu.pipeline_mode<synchronous>, transform_indices = @transform_1, window_bounds = array<i64: 1, 8>}, {pipeline_mode = #tpu.pipeline_mode<synchronous>, transform_indices = @transform_2, window_bounds = array<i64: 1, 8>}, {pipeline_mode = #tpu.pipeline_mode<synchronous>, transform_indices = @transform_3, window_bounds = array<i64: 8, 32>}, {pipeline_mode = #tpu.pipeline_mode<synchronous>, transform_indices = @transform_4, window_bounds = array<i64: 1, 32>}, {pipeline_mode = #tpu.pipeline_mode<synchronous>, transform_indices = @transform_5, window_bounds = array<i64: 1, 32>}, {pipeline_mode = #tpu.pipeline_mode<synchronous>, transform_indices = @transform_6, window_bounds = array<i64: 3, 32, 72>}, {transform_indices = @transform_7, window_bounds = array<i64: 1, 8, 512>}]} {
    %c8_i32 = arith.constant 8 : i32
    %0 = arith.muli %arg1, %c8_i32 : i32
    %c1_i32 = arith.constant 1 : i32
    %1 = arith.subi %0, %c1_i32 : i32
    %c0_i32 = arith.constant 0 : i32
    %c0_i32_0 = arith.constant 0 : i32
    %2 = arith.maxsi %c0_i32, %1 : i32
    %3 = arith.minsi %c0_i32_0, %2 : i32
    %c0_i32_1 = arith.constant 0 : i32
    %c0_i32_2 = arith.constant 0 : i32
    %c0_i32_3 = arith.constant 0 : i32
    %4 = tpu.memref_slice %arg2[%arg0, %3, %c0_i32_2, %c0_i32_3] : memref<2x8x64x8xf32, #tpu.memory_space<any>> -> memref<1x8x64x8xf32, #tpu.memory_space<any>>
    %5 = tpu.memref_squeeze %4 : memref<1x8x64x8xf32, #tpu.memory_space<any>> -> memref<8x64x8xf32, #tpu.memory_space<any>>
    %6 = tpu.memref_slice %arg12[%c0_i32_1] : memref<1x!tpu.dma_semaphore, #tpu.memory_space<semaphore_mem>> -> memref<1x!tpu.dma_semaphore, #tpu.memory_space<semaphore_mem>>
    %7 = tpu.memref_squeeze %6 : memref<1x!tpu.dma_semaphore, #tpu.memory_space<semaphore_mem>> -> memref<!tpu.dma_semaphore, #tpu.memory_space<semaphore_mem>>
    tpu.enqueue_dma source(%5 : memref<8x64x8xf32, #tpu.memory_space<any>>) target(%arg10 : memref<8x64x8xf32, #tpu.memory_space<vmem>>) target_semaphore(%7 : memref<!tpu.dma_semaphore, #tpu.memory_space<semaphore_mem>>)
    %cst = arith.constant 0.000000e+00 : bf16
    %8 = vector.broadcast %cst : bf16 to vector<10x1x16x32xbf16>
    %c0 = arith.constant 0 : index
    %c0_4 = arith.constant 0 : index
    %c0_5 = arith.constant 0 : index
    %c0_6 = arith.constant 0 : index
    %9 = vector.load %arg11[%c0, %c0_4, %c0_5, %c0_6] : memref<10x10x16x32xbf16, #tpu.memory_space<vmem>>, vector<10x1x16x32xbf16>
    tpu.vector_store %arg11[%c0, %c0_4, %c0_5, %c0_6], %8 {strides = array<i32>} : memref<10x10x16x32xbf16, #tpu.memory_space<vmem>>, vector<10x1x16x32xbf16>,
    %c0_7 = arith.constant 0 : index
    %c9 = arith.constant 9 : index
    %c0_8 = arith.constant 0 : index
    %c0_9 = arith.constant 0 : index
    %10 = vector.load %arg11[%c0_7, %c9, %c0_8, %c0_9] : memref<10x10x16x32xbf16, #tpu.memory_space<vmem>>, vector<10x1x16x32xbf16>
    tpu.vector_store %arg11[%c0_7, %c9, %c0_8, %c0_9], %8 {strides = array<i32>} : memref<10x10x16x32xbf16, #tpu.memory_space<vmem>>, vector<10x1x16x32xbf16>,
    %cst_10 = arith.constant 0.000000e+00 : bf16
    %11 = vector.broadcast %cst_10 : bf16 to vector<10x10x1x32xbf16>
    %c0_11 = arith.constant 0 : index
    %c0_12 = arith.constant 0 : index
    %c0_13 = arith.constant 0 : index
    %c0_14 = arith.constant 0 : index
    %12 = vector.load %arg11[%c0_11, %c0_12, %c0_13, %c0_14] : memref<10x10x16x32xbf16, #tpu.memory_space<vmem>>, vector<10x10x1x32xbf16>
    tpu.vector_store %arg11[%c0_11, %c0_12, %c0_13, %c0_14], %11 {strides = array<i32>} : memref<10x10x16x32xbf16, #tpu.memory_space<vmem>>, vector<10x10x1x32xbf16>,
    %cst_15 = arith.constant 0.000000e+00 : bf16
    %13 = vector.broadcast %cst_15 : bf16 to vector<10x10x7x32xbf16>
    %c0_16 = arith.constant 0 : index
    %c0_17 = arith.constant 0 : index
    %c9_18 = arith.constant 9 : index
    %c0_19 = arith.constant 0 : index
    %14 = vector.load %arg11[%c0_16, %c0_17, %c9_18, %c0_19] : memref<10x10x16x32xbf16, #tpu.memory_space<vmem>>, vector<10x10x7x32xbf16>
    tpu.vector_store %arg11[%c0_16, %c0_17, %c9_18, %c0_19], %13 {strides = array<i32>} : memref<10x10x16x32xbf16, #tpu.memory_space<vmem>>, vector<10x10x7x32xbf16>,
    %c0_20 = arith.constant 0 : index
    %c0_21 = arith.constant 0 : index
    %15 = vector.load %arg3[%c0_20, %c0_21] : memref<1x8xf32, #tpu.memory_space<vmem>>, vector<1x8xf32>
    %c0_22 = arith.constant 0 : index
    %c0_23 = arith.constant 0 : index
    %16 = vector.load %arg4[%c0_22, %c0_23] : memref<1x8xf32, #tpu.memory_space<vmem>>, vector<1x8xf32>
    %c0_24 = arith.constant 0 : index
    %c0_25 = arith.constant 0 : index
    %17 = vector.load %arg6[%c0_24, %c0_25] : memref<1x32xf32, #tpu.memory_space<vmem>>, vector<1x32xf32>
    %c0_26 = arith.constant 0 : index
    %c0_27 = arith.constant 0 : index
    %18 = vector.load %arg7[%c0_26, %c0_27] : memref<1x32xf32, #tpu.memory_space<vmem>>, vector<1x32xf32>
    %c0_28 = arith.constant 0 : index
    %c0_29 = arith.constant 0 : index
    %19 = vector.load %arg5[%c0_28, %c0_29] : memref<8x32xf32, #tpu.memory_space<vmem>>, vector<8x32xf32>
    %c0_i32_30 = arith.constant 0 : i32
    %c0_i32_31 = arith.constant 0 : i32
    %c0_i32_32 = arith.constant 0 : i32
    %20 = tpu.memref_slice %arg2[%arg0, %3, %c0_i32_31, %c0_i32_32] : memref<2x8x64x8xf32, #tpu.memory_space<any>> -> memref<1x8x64x8xf32, #tpu.memory_space<any>>
    %21 = tpu.memref_squeeze %20 : memref<1x8x64x8xf32, #tpu.memory_space<any>> -> memref<8x64x8xf32, #tpu.memory_space<any>>
    %22 = tpu.memref_slice %arg12[%c0_i32_30] : memref<1x!tpu.dma_semaphore, #tpu.memory_space<semaphore_mem>> -> memref<1x!tpu.dma_semaphore, #tpu.memory_space<semaphore_mem>>
    %23 = tpu.memref_squeeze %22 : memref<1x!tpu.dma_semaphore, #tpu.memory_space<semaphore_mem>> -> memref<!tpu.dma_semaphore, #tpu.memory_space<semaphore_mem>>
    tpu.wait_dma2 semaphore(%23 : memref<!tpu.dma_semaphore, #tpu.memory_space<semaphore_mem>>) src(%21 : memref<8x64x8xf32, #tpu.memory_space<any>>) dst(%arg10 : memref<8x64x8xf32, #tpu.memory_space<vmem>>)
    %c0_i32_33 = arith.constant 0 : i32
    %c10_i32 = arith.constant 10 : i32
    %24 = arith.addi %c0_i32_33, %c10_i32 : i32
    %c1_i32_34 = arith.constant 1 : i32
    scf.for %arg13 = %c0_i32_33 to %24 step %c1_i32_34  : i32 {
      %c1_i32_61 = arith.constant 1 : i32
      %65 = arith.subi %0, %c1_i32_61 : i32
      %66 = arith.addi %65, %arg13 : i32
      %c0_i32_62 = arith.constant 0 : i32
      %67 = arith.cmpi sge, %66, %c0_i32_62 : i32
      %c8_i32_63 = arith.constant 8 : i32
      %68 = arith.cmpi slt, %66, %c8_i32_63 : i32
      %69 = arith.andi %67, %68 : i1
      %70 = arith.subi %66, %3 : i32
      %c0_i32_64 = arith.constant 0 : i32
      %c7_i32 = arith.constant 7 : i32
      %71 = arith.maxsi %c0_i32_64, %70 : i32
      %72 = arith.minsi %c7_i32, %71 : i32
      %73 = arith.index_cast %72 : i32 to index
      %c0_65 = arith.constant 0 : index
      %c0_66 = arith.constant 0 : index
      %74 = vector.load %arg10[%73, %c0_65, %c0_66] : memref<8x64x8xf32, #tpu.memory_space<vmem>>, vector<1x64x8xf32>
      %75 = vector.shape_cast %74 : vector<1x64x8xf32> to vector<64x8xf32>
      %76 = vector.broadcast %15 : vector<1x8xf32> to vector<64x8xf32>
      %77 = arith.mulf %75, %76 : vector<64x8xf32>
      %78 = vector.broadcast %16 : vector<1x8xf32> to vector<64x8xf32>
      %79 = arith.addf %77, %78 : vector<64x8xf32>
      %cst_67 = arith.constant 0.000000e+00 : f32
      %80 = vector.broadcast %cst_67 : f32 to vector<64x8xf32>
      %81 = arith.maximumf %79, %80 : vector<64x8xf32>
      %cst_68 = arith.constant dense<0.000000e+00> : vector<64x32xf32>
      %82 = tpu.matmul %81, %19, %cst_68 {dimension_numbers = #tpu.dot_dimension_numbers<[1], [0], [0], [1], [0, 0, 1, 1], [], []>} : vector<64x8xf32>, vector<8x32xf32>, vector<64x32xf32> -> vector<64x32xf32>
      %83 = vector.broadcast %17 : vector<1x32xf32> to vector<64x32xf32>
      %84 = arith.mulf %82, %83 : vector<64x32xf32>
      %85 = vector.broadcast %18 : vector<1x32xf32> to vector<64x32xf32>
      %86 = arith.addf %84, %85 : vector<64x32xf32>
      %cst_69 = arith.constant 0.000000e+00 : f32
      %87 = vector.broadcast %cst_69 : f32 to vector<64x32xf32>
      %88 = arith.maximumf %86, %87 : vector<64x32xf32>
      %cst_70 = arith.constant 0.000000e+00 : f32
      %89 = vector.broadcast %cst_70 : f32 to vector<64x32xf32>
      %90 = arith.select %69, %88, %89 : vector<64x32xf32>
      %91 = vector.shape_cast %90 : vector<64x32xf32> to vector<1x8x8x32xf32>
      %92 = arith.truncf %91 : vector<1x8x8x32xf32> to vector<1x8x8x32xbf16>
      %93 = arith.index_cast %arg13 : i32 to index
      %c1_71 = arith.constant 1 : index
      %c1_72 = arith.constant 1 : index
      %c0_73 = arith.constant 0 : index
      %94 = vector.load %arg11[%93, %c1_71, %c1_72, %c0_73] : memref<10x10x16x32xbf16, #tpu.memory_space<vmem>>, vector<1x8x8x32xbf16>
      tpu.vector_store %arg11[%93, %c1_71, %c1_72, %c0_73], %92 {strides = array<i32>} : memref<10x10x16x32xbf16, #tpu.memory_space<vmem>>, vector<1x8x8x32xbf16>,
    }
    %c10_i32_35 = arith.constant 10 : i32
    %c0_36 = arith.constant 0 : index
    %c0_37 = arith.constant 0 : index
    %c0_38 = arith.constant 0 : index
    %c0_39 = arith.constant 0 : index
    %25 = vector.load %arg11[%c0_36, %c0_37, %c0_38, %c0_39] : memref<10x10x16x32xbf16, #tpu.memory_space<vmem>>, vector<8x10x16x32xbf16>
    %26 = vector.shape_cast %25 : vector<8x10x16x32xbf16> to vector<1280x32xbf16>
    %c0_40 = arith.constant 0 : index
    %c0_41 = arith.constant 0 : index
    %c0_42 = arith.constant 0 : index
    %27 = vector.load %arg8[%c0_40, %c0_41, %c0_42] : memref<3x32x72xbf16, #tpu.memory_space<vmem>>, vector<1x32x72xbf16>
    %28 = vector.shape_cast %27 : vector<1x32x72xbf16> to vector<32x72xbf16>
    %cst_43 = arith.constant dense<0.000000e+00> : vector<1280x72xf32>
    %29 = tpu.matmul %26, %28, %cst_43 {dimension_numbers = #tpu.dot_dimension_numbers<[1], [0], [0], [1], [0, 0, 1, 1], [], []>} : vector<1280x32xbf16>, vector<32x72xbf16>, vector<1280x72xf32> -> vector<1280x72xf32>
    %c1 = arith.constant 1 : index
    %c0_44 = arith.constant 0 : index
    %c0_45 = arith.constant 0 : index
    %c0_46 = arith.constant 0 : index
    %30 = vector.load %arg11[%c1, %c0_44, %c0_45, %c0_46] : memref<10x10x16x32xbf16, #tpu.memory_space<vmem>>, vector<8x10x16x32xbf16>
    %31 = vector.shape_cast %30 : vector<8x10x16x32xbf16> to vector<1280x32xbf16>
    %c1_47 = arith.constant 1 : index
    %c0_48 = arith.constant 0 : index
    %c0_49 = arith.constant 0 : index
    %32 = vector.load %arg8[%c1_47, %c0_48, %c0_49] : memref<3x32x72xbf16, #tpu.memory_space<vmem>>, vector<1x32x72xbf16>
    %33 = vector.shape_cast %32 : vector<1x32x72xbf16> to vector<32x72xbf16>
    %cst_50 = arith.constant dense<0.000000e+00> : vector<1280x72xf32>
    %34 = tpu.matmul %31, %33, %cst_50 {dimension_numbers = #tpu.dot_dimension_numbers<[1], [0], [0], [1], [0, 0, 1, 1], [], []>} : vector<1280x32xbf16>, vector<32x72xbf16>, vector<1280x72xf32> -> vector<1280x72xf32>
    %35 = arith.addf %29, %34 : vector<1280x72xf32>
    %c2 = arith.constant 2 : index
    %c0_51 = arith.constant 0 : index
    %c0_52 = arith.constant 0 : index
    %c0_53 = arith.constant 0 : index
    %36 = vector.load %arg11[%c2, %c0_51, %c0_52, %c0_53] : memref<10x10x16x32xbf16, #tpu.memory_space<vmem>>, vector<8x10x16x32xbf16>
    %37 = vector.shape_cast %36 : vector<8x10x16x32xbf16> to vector<1280x32xbf16>
    %c2_54 = arith.constant 2 : index
    %c0_55 = arith.constant 0 : index
    %c0_56 = arith.constant 0 : index
    %38 = vector.load %arg8[%c2_54, %c0_55, %c0_56] : memref<3x32x72xbf16, #tpu.memory_space<vmem>>, vector<1x32x72xbf16>
    %39 = vector.shape_cast %38 : vector<1x32x72xbf16> to vector<32x72xbf16>
    %cst_57 = arith.constant dense<0.000000e+00> : vector<1280x72xf32>
    %40 = tpu.matmul %37, %39, %cst_57 {dimension_numbers = #tpu.dot_dimension_numbers<[1], [0], [0], [1], [0, 0, 1, 1], [], []>} : vector<1280x32xbf16>, vector<32x72xbf16>, vector<1280x72xf32> -> vector<1280x72xf32>
    %41 = arith.addf %35, %40 : vector<1280x72xf32>
    %42 = vector.shape_cast %41 : vector<1280x72xf32> to vector<8x10x16x72xf32>
    %43 = vector.extract_strided_slice %42 {offsets = [0, 0, 0, 0], sizes = [8, 8, 8, 8], strides = [1, 1, 1, 1]} : vector<8x10x16x72xf32> to vector<8x8x8x8xf32>
    %44 = vector.extract_strided_slice %42 {offsets = [0, 0, 1, 8], sizes = [8, 8, 8, 8], strides = [1, 1, 1, 1]} : vector<8x10x16x72xf32> to vector<8x8x8x8xf32>
    %45 = arith.addf %43, %44 : vector<8x8x8x8xf32>
    %46 = vector.extract_strided_slice %42 {offsets = [0, 0, 2, 16], sizes = [8, 8, 8, 8], strides = [1, 1, 1, 1]} : vector<8x10x16x72xf32> to vector<8x8x8x8xf32>
    %47 = arith.addf %45, %46 : vector<8x8x8x8xf32>
    %48 = vector.extract_strided_slice %42 {offsets = [0, 1, 0, 24], sizes = [8, 8, 8, 8], strides = [1, 1, 1, 1]} : vector<8x10x16x72xf32> to vector<8x8x8x8xf32>
    %49 = arith.addf %47, %48 : vector<8x8x8x8xf32>
    %50 = vector.extract_strided_slice %42 {offsets = [0, 1, 1, 32], sizes = [8, 8, 8, 8], strides = [1, 1, 1, 1]} : vector<8x10x16x72xf32> to vector<8x8x8x8xf32>
    %51 = arith.addf %49, %50 : vector<8x8x8x8xf32>
    %52 = vector.extract_strided_slice %42 {offsets = [0, 1, 2, 40], sizes = [8, 8, 8, 8], strides = [1, 1, 1, 1]} : vector<8x10x16x72xf32> to vector<8x8x8x8xf32>
    %53 = arith.addf %51, %52 : vector<8x8x8x8xf32>
    %54 = vector.extract_strided_slice %42 {offsets = [0, 2, 0, 48], sizes = [8, 8, 8, 8], strides = [1, 1, 1, 1]} : vector<8x10x16x72xf32> to vector<8x8x8x8xf32>
    %55 = arith.addf %53, %54 : vector<8x8x8x8xf32>
    %56 = vector.extract_strided_slice %42 {offsets = [0, 2, 1, 56], sizes = [8, 8, 8, 8], strides = [1, 1, 1, 1]} : vector<8x10x16x72xf32> to vector<8x8x8x8xf32>
    %57 = arith.addf %55, %56 : vector<8x8x8x8xf32>
    %58 = vector.extract_strided_slice %42 {offsets = [0, 2, 2, 64], sizes = [8, 8, 8, 8], strides = [1, 1, 1, 1]} : vector<8x10x16x72xf32> to vector<8x8x8x8xf32>
    %59 = arith.addf %57, %58 : vector<8x8x8x8xf32>
    %60 = vector.shape_cast %59 : vector<8x8x8x8xf32> to vector<512x8xf32>
    %61 = tpu.transpose %60, [1, 0] : vector<512x8xf32> -> vector<8x512xf32>
    %c0_58 = arith.constant 0 : index
    %c0_59 = arith.constant 0 : index
    %c0_60 = arith.constant 0 : index
    %62 = vector.load %arg9[%c0_58, %c0_59, %c0_60] : memref<1x8x512xf32, #tpu.memory_space<vmem>>, vector<1x8x512xf32>
    %63 = vector.shape_cast %62 : vector<1x8x512xf32> to vector<8x512xf32>
    %64 = vector.shape_cast %61 : vector<8x512xf32> to vector<1x8x512xf32>
    tpu.vector_store %arg9[%c0_58, %c0_59, %c0_60], %64 {strides = array<i32>} : memref<1x8x512xf32, #tpu.memory_space<vmem>>, vector<1x8x512xf32>,
    return
  }
  func.func @transform_1(%arg0: i32, %arg1: i32) -> (i32, i32) {
    %c0_i32 = arith.constant 0 : i32
    %c0_i32_0 = arith.constant 0 : i32
    %c0_i32_1 = arith.constant 0 : i32
    return %c0_i32, %c0_i32_0 : i32, i32
  }
  func.func @transform_2(%arg0: i32, %arg1: i32) -> (i32, i32) {
    %c0_i32 = arith.constant 0 : i32
    %c0_i32_0 = arith.constant 0 : i32
    %c0_i32_1 = arith.constant 0 : i32
    return %c0_i32, %c0_i32_0 : i32, i32
  }
  func.func @transform_3(%arg0: i32, %arg1: i32) -> (i32, i32) {
    %c0_i32 = arith.constant 0 : i32
    %c0_i32_0 = arith.constant 0 : i32
    %c0_i32_1 = arith.constant 0 : i32
    return %c0_i32, %c0_i32_0 : i32, i32
  }
  func.func @transform_4(%arg0: i32, %arg1: i32) -> (i32, i32) {
    %c0_i32 = arith.constant 0 : i32
    %c0_i32_0 = arith.constant 0 : i32
    %c0_i32_1 = arith.constant 0 : i32
    return %c0_i32, %c0_i32_0 : i32, i32
  }
  func.func @transform_5(%arg0: i32, %arg1: i32) -> (i32, i32) {
    %c0_i32 = arith.constant 0 : i32
    %c0_i32_0 = arith.constant 0 : i32
    %c0_i32_1 = arith.constant 0 : i32
    return %c0_i32, %c0_i32_0 : i32, i32
  }
  func.func @transform_6(%arg0: i32, %arg1: i32) -> (i32, i32, i32) {
    %c0_i32 = arith.constant 0 : i32
    %c0_i32_0 = arith.constant 0 : i32
    %c0_i32_1 = arith.constant 0 : i32
    %c0_i32_2 = arith.constant 0 : i32
    return %c0_i32, %c0_i32_0, %c0_i32_1 : i32, i32, i32
  }
  func.func @transform_7(%arg0: i32, %arg1: i32) -> (i32, i32, i32) {
    %c0_i32 = arith.constant 0 : i32
    %c0_i32_0 = arith.constant 0 : i32
    return %arg0, %c0_i32, %arg1 : i32, i32, i32
  }
}

</mosaic_0001>

<bundles_post_ra>
// kernel: tpu_custom_call.1
= control target key start
LH: loop header
LB: loop body
LE: loop exit
PB: predicated region body
PF: predicated region fallthrough
CT: control target
= control target key end

     0   :  { %12 = vsyncpa [#allocation6], 0  ;;  %s14220_s0 = inlined_call_operand.vmem [shape: f32[2,8,64,8], index: 0, kind: input, shape index: {}]   ;;  %s14221_s1 = inlined_call_operand.vmem [shape: f32[1,8], index: 1, kind: input, shape index: {}]   ;;  %s14222_s2 = inlined_call_operand.vmem [shape: f32[1,8], index: 2, kind: input, shape index: {}]   ;;  %s14223_s3 = inlined_call_operand.vmem [shape: f32[8,32], index: 3, kind: input, shape index: {}]   ;;  %s14224_s4 = inlined_call_operand.vmem [shape: f32[1,32], index: 4, kind: input, shape index: {}]   ;;  %s14225_s5 = inlined_call_operand.vmem [shape: f32[1,32], index: 5, kind: input, shape index: {}]   ;;  %s14226_s6 = inlined_call_operand.vmem [shape: bf16[3,32,72], index: 6, kind: input, shape index: {}]   ;;  %s14227_s7 = inlined_call_operand.hbm [shape: f32[2,8,512], index: 7, kind: output, shape index: {}]  }
   0x1   :  { %14 = vsyncpa [#allocation6 + $0x1], 0  ;;  %s9886_s24 = smov 0   ;;  %s9888_s25 = smov 0  }
   0x2   :  { %s9890_s26 = smov 0   ;;  %s9892_s27 = smov 0  }
   0x3   :  { %s9894_s28 = smov 0   ;;  %s9896_s29 = smov 0  }
   0x4 LB: > { %s8125_s30 = sadd.s32 4294967295, %s9831_s29   ;;  %s8126_s8 = sadd.s32 4294967294, %s9831_s29   ;;  %s9831_s29 = sphi %s9896_s29, %s20_s29   ;;  %s9827_s28 = sphi %s9894_s28, %s15473_s28   ;;  %s9823_s27 = sphi %s9892_s27, %s15472_s27   ;;  %s9819_s26 = sphi %s9890_s26, %s15471_s26   ;;  %s9815_s25 = sphi %s9888_s25, %s15470_s25   ;;  %s9811_s24 = sphi %s9886_s24, %s15469_s24  }
   0x5   : > { %s32_s9 = sadd.s32 1, %s9827_s28  ;;  %s167_s10 = sadd.s32 1, %s9819_s26 }
   0x6   : > { %p34_p0 = scmp.ge.s32.totalorder %s32_s9, 2  ;;  %p177_p1 = scmp.ne.s32.totalorder %s9819_s26, %s9815_s25 }
   0x7   : > { %p178_p2 = scmp.eq.s32.totalorder %s8125_s30, 1  ;;  %p183_p3 = scmp.ne.s32.totalorder %s9815_s25, %s9811_s24 }
   0x8   : > { %s15475_s9 = smov (%p34_p0, %s32_s9), 0  ;;  %p184_p5 = scmp.eq.s32.totalorder %s8126_s8, 1 }
   0x9   : > { %p9926_p4 = por %p178_p2, %p177_p1  ;;  %s162_s12 = ssub.s32 %s9827_s28, %s15475_s9 }
   0xa   : > { %p8128_p6 = scmp.ge.s32.totalorder %s9831_s29, 1  ;;  %p165_p7 = scmp.eq.s32.totalorder %s162_s12, 0 }
   0xb   : > { %p9933_p8 = por %p184_p5, %p183_p3  ;;  %p220_p9 = scmp.lt.s32.totalorder %s9831_s29, 3 }
   0xc   : > { %s9939_s14 = scalar_select %p165_p7, %s9819_s26, %s167_s10  }
   0xd   : > { %p221_p10 = pnand %p8128_p6, %p220_p9 }
   0xf   : > { %224 = sbr.rel (%p221_p10) target bundleno = 2404 (0x964), region = 44 }
  0x14   : > { %s242_s15 = sand.u32 1, %s9815_s25   ;;  %s8130_s16 = sshll.u32 %s9823_s27, 9 }
  0x15   : > { %s9945_s17 = sshll.u32 %s242_s15, 5  ;;  %s9950_s20 = scalar_lea.vmem %s14220_s0, %s8130_s16 }
  0x16   : > { %v267_v0 = vld [vmem:[%s9950_s20] sm:$0xff]  ;;  %v269_v1 = vld [vmem:[%s9950_s20 + $0x8] sm:$0xff]  ;;  %v271_v2 = vld [vmem:[%s9950_s20 + $0x10] sm:$0xff]  ;;  %s10017_s21 = scalar_lea.vmem [#allocation5], %s9945_s17 }
  0x17   : > { %268 = vst [vmem:[#allocation2] sm:$0xff] %v267_v0  ;;  %v273_v3 = vld [vmem:[%s9950_s20 + $0x18] sm:$0xff]  ;;  %v275_v4 = vld [vmem:[%s9950_s20 + $0x20] sm:$0xff]  ;;  %v277_v5 = vld [vmem:[%s9950_s20 + $0x28] sm:$0xff] }
  0x18   : > { %270 = vst [vmem:[#allocation2 + $0x8] sm:$0xff] %v269_v1  ;;  %v279_v6 = vld [vmem:[%s9950_s20 + $0x30] sm:$0xff]  ;;  %v281_v7 = vld [vmem:[%s9950_s20 + $0x38] sm:$0xff]  ;;  %v283_v8 = vld [vmem:[%s9950_s20 + $0x40] sm:$0xff] }
  0x19   : > { %272 = vst [vmem:[#allocation2 + $0x10] sm:$0xff] %v271_v2  ;;  %v285_v9 = vld [vmem:[%s9950_s20 + $0x48] sm:$0xff]  ;;  %v287_v10 = vld [vmem:[%s9950_s20 + $0x50] sm:$0xff]  ;;  %v289_v11 = vld [vmem:[%s9950_s20 + $0x58] sm:$0xff] }
  0x1a   : > { %274 = vst [vmem:[#allocation2 + $0x18] sm:$0xff] %v273_v3  ;;  %v291_v12 = vld [vmem:[%s9950_s20 + $0x60] sm:$0xff]  ;;  %v293_v13 = vld [vmem:[%s9950_s20 + $0x68] sm:$0xff]  ;;  %v295_v14 = vld [vmem:[%s9950_s20 + $0x70] sm:$0xff] }
  0x1b   : > { %276 = vst [vmem:[#allocation2 + $0x20] sm:$0xff] %v275_v4  ;;  %v297_v15 = vld [vmem:[%s9950_s20 + $0x78] sm:$0xff]  ;;  %v299_v16 = vld [vmem:[%s9950_s20 + $0x80] sm:$0xff]  ;;  %v301_v17 = vld [vmem:[%s9950_s20 + $0x88] sm:$0xff] }
  0x1c   : > { %278 = vst [vmem:[#allocation2 + $0x28] sm:$0xff] %v277_v5  ;;  %v303_v18 = vld [vmem:[%s9950_s20 + $0x90] sm:$0xff]  ;;  %v305_v19 = vld [vmem:[%s9950_s20 + $0x98] sm:$0xff]  ;;  %v307_v20 = vld [vmem:[%s9950_s20 + $0xa0] sm:$0xff] }
  0x1d   : > { %280 = vst [vmem:[#allocation2 + $0x30] sm:$0xff] %v279_v6  ;;  %v309_v21 = vld [vmem:[%s9950_s20 + $0xa8] sm:$0xff]  ;;  %v311_v22 = vld [vmem:[%s9950_s20 + $0xb0] sm:$0xff]  ;;  %v313_v23 = vld [vmem:[%s9950_s20 + $0xb8] sm:$0xff] }
  0x1e   : > { %282 = vst [vmem:[#allocation2 + $0x38] sm:$0xff] %v281_v7  ;;  %v315_v24 = vld [vmem:[%s9950_s20 + $0xc0] sm:$0xff]  ;;  %v317_v25 = vld [vmem:[%s9950_s20 + $0xc8] sm:$0xff]  ;;  %v319_v26 = vld [vmem:[%s9950_s20 + $0xd0] sm:$0xff] }
  0x1f   : > { %284 = vst [vmem:[#allocation2 + $0x40] sm:$0xff] %v283_v8  ;;  %v321_v27 = vld [vmem:[%s9950_s20 + $0xd8] sm:$0xff]  ;;  %v323_v28 = vld [vmem:[%s9950_s20 + $0xe0] sm:$0xff]  ;;  %v325_v29 = vld [vmem:[%s9950_s20 + $0xe8] sm:$0xff] }
  0x20   : > { %286 = vst [vmem:[#allocation2 + $0x48] sm:$0xff] %v285_v9  ;;  %v327_v30 = vld [vmem:[%s9950_s20 + $0xf0] sm:$0xff]  ;;  %v329_v31 = vld [vmem:[%s9950_s20 + $0xf8] sm:$0xff]  ;;  %v331_v32 = vld [vmem:[%s9950_s20 + $0x100] sm:$0xff] }
  0x21   : > { %288 = vst [vmem:[#allocation2 + $0x50] sm:$0xff] %v287_v10  ;;  %v333_v33 = vld [vmem:[%s9950_s20 + $0x108] sm:$0xff]  ;;  %v335_v34 = vld [vmem:[%s9950_s20 + $0x110] sm:$0xff]  ;;  %v337_v35 = vld [vmem:[%s9950_s20 + $0x118] sm:$0xff] }
  0x22   : > { %290 = vst [vmem:[#allocation2 + $0x58] sm:$0xff] %v289_v11  ;;  %v339_v36 = vld [vmem:[%s9950_s20 + $0x120] sm:$0xff]  ;;  %v341_v37 = vld [vmem:[%s9950_s20 + $0x128] sm:$0xff]  ;;  %v343_v38 = vld [vmem:[%s9950_s20 + $0x130] sm:$0xff] }
  0x23   : > { %292 = vst [vmem:[#allocation2 + $0x60] sm:$0xff] %v291_v12  ;;  %v345_v39 = vld [vmem:[%s9950_s20 + $0x138] sm:$0xff]  ;;  %v347_v40 = vld [vmem:[%s9950_s20 + $0x140] sm:$0xff]  ;;  %v349_v41 = vld [vmem:[%s9950_s20 + $0x148] sm:$0xff] }
  0x24   : > { %294 = vst [vmem:[#allocation2 + $0x68] sm:$0xff] %v293_v13  ;;  %v351_v42 = vld [vmem:[%s9950_s20 + $0x150] sm:$0xff]  ;;  %v353_v43 = vld [vmem:[%s9950_s20 + $0x158] sm:$0xff]  ;;  %v355_v44 = vld [vmem:[%s9950_s20 + $0x160] sm:$0xff] }
  0x25   : > { %296 = vst [vmem:[#allocation2 + $0x70] sm:$0xff] %v295_v14  ;;  %v357_v45 = vld [vmem:[%s9950_s20 + $0x168] sm:$0xff]  ;;  %v359_v46 = vld [vmem:[%s9950_s20 + $0x170] sm:$0xff]  ;;  %v361_v47 = vld [vmem:[%s9950_s20 + $0x178] sm:$0xff] }
  0x26   : > { %298 = vst [vmem:[#allocation2 + $0x78] sm:$0xff] %v297_v15  ;;  %v363_v48 = vld [vmem:[%s9950_s20 + $0x180] sm:$0xff]  ;;  %v365_v49 = vld [vmem:[%s9950_s20 + $0x188] sm:$0xff]  ;;  %v367_v50 = vld [vmem:[%s9950_s20 + $0x190] sm:$0xff] }
  0x27   : > { %300 = vst [vmem:[#allocation2 + $0x80] sm:$0xff] %v299_v16  ;;  %v369_v51 = vld [vmem:[%s9950_s20 + $0x198] sm:$0xff]  ;;  %v371_v52 = vld [vmem:[%s9950_s20 + $0x1a0] sm:$0xff]  ;;  %v373_v53 = vld [vmem:[%s9950_s20 + $0x1a8] sm:$0xff] }
  0x28   : > { %302 = vst [vmem:[#allocation2 + $0x88] sm:$0xff] %v301_v17  ;;  %v375_v54 = vld [vmem:[%s9950_s20 + $0x1b0] sm:$0xff]  ;;  %v377_v55 = vld [vmem:[%s9950_s20 + $0x1b8] sm:$0xff]  ;;  %v379_v56 = vld [vmem:[%s9950_s20 + $0x1c0] sm:$0xff] }
  0x29   : > { %304 = vst [vmem:[#allocation2 + $0x90] sm:$0xff] %v303_v18  ;;  %v381_v57 = vld [vmem:[%s9950_s20 + $0x1c8] sm:$0xff]  ;;  %v383_v58 = vld [vmem:[%s9950_s20 + $0x1d0] sm:$0xff]  ;;  %v385_v59 = vld [vmem:[%s9950_s20 + $0x1d8] sm:$0xff] }
  0x2a   : > { %306 = vst [vmem:[#allocation2 + $0x98] sm:$0xff] %v305_v19  ;;  %v387_v60 = vld [vmem:[%s9950_s20 + $0x1e0] sm:$0xff]  ;;  %v389_v61 = vld [vmem:[%s9950_s20 + $0x1e8] sm:$0xff]  ;;  %v391_v62 = vld [vmem:[%s9950_s20 + $0x1f0] sm:$0xff] }
  0x2b   : > { %308 = vst [vmem:[#allocation2 + $0xa0] sm:$0xff] %v307_v20  ;;  %v393_v63 = vld [vmem:[%s9950_s20 + $0x1f8] sm:$0xff] }
  0x2c   : > { %310 = vst [vmem:[#allocation2 + $0xa8] sm:$0xff] %v309_v21 }
  0x2d   : > { %312 = vst [vmem:[#allocation2 + $0xb0] sm:$0xff] %v311_v22 }
  0x2e   : > { %314 = vst [vmem:[#allocation2 + $0xb8] sm:$0xff] %v313_v23 }
  0x2f   : > { %316 = vst [vmem:[#allocation2 + $0xc0] sm:$0xff] %v315_v24 }
  0x30   : > { %318 = vst [vmem:[#allocation2 + $0xc8] sm:$0xff] %v317_v25 }
  0x31   : > { %320 = vst [vmem:[#allocation2 + $0xd0] sm:$0xff] %v319_v26 }
  0x32   : > { %322 = vst [vmem:[#allocation2 + $0xd8] sm:$0xff] %v321_v27 }
  0x33   : > { %324 = vst [vmem:[#allocation2 + $0xe0] sm:$0xff] %v323_v28 }
  0x34   : > { %326 = vst [vmem:[#allocation2 + $0xe8] sm:$0xff] %v325_v29 }
  0x35   : > { %328 = vst [vmem:[#allocation2 + $0xf0] sm:$0xff] %v327_v30 }
  0x36   : > { %330 = vst [vmem:[#allocation2 + $0xf8] sm:$0xff] %v329_v31 }
  0x37   : > { %332 = vst [vmem:[#allocation2 + $0x100] sm:$0xff] %v331_v32 }
  0x38   : > { %334 = vst [vmem:[#allocation2 + $0x108] sm:$0xff] %v333_v33 }
  0x39   : > { %336 = vst [vmem:[#allocation2 + $0x110] sm:$0xff] %v335_v34 }
  0x3a   : > { %338 = vst [vmem:[#allocation2 + $0x118] sm:$0xff] %v337_v35 }
  0x3b   : > { %340 = vst [vmem:[#allocation2 + $0x120] sm:$0xff] %v339_v36 }
  0x3c   : > { %342 = vst [vmem:[#allocation2 + $0x128] sm:$0xff] %v341_v37 }
  0x3d   : > { %344 = vst [vmem:[#allocation2 + $0x130] sm:$0xff] %v343_v38 }
  0x3e   : > { %346 = vst [vmem:[#allocation2 + $0x138] sm:$0xff] %v345_v39 }
  0x3f   : > { %348 = vst [vmem:[#allocation2 + $0x140] sm:$0xff] %v347_v40 }
  0x40   : > { %350 = vst [vmem:[#allocation2 + $0x148] sm:$0xff] %v349_v41 }
  0x41   : > { %352 = vst [vmem:[#allocation2 + $0x150] sm:$0xff] %v351_v42 }
  0x42   : > { %354 = vst [vmem:[#allocation2 + $0x158] sm:$0xff] %v353_v43 }
  0x43   : > { %356 = vst [vmem:[#allocation2 + $0x160] sm:$0xff] %v355_v44 }
  0x44   : > { %358 = vst [vmem:[#allocation2 + $0x168] sm:$0xff] %v357_v45 }
  0x45   : > { %360 = vst [vmem:[#allocation2 + $0x170] sm:$0xff] %v359_v46 }
  0x46   : > { %362 = vst [vmem:[#allocation2 + $0x178] sm:$0xff] %v361_v47 }
  0x47   : > { %364 = vst [vmem:[#allocation2 + $0x180] sm:$0xff] %v363_v48 }
  0x48   : > { %366 = vst [vmem:[#allocation2 + $0x188] sm:$0xff] %v365_v49 }
  0x49   : > { %368 = vst [vmem:[#allocation2 + $0x190] sm:$0xff] %v367_v50 }
  0x4a   : > { %370 = vst [vmem:[#allocation2 + $0x198] sm:$0xff] %v369_v51 }
  0x4b   : > { %372 = vst [vmem:[#allocation2 + $0x1a0] sm:$0xff] %v371_v52 }
  0x4c   : > { %374 = vst [vmem:[#allocation2 + $0x1a8] sm:$0xff] %v373_v53 }
  0x4d   : > { %376 = vst [vmem:[#allocation2 + $0x1b0] sm:$0xff] %v375_v54 }
  0x4e   : > { %378 = vst [vmem:[#allocation2 + $0x1b8] sm:$0xff] %v377_v55 }
  0x4f   : > { %380 = vst [vmem:[#allocation2 + $0x1c0] sm:$0xff] %v379_v56 }
  0x50   : > { %382 = vst [vmem:[#allocation2 + $0x1c8] sm:$0xff] %v381_v57 }
  0x51   : > { %384 = vst [vmem:[#allocation2 + $0x1d0] sm:$0xff] %v383_v58 }
  0x52   : > { %386 = vst [vmem:[#allocation2 + $0x1d8] sm:$0xff] %v385_v59 }
  0x53   : > { %388 = vst [vmem:[#allocation2 + $0x1e0] sm:$0xff] %v387_v60 }
  0x54   : > { %390 = vst [vmem:[#allocation2 + $0x1e8] sm:$0xff] %v389_v61 }
  0x55   : > { %392 = vst [vmem:[#allocation2 + $0x1f0] sm:$0xff] %v391_v62 }
  0x56   : > { %394 = vst [vmem:[#allocation2 + $0x1f8] sm:$0xff] %v393_v63 }
  0x57   : > { %400 = vsyncadd [#allocation4], 8192  ;;  %vm401_vm0 = vcmask 257024   ;;  %v9837_v0 = vmov 0   ;;  %v10030_v1 = vld [vmem:[%s14221_s1] sm:$0x1] }
  0x58   : > { %402 = vst.msk [vmem:[#allocation3] sm:$0xf] %vm401_vm0, %v9837_v0  ;;  %v10035_v2 = vld [vmem:[%s14222_s2] sm:$0x1]  ;;  %vm443_vm1 = vcmask 253952  }
  0x59   : > { %403 = vst.msk [vmem:[#allocation3 + $0x4] sm:$0xf] %vm401_vm0, %v9837_v0  ;;  %v10041_v3 = vld [vmem:[%s14224_s4] sm:$0x1]  ;;  %vm444_vm2 = vsmask.f32 256 }
  0x5a   : > { %404 = vst.msk [vmem:[#allocation3 + $0x50] sm:$0xf] %vm401_vm0, %v9837_v0  ;;  %v10046_v4 = vld [vmem:[%s14225_s5] sm:$0x1]  ;;  %vm10079_vm3 = vmand %vm443_vm1, %vm444_vm2  ;;  %v449_v8 = vld [vmem:[#allocation3 + $0x8] sm:$0x1] }
  0x5b   : > { %405 = vst.msk [vmem:[#allocation3 + $0x54] sm:$0xf] %vm401_vm0, %v9837_v0  ;;  %v10052_v5 = vld [vmem:[%s14223_s3] sm:$0xff]  ;;  %v452_v9 = vld [vmem:[#allocation3 + $0x10] sm:$0x1]  ;;  %v450_v12 = vsel %vm10079_vm3, 0, %v449_v8 }
  0x5c   : > { %406 = vst.msk [vmem:[#allocation3 + $0xa0] sm:$0xf] %vm401_vm0, %v9837_v0  ;;  %v455_v11 = vld [vmem:[#allocation3 + $0x18] sm:$0x1]  ;;  %v453_v13 = vsel %vm10079_vm3, 0, %v452_v9 }
  0x5d   : > { %407 = vst.msk [vmem:[#allocation3 + $0xa4] sm:$0xf] %vm401_vm0, %v9837_v0  ;;  %v458_v14 = vld [vmem:[#allocation3 + $0x20] sm:$0x1]  ;;  %v461_v15 = vld [vmem:[#allocation3 + $0x28] sm:$0x1] }
  0x5e   : > { %408 = vst.msk [vmem:[#allocation3 + $0xf0] sm:$0xf] %vm401_vm0, %v9837_v0  ;;  %v464_v16 = vld [vmem:[#allocation3 + $0x30] sm:$0x1]  ;;  %v456_v17 = vsel %vm10079_vm3, 0, %v455_v11  ;;  %v459_v18 = vsel %vm10079_vm3, 0, %v458_v14 }
  0x5f   : > { %409 = vst.msk [vmem:[#allocation3 + $0xf4] sm:$0xf] %vm401_vm0, %v9837_v0  ;;  %v446_v7 = vld [vmem:[#allocation3] sm:$0x1]  ;;  %v467_v19 = vld [vmem:[#allocation3 + $0x38] sm:$0x1] }
  0x60   : > { %410 = vst.msk [vmem:[#allocation3 + $0x140] sm:$0xf] %vm401_vm0, %v9837_v0  ;;  %v447_v10 = vsel %vm10079_vm3, 0, %v446_v7  ;;  %v462_v20 = vsel %vm10079_vm3, 0, %v461_v15  ;;  %v465_v21 = vsel %vm10079_vm3, 0, %v464_v16  ;;  %v468_v25 = vsel %vm10079_vm3, 0, %v467_v19 }
  0x61   : > { %411 = vst.msk [vmem:[#allocation3 + $0x144] sm:$0xf] %vm401_vm0, %v9837_v0  ;;  %v470_v22 = vld [vmem:[#allocation3 + $0x40] sm:$0x1]  ;;  %v476_v24 = vld [vmem:[#allocation3 + $0x50] sm:$0x1] }
  0x62   : > { %412 = vst.msk [vmem:[#allocation3 + $0x190] sm:$0xf] %vm401_vm0, %v9837_v0  ;;  %v471_v26 = vsel %vm10079_vm3, 0, %v470_v22  ;;  %v479_v27 = vld [vmem:[#allocation3 + $0x58] sm:$0x1]  ;;  %v477_v29 = vsel %vm10079_vm3, 0, %v476_v24 }
  0x63   : > { %413 = vst.msk [vmem:[#allocation3 + $0x194] sm:$0xf] %vm401_vm0, %v9837_v0  ;;  %v482_v30 = vld [vmem:[#allocation3 + $0x60] sm:$0x1]  ;;  %v485_v31 = vld [vmem:[#allocation3 + $0x68] sm:$0x1] }
  0x64   : > { %414 = vst.msk [vmem:[#allocation3 + $0x1e0] sm:$0xf] %vm401_vm0, %v9837_v0  ;;  %v488_v32 = vld [vmem:[#allocation3 + $0x70] sm:$0x1]  ;;  %v480_v33 = vsel %vm10079_vm3, 0, %v479_v27  ;;  %v483_v34 = vsel %vm10079_vm3, 0, %v482_v30 }
  0x65   : > { %415 = vst.msk [vmem:[#allocation3 + $0x1e4] sm:$0xf] %vm401_vm0, %v9837_v0  ;;  %v491_v35 = vld [vmem:[#allocation3 + $0x78] sm:$0x1]  ;;  %v486_v36 = vsel %vm10079_vm3, 0, %v485_v31  ;;  %v489_v37 = vsel %vm10079_vm3, 0, %v488_v32 }
  0x66   : > { %416 = vst.msk [vmem:[#allocation3 + $0x230] sm:$0xf] %vm401_vm0, %v9837_v0  ;;  %v494_v38 = vld [vmem:[#allocation3 + $0x80] sm:$0x1]  ;;  %v497_v39 = vld [vmem:[#allocation3 + $0x88] sm:$0x1] }
  0x67   : > { %417 = vst.msk [vmem:[#allocation3 + $0x234] sm:$0xf] %vm401_vm0, %v9837_v0  ;;  %v500_v40 = vld [vmem:[#allocation3 + $0x90] sm:$0x1]  ;;  %v492_v41 = vsel %vm10079_vm3, 0, %v491_v35  ;;  %v495_v42 = vsel %vm10079_vm3, 0, %v494_v38 }
  0x68   : > { %418 = vst.msk [vmem:[#allocation3 + $0x280] sm:$0xf] %vm401_vm0, %v9837_v0  ;;  %v498_v44 = vsel %vm10079_vm3, 0, %v497_v39  ;;  %v501_v45 = vsel %vm10079_vm3, 0, %v500_v40  ;;  %v506_v46 = vld [vmem:[#allocation3 + $0xa0] sm:$0x1] }
  0x69   : > { %419 = vst.msk [vmem:[#allocation3 + $0x284] sm:$0xf] %vm401_vm0, %v9837_v0  ;;  %v509_v47 = vld [vmem:[#allocation3 + $0xa8] sm:$0x1]  ;;  %v512_v48 = vld [vmem:[#allocation3 + $0xb0] sm:$0x1] }
  0x6a   : > { %420 = vst.msk [vmem:[#allocation3 + $0x2d0] sm:$0xf] %vm401_vm0, %v9837_v0  ;;  %v507_v50 = vsel %vm10079_vm3, 0, %v506_v46  ;;  %v515_v51 = vld [vmem:[#allocation3 + $0xb8] sm:$0x1]  ;;  %v510_v52 = vsel %vm10079_vm3, 0, %v509_v47 }
  0x6b   : > { %421 = vst.msk [vmem:[#allocation3 + $0x2d4] sm:$0xf] %vm401_vm0, %v9837_v0  ;;  %v513_v53 = vsel %vm10079_vm3, 0, %v512_v48  ;;  %v518_v54 = vld [vmem:[#allocation3 + $0xc0] sm:$0x1]  ;;  %v516_v57 = vsel %vm10079_vm3, 0, %v515_v51 }
  0x6c   : > { %423 = vst.msk [vmem:[#allocation3 + $0x48] sm:$0xf] %vm401_vm0, %v9837_v0  ;;  %v521_v55 = vld [vmem:[#allocation3 + $0xc8] sm:$0x1]  ;;  %v524_v56 = vld [vmem:[#allocation3 + $0xd0] sm:$0x1] }
  0x6d   : > { %424 = vst.msk [vmem:[#allocation3 + $0x4c] sm:$0xf] %vm401_vm0, %v9837_v0  ;;  %v519_v58 = vsel %vm10079_vm3, 0, %v518_v54  ;;  %v527_v59 = vld [vmem:[#allocation3 + $0xd8] sm:$0x1]  ;;  %v522_v60 = vsel %vm10079_vm3, 0, %v521_v55 }
  0x6e   : > { %425 = vst.msk [vmem:[#allocation3 + $0x98] sm:$0xf] %vm401_vm0, %v9837_v0  ;;  %v525_v61 = vsel %vm10079_vm3, 0, %v524_v56  ;;  %v530_v62 = vld [vmem:[#allocation3 + $0xe0] sm:$0x1]  ;;  %v528_v7 = vsel %vm10079_vm3, 0, %v527_v59 }
  0x6f   : > { %426 = vst.msk [vmem:[#allocation3 + $0x9c] sm:$0xf] %vm401_vm0, %v9837_v0  ;;  %v531_v8 = vsel %vm10079_vm3, 0, %v530_v62  ;;  %v539_v9 = vld [vmem:[#allocation3 + $0xf8] sm:$0x1] }
  0x70   : > { %427 = vst.msk [vmem:[#allocation3 + $0xe8] sm:$0xf] %vm401_vm0, %v9837_v0  ;;  %v548_v14 = vld [vmem:[#allocation3 + $0x110] sm:$0x1]  ;;  %v540_v15 = vsel %vm10079_vm3, 0, %v539_v9 }
  0x71   : > { %428 = vst.msk [vmem:[#allocation3 + $0xec] sm:$0xf] %vm401_vm0, %v9837_v0  ;;  %v549_v19 = vsel %vm10079_vm3, 0, %v548_v14  ;;  %v560_v22 = vld [vmem:[#allocation3 + $0x130] sm:$0x1] }
  0x72   : > { %429 = vst.msk [vmem:[#allocation3 + $0x138] sm:$0xf] %vm401_vm0, %v9837_v0  ;;  %v561_v27 = vsel %vm10079_vm3, 0, %v560_v22  ;;  %v572_v30 = vld [vmem:[#allocation3 + $0x150] sm:$0x1] }
  0x73   : > { %430 = vst.msk [vmem:[#allocation3 + $0x13c] sm:$0xf] %vm401_vm0, %v9837_v0  ;;  %v473_v23 = vld [vmem:[#allocation3 + $0x48] sm:$0x1]  ;;  %v573_v35 = vsel %vm10079_vm3, 0, %v572_v30 }
  0x74   : > { %431 = vst.msk [vmem:[#allocation3 + $0x188] sm:$0xf] %vm401_vm0, %v9837_v0  ;;  %v474_v28 = vsel %vm10079_vm3, 0, %v473_v23  ;;  %v584_v38 = vld [vmem:[#allocation3 + $0x170] sm:$0x1] }
  0x75   : > { %432 = vst.msk [vmem:[#allocation3 + $0x18c] sm:$0xf] %vm401_vm0, %v9837_v0  ;;  %v503_v43 = vld [vmem:[#allocation3 + $0x98] sm:$0x1]  ;;  %v596_v46 = vld [vmem:[#allocation3 + $0x190] sm:$0x1] }
  0x76   : > { %433 = vst.msk [vmem:[#allocation3 + $0x1d8] sm:$0xf] %vm401_vm0, %v9837_v0  ;;  %v504_v49 = vsel %vm10079_vm3, 0, %v503_v43  ;;  %v585_v43 = vsel %vm10079_vm3, 0, %v584_v38  ;;  %v597_v51 = vsel %vm10079_vm3, 0, %v596_v46 }
  0x77   : > { %434 = vst.msk [vmem:[#allocation3 + $0x1dc] sm:$0xf] %vm401_vm0, %v9837_v0  ;;  %v533_v63 = vld [vmem:[#allocation3 + $0xe8] sm:$0x1]  ;;  %v608_v54 = vld [vmem:[#allocation3 + $0x1b0] sm:$0x1] }
  0x78   : > { %435 = vst.msk [vmem:[#allocation3 + $0x228] sm:$0xf] %vm401_vm0, %v9837_v0  ;;  %v609_v59 = vsel %vm10079_vm3, 0, %v608_v54  ;;  %v620_v62 = vld [vmem:[#allocation3 + $0x1d0] sm:$0x1] }
  0x79   : > { %436 = vst.msk [vmem:[#allocation3 + $0x22c] sm:$0xf] %vm401_vm0, %v9837_v0  ;;  %v621_v9 = vsel %vm10079_vm3, 0, %v620_v62  ;;  %vm747_vm4 = vsmask.f32 7938 }
  0x7a   : > { %437 = vst.msk [vmem:[#allocation3 + $0x278] sm:$0xf] %vm401_vm0, %v9837_v0  ;;  %vm10285_vm5 = vmand %vm401_vm0, %vm747_vm4 }
  0x7b   : > { %438 = vst.msk [vmem:[#allocation3 + $0x27c] sm:$0xf] %vm401_vm0, %v9837_v0 }
  0x7c   : > { %439 = vst.msk [vmem:[#allocation3 + $0x2c8] sm:$0xf] %vm401_vm0, %v9837_v0 }
  0x7d   : > { %440 = vst.msk [vmem:[#allocation3 + $0x2cc] sm:$0xf] %vm401_vm0, %v9837_v0 }
  0x7e   : > { %441 = vst.msk [vmem:[#allocation3 + $0x318] sm:$0xf] %vm401_vm0, %v9837_v0 }
  0x7f   : > { %442 = vst.msk [vmem:[#allocation3 + $0x31c] sm:$0xf] %vm401_vm0, %v9837_v0  ;;  %v536_v0 = vld [vmem:[#allocation3 + $0xf0] sm:$0x1] }
  0x80   : > { %448 = vst [vmem:[#allocation3] sm:$0x1] %v447_v10  ;;  %v534_v10 = vsel %vm10079_vm3, 0, %v533_v63  ;;  %v537_v11 = vsel %vm10079_vm3, 0, %v536_v0 }
  0x81   : > { %451 = vst [vmem:[#allocation3 + $0x8] sm:$0x1] %v450_v12  ;;  %v542_v12 = vld [vmem:[#allocation3 + $0x100] sm:$0x1] }
  0x82   : > { %454 = vst [vmem:[#allocation3 + $0x10] sm:$0x1] %v453_v13  ;;  %v545_v13 = vld [vmem:[#allocation3 + $0x108] sm:$0x1]  ;;  %v543_v16 = vsel %vm10079_vm3, 0, %v542_v12 }
  0x83   : > { %457 = vst [vmem:[#allocation3 + $0x18] sm:$0x1] %v456_v17  ;;  %v551_v17 = vld [vmem:[#allocation3 + $0x118] sm:$0x1]  ;;  %v632_v12 = vld [vmem:[#allocation3 + $0x1f0] sm:$0x1] }
  0x84   : > { %460 = vst [vmem:[#allocation3 + $0x20] sm:$0x1] %v459_v18  ;;  %v546_v18 = vsel %vm10079_vm3, 0, %v545_v13  ;;  %v552_v23 = vsel %vm10079_vm3, 0, %v551_v17  ;;  %v633_v17 = vsel %vm10079_vm3, 0, %v632_v12 }
  0x85   : > { %463 = vst [vmem:[#allocation3 + $0x28] sm:$0x1] %v462_v20  ;;  %v554_v20 = vld [vmem:[#allocation3 + $0x120] sm:$0x1] }
  0x86   : > { %466 = vst [vmem:[#allocation3 + $0x30] sm:$0x1] %v465_v21  ;;  %v557_v21 = vld [vmem:[#allocation3 + $0x128] sm:$0x1]  ;;  %v555_v24 = vsel %vm10079_vm3, 0, %v554_v20 }
  0x87   : > { %469 = vst [vmem:[#allocation3 + $0x38] sm:$0x1] %v468_v25  ;;  %v563_v25 = vld [vmem:[#allocation3 + $0x138] sm:$0x1]  ;;  %v644_v20 = vld [vmem:[#allocation3 + $0x210] sm:$0x1] }
  0x88   : > { %472 = vst [vmem:[#allocation3 + $0x40] sm:$0x1] %v471_v26  ;;  %v558_v26 = vsel %vm10079_vm3, 0, %v557_v21  ;;  %v564_v31 = vsel %vm10079_vm3, 0, %v563_v25  ;;  %v645_v25 = vsel %vm10079_vm3, 0, %v644_v20 }
  0x89   : > { %475 = vst [vmem:[#allocation3 + $0x48] sm:$0x1] %v474_v28  ;;  %v566_v28 = vld [vmem:[#allocation3 + $0x140] sm:$0x1] }
  0x8a   : > { %478 = vst [vmem:[#allocation3 + $0x50] sm:$0x1] %v477_v29  ;;  %v569_v29 = vld [vmem:[#allocation3 + $0x148] sm:$0x1]  ;;  %v567_v32 = vsel %vm10079_vm3, 0, %v566_v28 }
  0x8b   : > { %481 = vst [vmem:[#allocation3 + $0x58] sm:$0x1] %v480_v33  ;;  %v575_v33 = vld [vmem:[#allocation3 + $0x158] sm:$0x1]  ;;  %v656_v28 = vld [vmem:[#allocation3 + $0x230] sm:$0x1] }
  0x8c   : > { %484 = vst [vmem:[#allocation3 + $0x60] sm:$0x1] %v483_v34  ;;  %v570_v34 = vsel %vm10079_vm3, 0, %v569_v29  ;;  %v576_v39 = vsel %vm10079_vm3, 0, %v575_v33  ;;  %v657_v33 = vsel %vm10079_vm3, 0, %v656_v28 }
  0x8d   : > { %487 = vst [vmem:[#allocation3 + $0x68] sm:$0x1] %v486_v36  ;;  %v578_v36 = vld [vmem:[#allocation3 + $0x160] sm:$0x1] }
  0x8e   : > { %490 = vst [vmem:[#allocation3 + $0x70] sm:$0x1] %v489_v37  ;;  %v581_v37 = vld [vmem:[#allocation3 + $0x168] sm:$0x1]  ;;  %v579_v40 = vsel %vm10079_vm3, 0, %v578_v36 }
  0x8f   : > { %493 = vst [vmem:[#allocation3 + $0x78] sm:$0x1] %v492_v41  ;;  %v587_v41 = vld [vmem:[#allocation3 + $0x178] sm:$0x1]  ;;  %v668_v36 = vld [vmem:[#allocation3 + $0x250] sm:$0x1] }
  0x90   : > { %496 = vst [vmem:[#allocation3 + $0x80] sm:$0x1] %v495_v42  ;;  %v582_v42 = vsel %vm10079_vm3, 0, %v581_v37  ;;  %v588_v47 = vsel %vm10079_vm3, 0, %v587_v41  ;;  %v669_v41 = vsel %vm10079_vm3, 0, %v668_v36 }
  0x91   : > { %499 = vst [vmem:[#allocation3 + $0x88] sm:$0x1] %v498_v44  ;;  %v590_v44 = vld [vmem:[#allocation3 + $0x180] sm:$0x1]  ;;  %v755_v36 = vld [vmem:[#allocation3 + $0x14] sm:$0xf] }
  0x92   : > { %502 = vst [vmem:[#allocation3 + $0x90] sm:$0x1] %v501_v45  ;;  %v593_v45 = vld [vmem:[#allocation3 + $0x188] sm:$0x1]  ;;  %v591_v48 = vsel %vm10079_vm3, 0, %v590_v44 }
  0x93   : > { %505 = vst [vmem:[#allocation3 + $0x98] sm:$0x1] %v504_v49  ;;  %v599_v49 = vld [vmem:[#allocation3 + $0x198] sm:$0x1]  ;;  %v680_v44 = vld [vmem:[#allocation3 + $0x270] sm:$0x1] }
  0x94   : > { %508 = vst [vmem:[#allocation3 + $0xa0] sm:$0x1] %v507_v50  ;;  %v594_v50 = vsel %vm10079_vm3, 0, %v593_v45  ;;  %v600_v55 = vsel %vm10079_vm3, 0, %v599_v49  ;;  %v681_v49 = vsel %vm10079_vm3, 0, %v680_v44 }
  0x95   : > { %511 = vst [vmem:[#allocation3 + $0xa8] sm:$0x1] %v510_v52  ;;  %v602_v52 = vld [vmem:[#allocation3 + $0x1a0] sm:$0x1]  ;;  %v767_v44 = vld [vmem:[#allocation3 + $0x34] sm:$0xf] }
  0x96   : > { %514 = vst [vmem:[#allocation3 + $0xb0] sm:$0x1] %v513_v53  ;;  %v605_v53 = vld [vmem:[#allocation3 + $0x1a8] sm:$0x1]  ;;  %v603_v56 = vsel %vm10079_vm3, 0, %v602_v52 }
  0x97   : > { %517 = vst [vmem:[#allocation3 + $0xb8] sm:$0x1] %v516_v57  ;;  %v611_v57 = vld [vmem:[#allocation3 + $0x1b8] sm:$0x1]  ;;  %v692_v52 = vld [vmem:[#allocation3 + $0x290] sm:$0x1] }
  0x98   : > { %520 = vst [vmem:[#allocation3 + $0xc0] sm:$0x1] %v519_v58  ;;  %v606_v58 = vsel %vm10079_vm3, 0, %v605_v53  ;;  %v612_v63 = vsel %vm10079_vm3, 0, %v611_v57  ;;  %v693_v57 = vsel %vm10079_vm3, 0, %v692_v52 }
  0x99   : > { %523 = vst [vmem:[#allocation3 + $0xc8] sm:$0x1] %v522_v60  ;;  %v614_v60 = vld [vmem:[#allocation3 + $0x1c0] sm:$0x1]  ;;  %v779_v52 = vld [vmem:[#allocation3 + $0x54] sm:$0xf] }
  0x9a   : > { %526 = vst [vmem:[#allocation3 + $0xd0] sm:$0x1] %v525_v61  ;;  %v617_v61 = vld [vmem:[#allocation3 + $0x1c8] sm:$0x1]  ;;  %v615_v0 = vsel %vm10079_vm3, 0, %v614_v60 }
  0x9b   : > { %529 = vst [vmem:[#allocation3 + $0xd8] sm:$0x1] %v528_v7  ;;  %v623_v7 = vld [vmem:[#allocation3 + $0x1d8] sm:$0x1]  ;;  %v704_v60 = vld [vmem:[#allocation3 + $0x2b0] sm:$0x1] }
  0x9c   : > { %532 = vst [vmem:[#allocation3 + $0xe0] sm:$0x1] %v531_v8  ;;  %v618_v8 = vsel %vm10079_vm3, 0, %v617_v61  ;;  %v624_v13 = vsel %vm10079_vm3, 0, %v623_v7  ;;  %v705_v7 = vsel %vm10079_vm3, 0, %v704_v60 }
  0x9d   : > { %535 = vst [vmem:[#allocation3 + $0xe8] sm:$0x1] %v534_v10  ;;  %v626_v10 = vld [vmem:[#allocation3 + $0x1e0] sm:$0x1]  ;;  %v791_v60 = vld [vmem:[#allocation3 + $0x74] sm:$0xf] }
  0x9e   : > { %538 = vst [vmem:[#allocation3 + $0xf0] sm:$0x1] %v537_v11  ;;  %v629_v11 = vld [vmem:[#allocation3 + $0x1e8] sm:$0x1]  ;;  %v627_v14 = vsel %vm10079_vm3, 0, %v626_v10 }
  0x9f   : > { %541 = vst [vmem:[#allocation3 + $0xf8] sm:$0x1] %v540_v15  ;;  %v635_v15 = vld [vmem:[#allocation3 + $0x1f8] sm:$0x1]  ;;  %v716_v10 = vld [vmem:[#allocation3 + $0x2d0] sm:$0x1] }
  0xa0   : > { %544 = vst [vmem:[#allocation3 + $0x100] sm:$0x1] %v543_v16  ;;  %v630_v16 = vsel %vm10079_vm3, 0, %v629_v11  ;;  %v636_v21 = vsel %vm10079_vm3, 0, %v635_v15  ;;  %v717_v15 = vsel %vm10079_vm3, 0, %v716_v10 }
  0xa1   : > { %547 = vst [vmem:[#allocation3 + $0x108] sm:$0x1] %v546_v18  ;;  %v638_v18 = vld [vmem:[#allocation3 + $0x200] sm:$0x1]  ;;  %v803_v10 = vld [vmem:[#allocation3 + $0x94] sm:$0xf] }
  0xa2   : > { %550 = vst [vmem:[#allocation3 + $0x110] sm:$0x1] %v549_v19  ;;  %v641_v19 = vld [vmem:[#allocation3 + $0x208] sm:$0x1]  ;;  %v639_v22 = vsel %vm10079_vm3, 0, %v638_v18 }
  0xa3   : > { %553 = vst [vmem:[#allocation3 + $0x118] sm:$0x1] %v552_v23  ;;  %v647_v23 = vld [vmem:[#allocation3 + $0x218] sm:$0x1]  ;;  %v728_v18 = vld [vmem:[#allocation3 + $0x2f0] sm:$0x1] }
  0xa4   : > { %556 = vst [vmem:[#allocation3 + $0x120] sm:$0x1] %v555_v24  ;;  %v642_v24 = vsel %vm10079_vm3, 0, %v641_v19  ;;  %v648_v29 = vsel %vm10079_vm3, 0, %v647_v23  ;;  %v729_v23 = vsel %vm10079_vm3, 0, %v728_v18 }
  0xa5   : > { %559 = vst [vmem:[#allocation3 + $0x128] sm:$0x1] %v558_v26  ;;  %v650_v26 = vld [vmem:[#allocation3 + $0x220] sm:$0x1]  ;;  %v815_v18 = vld [vmem:[#allocation3 + $0xb4] sm:$0xf] }
  0xa6   : > { %562 = vst [vmem:[#allocation3 + $0x130] sm:$0x1] %v561_v27  ;;  %v653_v27 = vld [vmem:[#allocation3 + $0x228] sm:$0x1]  ;;  %v651_v30 = vsel %vm10079_vm3, 0, %v650_v26 }
  0xa7   : > { %565 = vst [vmem:[#allocation3 + $0x138] sm:$0x1] %v564_v31  ;;  %v659_v31 = vld [vmem:[#allocation3 + $0x238] sm:$0x1] }
  0xa8   : > { %568 = vst [vmem:[#allocation3 + $0x140] sm:$0x1] %v567_v32  ;;  %v654_v32 = vsel %vm10079_vm3, 0, %v653_v27  ;;  %v660_v37 = vsel %vm10079_vm3, 0, %v659_v31  ;;  %v740_v27 = vld [vmem:[#allocation3 + $0x310] sm:$0x1] }
  0xa9   : > { %571 = vst [vmem:[#allocation3 + $0x148] sm:$0x1] %v570_v34  ;;  %v662_v34 = vld [vmem:[#allocation3 + $0x240] sm:$0x1] }
  0xaa   : > { %574 = vst [vmem:[#allocation3 + $0x150] sm:$0x1] %v573_v35  ;;  %v665_v35 = vld [vmem:[#allocation3 + $0x248] sm:$0x1]  ;;  %v663_v38 = vsel %vm10079_vm3, 0, %v662_v34 }
  0xab   : > { %577 = vst [vmem:[#allocation3 + $0x158] sm:$0x1] %v576_v39  ;;  %v671_v39 = vld [vmem:[#allocation3 + $0x258] sm:$0x1]  ;;  %v752_v34 = vld [vmem:[#allocation3 + $0xc] sm:$0xf] }
  0xac   : > { %580 = vst [vmem:[#allocation3 + $0x160] sm:$0x1] %v579_v40  ;;  %v666_v40 = vsel %vm10079_vm3, 0, %v665_v35  ;;  %v672_v45 = vsel %vm10079_vm3, 0, %v671_v39  ;;  %v753_v39 = vsel %vm10285_vm5, 0, %v752_v34 }
  0xad   : > { %583 = vst [vmem:[#allocation3 + $0x168] sm:$0x1] %v582_v42  ;;  %v674_v42 = vld [vmem:[#allocation3 + $0x260] sm:$0x1] }
  0xae   : > { %586 = vst [vmem:[#allocation3 + $0x170] sm:$0x1] %v585_v43  ;;  %v677_v43 = vld [vmem:[#allocation3 + $0x268] sm:$0x1]  ;;  %v675_v46 = vsel %vm10079_vm3, 0, %v674_v42 }
  0xaf   : > { %589 = vst [vmem:[#allocation3 + $0x178] sm:$0x1] %v588_v47  ;;  %v683_v47 = vld [vmem:[#allocation3 + $0x278] sm:$0x1]  ;;  %v764_v42 = vld [vmem:[#allocation3 + $0x2c] sm:$0xf] }
  0xb0   : > { %592 = vst [vmem:[#allocation3 + $0x180] sm:$0x1] %v591_v48  ;;  %v678_v48 = vsel %vm10079_vm3, 0, %v677_v43  ;;  %v684_v53 = vsel %vm10079_vm3, 0, %v683_v47  ;;  %v765_v47 = vsel %vm10285_vm5, 0, %v764_v42 }
  0xb1   : > { %595 = vst [vmem:[#allocation3 + $0x188] sm:$0x1] %v594_v50  ;;  %v686_v50 = vld [vmem:[#allocation3 + $0x280] sm:$0x1] }
  0xb2   : > { %598 = vst [vmem:[#allocation3 + $0x190] sm:$0x1] %v597_v51  ;;  %v689_v51 = vld [vmem:[#allocation3 + $0x288] sm:$0x1]  ;;  %v687_v54 = vsel %vm10079_vm3, 0, %v686_v50 }
  0xb3   : > { %601 = vst [vmem:[#allocation3 + $0x198] sm:$0x1] %v600_v55  ;;  %v695_v55 = vld [vmem:[#allocation3 + $0x298] sm:$0x1]  ;;  %v776_v50 = vld [vmem:[#allocation3 + $0x4c] sm:$0xf] }
  0xb4   : > { %604 = vst [vmem:[#allocation3 + $0x1a0] sm:$0x1] %v603_v56  ;;  %v690_v56 = vsel %vm10079_vm3, 0, %v689_v51  ;;  %v696_v61 = vsel %vm10079_vm3, 0, %v695_v55  ;;  %v777_v55 = vsel %vm10285_vm5, 0, %v776_v50 }
  0xb5   : > { %607 = vst [vmem:[#allocation3 + $0x1a8] sm:$0x1] %v606_v58  ;;  %v698_v58 = vld [vmem:[#allocation3 + $0x2a0] sm:$0x1] }
  0xb6   : > { %610 = vst [vmem:[#allocation3 + $0x1b0] sm:$0x1] %v609_v59  ;;  %v701_v59 = vld [vmem:[#allocation3 + $0x2a8] sm:$0x1]  ;;  %v699_v62 = vsel %vm10079_vm3, 0, %v698_v58 }
  0xb7   : > { %613 = vst [vmem:[#allocation3 + $0x1b8] sm:$0x1] %v612_v63  ;;  %v707_v63 = vld [vmem:[#allocation3 + $0x2b8] sm:$0x1]  ;;  %v788_v58 = vld [vmem:[#allocation3 + $0x6c] sm:$0xf] }
  0xb8   : > { %616 = vst [vmem:[#allocation3 + $0x1c0] sm:$0x1] %v615_v0  ;;  %v702_v0 = vsel %vm10079_vm3, 0, %v701_v59  ;;  %v708_v11 = vsel %vm10079_vm3, 0, %v707_v63  ;;  %v789_v63 = vsel %vm10285_vm5, 0, %v788_v58 }
  0xb9   : > { %619 = vst [vmem:[#allocation3 + $0x1c8] sm:$0x1] %v618_v8  ;;  %v710_v8 = vld [vmem:[#allocation3 + $0x2c0] sm:$0x1] }
  0xba   : > { %622 = vst [vmem:[#allocation3 + $0x1d0] sm:$0x1] %v621_v9  ;;  %v713_v9 = vld [vmem:[#allocation3 + $0x2c8] sm:$0x1]  ;;  %v711_v12 = vsel %vm10079_vm3, 0, %v710_v8 }
  0xbb   : > { %625 = vst [vmem:[#allocation3 + $0x1d8] sm:$0x1] %v624_v13  ;;  %v719_v13 = vld [vmem:[#allocation3 + $0x2d8] sm:$0x1]  ;;  %v800_v8 = vld [vmem:[#allocation3 + $0x8c] sm:$0xf] }
  0xbc   : > { %628 = vst [vmem:[#allocation3 + $0x1e0] sm:$0x1] %v627_v14  ;;  %v714_v14 = vsel %vm10079_vm3, 0, %v713_v9  ;;  %v720_v19 = vsel %vm10079_vm3, 0, %v719_v13  ;;  %v801_v13 = vsel %vm10285_vm5, 0, %v800_v8 }
  0xbd   : > { %631 = vst [vmem:[#allocation3 + $0x1e8] sm:$0x1] %v630_v16  ;;  %v722_v16 = vld [vmem:[#allocation3 + $0x2e0] sm:$0x1] }
  0xbe   : > { %634 = vst [vmem:[#allocation3 + $0x1f0] sm:$0x1] %v633_v17  ;;  %v725_v17 = vld [vmem:[#allocation3 + $0x2e8] sm:$0x1]  ;;  %v723_v20 = vsel %vm10079_vm3, 0, %v722_v16 }
  0xbf   : > { %637 = vst [vmem:[#allocation3 + $0x1f8] sm:$0x1] %v636_v21  ;;  %v731_v21 = vld [vmem:[#allocation3 + $0x2f8] sm:$0x1]  ;;  %v812_v16 = vld [vmem:[#allocation3 + $0xac] sm:$0xf] }
  0xc0   : > { %640 = vst [vmem:[#allocation3 + $0x200] sm:$0x1] %v639_v22  ;;  %v726_v22 = vsel %vm10079_vm3, 0, %v725_v17  ;;  %v732_v26 = vsel %vm10079_vm3, 0, %v731_v21  ;;  %v813_v21 = vsel %vm10285_vm5, 0, %v812_v16 }
  0xc1   : > { %643 = vst [vmem:[#allocation3 + $0x208] sm:$0x1] %v642_v24  ;;  %v734_v24 = vld [vmem:[#allocation3 + $0x300] sm:$0x1] }
  0xc2   : > { %646 = vst [vmem:[#allocation3 + $0x210] sm:$0x1] %v645_v25  ;;  %v737_v25 = vld [vmem:[#allocation3 + $0x308] sm:$0x1]  ;;  %v735_v28 = vsel %vm10079_vm3, 0, %v734_v24 }
  0xc3   : > { %649 = vst [vmem:[#allocation3 + $0x218] sm:$0x1] %v648_v29  ;;  %v743_v29 = vld [vmem:[#allocation3 + $0x318] sm:$0x1]  ;;  %v824_v24 = vld [vmem:[#allocation3 + $0xcc] sm:$0xf] }
  0xc4   : > { %652 = vst [vmem:[#allocation3 + $0x220] sm:$0x1] %v651_v30  ;;  %v738_v30 = vsel %vm10079_vm3, 0, %v737_v25  ;;  %v744_v35 = vsel %vm10079_vm3, 0, %v743_v29  ;;  %v825_v29 = vsel %vm10285_vm5, 0, %v824_v24 }
  0xc5   : > { %655 = vst [vmem:[#allocation3 + $0x228] sm:$0x1] %v654_v32  ;;  %v749_v32 = vld [vmem:[#allocation3 + $0x4] sm:$0xf] }
  0xc6   : > { %658 = vst [vmem:[#allocation3 + $0x230] sm:$0x1] %v657_v33  ;;  %v741_v33 = vsel %vm10079_vm3, 0, %v740_v27 }
  0xc7   : > { %661 = vst [vmem:[#allocation3 + $0x238] sm:$0x1] %v660_v37  ;;  %v750_v37 = vsel %vm10285_vm5, 0, %v749_v32 }
  0xc8   : > { %664 = vst [vmem:[#allocation3 + $0x240] sm:$0x1] %v663_v38  ;;  %v758_v38 = vld [vmem:[#allocation3 + $0x1c] sm:$0xf] }
  0xc9   : > { %667 = vst [vmem:[#allocation3 + $0x248] sm:$0x1] %v666_v40  ;;  %v761_v40 = vld [vmem:[#allocation3 + $0x24] sm:$0xf]  ;;  %v759_v43 = vsel %vm10285_vm5, 0, %v758_v38 }
  0xca   : > { %670 = vst [vmem:[#allocation3 + $0x250] sm:$0x1] %v669_v41  ;;  %v756_v41 = vsel %vm10285_vm5, 0, %v755_v36 }
  0xcb   : > { %673 = vst [vmem:[#allocation3 + $0x258] sm:$0x1] %v672_v45  ;;  %v762_v45 = vsel %vm10285_vm5, 0, %v761_v40 }
  0xcc   : > { %676 = vst [vmem:[#allocation3 + $0x260] sm:$0x1] %v675_v46  ;;  %v770_v46 = vld [vmem:[#allocation3 + $0x3c] sm:$0xf] }
  0xcd   : > { %679 = vst [vmem:[#allocation3 + $0x268] sm:$0x1] %v678_v48  ;;  %v773_v48 = vld [vmem:[#allocation3 + $0x44] sm:$0xf]  ;;  %v771_v51 = vsel %vm10285_vm5, 0, %v770_v46 }
  0xce   : > { %682 = vst [vmem:[#allocation3 + $0x270] sm:$0x1] %v681_v49  ;;  %v768_v49 = vsel %vm10285_vm5, 0, %v767_v44 }
  0xcf   : > { %685 = vst [vmem:[#allocation3 + $0x278] sm:$0x1] %v684_v53  ;;  %v774_v53 = vsel %vm10285_vm5, 0, %v773_v48 }
  0xd0   : > { %688 = vst [vmem:[#allocation3 + $0x280] sm:$0x1] %v687_v54  ;;  %v782_v54 = vld [vmem:[#allocation3 + $0x5c] sm:$0xf] }
  0xd1   : > { %691 = vst [vmem:[#allocation3 + $0x288] sm:$0x1] %v690_v56  ;;  %v785_v56 = vld [vmem:[#allocation3 + $0x64] sm:$0xf]  ;;  %v783_v59 = vsel %vm10285_vm5, 0, %v782_v54 }
  0xd2   : > { %694 = vst [vmem:[#allocation3 + $0x290] sm:$0x1] %v693_v57  ;;  %v780_v57 = vsel %vm10285_vm5, 0, %v779_v52 }
  0xd3   : > { %697 = vst [vmem:[#allocation3 + $0x298] sm:$0x1] %v696_v61  ;;  %v786_v61 = vsel %vm10285_vm5, 0, %v785_v56 }
  0xd4   : > { %700 = vst [vmem:[#allocation3 + $0x2a0] sm:$0x1] %v699_v62  ;;  %v794_v62 = vld [vmem:[#allocation3 + $0x7c] sm:$0xf] }
  0xd5   : > { %703 = vst [vmem:[#allocation3 + $0x2a8] sm:$0x1] %v702_v0  ;;  %v797_v0 = vld [vmem:[#allocation3 + $0x84] sm:$0xf]  ;;  %v795_v9 = vsel %vm10285_vm5, 0, %v794_v62 }
  0xd6   : > { %706 = vst [vmem:[#allocation3 + $0x2b0] sm:$0x1] %v705_v7  ;;  %v792_v7 = vsel %vm10285_vm5, 0, %v791_v60 }
  0xd7   : > { %709 = vst [vmem:[#allocation3 + $0x2b8] sm:$0x1] %v708_v11  ;;  %v798_v11 = vsel %vm10285_vm5, 0, %v797_v0 }
  0xd8   : > { %712 = vst [vmem:[#allocation3 + $0x2c0] sm:$0x1] %v711_v12  ;;  %v806_v12 = vld [vmem:[#allocation3 + $0x9c] sm:$0xf] }
  0xd9   : > { %715 = vst [vmem:[#allocation3 + $0x2c8] sm:$0x1] %v714_v14  ;;  %v809_v14 = vld [vmem:[#allocation3 + $0xa4] sm:$0xf]  ;;  %v807_v17 = vsel %vm10285_vm5, 0, %v806_v12 }
  0xda   : > { %718 = vst [vmem:[#allocation3 + $0x2d0] sm:$0x1] %v717_v15  ;;  %v804_v15 = vsel %vm10285_vm5, 0, %v803_v10 }
  0xdb   : > { %721 = vst [vmem:[#allocation3 + $0x2d8] sm:$0x1] %v720_v19  ;;  %v810_v19 = vsel %vm10285_vm5, 0, %v809_v14 }
  0xdc   : > { %724 = vst [vmem:[#allocation3 + $0x2e0] sm:$0x1] %v723_v20  ;;  %v818_v20 = vld [vmem:[#allocation3 + $0xbc] sm:$0xf] }
  0xdd   : > { %727 = vst [vmem:[#allocation3 + $0x2e8] sm:$0x1] %v726_v22  ;;  %v821_v22 = vld [vmem:[#allocation3 + $0xc4] sm:$0xf]  ;;  %v819_v25 = vsel %vm10285_vm5, 0, %v818_v20 }
  0xde   : > { %730 = vst [vmem:[#allocation3 + $0x2f0] sm:$0x1] %v729_v23  ;;  %v816_v23 = vsel %vm10285_vm5, 0, %v815_v18  ;;  %v822_v27 = vsel %vm10285_vm5, 0, %v821_v22 }
  0xdf   : > { %733 = vst [vmem:[#allocation3 + $0x2f8] sm:$0x1] %v732_v26  ;;  %v827_v26 = vld [vmem:[#allocation3 + $0xd4] sm:$0xf] }
  0xe0   : > { %736 = vst [vmem:[#allocation3 + $0x300] sm:$0x1] %v735_v28  ;;  %v830_v28 = vld [vmem:[#allocation3 + $0xdc] sm:$0xf]  ;;  %v828_v32 = vsel %vm10285_vm5, 0, %v827_v26 }
  0xe1   : > { %739 = vst [vmem:[#allocation3 + $0x308] sm:$0x1] %v738_v30  ;;  %v833_v30 = vld [vmem:[#allocation3 + $0xe4] sm:$0xf]  ;;  %v831_v34 = vsel %vm10285_vm5, 0, %v830_v28 }
  0xe2   : > { %742 = vst [vmem:[#allocation3 + $0x310] sm:$0x1] %v741_v33  ;;  %v836_v33 = vld [vmem:[#allocation3 + $0xec] sm:$0xf]  ;;  %v834_v36 = vsel %vm10285_vm5, 0, %v833_v30 }
  0xe3   : > { %745 = vst [vmem:[#allocation3 + $0x318] sm:$0x1] %v744_v35  ;;  %v839_v35 = vld [vmem:[#allocation3 + $0xf4] sm:$0xf]  ;;  %v837_v38 = vsel %vm10285_vm5, 0, %v836_v33 }
  0xe4   : > { %751 = vst [vmem:[#allocation3 + $0x4] sm:$0xf] %v750_v37  ;;  %v842_v37 = vld [vmem:[#allocation3 + $0xfc] sm:$0xf]  ;;  %v840_v40 = vsel %vm10285_vm5, 0, %v839_v35 }
  0xe5   : > { %754 = vst [vmem:[#allocation3 + $0xc] sm:$0xf] %v753_v39  ;;  %v845_v39 = vld [vmem:[#allocation3 + $0x104] sm:$0xf]  ;;  %v843_v42 = vsel %vm10285_vm5, 0, %v842_v37 }
  0xe6   : > { %757 = vst [vmem:[#allocation3 + $0x14] sm:$0xf] %v756_v41  ;;  %v848_v41 = vld [vmem:[#allocation3 + $0x10c] sm:$0xf]  ;;  %v846_v44 = vsel %vm10285_vm5, 0, %v845_v39 }
  0xe7   : > { %760 = vst [vmem:[#allocation3 + $0x1c] sm:$0xf] %v759_v43  ;;  %v851_v43 = vld [vmem:[#allocation3 + $0x114] sm:$0xf]  ;;  %v849_v46 = vsel %vm10285_vm5, 0, %v848_v41 }
  0xe8   : > { %763 = vst [vmem:[#allocation3 + $0x24] sm:$0xf] %v762_v45  ;;  %v854_v45 = vld [vmem:[#allocation3 + $0x11c] sm:$0xf]  ;;  %v852_v48 = vsel %vm10285_vm5, 0, %v851_v43 }
  0xe9   : > { %766 = vst [vmem:[#allocation3 + $0x2c] sm:$0xf] %v765_v47  ;;  %v857_v47 = vld [vmem:[#allocation3 + $0x124] sm:$0xf]  ;;  %v855_v50 = vsel %vm10285_vm5, 0, %v854_v45 }
  0xea   : > { %769 = vst [vmem:[#allocation3 + $0x34] sm:$0xf] %v768_v49  ;;  %v860_v49 = vld [vmem:[#allocation3 + $0x12c] sm:$0xf]  ;;  %v858_v52 = vsel %vm10285_vm5, 0, %v857_v47 }
  0xeb   : > { %772 = vst [vmem:[#allocation3 + $0x3c] sm:$0xf] %v771_v51  ;;  %v863_v51 = vld [vmem:[#allocation3 + $0x134] sm:$0xf]  ;;  %v861_v54 = vsel %vm10285_vm5, 0, %v860_v49 }
  0xec   : > { %775 = vst [vmem:[#allocation3 + $0x44] sm:$0xf] %v774_v53  ;;  %v866_v53 = vld [vmem:[#allocation3 + $0x13c] sm:$0xf]  ;;  %v864_v56 = vsel %vm10285_vm5, 0, %v863_v51 }
  0xed   : > { %778 = vst [vmem:[#allocation3 + $0x4c] sm:$0xf] %v777_v55  ;;  %v869_v55 = vld [vmem:[#allocation3 + $0x144] sm:$0xf]  ;;  %v867_v58 = vsel %vm10285_vm5, 0, %v866_v53 }
  0xee   : > { %781 = vst [vmem:[#allocation3 + $0x54] sm:$0xf] %v780_v57  ;;  %v872_v57 = vld [vmem:[#allocation3 + $0x14c] sm:$0xf]  ;;  %v870_v60 = vsel %vm10285_vm5, 0, %v869_v55 }
  0xef   : > { %784 = vst [vmem:[#allocation3 + $0x5c] sm:$0xf] %v783_v59  ;;  %v875_v59 = vld [vmem:[#allocation3 + $0x154] sm:$0xf]  ;;  %v873_v62 = vsel %vm10285_vm5, 0, %v872_v57 }
  0xf0   : > { %787 = vst [vmem:[#allocation3 + $0x64] sm:$0xf] %v786_v61  ;;  %v878_v61 = vld [vmem:[#allocation3 + $0x15c] sm:$0xf]  ;;  %v876_v0 = vsel %vm10285_vm5, 0, %v875_v59 }
  0xf1   : > { %790 = vst [vmem:[#allocation3 + $0x6c] sm:$0xf] %v789_v63  ;;  %v881_v63 = vld [vmem:[#allocation3 + $0x164] sm:$0xf]  ;;  %v879_v8 = vsel %vm10285_vm5, 0, %v878_v61 }
  0xf2   : > { %793 = vst [vmem:[#allocation3 + $0x74] sm:$0xf] %v792_v7  ;;  %v884_v7 = vld [vmem:[#allocation3 + $0x16c] sm:$0xf]  ;;  %v882_v10 = vsel %vm10285_vm5, 0, %v881_v63 }
  0xf3   : > { %796 = vst [vmem:[#allocation3 + $0x7c] sm:$0xf] %v795_v9  ;;  %v887_v9 = vld [vmem:[#allocation3 + $0x174] sm:$0xf]  ;;  %v885_v12 = vsel %vm10285_vm5, 0, %v884_v7 }
  0xf4   : > { %799 = vst [vmem:[#allocation3 + $0x84] sm:$0xf] %v798_v11  ;;  %v890_v11 = vld [vmem:[#allocation3 + $0x17c] sm:$0xf]  ;;  %v888_v14 = vsel %vm10285_vm5, 0, %v887_v9 }
  0xf5   : > { %802 = vst [vmem:[#allocation3 + $0x8c] sm:$0xf] %v801_v13  ;;  %v893_v13 = vld [vmem:[#allocation3 + $0x184] sm:$0xf]  ;;  %v891_v16 = vsel %vm10285_vm5, 0, %v890_v11 }
  0xf6   : > { %805 = vst [vmem:[#allocation3 + $0x94] sm:$0xf] %v804_v15  ;;  %v896_v15 = vld [vmem:[#allocation3 + $0x18c] sm:$0xf]  ;;  %v894_v18 = vsel %vm10285_vm5, 0, %v893_v13 }
  0xf7   : > { %808 = vst [vmem:[#allocation3 + $0x9c] sm:$0xf] %v807_v17  ;;  %v899_v17 = vld [vmem:[#allocation3 + $0x194] sm:$0xf]  ;;  %v897_v20 = vsel %vm10285_vm5, 0, %v896_v15 }
  0xf8   : > { %811 = vst [vmem:[#allocation3 + $0xa4] sm:$0xf] %v810_v19  ;;  %v902_v19 = vld [vmem:[#allocation3 + $0x19c] sm:$0xf]  ;;  %v900_v22 = vsel %vm10285_vm5, 0, %v899_v17 }
  0xf9   : > { %814 = vst [vmem:[#allocation3 + $0xac] sm:$0xf] %v813_v21  ;;  %v905_v21 = vld [vmem:[#allocation3 + $0x1a4] sm:$0xf]  ;;  %v903_v24 = vsel %vm10285_vm5, 0, %v902_v19 }
  0xfa   : > { %817 = vst [vmem:[#allocation3 + $0xb4] sm:$0xf] %v816_v23  ;;  %v908_v23 = vld [vmem:[#allocation3 + $0x1ac] sm:$0xf]  ;;  %v906_v26 = vsel %vm10285_vm5, 0, %v905_v21 }
  0xfb   : > { %820 = vst [vmem:[#allocation3 + $0xbc] sm:$0xf] %v819_v25  ;;  %v911_v25 = vld [vmem:[#allocation3 + $0x1b4] sm:$0xf]  ;;  %v909_v28 = vsel %vm10285_vm5, 0, %v908_v23 }
  0xfc   : > { %823 = vst [vmem:[#allocation3 + $0xc4] sm:$0xf] %v822_v27  ;;  %v914_v27 = vld [vmem:[#allocation3 + $0x1bc] sm:$0xf]  ;;  %v912_v30 = vsel %vm10285_vm5, 0, %v911_v25 }
  0xfd   : > { %826 = vst [vmem:[#allocation3 + $0xcc] sm:$0xf] %v825_v29  ;;  %v917_v29 = vld [vmem:[#allocation3 + $0x1c4] sm:$0xf]  ;;  %v915_v33 = vsel %vm10285_vm5, 0, %v914_v27 }
  0xfe   : > { %829 = vst [vmem:[#allocation3 + $0xd4] sm:$0xf] %v828_v32  ;;  %v920_v32 = vld [vmem:[#allocation3 + $0x1cc] sm:$0xf]  ;;  %v918_v35 = vsel %vm10285_vm5, 0, %v917_v29 }
  0xff   : > { %832 = vst [vmem:[#allocation3 + $0xdc] sm:$0xf] %v831_v34  ;;  %v923_v34 = vld [vmem:[#allocation3 + $0x1d4] sm:$0xf]  ;;  %v921_v37 = vsel %vm10285_vm5, 0, %v920_v32 }
 0x100   : > { %835 = vst [vmem:[#allocation3 + $0xe4] sm:$0xf] %v834_v36  ;;  %v926_v36 = vld [vmem:[#allocation3 + $0x1dc] sm:$0xf]  ;;  %v924_v39 = vsel %vm10285_vm5, 0, %v923_v34 }
 0x101   : > { %838 = vst [vmem:[#allocation3 + $0xec] sm:$0xf] %v837_v38  ;;  %v929_v38 = vld [vmem:[#allocation3 + $0x1e4] sm:$0xf]  ;;  %v927_v41 = vsel %vm10285_vm5, 0, %v926_v36 }
 0x102   : > { %841 = vst [vmem:[#allocation3 + $0xf4] sm:$0xf] %v840_v40  ;;  %v932_v40 = vld [vmem:[#allocation3 + $0x1ec] sm:$0xf]  ;;  %v930_v43 = vsel %vm10285_vm5, 0, %v929_v38 }
 0x103   : > { %844 = vst [vmem:[#allocation3 + $0xfc] sm:$0xf] %v843_v42  ;;  %v935_v42 = vld [vmem:[#allocation3 + $0x1f4] sm:$0xf]  ;;  %v933_v45 = vsel %vm10285_vm5, 0, %v932_v40 }
 0x104   : > { %847 = vst [vmem:[#allocation3 + $0x104] sm:$0xf] %v846_v44  ;;  %v938_v44 = vld [vmem:[#allocation3 + $0x1fc] sm:$0xf]  ;;  %v936_v47 = vsel %vm10285_vm5, 0, %v935_v42 }
 0x105   : > { %850 = vst [vmem:[#allocation3 + $0x10c] sm:$0xf] %v849_v46  ;;  %v941_v46 = vld [vmem:[#allocation3 + $0x204] sm:$0xf]  ;;  %v939_v49 = vsel %vm10285_vm5, 0, %v938_v44 }
 0x106   : > { %853 = vst [vmem:[#allocation3 + $0x114] sm:$0xf] %v852_v48  ;;  %v944_v48 = vld [vmem:[#allocation3 + $0x20c] sm:$0xf]  ;;  %v942_v51 = vsel %vm10285_vm5, 0, %v941_v46 }
 0x107   : > { %856 = vst [vmem:[#allocation3 + $0x11c] sm:$0xf] %v855_v50  ;;  %v947_v50 = vld [vmem:[#allocation3 + $0x214] sm:$0xf]  ;;  %v945_v53 = vsel %vm10285_vm5, 0, %v944_v48 }
 0x108   : > { %859 = vst [vmem:[#allocation3 + $0x124] sm:$0xf] %v858_v52  ;;  %v950_v52 = vld [vmem:[#allocation3 + $0x21c] sm:$0xf]  ;;  %v948_v55 = vsel %vm10285_vm5, 0, %v947_v50 }
 0x109   : > { %862 = vst [vmem:[#allocation3 + $0x12c] sm:$0xf] %v861_v54  ;;  %v953_v54 = vld [vmem:[#allocation3 + $0x224] sm:$0xf]  ;;  %v951_v57 = vsel %vm10285_vm5, 0, %v950_v52 }
 0x10a   : > { %865 = vst [vmem:[#allocation3 + $0x134] sm:$0xf] %v864_v56  ;;  %v956_v56 = vld [vmem:[#allocation3 + $0x22c] sm:$0xf]  ;;  %v954_v59 = vsel %vm10285_vm5, 0, %v953_v54 }
 0x10b   : > { %868 = vst [vmem:[#allocation3 + $0x13c] sm:$0xf] %v867_v58  ;;  %v959_v58 = vld [vmem:[#allocation3 + $0x234] sm:$0xf]  ;;  %v957_v61 = vsel %vm10285_vm5, 0, %v956_v56 }
 0x10c   : > { %871 = vst [vmem:[#allocation3 + $0x144] sm:$0xf] %v870_v60  ;;  %v962_v60 = vld [vmem:[#allocation3 + $0x23c] sm:$0xf]  ;;  %v960_v63 = vsel %vm10285_vm5, 0, %v959_v58 }
 0x10d   : > { %874 = vst [vmem:[#allocation3 + $0x14c] sm:$0xf] %v873_v62  ;;  %v965_v62 = vld [vmem:[#allocation3 + $0x244] sm:$0xf]  ;;  %v963_v7 = vsel %vm10285_vm5, 0, %v962_v60 }
 0x10e   : > { %877 = vst [vmem:[#allocation3 + $0x154] sm:$0xf] %v876_v0  ;;  %v968_v0 = vld [vmem:[#allocation3 + $0x24c] sm:$0xf]  ;;  %v966_v9 = vsel %vm10285_vm5, 0, %v965_v62 }
 0x10f   : > { %880 = vst [vmem:[#allocation3 + $0x15c] sm:$0xf] %v879_v8  ;;  %v971_v8 = vld [vmem:[#allocation3 + $0x254] sm:$0xf]  ;;  %v969_v11 = vsel %vm10285_vm5, 0, %v968_v0 }
 0x110   : > { %883 = vst [vmem:[#allocation3 + $0x164] sm:$0xf] %v882_v10  ;;  %v974_v10 = vld [vmem:[#allocation3 + $0x25c] sm:$0xf]  ;;  %v972_v13 = vsel %vm10285_vm5, 0, %v971_v8 }
 0x111   : > { %886 = vst [vmem:[#allocation3 + $0x16c] sm:$0xf] %v885_v12  ;;  %v977_v12 = vld [vmem:[#allocation3 + $0x264] sm:$0xf]  ;;  %v975_v15 = vsel %vm10285_vm5, 0, %v974_v10 }
 0x112   : > { %889 = vst [vmem:[#allocation3 + $0x174] sm:$0xf] %v888_v14  ;;  %v980_v14 = vld [vmem:[#allocation3 + $0x26c] sm:$0xf]  ;;  %v978_v17 = vsel %vm10285_vm5, 0, %v977_v12 }
 0x113   : > { %892 = vst [vmem:[#allocation3 + $0x17c] sm:$0xf] %v891_v16  ;;  %v983_v16 = vld [vmem:[#allocation3 + $0x274] sm:$0xf]  ;;  %v981_v19 = vsel %vm10285_vm5, 0, %v980_v14 }
 0x114   : > { %895 = vst [vmem:[#allocation3 + $0x184] sm:$0xf] %v894_v18  ;;  %v986_v18 = vld [vmem:[#allocation3 + $0x27c] sm:$0xf]  ;;  %v984_v21 = vsel %vm10285_vm5, 0, %v983_v16 }
 0x115   : > { %898 = vst [vmem:[#allocation3 + $0x18c] sm:$0xf] %v897_v20  ;;  %v989_v20 = vld [vmem:[#allocation3 + $0x284] sm:$0xf]  ;;  %v987_v23 = vsel %vm10285_vm5, 0, %v986_v18 }
 0x116   : > { %901 = vst [vmem:[#allocation3 + $0x194] sm:$0xf] %v900_v22  ;;  %v992_v22 = vld [vmem:[#allocation3 + $0x28c] sm:$0xf]  ;;  %v990_v25 = vsel %vm10285_vm5, 0, %v989_v20 }
 0x117   : > { %904 = vst [vmem:[#allocation3 + $0x19c] sm:$0xf] %v903_v24  ;;  %v995_v24 = vld [vmem:[#allocation3 + $0x294] sm:$0xf]  ;;  %v993_v27 = vsel %vm10285_vm5, 0, %v992_v22 }
 0x118   : > { %907 = vst [vmem:[#allocation3 + $0x1a4] sm:$0xf] %v906_v26  ;;  %v998_v26 = vld [vmem:[#allocation3 + $0x29c] sm:$0xf]  ;;  %v996_v29 = vsel %vm10285_vm5, 0, %v995_v24 }
 0x119   : > { %910 = vst [vmem:[#allocation3 + $0x1ac] sm:$0xf] %v909_v28  ;;  %v1001_v28 = vld [vmem:[#allocation3 + $0x2a4] sm:$0xf]  ;;  %v999_v32 = vsel %vm10285_vm5, 0, %v998_v26 }
 0x11a   : > { %913 = vst [vmem:[#allocation3 + $0x1b4] sm:$0xf] %v912_v30  ;;  %v1004_v30 = vld [vmem:[#allocation3 + $0x2ac] sm:$0xf]  ;;  %v1002_v34 = vsel %vm10285_vm5, 0, %v1001_v28 }
 0x11b   : > { %916 = vst [vmem:[#allocation3 + $0x1bc] sm:$0xf] %v915_v33  ;;  %v1007_v33 = vld [vmem:[#allocation3 + $0x2b4] sm:$0xf]  ;;  %v1005_v36 = vsel %vm10285_vm5, 0, %v1004_v30 }
 0x11c   : > { %919 = vst [vmem:[#allocation3 + $0x1c4] sm:$0xf] %v918_v35  ;;  %v1010_v35 = vld [vmem:[#allocation3 + $0x2bc] sm:$0xf]  ;;  %v1008_v38 = vsel %vm10285_vm5, 0, %v1007_v33 }
 0x11d   : > { %922 = vst [vmem:[#allocation3 + $0x1cc] sm:$0xf] %v921_v37  ;;  %v1013_v37 = vld [vmem:[#allocation3 + $0x2c4] sm:$0xf]  ;;  %v1011_v40 = vsel %vm10285_vm5, 0, %v1010_v35 }
 0x11e   : > { %925 = vst [vmem:[#allocation3 + $0x1d4] sm:$0xf] %v924_v39  ;;  %v1016_v39 = vld [vmem:[#allocation3 + $0x2cc] sm:$0xf]  ;;  %v1014_v42 = vsel %vm10285_vm5, 0, %v1013_v37 }
 0x11f   : > { %928 = vst [vmem:[#allocation3 + $0x1dc] sm:$0xf] %v927_v41  ;;  %v1019_v41 = vld [vmem:[#allocation3 + $0x2d4] sm:$0xf]  ;;  %v1017_v44 = vsel %vm10285_vm5, 0, %v1016_v39 }
 0x120   : > { %931 = vst [vmem:[#allocation3 + $0x1e4] sm:$0xf] %v930_v43  ;;  %v1022_v43 = vld [vmem:[#allocation3 + $0x2dc] sm:$0xf]  ;;  %v1020_v46 = vsel %vm10285_vm5, 0, %v1019_v41 }
 0x121   : > { %934 = vst [vmem:[#allocation3 + $0x1ec] sm:$0xf] %v933_v45  ;;  %v1025_v45 = vld [vmem:[#allocation3 + $0x2e4] sm:$0xf]  ;;  %v1023_v48 = vsel %vm10285_vm5, 0, %v1022_v43 }
 0x122   : > { %937 = vst [vmem:[#allocation3 + $0x1f4] sm:$0xf] %v936_v47  ;;  %v1028_v47 = vld [vmem:[#allocation3 + $0x2ec] sm:$0xf]  ;;  %v1026_v50 = vsel %vm10285_vm5, 0, %v1025_v45 }
 0x123   : > { %940 = vst [vmem:[#allocation3 + $0x1fc] sm:$0xf] %v939_v49  ;;  %v1031_v49 = vld [vmem:[#allocation3 + $0x2f4] sm:$0xf]  ;;  %v1029_v52 = vsel %vm10285_vm5, 0, %v1028_v47 }
 0x124   : > { %943 = vst [vmem:[#allocation3 + $0x204] sm:$0xf] %v942_v51  ;;  %v1034_v51 = vld [vmem:[#allocation3 + $0x2fc] sm:$0xf]  ;;  %v1032_v54 = vsel %vm10285_vm5, 0, %v1031_v49 }
 0x125   : > { %946 = vst [vmem:[#allocation3 + $0x20c] sm:$0xf] %v945_v53  ;;  %v1037_v53 = vld [vmem:[#allocation3 + $0x304] sm:$0xf]  ;;  %v1035_v56 = vsel %vm10285_vm5, 0, %v1034_v51 }
 0x126   : > { %949 = vst [vmem:[#allocation3 + $0x214] sm:$0xf] %v948_v55  ;;  %v1040_v55 = vld [vmem:[#allocation3 + $0x30c] sm:$0xf]  ;;  %v1038_v58 = vsel %vm10285_vm5, 0, %v1037_v53 }
 0x127   : > { %952 = vst [vmem:[#allocation3 + $0x21c] sm:$0xf] %v951_v57  ;;  %v1043_v57 = vld [vmem:[#allocation3 + $0x314] sm:$0xf]  ;;  %v1041_v60 = vsel %vm10285_vm5, 0, %v1040_v55 }
 0x128   : > { %955 = vst [vmem:[#allocation3 + $0x224] sm:$0xf] %v954_v59  ;;  %v1046_v59 = vld [vmem:[#allocation3 + $0x31c] sm:$0xf] }
 0x129   : > { %958 = vst [vmem:[#allocation3 + $0x22c] sm:$0xf] %v957_v61  ;;  %v1044_v61 = vsel %vm10285_vm5, 0, %v1043_v57  ;;  %v1047_v62 = vsel %vm10285_vm5, 0, %v1046_v59 }
 0x12a   : > { %961 = vst [vmem:[#allocation3 + $0x234] sm:$0xf] %v960_v63 }
 0x12b   : > { %964 = vst [vmem:[#allocation3 + $0x23c] sm:$0xf] %v963_v7 }
 0x12c   : > { %967 = vst [vmem:[#allocation3 + $0x244] sm:$0xf] %v966_v9 }
 0x12d   : > { %970 = vst [vmem:[#allocation3 + $0x24c] sm:$0xf] %v969_v11 }
 0x12e   : > { %973 = vst [vmem:[#allocation3 + $0x254] sm:$0xf] %v972_v13 }
 0x12f   : > { %976 = vst [vmem:[#allocation3 + $0x25c] sm:$0xf] %v975_v15 }
 0x130   : > { %979 = vst [vmem:[#allocation3 + $0x264] sm:$0xf] %v978_v17 }
 0x131   : > { %982 = vst [vmem:[#allocation3 + $0x26c] sm:$0xf] %v981_v19 }
 0x132   : > { %985 = vst [vmem:[#allocation3 + $0x274] sm:$0xf] %v984_v21 }
 0x133   : > { %988 = vst [vmem:[#allocation3 + $0x27c] sm:$0xf] %v987_v23 }
 0x134   : > { %991 = vst [vmem:[#allocation3 + $0x284] sm:$0xf] %v990_v25 }
 0x135   : > { %994 = vst [vmem:[#allocation3 + $0x28c] sm:$0xf] %v993_v27 }
 0x136   : > { %997 = vst [vmem:[#allocation3 + $0x294] sm:$0xf] %v996_v29 }
 0x137   : > { %1000 = vst [vmem:[#allocation3 + $0x29c] sm:$0xf] %v999_v32 }
 0x138   : > { %1003 = vst [vmem:[#allocation3 + $0x2a4] sm:$0xf] %v1002_v34 }
 0x139   : > { %1006 = vst [vmem:[#allocation3 + $0x2ac] sm:$0xf] %v1005_v36 }
 0x13a   : > { %1009 = vst [vmem:[#allocation3 + $0x2b4] sm:$0xf] %v1008_v38 }
 0x13b   : > { %1012 = vst [vmem:[#allocation3 + $0x2bc] sm:$0xf] %v1011_v40 }
 0x13c   : > { %1015 = vst [vmem:[#allocation3 + $0x2c4] sm:$0xf] %v1014_v42 }
 0x13d   : > { %1018 = vst [vmem:[#allocation3 + $0x2cc] sm:$0xf] %v1017_v44 }
 0x13e   : > { %1021 = vst [vmem:[#allocation3 + $0x2d4] sm:$0xf] %v1020_v46 }
 0x13f   : > { %1024 = vst [vmem:[#allocation3 + $0x2dc] sm:$0xf] %v1023_v48 }
 0x140   : > { %1027 = vst [vmem:[#allocation3 + $0x2e4] sm:$0xf] %v1026_v50 }
 0x141   : > { %1030 = vst [vmem:[#allocation3 + $0x2ec] sm:$0xf] %v1029_v52 }
 0x142   : > { %1033 = vst [vmem:[#allocation3 + $0x2f4] sm:$0xf] %v1032_v54 }
 0x143   : > { %1036 = vst [vmem:[#allocation3 + $0x2fc] sm:$0xf] %v1035_v56 }
 0x144   : > { %1039 = vst [vmem:[#allocation3 + $0x304] sm:$0xf] %v1038_v58 }
 0x145   : > { %1042 = vst [vmem:[#allocation3 + $0x30c] sm:$0xf] %v1041_v60 }
 0x146   : > { %1045 = vst [vmem:[#allocation3 + $0x314] sm:$0xf] %v1044_v61 }
 0x147   : > { %1048 = vst [vmem:[#allocation3 + $0x31c] sm:$0xf] %v1047_v62 }
 0x148   : > { %9803 = dma.done.wait [#allocation4], 8192 }
 0x149   : > { %9804 = vsyncadd [#allocation4], 4294959104  ;;  %s10493_s20 = smov 0  }
 0x14a LB: >> { %9667 = vmatpush.msra.mxu2 %v10052_v5  ;;  %9668 = vmatpush.msra.mxu3 %v10052_v5  ;;  %s10503_s22 = sadd.s32 4294967295, %s9835_s20  ;;  %v1085_v63 = vperm.slane %v10030_v1, 0  ;;  %v1096_v0 = vperm.slane %v10035_v2, 0  ;;  %vm1114_vm6 = vcmask 64512   ;;  %v10521_v40 = vperm.slane %v10041_v3, 0  ;;  %s8146_s12 = smul.u32 80, %s9835_s20  ;;  %s9835_s20 = sphi %s10493_s20, %s1063_s20  }
 0x14b   : >> { %1154 = vmatpush.msra.mxu0 %v10052_v5  ;;  %9666 = vmatpush.msra.mxu1 %v10052_v5  ;;  %p1070_p11 = scmp.gt.s32.totalorder %s10503_s22, 0  ;;  %p8131_p12 = scmp.lt.s32.totalorder %s10503_s22, 7  ;;  %v10524_v41 = vperm.slane %v10046_v4, 0 }
 0x14c   : >> { %p1065_p13 = scmp.ge.s32.totalorder %s10503_s22, 0  ;;  %p1066_p0 = scmp.lt.s32.totalorder %s10503_s22, 8 }
 0x14d   : >> { %s1071_s23 = scalar_select %p1070_p11, %s10503_s22, 0 }
 0x14e   : >> { %p1067_p1 = pnand %p1066_p0, %p1065_p13  ;;  %s10544_s16 = scalar_lea.vmem [#allocation3], %s8146_s12 }
 0x14f   : >> { %s15477_s23 = smov (!%p8131_p12, %s1071_s23), 7  ;;  %s1063_s20 = sadd.s32 1, %s9835_s20  }
 0x150   : >> { %s8136_s30 = sshll.u32 %s15477_s23, 6  ;;  %p1060_p2 = scmp.ge.s32.totalorder %s1063_s20, 10  }
 0x151   : >> { %s1075_s8 = scalar_lea.vmem [#allocation2], %s8136_s30  ;;  %v9499_v1 = vld [vmem:[%s14226_s6] sm:$0xff] (%p1060_p2)  ;;  %vm2103_vm8 = vcmask (%p1060_p2), 261120   ;;  %vm5778_vm9 = vcmask (%p1060_p2), 1045504   ;;  %vm5329_vm10 = vcmask (%p1060_p2), 1046528   ;;  %s9838_s18 = smov (%p1060_p2), 112  }
 0x152   : >> { %v1080_v7 = vld [vmem:[%s1075_s8 + $0x20] sm:$0xff]  ;;  %v1082_v8 = vld [vmem:[%s1075_s8 + $0x30] sm:$0xff]  ;;  %v1081_v14 = vld [vmem:[%s1075_s8 + $0x28] sm:$0xff]  ;;  %s8145_s10 = scalar_select %p1067_p1, 0, 1 }
 0x153   : >> { %v1076_v9 = vld [vmem:[%s1075_s8] sm:$0xff]  ;;  %v1091_v10 = vmul.f32 %v1085_v63, %v1080_v7  ;;  %v1093_v11 = vmul.f32 %v1085_v63, %v1082_v8  ;;  %v1078_v13 = vld [vmem:[%s1075_s8 + $0x10] sm:$0xff]  ;;  %v1083_v15 = vld [vmem:[%s1075_s8 + $0x38] sm:$0xff]  ;;  %v1092_v17 = vmul.f32 %v1085_v63, %v1081_v14  ;;  %s9839_s19 = smov (%p1060_p2), 120   ;;  %s9840_s22 = smov (%p1060_p2), 104  }
 0x154   : >> { %v1087_v12 = vmul.f32 %v1085_v63, %v1076_v9  ;;  %v1089_v16 = vmul.f32 %v1085_v63, %v1078_v13  ;;  %v1077_v18 = vld [vmem:[%s1075_s8 + $0x8] sm:$0xff]  ;;  %v1079_v19 = vld [vmem:[%s1075_s8 + $0x18] sm:$0xff]  ;;  %v1094_v23 = vmul.f32 %v1085_v63, %v1083_v15  ;;  %v10527_v45 = vstv %s8145_s10  ;;  %v9663_v2 = vld [vmem:[%s14226_s6 + $0x20] sm:$0xff] (%p1060_p2)  ;;  %s9841_s23 = smov (%p1060_p2), 88   ;;  %s9842_s30 = smov (%p1060_p2), 80  }
 0x155   : >> { %v1102_v20 = vadd.f32 %v1096_v0, %v1091_v10  ;;  %v1104_v21 = vadd.f32 %v1096_v0, %v1093_v11  ;;  %v1088_v25 = vmul.f32 %v1085_v63, %v1077_v18  ;;  %v1090_v26 = vmul.f32 %v1085_v63, %v1079_v19  ;;  %v8147_v11 = vld [vmem:[%s10544_s16 + $0x8] sm:$0xf]  ;;  %v8155_v19 = vld [vmem:[%s10544_s16 + $0x18] sm:$0xf]  ;;  %s9843_s8 = smov (%p1060_p2), 96   ;;  %s9844_s10 = smov (%p1060_p2), 72  }
 0x156   : >> { %v1098_v22 = vadd.f32 %v1096_v0, %v1087_v12  ;;  %v1100_v24 = vadd.f32 %v1096_v0, %v1089_v16  ;;  %v1103_v32 = vadd.f32 %v1096_v0, %v1092_v17  ;;  %v1105_v33 = vadd.f32 %v1096_v0, %v1094_v23  ;;  %v8149_v17 = vld [vmem:[%s10544_s16 + $0xc] sm:$0x1]  ;;  %s9845_s20 = smov (%p1060_p2), 64   ;;  %s9665_s12 = sshll.u32 (%p1060_p2), %s9823_s27, 5 }
 0x157   : >> { %v1110_v27 = vmax.f32 %v1102_v20, 0.0  ;;  %v1112_v28 = vmax.f32 %v1104_v21, 0.0  ;;  %v1099_v34 = vadd.f32 %v1096_v0, %v1088_v25  ;;  %v1101_v35 = vadd.f32 %v1096_v0, %v1090_v26  ;;  %v8157_v20 = vld [vmem:[%s10544_s16 + $0x1c] sm:$0x1] }
 0x158   : >> { %v1106_v29 = vmax.f32 %v1098_v22, 0.0  ;;  %v1108_v30 = vmax.f32 %v1100_v24, 0.0  ;;  %v1111_v36 = vmax.f32 %v1103_v32, 0.0  ;;  %v1113_v37 = vmax.f32 %v1105_v33, 0.0 }
 0x159   : >> { %8141 = vmatmul.msk.f32.vlgmr.msra.gmra.mxu2 %vm1114_vm6, %v1110_v27  ;;  %8143 = vmatmul.msk.f32.vlgmr.msra.gmra.mxu3 %vm1114_vm6, %v1112_v28  ;;  %v1107_v38 = vmax.f32 %v1099_v34, 0.0  ;;  %v1109_v39 = vmax.f32 %v1101_v35, 0.0  ;;  %vm1212_vm7 = vcmp.eq.s32.totalorder %v10527_v45, 1 }
 0x15a   : >> { %8137 = vmatmul.msk.f32.vlgmr.msra.gmra.mxu0 %vm1114_vm6, %v1106_v29  ;;  %8139 = vmatmul.msk.f32.vlgmr.msra.gmra.mxu1 %vm1114_vm6, %v1108_v30 }
 0x161   : >> { %8142 = vmatmul.msk.f32.gmra.mxu2 %vm1114_vm6, %v1111_v36  ;;  %8144 = vmatmul.msk.f32.gmra.mxu3 %vm1114_vm6, %v1113_v37 }
 0x162   : >> { %8138 = vmatmul.msk.f32.gmra.mxu0 %vm1114_vm6, %v1107_v38  ;;  %8140 = vmatmul.msk.f32.gmra.mxu1 %vm1114_vm6, %v1109_v39 }
 0x1d7   : >> { %v1156_v42 = vpop.f32.mrf.mxu0  ;;  %v1162_v43 = vpop.f32.mrf.mxu1 }
 0x1d8   : >> { %v1183_v44 = vmul.f32 %v10521_v40, %v1156_v42  ;;  %v1185_v46 = vmul.f32 %v10521_v40, %v1162_v43 }
 0x1da   : >> { %v1194_v47 = vadd.f32 %v10524_v41, %v1183_v44  ;;  %v1196_v48 = vadd.f32 %v10524_v41, %v1185_v46  ;;  %v8163_v44 = vld [vmem:[%s10544_s16 + $0x28] sm:$0xf]  ;;  %v8165_v46 = vld [vmem:[%s10544_s16 + $0x2c] sm:$0x1] }
 0x1dc   : >> { %v1202_v49 = vmax.f32 %v1194_v47, 0.0  ;;  %v1204_v50 = vmax.f32 %v1196_v48, 0.0  ;;  %v1168_v51 = vpop.f32.mrf.mxu2  ;;  %v1174_v52 = vpop.f32.mrf.mxu3  ;;  %v8171_v47 = vld [vmem:[%s10544_s16 + $0x38] sm:$0xf]  ;;  %v8173_v48 = vld [vmem:[%s10544_s16 + $0x3c] sm:$0x1] }
 0x1dd   : >> { %v1187_v53 = vmul.f32 %v10521_v40, %v1168_v51  ;;  %v1189_v54 = vmul.f32 %v10521_v40, %v1174_v52 }
 0x1de   : >> { %v1213_v55 = vsel %vm1212_vm7, %v1202_v49, 0.0  ;;  %v1215_v56 = vsel %vm1212_vm7, %v1204_v50, 0.0 }
 0x1df   : >> { %v1221_v57 = vpack.c.bf16 %v1213_v55, %v1213_v55  ;;  %v1223_v58 = vpack.c.bf16 %v1215_v56, %v1215_v56  ;;  %v1198_v59 = vadd.f32 %v10524_v41, %v1187_v53  ;;  %v1200_v60 = vadd.f32 %v10524_v41, %v1189_v54  ;;  %v1159_v61 = vpop.f32.mrf.mxu0  ;;  %v1165_v62 = vpop.f32.mrf.mxu1 }
 0x1e0   : >> { %v1184_v63 = vmul.f32 %v10521_v40, %v1159_v61  ;;  %v1186_v0 = vmul.f32 %v10521_v40, %v1165_v62 }
 0x1e1   : >> { %v1230_v7 = vshrl.u32 %v1221_v57, 16  ;;  %v1233_v8 = vshll.u32 %v1221_v57, 16  ;;  %v1246_v9 = vshrl.u32 %v1223_v58, 16  ;;  %v1249_v10 = vshll.u32 %v1223_v58, 16 }
 0x1e2   : >> { %v1206_v12 = vmax.f32 %v1198_v59, 0.0  ;;  %v1208_v13 = vmax.f32 %v1200_v60, 0.0  ;;  %v1195_v14 = vadd.f32 %v10524_v41, %v1184_v63  ;;  %v1197_v15 = vadd.f32 %v10524_v41, %v1186_v0 }
 0x1e3   : >> { %v1232_v16 = vrot.slane %v1230_v7, 7  ;;  %v1248_v18 = vrot.slane %v1246_v9, 7  ;;  %v8151_v7 = vld [vmem:[%s10544_s16 + $0x10] sm:$0xf] }
 0x1e4   : >> { %v1217_v21 = vsel %vm1212_vm7, %v1206_v12, 0.0  ;;  %v1219_v22 = vsel %vm1212_vm7, %v1208_v13, 0.0  ;;  %v1203_v23 = vmax.f32 %v1195_v14, 0.0  ;;  %v1205_v24 = vmax.f32 %v1197_v15, 0.0  ;;  %v1171_v34 = vpop.f32.mrf.mxu2  ;;  %v1177_v35 = vpop.f32.mrf.mxu3  ;;  %v8153_v15 = vld [vmem:[%s10544_s16 + $0x14] sm:$0x1] }
 0x1e5   : >> { %v1235_v25 = vor.u32 %v1233_v8, %v1232_v16  ;;  %v1236_v26 = vrot.slane %v1232_v16, 4  ;;  %v1251_v27 = vor.u32 %v1249_v10, %v1248_v18  ;;  %v1252_v28 = vrot.slane %v1248_v18, 4  ;;  %v8159_v16 = vld [vmem:[%s10544_s16 + $0x20] sm:$0xf] }
 0x1e6   : >> { %v1225_v29 = vpack.c.bf16 %v1217_v21, %v1217_v21  ;;  %v1227_v30 = vpack.c.bf16 %v1219_v22, %v1219_v22  ;;  %v1214_v32 = vsel %vm1212_vm7, %v1203_v23, 0.0  ;;  %v1216_v33 = vsel %vm1212_vm7, %v1205_v24, 0.0 }
 0x1e7   : >> { %v1314_v36 = vsel %vm10285_vm5, %v1235_v25, %v8147_v11  ;;  %v1317_v37 = vsel %vm10079_vm3, %v1236_v26, %v8149_v17  ;;  %v1326_v38 = vsel %vm10285_vm5, %v1251_v27, %v8155_v19  ;;  %v1329_v39 = vsel %vm10079_vm3, %v1252_v28, %v8157_v20  ;;  %v8161_v17 = vld [vmem:[%s10544_s16 + $0x24] sm:$0x1] }
 0x1e8   : >> { %8148 = vst [vmem:[%s10544_s16 + $0x8] sm:$0xf] %v1314_v36  ;;  %v1262_v42 = vshrl.u32 %v1225_v29, 16  ;;  %v1278_v43 = vshrl.u32 %v1227_v30, 16  ;;  %v1222_v49 = vpack.c.bf16 %v1214_v32, %v1214_v32  ;;  %v1224_v50 = vpack.c.bf16 %v1216_v33, %v1216_v33  ;;  %v8167_v36 = vld [vmem:[%s10544_s16 + $0x30] sm:$0xf] }
 0x1e9   : >> { %8150 = vst [vmem:[%s10544_s16 + $0xc] sm:$0x1] %v1317_v37  ;;  %v1188_v51 = vmul.f32 %v10521_v40, %v1171_v34  ;;  %v1190_v52 = vmul.f32 %v10521_v40, %v1177_v35  ;;  %v1265_v54 = vshll.u32 %v1225_v29, 16  ;;  %v1281_v56 = vshll.u32 %v1227_v30, 16 }
 0x1ea   : >> { %8156 = vst [vmem:[%s10544_s16 + $0x18] sm:$0xf] %v1326_v38  ;;  %v1264_v53 = vrot.slane %v1262_v42, 7  ;;  %v1280_v55 = vrot.slane %v1278_v43, 7  ;;  %v1238_v57 = vshrl.u32 %v1222_v49, 16  ;;  %v1241_v58 = vshll.u32 %v1222_v49, 16 }
 0x1eb   : >> { %8158 = vst [vmem:[%s10544_s16 + $0x1c] sm:$0x1] %v1329_v39  ;;  %v1254_v59 = vshrl.u32 %v1224_v50, 16  ;;  %v1257_v60 = vshll.u32 %v1224_v50, 16  ;;  %v1199_v9 = vadd.f32 %v10524_v41, %v1188_v51  ;;  %v1201_v10 = vadd.f32 %v10524_v41, %v1190_v52  ;;  %v8169_v38 = vld [vmem:[%s10544_s16 + $0x34] sm:$0x1] }
 0x1ec   : >> { %v1267_v61 = vor.u32 %v1265_v54, %v1264_v53  ;;  %v1268_v62 = vrot.slane %v1264_v53, 4  ;;  %v1283_v63 = vor.u32 %v1281_v56, %v1280_v55  ;;  %v1284_v0 = vrot.slane %v1280_v55, 4  ;;  %v8175_v39 = vld [vmem:[%s10544_s16 + $0x40] sm:$0xf]  ;;  %v8177_v42 = vld [vmem:[%s10544_s16 + $0x44] sm:$0x1] }
 0x1ed   : >> { %v1240_v40 = vrot.slane %v1238_v57, 7  ;;  %v1256_v8 = vrot.slane %v1254_v59, 7  ;;  %v1207_v21 = vmax.f32 %v1199_v9, 0.0  ;;  %v1209_v22 = vmax.f32 %v1201_v10, 0.0  ;;  %v9582_v52 = vld [vmem:[%s14226_s6 + $0x18] sm:$0xff] (%p1060_p2)  ;;  %v9500_v53 = vld [vmem:[%s14226_s6 + $0x8] sm:$0xff] (%p1060_p2) }
 0x1ee   : >> { %v1338_v11 = vsel %vm10285_vm5, %v1267_v61, %v8163_v44  ;;  %v1341_v12 = vsel %vm10079_vm3, %v1268_v62, %v8165_v46  ;;  %v1350_v13 = vsel %vm10285_vm5, %v1283_v63, %v8171_v47  ;;  %v1353_v14 = vsel %vm10079_vm3, %v1284_v0, %v8173_v48  ;;  %v9664_v54 = vld [vmem:[%s14226_s6 + $0x28] sm:$0xff] (%p1060_p2)  ;;  %2350 = vmatpush.bf16.msra.mxu0 (%p1060_p2), %v9582_v52  ;;  %v9581_v55 = vld [vmem:[%s14226_s6 + $0x10] sm:$0xff] (%p1060_p2) }
 0x1ef   : >> { %8164 = vst [vmem:[%s10544_s16 + $0x28] sm:$0xf] %v1338_v11  ;;  %v1243_v41 = vor.u32 %v1241_v58, %v1240_v40  ;;  %v1244_v18 = vrot.slane %v1240_v40, 4  ;;  %v1259_v19 = vor.u32 %v1257_v60, %v1256_v8  ;;  %v1260_v20 = vrot.slane %v1256_v8, 4  ;;  %9669 = vmatpush.bf16.msra.mxu3 (%p1060_p2), %v9582_v52  ;;  %3411 = vmatpush.bf16.msra.mxu1 (%p1060_p2), %v9500_v53 }
 0x1f0   : >> { %8166 = vst [vmem:[%s10544_s16 + $0x2c] sm:$0x1] %v1341_v12  ;;  %v1218_v27 = vsel %vm1212_vm7, %v1207_v21, 0.0  ;;  %v1220_v28 = vsel %vm1212_vm7, %v1209_v22, 0.0  ;;  %4638 = vmatpush.bf16.msra.mxu2 (%p1060_p2), %v9664_v54 }
 0x1f1   : >> { %8172 = vst [vmem:[%s10544_s16 + $0x38] sm:$0xf] %v1350_v13  ;;  %v1320_v23 = vsel %vm10285_vm5, %v1243_v41, %v8151_v7  ;;  %v1323_v24 = vsel %vm10079_vm3, %v1244_v18, %v8153_v15  ;;  %v1332_v25 = vsel %vm10285_vm5, %v1259_v19, %v8159_v16  ;;  %v1335_v26 = vsel %vm10079_vm3, %v1260_v20, %v8161_v17 }
 0x1f2   : >> { %8174 = vst [vmem:[%s10544_s16 + $0x3c] sm:$0x1] %v1353_v14  ;;  %v1226_v29 = vpack.c.bf16 %v1218_v27, %v1218_v27  ;;  %v1228_v30 = vpack.c.bf16 %v1220_v28, %v1220_v28  ;;  %2351 = vmatpush.bf16.msra.mxu0 (%p1060_p2), %v9581_v55 }
 0x1f3   : >> { %8152 = vst [vmem:[%s10544_s16 + $0x10] sm:$0xf] %v1320_v23  ;;  %9670 = vmatpush.bf16.msra.mxu3 (%p1060_p2), %v9581_v55  ;;  %3412 = vmatpush.bf16.msra.mxu1 (%p1060_p2), %v9499_v1 }
 0x1f4   : >> { %8154 = vst [vmem:[%s10544_s16 + $0x14] sm:$0x1] %v1323_v24  ;;  %v1270_v32 = vshrl.u32 %v1226_v29, 16  ;;  %v1286_v33 = vshrl.u32 %v1228_v30, 16  ;;  %v1273_v35 = vshll.u32 %v1226_v29, 16  ;;  %v1289_v45 = vshll.u32 %v1228_v30, 16  ;;  %4639 = vmatpush.bf16.msra.mxu2 (%p1060_p2), %v9663_v2 }
 0x1f5   : >> { %8160 = vst [vmem:[%s10544_s16 + $0x20] sm:$0xf] %v1332_v25 }
 0x1f6   : >> { %8162 = vst [vmem:[%s10544_s16 + $0x24] sm:$0x1] %v1335_v26  ;;  %v1272_v34 = vrot.slane %v1270_v32, 7  ;;  %v1288_v37 = vrot.slane %v1286_v33, 7 }
 0x1f7   : > { %9671 = vmatpush.bf16.msrb.mxu3 (%p1060_p2), %v9500_v53 }
 0x1f8   : >> { %v1275_v43 = vor.u32 %v1273_v35, %v1272_v34  ;;  %v1276_v44 = vrot.slane %v1272_v34, 4  ;;  %v1291_v46 = vor.u32 %v1289_v45, %v1288_v37  ;;  %v1292_v47 = vrot.slane %v1288_v37, 4 }
 0x1fa   : >> { %v1344_v48 = vsel %vm10285_vm5, %v1275_v43, %v8167_v36  ;;  %v1347_v49 = vsel %vm10079_vm3, %v1276_v44, %v8169_v38  ;;  %v1356_v50 = vsel %vm10285_vm5, %v1291_v46, %v8175_v39  ;;  %v1359_v51 = vsel %vm10079_vm3, %v1292_v47, %v8177_v42  ;;  %1062 = sbr.rel (!%p1060_p2) target bundleno = 330 (0x14a), region = 114 }
 0x1fb   : >> { %8168 = vst [vmem:[%s10544_s16 + $0x30] sm:$0xf] %v1344_v48  ;;  %9672 = vmatpush.bf16.msrb.mxu3 (%p1060_p2), %v9499_v1 }
 0x1fc   : >> { %8170 = vst [vmem:[%s10544_s16 + $0x34] sm:$0x1] %v1347_v49 }
 0x1fd   : >> { %8176 = vst [vmem:[%s10544_s16 + $0x40] sm:$0xf] %v1356_v50 }
 0x1fe   : >> { %8178 = vst [vmem:[%s10544_s16 + $0x44] sm:$0x1] %v1359_v51 }
 0x205   : > { %v9501_v3 = vld [vmem:[#allocation3 + $0x50] sm:$0xff]  ;;  %v9419_v5 = vld [vmem:[#allocation3] sm:$0xff]  ;;  %v9502_v31 = vld [vmem:[#allocation3 + $0x58] sm:$0xff] }
 0x206   : > { %v9561_v4 = vld [vmem:[#allocation3 + $0x230] sm:$0xff]  ;;  %v9583_v6 = vld [vmem:[#allocation3 + $0xa0] sm:$0xff]  ;;  %8511 = vmatmul.msk.bf16.vlgmr.msra.gmra.mxu0 %vm2103_vm8, %v9501_v3  ;;  %8919 = vmatmul.msk.bf16.vlgmr.msra.gmra.mxu1 %vm2103_vm8, %v9419_v5  ;;  %v9562_v56 = vld [vmem:[#allocation3 + $0x238] sm:$0xff] }
 0x207   : > { %8571 = vmatmul.msk.bf16.vlgmr.msra.gmra.mxu3 %vm2103_vm8, %v9561_v4  ;;  %9331 = vmatmul.msk.bf16.vlgmr.msra.gmra.mxu2 %vm2103_vm8, %v9583_v6  ;;  %v9420_v57 = vld [vmem:[#allocation3 + $0x8] sm:$0xff]  ;;  %v9503_v59 = vld [vmem:[#allocation3 + $0x60] sm:$0xff]  ;;  %v9421_v61 = vld [vmem:[#allocation3 + $0x10] sm:$0xff] }
 0x208   : > { %9673 = vmatpush.bf16.msra.mxu3 %v9664_v54  ;;  %v9584_v58 = vld [vmem:[#allocation3 + $0xa8] sm:$0xff]  ;;  %v9563_v60 = vld [vmem:[#allocation3 + $0x240] sm:$0xff]  ;;  %v9585_v62 = vld [vmem:[#allocation3 + $0xb0] sm:$0xff] }
 0x209   : > { %v9504_v63 = vld [vmem:[#allocation3 + $0x68] sm:$0xff]  ;;  %v9422_v40 = vld [vmem:[#allocation3 + $0x18] sm:$0xff]  ;;  %v9505_v8 = vld [vmem:[#allocation3 + $0x70] sm:$0xff] }
 0x20a   : > { %v9564_v0 = vld [vmem:[#allocation3 + $0x248] sm:$0xff]  ;;  %v9586_v7 = vld [vmem:[#allocation3 + $0xb8] sm:$0xff]  ;;  %v9565_v9 = vld [vmem:[#allocation3 + $0x250] sm:$0xff] }
 0x20b   : > { %v9423_v10 = vld [vmem:[#allocation3 + $0x20] sm:$0xff]  ;;  %v9506_v12 = vld [vmem:[#allocation3 + $0x78] sm:$0xff]  ;;  %v9424_v14 = vld [vmem:[#allocation3 + $0x28] sm:$0xff] }
 0x20c   : > { %9674 = vmatpush.bf16.msra.mxu3 %v9663_v2  ;;  %v9587_v11 = vld [vmem:[#allocation3 + $0xc0] sm:$0xff]  ;;  %v9566_v13 = vld [vmem:[#allocation3 + $0x258] sm:$0xff]  ;;  %v9588_v15 = vld [vmem:[#allocation3 + $0xc8] sm:$0xff] }
 0x20d   : > { %v9507_v16 = vld [vmem:[#allocation3 + $0x80] sm:$0xff]  ;;  %v9425_v41 = vld [vmem:[#allocation3 + $0x30] sm:$0xff]  ;;  %v9508_v19 = vld [vmem:[#allocation3 + $0x88] sm:$0xff] }
 0x20e   : > { %v9567_v17 = vld [vmem:[#allocation3 + $0x260] sm:$0xff]  ;;  %v9589_v18 = vld [vmem:[#allocation3 + $0xd0] sm:$0xff]  ;;  %v9568_v20 = vld [vmem:[#allocation3 + $0x268] sm:$0xff] }
 0x20f   : > { %v9426_v21 = vld [vmem:[#allocation3 + $0x38] sm:$0xff]  ;;  %v9509_v23 = vld [vmem:[#allocation3 + $0x90] sm:$0xff]  ;;  %v9427_v26 = vld [vmem:[#allocation3 + $0x40] sm:$0xff] }
 0x210   : > { %v9590_v22 = vld [vmem:[#allocation3 + $0xd8] sm:$0xff]  ;;  %v9569_v24 = vld [vmem:[#allocation3 + $0x270] sm:$0xff]  ;;  %v9591_v27 = vld [vmem:[#allocation3 + $0xe0] sm:$0xff] }
 0x211   : > { %v9510_v38 = vld [vmem:[#allocation3 + $0x98] sm:$0xff]  ;;  %v9428_v44 = vld [vmem:[#allocation3 + $0x48] sm:$0xff] }
 0x212   : > { %v9570_v39 = vld [vmem:[#allocation3 + $0x278] sm:$0xff]  ;;  %v9592_v46 = vld [vmem:[#allocation3 + $0xe8] sm:$0xff] }
 0x216   : > { %8512 = vmatmul.msk.bf16.gmra.mxu0 %vm2103_vm8, %v9502_v31  ;;  %8920 = vmatmul.msk.bf16.gmra.mxu1 %vm2103_vm8, %v9420_v57  ;;  %v9571_v57 = vld [vmem:[#allocation3 + $0x280] sm:$0xff] }
 0x217   : > { %8572 = vmatmul.msk.bf16.gmra.mxu3 %vm2103_vm8, %v9562_v56  ;;  %9332 = vmatmul.msk.bf16.gmra.mxu2 %vm2103_vm8, %v9584_v58  ;;  %v9511_v56 = vld [vmem:[#allocation3 + $0xa0] sm:$0xff] }
 0x226   : > { %8513 = vmatmul.msk.bf16.gmra.mxu0 %vm2103_vm8, %v9503_v59  ;;  %8921 = vmatmul.msk.bf16.gmra.mxu1 %vm2103_vm8, %v9421_v61  ;;  %v9593_v61 = vld [vmem:[#allocation3 + $0xf0] sm:$0xff] }
 0x227   : > { %8573 = vmatmul.msk.bf16.gmra.mxu3 %vm2103_vm8, %v9563_v60  ;;  %9333 = vmatmul.msk.bf16.gmra.mxu2 %vm2103_vm8, %v9585_v62  ;;  %v9429_v60 = vld [vmem:[#allocation3 + $0x50] sm:$0xff] }
 0x236   : > { %8514 = vmatmul.msk.bf16.gmra.mxu0 %vm2103_vm8, %v9504_v63  ;;  %8922 = vmatmul.msk.bf16.gmra.mxu1 %vm2103_vm8, %v9422_v40 }
 0x237   : > { %8574 = vmatmul.msk.bf16.gmra.mxu3 %vm2103_vm8, %v9564_v0  ;;  %9334 = vmatmul.msk.bf16.gmra.mxu2 %vm2103_vm8, %v9586_v7 }
 0x246   : > { %8515 = vmatmul.msk.bf16.gmra.mxu0 %vm2103_vm8, %v9505_v8  ;;  %8923 = vmatmul.msk.bf16.gmra.mxu1 %vm2103_vm8, %v9423_v10 }
 0x247   : > { %8575 = vmatmul.msk.bf16.gmra.mxu3 %vm2103_vm8, %v9565_v9  ;;  %9335 = vmatmul.msk.bf16.gmra.mxu2 %vm2103_vm8, %v9587_v11 }
 0x256   : > { %8516 = vmatmul.msk.bf16.gmra.mxu0 %vm2103_vm8, %v9506_v12  ;;  %8924 = vmatmul.msk.bf16.gmra.mxu1 %vm2103_vm8, %v9424_v14 }
 0x257   : > { %8576 = vmatmul.msk.bf16.gmra.mxu3 %vm2103_vm8, %v9566_v13  ;;  %9336 = vmatmul.msk.bf16.gmra.mxu2 %vm2103_vm8, %v9588_v15 }
 0x266   : > { %8517 = vmatmul.msk.bf16.gmra.mxu0 %vm2103_vm8, %v9507_v16  ;;  %8925 = vmatmul.msk.bf16.gmra.mxu1 %vm2103_vm8, %v9425_v41 }
 0x267   : > { %8577 = vmatmul.msk.bf16.gmra.mxu3 %vm2103_vm8, %v9567_v17  ;;  %9337 = vmatmul.msk.bf16.gmra.mxu2 %vm2103_vm8, %v9589_v18  ;;  %v9512_v18 = vld [vmem:[#allocation3 + $0xa8] sm:$0xff] }
 0x276   : > { %8518 = vmatmul.msk.bf16.gmra.mxu0 %vm2103_vm8, %v9508_v19  ;;  %8926 = vmatmul.msk.bf16.gmra.mxu1 %vm2103_vm8, %v9426_v21  ;;  %v9572_v19 = vld [vmem:[#allocation3 + $0x288] sm:$0xff] }
 0x277   : > { %8578 = vmatmul.msk.bf16.gmra.mxu3 %vm2103_vm8, %v9568_v20  ;;  %9338 = vmatmul.msk.bf16.gmra.mxu2 %vm2103_vm8, %v9590_v22  ;;  %v9430_v22 = vld [vmem:[#allocation3 + $0x58] sm:$0xff] }
 0x283   : > { %v2353_v25 = vpop.f32.mrf.mxu0  ;;  %v3414_v28 = vpop.f32.mrf.mxu1 }
 0x284   : > { %v3415_v34 = vadd.f32 %v3414_v28, %v2353_v25 }
 0x286   : > { %8519 = vmatmul.msk.bf16.gmra.mxu0 %vm2103_vm8, %v9509_v23  ;;  %8927 = vmatmul.msk.bf16.gmra.mxu1 %vm2103_vm8, %v9427_v26  ;;  %v9594_v23 = vld [vmem:[#allocation3 + $0xf8] sm:$0xff] }
 0x287   : > { %8579 = vmatmul.msk.bf16.gmra.mxu3 %vm2103_vm8, %v9569_v24  ;;  %9339 = vmatmul.msk.bf16.gmra.mxu2 %vm2103_vm8, %v9591_v27 }
 0x28a   : > { %v10685_v29 = vpop.f32.mrf.mxu3  ;;  %v4641_v30 = vpop.f32.mrf.mxu2 }
 0x28b   : > { %v2355_v32 = vpop.f32.mrf.mxu0  ;;  %v3416_v33 = vpop.f32.mrf.mxu1  ;;  %v10687_v35 = vadd.f32 %v4641_v30, %v3415_v34 }
 0x28c   : > { %v3417_v36 = vadd.f32 %v3416_v33, %v2355_v32 }
 0x28d   : > { %14361 = vst [vmem:[#allocation10_spill] sm:$0xff] %v10687_v35  ;;  %v5779_v50 = vrot.slane %v10687_v35, 2  ;;  %v5330_v51 = vrot.slane %v10687_v35, 1 }
 0x292   : > { %v10689_v37 = vpop.f32.mrf.mxu3  ;;  %v4643_v45 = vpop.f32.mrf.mxu2 }
 0x293   : > { %v5042_v42 = vadd.f32 %v4643_v45, %v3417_v36  ;;  %v2358_v43 = vpop.f32.mrf.mxu0  ;;  %v3419_v47 = vpop.f32.mrf.mxu1 }
 0x294   : > { %v3420_v52 = vadd.f32 %v3419_v47, %v2358_v43  ;;  %v9573_v47 = vld [vmem:[#allocation3 + $0x290] sm:$0xff] }
 0x295   : > { %v5331_v48 = vrot.slane %v5042_v42, 1  ;;  %v5780_v49 = vrot.slane %v5042_v42, 2 }
 0x296   : > { %8520 = vmatmul.msk.bf16.gmra.mxu0 %vm2103_vm8, %v9510_v38  ;;  %8928 = vmatmul.msk.bf16.gmra.mxu1 %vm2103_vm8, %v9428_v44 }
 0x297   : > { %8580 = vmatmul.msk.bf16.gmra.mxu3 %vm2103_vm8, %v9570_v39  ;;  %9340 = vmatmul.msk.bf16.gmra.mxu2 %vm2103_vm8, %v9592_v46  ;;  %v5781_v53 = vsel %vm5778_vm9, %v5779_v50, %v5780_v49  ;;  %v5332_v54 = vsel %vm5329_vm10, %v5330_v51, %v5331_v48  ;;  %v9513_v46 = vld [vmem:[#allocation3 + $0xb0] sm:$0xff]  ;;  %v9431_v50 = vld [vmem:[#allocation3 + $0x60] sm:$0xff] }
 0x298   : > { %5971 = vrot.lane.b32.xlu1 %v5781_v53, %s9838_s18  ;;  %5522 = vrot.lane.b32.xlu0 %v5332_v54, %s9839_s19  ;;  %v9595_v51 = vld [vmem:[#allocation3 + $0x100] sm:$0xff] }
 0x29a   : > { %v10701_v55 = vpop.f32.mrf.mxu3  ;;  %v4646_v1 = vpop.f32.mrf.mxu2 }
 0x29b   : > { %v10703_v2 = vadd.f32 %v4646_v1, %v3420_v52  ;;  %v2360_v3 = vpop.f32.mrf.mxu0  ;;  %v3421_v4 = vpop.f32.mrf.mxu1 }
 0x29c   : > { %v3422_v5 = vadd.f32 %v3421_v4, %v2360_v3 }
 0x29d   : > { %14362 = vst [vmem:[#allocation11_spill] sm:$0xff] %v10703_v2  ;;  %6235 = vrot.lane.b32.xlu2 %v10703_v2, %s9840_s22  ;;  %v5782_v40 = vrot.slane %v10703_v2, 2  ;;  %v5333_v7 = vrot.slane %v10703_v2, 1  ;;  %v9443_v2 = vld [vmem:[#allocation3 + $0xc0] sm:$0xff] }
 0x2a2   : > { %v10707_v6 = vpop.f32.mrf.mxu3  ;;  %v4648_v31 = vpop.f32.mrf.mxu2 }
 0x2a3   : > { %v5044_v58 = vadd.f32 %v4648_v31, %v3422_v5  ;;  %v2363_v59 = vpop.f32.mrf.mxu0  ;;  %v3424_v62 = vpop.f32.mrf.mxu1 }
 0x2a4   : > { %v3425_v11 = vadd.f32 %v3424_v62, %v2363_v59  ;;  %v9574_v62 = vld [vmem:[#allocation3 + $0x298] sm:$0xff] }
 0x2a5   : > { %v5334_v63 = vrot.slane %v5044_v58, 1  ;;  %v5783_v0 = vrot.slane %v5044_v58, 2 }
 0x2a6   : > { %8521 = vmatmul.msk.bf16.gmra.mxu0 %vm2103_vm8, %v9511_v56  ;;  %8929 = vmatmul.msk.bf16.gmra.mxu1 %vm2103_vm8, %v9429_v60 }
 0x2a7   : > { %8581 = vmatmul.msk.bf16.gmra.mxu3 %vm2103_vm8, %v9571_v57  ;;  %9341 = vmatmul.msk.bf16.gmra.mxu2 %vm2103_vm8, %v9593_v61  ;;  %v5784_v8 = vsel %vm5778_vm9, %v5782_v40, %v5783_v0  ;;  %v5335_v9 = vsel %vm5329_vm10, %v5333_v7, %v5334_v63  ;;  %v9514_v61 = vld [vmem:[#allocation3 + $0xb8] sm:$0xff]  ;;  %v9432_v7 = vld [vmem:[#allocation3 + $0x68] sm:$0xff] }
 0x2a8   : > { %5973 = vrot.lane.b32.xlu2 %v5784_v8, %s9838_s18  ;;  %6803 = vrot.lane.b32.xlu1 %v5784_v8, %s9841_s23  ;;  %v9596_v8 = vld [vmem:[#allocation3 + $0x108] sm:$0xff] }
 0x2a9   : > { %5524 = vrot.lane.b32.xlu0 %v5335_v9, %s9839_s19 }
 0x2aa   : > { %v10720_v10 = vpop.f32.mrf.mxu3  ;;  %v4651_v12 = vpop.f32.mrf.mxu2 }
 0x2ab   : > { %v2365_v13 = vpop.f32.mrf.mxu0  ;;  %v3426_v14 = vpop.f32.mrf.mxu1  ;;  %v10722_v15 = vadd.f32 %v4651_v12, %v3425_v11 }
 0x2ac   : > { %v3427_v16 = vadd.f32 %v3426_v14, %v2365_v13 }
 0x2ad   : > { %14363 = vst [vmem:[#allocation12_spill] sm:$0xff] %v10722_v15  ;;  %v5785_v27 = vrot.slane %v10722_v15, 2  ;;  %v5336_v28 = vrot.slane %v10722_v15, 1 }
 0x2b0   : > { %7067 = vrot.lane.b32.xlu2 %v10722_v15, %s9842_s30 }
 0x2b1   : > { %6523 = vrot.lane.b32.xlu0 %v5335_v9, %s9843_s8 }
 0x2b2   : > { %v10727_v17 = vpop.f32.mrf.mxu3  ;;  %v4653_v41 = vpop.f32.mrf.mxu2 }
 0x2b3   : > { %v5046_v20 = vadd.f32 %v4653_v41, %v3427_v16  ;;  %v2368_v21 = vpop.f32.mrf.mxu0  ;;  %v3429_v24 = vpop.f32.mrf.mxu1 }
 0x2b4   : > { %v3430_v38 = vadd.f32 %v3429_v24, %v2368_v21 }
 0x2b5   : > { %v5337_v25 = vrot.slane %v5046_v20, 1  ;;  %v5786_v26 = vrot.slane %v5046_v20, 2 }
 0x2b6   : > { %8522 = vmatmul.msk.bf16.gmra.mxu0 %vm2103_vm8, %v9512_v18  ;;  %8930 = vmatmul.msk.bf16.gmra.mxu1 %vm2103_vm8, %v9430_v22 }
 0x2b7   : > { %8582 = vmatmul.msk.bf16.gmra.mxu3 %vm2103_vm8, %v9572_v19  ;;  %9342 = vmatmul.msk.bf16.gmra.mxu2 %vm2103_vm8, %v9594_v23  ;;  %v10736_v30 = vsel %vm5778_vm9, %v5785_v27, %v5786_v26  ;;  %v5338_v32 = vsel %vm5329_vm10, %v5336_v28, %v5337_v25  ;;  %v9515_v26 = vld [vmem:[#allocation3 + $0xc0] sm:$0xff] }
 0x2b8   : > { %14364 = vst [vmem:[#allocation13_spill] sm:$0xff] %v10736_v30  ;;  %6805 = vrot.lane.b32.xlu2 %v10736_v30, %s9841_s23  ;;  %5526 = vrot.lane.b32.xlu1 %v5338_v32, %s9839_s19  ;;  %v9575_v27 = vld [vmem:[#allocation3 + $0x2a0] sm:$0xff] }
 0x2b9   : > { %6237 = vrot.lane.b32.xlu0 %v10722_v15, %s9840_s22 }
 0x2ba   : > { %v10744_v33 = vpop.f32.mrf.mxu3  ;;  %v4656_v34 = vpop.f32.mrf.mxu2 }
 0x2bb   : > { %v2370_v36 = vpop.f32.mrf.mxu0  ;;  %v3431_v45 = vpop.f32.mrf.mxu1  ;;  %v10747_v39 = vadd.f32 %v4656_v34, %v3430_v38  ;;  %v9433_v34 = vld [vmem:[#allocation3 + $0x70] sm:$0xff] }
 0x2bc   : > { %v3432_v42 = vadd.f32 %v3431_v45, %v2370_v36  ;;  %v9597_v36 = vld [vmem:[#allocation3 + $0x110] sm:$0xff] }
 0x2bd   : > { %14365 = vst [vmem:[#allocation14_spill] sm:$0xff] %v10747_v39  ;;  %v5339_v54 = vrot.slane %v10747_v39, 1  ;;  %v5788_v13 = vrot.slane %v10747_v39, 2 }
 0x2c0   : > { %6525 = vrot.lane.b32.xlu1 %v5338_v32, %s9843_s8 }
 0x2c1   : > { %5975 = vrot.lane.b32.xlu0 %v10736_v30, %s9838_s18 }
 0x2c2   : > { %v10751_v43 = vpop.f32.mrf.mxu3  ;;  %v4658_v44 = vpop.f32.mrf.mxu2 }
 0x2c3   : > { %v5048_v48 = vadd.f32 %v4658_v44, %v3432_v42  ;;  %v2373_v49 = vpop.f32.mrf.mxu0  ;;  %v3434_v52 = vpop.f32.mrf.mxu1 }
 0x2c4   : > { %v3435_v4 = vadd.f32 %v3434_v52, %v2373_v49 }
 0x2c5   : > { %v5340_v53 = vrot.slane %v5048_v48, 1  ;;  %v5789_v63 = vrot.slane %v5048_v48, 2 }
 0x2c6   : > { %8523 = vmatmul.msk.bf16.gmra.mxu0 %vm2103_vm8, %v9513_v46  ;;  %8931 = vmatmul.msk.bf16.gmra.mxu1 %vm2103_vm8, %v9431_v50 }
 0x2c7   : > { %8583 = vmatmul.msk.bf16.gmra.mxu3 %vm2103_vm8, %v9573_v47  ;;  %9343 = vmatmul.msk.bf16.gmra.mxu2 %vm2103_vm8, %v9595_v51  ;;  %v5341_v1 = vsel %vm5329_vm10, %v5339_v54, %v5340_v53  ;;  %v10782_v16 = vsel %vm5778_vm9, %v5788_v13, %v5789_v63 }
 0x2c8   : > { %6527 = vrot.lane.b32.xlu2 %v5341_v1, %s9843_s8  ;;  %6239 = vrot.lane.b32.xlu1 %v10747_v39, %s9840_s22  ;;  %14367 = vst [vmem:[#allocation16_spill] sm:$0xff] %v10782_v16 }
 0x2c9   : > { %7355 = vrot.lane.b32.xlu0 %v5338_v32, %s9844_s10 }
 0x2ca   : > { %v10763_v3 = vpop.f32.mrf.mxu3  ;;  %v4661_v5 = vpop.f32.mrf.mxu2 }
 0x2cb   : > { %v2375_v31 = vpop.f32.mrf.mxu0  ;;  %v3436_v56 = vpop.f32.mrf.mxu1  ;;  %v10765_v57 = vadd.f32 %v4661_v5, %v3435_v4  ;;  %v9576_v4 = vld [vmem:[#allocation3 + $0x2a8] sm:$0xff] }
 0x2cc   : > { %v3437_v58 = vadd.f32 %v3436_v56, %v2375_v31  ;;  %v9434_v56 = vld [vmem:[#allocation3 + $0x78] sm:$0xff] }
 0x2cd   : > { %14366 = vst [vmem:[#allocation15_spill] sm:$0xff] %v10765_v57  ;;  %v5342_v12 = vrot.slane %v10765_v57, 1  ;;  %v5791_v22 = vrot.slane %v10765_v57, 2 }
 0x2d0   : > { %6241 = vrot.lane.b32.xlu2 %v10765_v57, %s9840_s22  ;;  %5528 = vrot.lane.b32.xlu1 %v5341_v1, %s9839_s19 }
 0x2d1   : > { %7069 = vrot.lane.b32.xlu0 %v10747_v39, %s9842_s30 }
 0x2d2   : > { %v10772_v59 = vpop.f32.mrf.mxu3  ;;  %v4663_v60 = vpop.f32.mrf.mxu2 }
 0x2d3   : > { %v5050_v0 = vadd.f32 %v4663_v60, %v3437_v58  ;;  %v2378_v40 = vpop.f32.mrf.mxu0  ;;  %v3439_v9 = vpop.f32.mrf.mxu1  ;;  %v9598_v58 = vld [vmem:[#allocation3 + $0x118] sm:$0xff] }
 0x2d4   : > { %v3440_v28 = vadd.f32 %v3439_v9, %v2378_v40 }
 0x2d5   : > { %v5343_v11 = vrot.slane %v5050_v0, 1  ;;  %v5792_v19 = vrot.slane %v5050_v0, 2 }
 0x2d6   : > { %8524 = vmatmul.msk.bf16.gmra.mxu0 %vm2103_vm8, %v9514_v61  ;;  %8932 = vmatmul.msk.bf16.gmra.mxu1 %vm2103_vm8, %v9432_v7 }
 0x2d7   : > { %8584 = vmatmul.msk.bf16.gmra.mxu3 %vm2103_vm8, %v9574_v62  ;;  %9344 = vmatmul.msk.bf16.gmra.mxu2 %vm2103_vm8, %v9596_v8  ;;  %v5344_v14 = vsel %vm5329_vm10, %v5342_v12, %v5343_v11  ;;  %v10793_v23 = vsel %vm5778_vm9, %v5791_v22, %v5792_v19  ;;  %v9517_v19 = vld [vmem:[#allocation3 + $0xd0] sm:$0xff] }
 0x2d8   : > { %5530 = vrot.lane.b32.xlu2 %v5344_v14, %s9839_s19  ;;  %5977 = vrot.lane.b32.xlu1 %v10782_v16, %s9838_s18  ;;  %14368 = vst [vmem:[#allocation17_spill] sm:$0xff] %v10793_v23 }
 0x2d9   : > { %6807 = vrot.lane.b32.xlu0 %v10782_v16, %s9841_s23 }
 0x2da   : > { %v10789_v41 = vpop.f32.mrf.mxu3  ;;  %v4666_v18 = vpop.f32.mrf.mxu2 }
 0x2db   : > { %v2380_v20 = vpop.f32.mrf.mxu0  ;;  %v3441_v21 = vpop.f32.mrf.mxu1  ;;  %v10803_v42 = vadd.f32 %v4666_v18, %v3440_v28 }
 0x2dc   : > { %v3442_v38 = vadd.f32 %v3441_v21, %v2380_v20  ;;  %v9577_v20 = vld [vmem:[#allocation3 + $0x2b0] sm:$0xff] }
 0x2dd   : > { %14369 = vst [vmem:[#allocation18_spill] sm:$0xff] %v10803_v42  ;;  %v5794_v51 = vrot.slane %v10803_v42, 2  ;;  %v5345_v61 = vrot.slane %v10803_v42, 1 }
 0x2e0   : > { %5979 = vrot.lane.b32.xlu2 %v10793_v23, %s9838_s18  ;;  %7357 = vrot.lane.b32.xlu1 %v5341_v1, %s9844_s10  ;;  %v9516_v1 = vld [vmem:[#allocation3 + $0xc8] sm:$0xff] }
 0x2e1   : > { %6529 = vrot.lane.b32.xlu0 %v5344_v14, %s9843_s8 }
 0x2e2   : > { %v10799_v24 = vpop.f32.mrf.mxu3  ;;  %v4668_v25 = vpop.f32.mrf.mxu2 }
 0x2e3   : > { %v2383_v32 = vpop.f32.mrf.mxu0  ;;  %v3444_v45 = vpop.f32.mrf.mxu1  ;;  %v5052_v44 = vadd.f32 %v4668_v25, %v3442_v38 }
 0x2e4   : > { %v3445_v0 = vadd.f32 %v3444_v45, %v2383_v32 }
 0x2e5   : > { %v5795_v49 = vrot.slane %v5052_v44, 2  ;;  %v5346_v5 = vrot.slane %v5052_v44, 1 }
 0x2e6   : > { %8525 = vmatmul.msk.bf16.gmra.mxu0 %vm2103_vm8, %v9515_v26  ;;  %8933 = vmatmul.msk.bf16.gmra.mxu1 %vm2103_vm8, %v9433_v34  ;;  %v9435_v26 = vld [vmem:[#allocation3 + $0x80] sm:$0xff] }
 0x2e7   : > { %8585 = vmatmul.msk.bf16.gmra.mxu3 %vm2103_vm8, %v9575_v27  ;;  %9345 = vmatmul.msk.bf16.gmra.mxu2 %vm2103_vm8, %v9597_v36  ;;  %v10820_v52 = vsel %vm5778_vm9, %v5794_v51, %v5795_v49  ;;  %v5347_v62 = vsel %vm5329_vm10, %v5345_v61, %v5346_v5  ;;  %v9599_v27 = vld [vmem:[#allocation3 + $0x120] sm:$0xff] }
 0x2e8   : > { %7359 = vrot.lane.b32.xlu2 %v5344_v14, %s9844_s10  ;;  %7071 = vrot.lane.b32.xlu1 %v10765_v57, %s9842_s30  ;;  %14370 = vst [vmem:[#allocation19_spill] sm:$0xff] %v10820_v52 }
 0x2e9   : > { %6243 = vrot.lane.b32.xlu0 %v10803_v42, %s9840_s22 }
 0x2ea   : > { %v10812_v46 = vpop.f32.mrf.mxu3  ;;  %v4671_v47 = vpop.f32.mrf.mxu2 }
 0x2eb   : > { %v2385_v48 = vpop.f32.mrf.mxu0  ;;  %v3446_v50 = vpop.f32.mrf.mxu1  ;;  %v10837_v11 = vadd.f32 %v4671_v47, %v3445_v0  ;;  %v9600_v0 = vld [vmem:[#allocation3 + $0x128] sm:$0xff] }
 0x2ec   : > { %v3447_v9 = vadd.f32 %v3446_v50, %v2385_v48 }
 0x2ed   : > { %14371 = vst [vmem:[#allocation20_spill] sm:$0xff] %v10837_v11  ;;  %v5348_v32 = vrot.slane %v10837_v11, 1  ;;  %v5797_v34 = vrot.slane %v10837_v11, 2 }
 0x2f0   : > { %7073 = vrot.lane.b32.xlu2 %v10803_v42, %s9842_s30  ;;  %6809 = vrot.lane.b32.xlu1 %v10793_v23, %s9841_s23 }
 0x2f1   : > { %5981 = vrot.lane.b32.xlu0 %v10820_v52, %s9838_s18 }
 0x2f2   : > { %v10824_v53 = vpop.f32.mrf.mxu3  ;;  %v4673_v54 = vpop.f32.mrf.mxu2 }
 0x2f3   : > { %v2388_v31 = vpop.f32.mrf.mxu0  ;;  %v3449_v60 = vpop.f32.mrf.mxu1  ;;  %v5054_v13 = vadd.f32 %v4673_v54, %v3447_v9 }
 0x2f4   : > { %v3450_v47 = vadd.f32 %v3449_v60, %v2388_v31 }
 0x2f5   : > { %v5349_v21 = vrot.slane %v5054_v13, 1  ;;  %v5798_v22 = vrot.slane %v5054_v13, 2 }
 0x2f6   : > { %8526 = vmatmul.msk.bf16.gmra.mxu0 %vm2103_vm8, %v9516_v1  ;;  %8934 = vmatmul.msk.bf16.gmra.mxu1 %vm2103_vm8, %v9434_v56  ;;  %v9518_v56 = vld [vmem:[#allocation3 + $0xd8] sm:$0xff] }
 0x2f7   : > { %8586 = vmatmul.msk.bf16.gmra.mxu3 %vm2103_vm8, %v9576_v4  ;;  %9346 = vmatmul.msk.bf16.gmra.mxu2 %vm2103_vm8, %v9598_v58  ;;  %v10839_v12 = vpop.permute.xlu2 %6235  ;;  %v5350_v45 = vsel %vm5329_vm10, %v5348_v32, %v5349_v21  ;;  %v10859_v38 = vsel %vm5778_vm9, %v5797_v34, %v5798_v22  ;;  %v9578_v58 = vld [vmem:[#allocation3 + $0x2b8] sm:$0xff] }
 0x2f8   : > { %5532 = vrot.lane.b32.xlu2 %v5347_v62, %s9839_s19  ;;  %6531 = vrot.lane.b32.xlu1 %v5347_v62, %s9843_s8  ;;  %14372 = vst [vmem:[#allocation21_spill] sm:$0xff] %v10839_v12 }
 0x2f9   : > { %7361 = vrot.lane.b32.xlu0 %v5347_v62, %s9844_s10  ;;  %14374 = vst [vmem:[#allocation23_spill] sm:$0xff] %v10859_v38  ;;  %v9436_v62 = vld [vmem:[#allocation3 + $0x88] sm:$0xff] }
 0x2fa   : > { %v10835_v63 = vpop.f32.mrf.mxu3  ;;  %v4676_v40 = vpop.f32.mrf.mxu2 }
 0x2fb   : > { %v2390_v7 = vpop.f32.mrf.mxu0  ;;  %v3451_v8 = vpop.f32.mrf.mxu1  ;;  %v10867_v54 = vadd.f32 %v4676_v40, %v3450_v47 }
 0x2fc   : > { %v3452_v51 = vadd.f32 %v3451_v8, %v2390_v7 }
 0x2fd   : > { %14375 = vst [vmem:[#allocation24_spill] sm:$0xff] %v10867_v54  ;;  %v5800_v9 = vrot.slane %v10867_v54, 2  ;;  %v5351_v13 = vrot.slane %v10867_v54, 1 }
 0x300   : > { %6811 = vrot.lane.b32.xlu2 %v10820_v52, %s9841_s23  ;;  %6245 = vrot.lane.b32.xlu1 %v10837_v11, %s9840_s22 }
 0x301   : > { %7075 = vrot.lane.b32.xlu0 %v10837_v11, %s9842_s30 }
 0x302   : > { %v10847_v14 = vpop.f32.mrf.mxu3  ;;  %v4678_v18 = vpop.f32.mrf.mxu2 }
 0x303   : > { %v2393_v25 = vpop.f32.mrf.mxu0  ;;  %v3454_v28 = vpop.f32.mrf.mxu1  ;;  %v5056_v1 = vadd.f32 %v4678_v18, %v3452_v51 }
 0x304   : > { %v10851_v36 = vpop.permute.xlu2 %5973 }
 0x305   : > { %14373 = vst [vmem:[#allocation22_spill] sm:$0xff] %v10851_v36  ;;  %v5801_v60 = vrot.slane %v5056_v1, 2  ;;  %v5352_v40 = vrot.slane %v5056_v1, 1 }
 0x306   : > { %8527 = vmatmul.msk.bf16.gmra.mxu0 %vm2103_vm8, %v9517_v19  ;;  %8935 = vmatmul.msk.bf16.gmra.mxu1 %vm2103_vm8, %v9435_v26  ;;  %v3455_v26 = vadd.f32 %v3454_v28, %v2393_v25 }
 0x307   : > { %8587 = vmatmul.msk.bf16.gmra.mxu3 %vm2103_vm8, %v9577_v20  ;;  %9347 = vmatmul.msk.bf16.gmra.mxu2 %vm2103_vm8, %v9599_v27  ;;  %v10887_v18 = vsel %vm5778_vm9, %v5800_v9, %v5801_v60  ;;  %v5353_v19 = vsel %vm5329_vm10, %v5351_v13, %v5352_v40  ;;  %v9579_v40 = vld [vmem:[#allocation3 + $0x2c0] sm:$0xff] }
 0x308   : > { %6533 = vrot.lane.b32.xlu2 %v5350_v45, %s9843_s8  ;;  %5983 = vrot.lane.b32.xlu1 %v10859_v38, %s9838_s18  ;;  %14378 = vst [vmem:[#allocation27_spill] sm:$0xff] %v10887_v18 }
 0x309   : > { %5534 = vrot.lane.b32.xlu0 %v5350_v45, %s9839_s19 }
 0x30a   : > { %v10865_v44 = vpop.f32.mrf.mxu3  ;;  %v4681_v48 = vpop.f32.mrf.mxu2 }
 0x30b   : > { %v2395_v49 = vpop.f32.mrf.mxu0  ;;  %v3456_v50 = vpop.f32.mrf.mxu1  ;;  %v5057_v1 = vadd.f32 %v4681_v48, %v3455_v26 }
 0x30c   : > { %v10869_v4 = vpop.permute.xlu2 %7067  ;;  %v10878_v61 = vpop.permute.xlu0 %5522  ;;  %v3457_v51 = vadd.f32 %v3456_v50, %v2395_v49  ;;  %v9437_v50 = vld [vmem:[#allocation3 + $0x90] sm:$0xff] }
 0x30d   : > { %14376 = vst [vmem:[#allocation25_spill] sm:$0xff] %v10869_v4  ;;  %v10899_v27 = vpop.permute.xlu1 %5971  ;;  %v6499_v26 = vrot.slane %v5057_v1, 1 }
 0x30e   : > { %14377 = vst [vmem:[#allocation26_spill] sm:$0xff] %v10878_v61 }
 0x30f   : > { %14380 = vst [vmem:[#allocation29_spill] sm:$0xff] %v10899_v27 }
 0x310   : > { %6247 = vrot.lane.b32.xlu2 %v10867_v54, %s9840_s22  ;;  %7363 = vrot.lane.b32.xlu1 %v5350_v45, %s9844_s10 }
 0x311   : > { %6813 = vrot.lane.b32.xlu0 %v10859_v38, %s9841_s23 }
 0x312   : > { %v10876_v5 = vpop.f32.mrf.mxu3  ;;  %v4683_v31 = vpop.f32.mrf.mxu2 }
 0x313   : > { %v2398_v7 = vpop.f32.mrf.mxu0  ;;  %v3459_v8 = vpop.f32.mrf.mxu1 }
 0x314   : > { %v10897_v21 = vpop.permute.xlu2 %6805  ;;  %v3460_v47 = vadd.f32 %v3459_v8, %v2398_v7 }
 0x315   : > { %14379 = vst [vmem:[#allocation28_spill] sm:$0xff] %v10897_v21 }
 0x316   : > { %8528 = vmatmul.msk.bf16.gmra.mxu0 %vm2103_vm8, %v9518_v56  ;;  %8936 = vmatmul.msk.bf16.gmra.mxu1 %vm2103_vm8, %v9436_v62  ;;  %v5058_v56 = vadd.f32 %v4683_v31, %v3457_v51  ;;  %v9601_v31 = vld [vmem:[#allocation3 + $0x130] sm:$0xff] }
 0x317   : > { %8588 = vmatmul.msk.bf16.gmra.mxu3 %vm2103_vm8, %v9578_v58  ;;  %9348 = vmatmul.msk.bf16.gmra.mxu2 %vm2103_vm8, %v9600_v0  ;;  %v9519_v0 = vld [vmem:[#allocation3 + $0xe0] sm:$0xff] }
 0x318   : > { %5985 = vrot.lane.b32.xlu2 %v10887_v18, %s9838_s18  ;;  %7077 = vrot.lane.b32.xlu1 %v10867_v54, %s9842_s30  ;;  %v6500_v8 = vrot.slane %v5058_v56, 1 }
 0x319   : > { %6535 = vrot.lane.b32.xlu0 %v5353_v19, %s9843_s8 }
 0x31a   : > { %v10895_v20 = vpop.f32.mrf.mxu3  ;;  %v4686_v22 = vpop.f32.mrf.mxu2 }
 0x31b   : > { %v10901_v32 = vpop.permute.xlu0 %5524  ;;  %v2400_v34 = vpop.f32.mrf.mxu0  ;;  %v10905_v58 = vadd.f32 %v4686_v22, %v3460_v47 }
 0x31c   : > { %14381 = vst [vmem:[#allocation30_spill] sm:$0xff] %v10901_v32  ;;  %v3461_v45 = vpop.f32.mrf.mxu1  ;;  %v10912_v7 = vpop.permute.xlu1 %6803 }
 0x31d   : > { %v3462_v60 = vadd.f32 %v3461_v45, %v2400_v34  ;;  %14383 = vst [vmem:[#allocation32_spill] sm:$0xff] %v10912_v7  ;;  %v6501_v45 = vsel %vm5329_vm10, %v6499_v26, %v6500_v8 }
 0x320   : > { %7365 = vrot.lane.b32.xlu2 %v5353_v19, %s9844_s10  ;;  %5536 = vrot.lane.b32.xlu1 %v5353_v19, %s9839_s19  ;;  %v7611_v19 = vrot.slane %v10905_v58, 2 }
 0x321   : > { %6249 = vrot.lane.b32.xlu0 %v5057_v1, %s9840_s22 }
 0x322   : > { %v10908_v25 = vpop.f32.mrf.mxu3  ;;  %v4688_v28 = vpop.f32.mrf.mxu2 }
 0x323   : > { %v10910_v62 = vpop.permute.xlu2 %6527  ;;  %v5060_v48 = vadd.f32 %v4688_v28, %v3462_v60  ;;  %v10914_v49 = vpop.permute.xlu0 %6523  ;;  %v6780_v28 = vrot.slane %v5058_v56, 2 }
 0x324   : > { %14382 = vst [vmem:[#allocation31_spill] sm:$0xff] %v10910_v62  ;;  %v2403_v9 = vpop.f32.mrf.mxu0  ;;  %v3464_v13 = vpop.f32.mrf.mxu1 }
 0x325   : > { %14384 = vst [vmem:[#allocation33_spill] sm:$0xff] %v10914_v49  ;;  %v7612_v22 = vrot.slane %v5060_v48, 2 }
 0x326   : > { %8529 = vmatmul.msk.bf16.gmra.mxu0 %vm2103_vm8, %v9519_v0  ;;  %8937 = vmatmul.msk.bf16.gmra.mxu1 %vm2103_vm8, %v9437_v50 }
 0x327   : > { %8589 = vmatmul.msk.bf16.gmra.mxu3 %vm2103_vm8, %v9579_v40  ;;  %9349 = vmatmul.msk.bf16.gmra.mxu2 %vm2103_vm8, %v9601_v31  ;;  %v10922_v34 = vsel %vm5778_vm9, %v7611_v19, %v7612_v22  ;;  %v3465_v19 = vadd.f32 %v3464_v13, %v2403_v9  ;;  %v6779_v22 = vrot.slane %v5057_v1, 2  ;;  %v9580_v9 = vld [vmem:[#allocation3 + $0x2c8] sm:$0xff]  ;;  %v7332_v13 = vrot.slane %v5060_v48, 1 }
 0x328   : > { %14385 = vst [vmem:[#allocation34_spill] sm:$0xff] %v10922_v34  ;;  %7079 = vrot.lane.b32.xlu2 %v5057_v1, %s9842_s30  ;;  %6815 = vrot.lane.b32.xlu1 %v10887_v18, %s9841_s23  ;;  %v9520_v1 = vld [vmem:[#allocation3 + $0xe8] sm:$0xff] }
 0x329   : > { %7367 = vrot.lane.b32.xlu0 %v6501_v45, %s9844_s10  ;;  %v10938_v54 = vsel %vm5778_vm9, %v6779_v22, %v6780_v28 }
 0x32a   : > { %v10929_v47 = vpop.f32.mrf.mxu3  ;;  %v4691_v51 = vpop.f32.mrf.mxu2  ;;  %14389 = vst [vmem:[#allocation38_spill] sm:$0xff] %v10938_v54 }
 0x32b   : > { %v10931_v60 = vpop.permute.xlu2 %6241  ;;  %v10933_v0 = vpop.permute.xlu1 %5526  ;;  %v10943_v8 = vadd.f32 %v4691_v51, %v3465_v19  ;;  %v9602_v51 = vld [vmem:[#allocation3 + $0x138] sm:$0xff] }
 0x32c   : > { %14386 = vst [vmem:[#allocation35_spill] sm:$0xff] %v10931_v60  ;;  %v10935_v40 = vpop.permute.xlu0 %6237  ;;  %v2405_v50 = vpop.f32.mrf.mxu0 }
 0x32d   : > { %14387 = vst [vmem:[#allocation36_spill] sm:$0xff] %v10933_v0  ;;  %v3466_v31 = vpop.f32.mrf.mxu1  ;;  %v5354_v60 = vrot.slane %v10943_v8, 1  ;;  %v5803_v62 = vrot.slane %v10943_v8, 2 }
 0x32e   : > { %14388 = vst [vmem:[#allocation37_spill] sm:$0xff] %v10935_v40  ;;  %v3467_v26 = vadd.f32 %v3466_v31, %v2405_v50  ;;  %v7331_v50 = vrot.slane %v10905_v58, 1 }
 0x32f   : > { %14390 = vst [vmem:[#allocation39_spill] sm:$0xff] %v10943_v8 }
 0x330   : > { %6817 = vrot.lane.b32.xlu2 %v10938_v54, %s9841_s23  ;;  %6537 = vrot.lane.b32.xlu1 %v6501_v45, %s9843_s8  ;;  %v9438_v45 = vld [vmem:[#allocation3 + $0x98] sm:$0xff] }
 0x331   : > { %7081 = vrot.lane.b32.xlu0 %v10905_v58, %s9842_s30  ;;  %v7333_v58 = vsel %vm5329_vm10, %v7331_v50, %v7332_v13 }
 0x332   : > { %v10947_v56 = vpop.f32.mrf.mxu3  ;;  %v4693_v11 = vpop.f32.mrf.mxu2 }
 0x333   : > { %v10949_v42 = vpop.permute.xlu2 %5530  ;;  %v5062_v28 = vadd.f32 %v4693_v11, %v3467_v26  ;;  %v10951_v22 = vpop.permute.xlu1 %6525 }
 0x334   : > { %14391 = vst [vmem:[#allocation40_spill] sm:$0xff] %v10949_v42  ;;  %v10953_v57 = vpop.permute.xlu0 %5975  ;;  %v2408_v31 = vpop.f32.mrf.mxu0 }
 0x335   : > { %14392 = vst [vmem:[#allocation41_spill] sm:$0xff] %v10951_v22  ;;  %v3469_v19 = vpop.f32.mrf.mxu1  ;;  %v5355_v39 = vrot.slane %v5062_v28, 1  ;;  %v5804_v42 = vrot.slane %v5062_v28, 2 }
 0x336   : > { %14393 = vst [vmem:[#allocation42_spill] sm:$0xff] %v10953_v57  ;;  %8530 = vmatmul.msk.bf16.gmra.mxu0 %vm2103_vm8, %v9520_v1  ;;  %8938 = vmatmul.msk.bf16.gmra.mxu1 %vm2103_vm8, %v9438_v45  ;;  %v3470_v1 = vadd.f32 %v3469_v19, %v2408_v31  ;;  %v9521_v31 = vld [vmem:[#allocation3 + $0xf0] sm:$0xff]  ;;  %v9479_v19 = vld [vmem:[#allocation3 + $0x1e0] sm:$0xff] }
 0x337   : > { %8590 = vmatmul.msk.bf16.gmra.mxu3 %vm2103_vm8, %v9580_v9  ;;  %9350 = vmatmul.msk.bf16.gmra.mxu2 %vm2103_vm8, %v9602_v51  ;;  %v5356_v11 = vsel %vm5329_vm10, %v5354_v60, %v5355_v39  ;;  %v5805_v48 = vsel %vm5778_vm9, %v5803_v62, %v5804_v42 }
 0x338   : > { %5538 = vrot.lane.b32.xlu2 %v5356_v11, %s9839_s19  ;;  %7369 = vrot.lane.b32.xlu1 %v7333_v58, %s9844_s10 }
 0x339   : > { %5987 = vrot.lane.b32.xlu0 %v5805_v48, %s9838_s18 }
 0x33a   : > { %v10968_v26 = vpop.f32.mrf.mxu3  ;;  %v4696_v9 = vpop.f32.mrf.mxu2 }
 0x33b   : > { %v10970_v28 = vpop.permute.xlu2 %5979  ;;  %v10972_v45 = vpop.permute.xlu1 %6239  ;;  %v10976_v13 = vadd.f32 %v4696_v9, %v3470_v1 }
 0x33c   : > { %14394 = vst [vmem:[#allocation43_spill] sm:$0xff] %v10970_v28  ;;  %v10974_v51 = vpop.permute.xlu0 %7355  ;;  %v2410_v39 = vpop.f32.mrf.mxu0  ;;  %v9439_v28 = vld [vmem:[#allocation3 + $0xa0] sm:$0xff] }
 0x33d   : > { %14395 = vst [vmem:[#allocation44_spill] sm:$0xff] %v10972_v45  ;;  %v3471_v60 = vpop.f32.mrf.mxu1  ;;  %v9603_v45 = vld [vmem:[#allocation3 + $0x140] sm:$0xff] }
 0x33e   : > { %14396 = vst [vmem:[#allocation45_spill] sm:$0xff] %v10974_v51  ;;  %v3472_v42 = vadd.f32 %v3471_v60, %v2410_v39  ;;  %v5357_v39 = vrot.slane %v10976_v13, 1  ;;  %v5806_v60 = vrot.slane %v10976_v13, 2 }
 0x33f   : > { %14397 = vst [vmem:[#allocation46_spill] sm:$0xff] %v10976_v13 }
 0x340   : > { %6251 = vrot.lane.b32.xlu1 %v10976_v13, %s9840_s22 }
 0x342   : > { %v10980_v62 = vpop.f32.mrf.mxu3  ;;  %v4698_v50 = vpop.f32.mrf.mxu2 }
 0x343   : > { %14398 = vst [vmem:[#allocation47_spill] sm:$0xff] %v10980_v62  ;;  %v10982_v11 = vpop.permute.xlu2 %7359  ;;  %v5064_v58 = vadd.f32 %v4698_v50, %v3472_v42  ;;  %v10984_v48 = vpop.permute.xlu1 %5528  ;;  %v9497_v62 = vld [vmem:[#allocation3 + $0x270] sm:$0xff] }
 0x344   : > { %14399 = vst [vmem:[#allocation48_spill] sm:$0xff] %v10982_v11  ;;  %v10986_v8 = vpop.permute.xlu0 %7069  ;;  %v2413_v1 = vpop.f32.mrf.mxu0 }
 0x345   : > { %14400 = vst [vmem:[#allocation49_spill] sm:$0xff] %v10984_v48  ;;  %v3474_v9 = vpop.f32.mrf.mxu1  ;;  %v5358_v21 = vrot.slane %v5064_v58, 1  ;;  %v5807_v57 = vrot.slane %v5064_v58, 2  ;;  %v9604_v48 = vld [vmem:[#allocation3 + $0x148] sm:$0xff] }
 0x346   : > { %14401 = vst [vmem:[#allocation50_spill] sm:$0xff] %v10986_v8  ;;  %8531 = vmatmul.msk.bf16.gmra.mxu0 %vm2103_vm8, %v9521_v31  ;;  %8939 = vmatmul.msk.bf16.gmra.mxu1 %vm2103_vm8, %v9439_v28  ;;  %v3475_v13 = vadd.f32 %v3474_v9, %v2413_v1 }
 0x347   : > { %8979 = vmatmul.msk.bf16.vlgmr.msrb.gmra.mxu3 %vm2103_vm8, %v9479_v19  ;;  %9351 = vmatmul.msk.bf16.gmra.mxu2 %vm2103_vm8, %v9603_v45  ;;  %v5359_v42 = vsel %vm5329_vm10, %v5357_v39, %v5358_v21  ;;  %v5808_v50 = vsel %vm5778_vm9, %v5806_v60, %v5807_v57 }
 0x348   : > { %6539 = vrot.lane.b32.xlu2 %v5359_v42, %s9843_s8  ;;  %5989 = vrot.lane.b32.xlu1 %v5808_v50, %s9838_s18 }
 0x349   : > { %5540 = vrot.lane.b32.xlu0 %v5359_v42, %s9839_s19  ;;  %v9522_v42 = vld [vmem:[#allocation3 + $0xf8] sm:$0xff] }
 0x34a   : > { %v10999_v58 = vpop.f32.mrf.mxu3  ;;  %v4701_v31 = vpop.f32.mrf.mxu2 }
 0x34b   : > { %14402 = vst [vmem:[#allocation51_spill] sm:$0xff] %v10999_v58  ;;  %v11001_v11 = vpop.permute.xlu2 %7073  ;;  %v11003_v19 = vpop.permute.xlu1 %5977  ;;  %v11007_v39 = vadd.f32 %v4701_v31, %v3475_v13  ;;  %v9440_v31 = vld [vmem:[#allocation3 + $0xa8] sm:$0xff] }
 0x34c   : > { %14403 = vst [vmem:[#allocation52_spill] sm:$0xff] %v11001_v11  ;;  %v11005_v28 = vpop.permute.xlu0 %6807  ;;  %v2415_v45 = vpop.f32.mrf.mxu0  ;;  %v9480_v11 = vld [vmem:[#allocation3 + $0x1e8] sm:$0xff] }
 0x34d   : > { %14404 = vst [vmem:[#allocation53_spill] sm:$0xff] %v11003_v19  ;;  %v3476_v21 = vpop.f32.mrf.mxu1 }
 0x34e   : > { %14405 = vst [vmem:[#allocation54_spill] sm:$0xff] %v11005_v28  ;;  %v3477_v57 = vadd.f32 %v3476_v21, %v2415_v45  ;;  %v5360_v21 = vrot.slane %v11007_v39, 1 }
 0x34f   : > { %14406 = vst [vmem:[#allocation55_spill] sm:$0xff] %v11007_v39 }
 0x350   : > { %6253 = vrot.lane.b32.xlu2 %v11007_v39, %s9840_s22  ;;  %7083 = vrot.lane.b32.xlu1 %v11007_v39, %s9842_s30 }
 0x351   : > { %6819 = vrot.lane.b32.xlu0 %v5808_v50, %s9841_s23  ;;  %v5809_v50 = vrot.slane %v11007_v39, 2 }
 0x352   : > { %v11014_v1 = vpop.f32.mrf.mxu3  ;;  %v4703_v9 = vpop.f32.mrf.mxu2 }
 0x353   : > { %14407 = vst [vmem:[#allocation56_spill] sm:$0xff] %v11014_v1  ;;  %v11016_v60 = vpop.permute.xlu2 %5532  ;;  %v5066_v28 = vadd.f32 %v4703_v9, %v3477_v57  ;;  %v11018_v19 = vpop.permute.xlu1 %7357 }
 0x354   : > { %14408 = vst [vmem:[#allocation57_spill] sm:$0xff] %v11016_v60  ;;  %v11020_v13 = vpop.permute.xlu0 %6529  ;;  %v2418_v8 = vpop.f32.mrf.mxu0 }
 0x355   : > { %14409 = vst [vmem:[#allocation58_spill] sm:$0xff] %v11018_v19  ;;  %v3479_v51 = vpop.f32.mrf.mxu1  ;;  %v5361_v22 = vrot.slane %v5066_v28, 1  ;;  %v5810_v45 = vrot.slane %v5066_v28, 2 }
 0x356   : > { %14410 = vst [vmem:[#allocation59_spill] sm:$0xff] %v11020_v13  ;;  %8532 = vmatmul.msk.bf16.gmra.mxu0 %vm2103_vm8, %v9522_v42  ;;  %8940 = vmatmul.msk.bf16.gmra.mxu1 %vm2103_vm8, %v9440_v31  ;;  %v3480_v31 = vadd.f32 %v3479_v51, %v2418_v8 }
 0x357   : > { %8980 = vmatmul.msk.bf16.gmra.mxu3 %vm2103_vm8, %v9480_v11  ;;  %9352 = vmatmul.msk.bf16.gmra.mxu2 %vm2103_vm8, %v9604_v48  ;;  %v11029_v57 = vsel %vm5778_vm9, %v5809_v50, %v5810_v45  ;;  %v5362_v9 = vsel %vm5329_vm10, %v5360_v21, %v5361_v22 }
 0x358   : > { %14411 = vst [vmem:[#allocation60_spill] sm:$0xff] %v11029_v57  ;;  %5991 = vrot.lane.b32.xlu2 %v11029_v57, %s9838_s18  ;;  %5542 = vrot.lane.b32.xlu1 %v5362_v9, %s9839_s19 }
 0x359   : > { %6541 = vrot.lane.b32.xlu0 %v5362_v9, %s9843_s8 }
 0x35a   : > { %v11036_v28 = vpop.f32.mrf.mxu3  ;;  %v4706_v42 = vpop.f32.mrf.mxu2 }
 0x35b   : > { %14412 = vst [vmem:[#allocation61_spill] sm:$0xff] %v11036_v28  ;;  %v11038_v11 = vpop.permute.xlu2 %6811  ;;  %v11040_v39 = vpop.permute.xlu1 %7071  ;;  %v11044_v22 = vadd.f32 %v4706_v42, %v3480_v31  ;;  %v9605_v31 = vld [vmem:[#allocation3 + $0x150] sm:$0xff] }
 0x35c   : > { %14413 = vst [vmem:[#allocation62_spill] sm:$0xff] %v11038_v11  ;;  %v11042_v48 = vpop.permute.xlu0 %6243  ;;  %v2420_v45 = vpop.f32.mrf.mxu0  ;;  %v9523_v11 = vld [vmem:[#allocation3 + $0x100] sm:$0xff] }
 0x35d   : > { %14414 = vst [vmem:[#allocation63_spill] sm:$0xff] %v11040_v39  ;;  %v3481_v50 = vpop.f32.mrf.mxu1  ;;  %v5363_v15 = vrot.slane %v11044_v22, 1  ;;  %v5812_v4 = vrot.slane %v11044_v22, 2 }
 0x35e   : > { %14415 = vst [vmem:[#allocation64_spill] sm:$0xff] %v11042_v48  ;;  %v3482_v21 = vadd.f32 %v3481_v50, %v2420_v45  ;;  %v9481_v48 = vld [vmem:[#allocation3 + $0x1f0] sm:$0xff] }
 0x35f   : > { %14416 = vst [vmem:[#allocation65_spill] sm:$0xff] %v11044_v22 }
 0x360   : > { %7371 = vrot.lane.b32.xlu2 %v5362_v9, %s9844_s10  ;;  %6821 = vrot.lane.b32.xlu1 %v11029_v57, %s9841_s23  ;;  %v9441_v9 = vld [vmem:[#allocation3 + $0xb0] sm:$0xff] }
 0x361   : > { %6255 = vrot.lane.b32.xlu0 %v11044_v22, %s9840_s22 }
 0x362   : > { %v11051_v60 = vpop.f32.mrf.mxu3  ;;  %v4708_v8 = vpop.f32.mrf.mxu2 }
 0x363   : > { %14417 = vst [vmem:[#allocation66_spill] sm:$0xff] %v11051_v60  ;;  %v11053_v51 = vpop.permute.xlu2 %6533  ;;  %v5068_v13 = vadd.f32 %v4708_v8, %v3482_v21  ;;  %v11055_v39 = vpop.permute.xlu1 %6809 }
 0x364   : > { %14418 = vst [vmem:[#allocation67_spill] sm:$0xff] %v11053_v51  ;;  %v11057_v42 = vpop.permute.xlu0 %5981  ;;  %v2423_v19 = vpop.f32.mrf.mxu0  ;;  %v9524_v51 = vld [vmem:[#allocation3 + $0x108] sm:$0xff] }
 0x365   : > { %14419 = vst [vmem:[#allocation68_spill] sm:$0xff] %v11055_v39  ;;  %v3484_v0 = vpop.f32.mrf.mxu1  ;;  %v5364_v45 = vrot.slane %v5068_v13, 1  ;;  %v5813_v50 = vrot.slane %v5068_v13, 2  ;;  %v9606_v39 = vld [vmem:[#allocation3 + $0x158] sm:$0xff] }
 0x366   : > { %14420 = vst [vmem:[#allocation69_spill] sm:$0xff] %v11057_v42  ;;  %8533 = vmatmul.msk.bf16.gmra.mxu0 %vm2103_vm8, %v9523_v11  ;;  %8941 = vmatmul.msk.bf16.gmra.mxu1 %vm2103_vm8, %v9441_v9  ;;  %v3485_v11 = vadd.f32 %v3484_v0, %v2423_v19  ;;  %v9482_v42 = vld [vmem:[#allocation3 + $0x1f8] sm:$0xff] }
 0x367   : > { %8981 = vmatmul.msk.bf16.gmra.mxu3 %vm2103_vm8, %v9481_v48  ;;  %9353 = vmatmul.msk.bf16.gmra.mxu2 %vm2103_vm8, %v9605_v31  ;;  %v5365_v21 = vsel %vm5329_vm10, %v5363_v15, %v5364_v45  ;;  %v11067_v8 = vsel %vm5778_vm9, %v5812_v4, %v5813_v50 }
 0x368   : > { %14421 = vst [vmem:[#allocation70_spill] sm:$0xff] %v11067_v8  ;;  %7085 = vrot.lane.b32.xlu2 %v11044_v22, %s9842_s30  ;;  %6543 = vrot.lane.b32.xlu1 %v5365_v21, %s9843_s8 }
 0x369   : > { %5993 = vrot.lane.b32.xlu0 %v11067_v8, %s9838_s18 }
 0x36a   : > { %v11074_v13 = vpop.f32.mrf.mxu3  ;;  %v4711_v48 = vpop.f32.mrf.mxu2 }
 0x36b   : > { %14422 = vst [vmem:[#allocation71_spill] sm:$0xff] %v11074_v13  ;;  %v11076_v9 = vpop.permute.xlu2 %6247  ;;  %v11078_v31 = vpop.permute.xlu1 %6531  ;;  %v11082_v50 = vadd.f32 %v4711_v48, %v3485_v11  ;;  %v9442_v48 = vld [vmem:[#allocation3 + $0xb8] sm:$0xff] }
 0x36c   : > { %14423 = vst [vmem:[#allocation72_spill] sm:$0xff] %v11076_v9  ;;  %v11080_v15 = vpop.permute.xlu0 %7361  ;;  %v2425_v4 = vpop.f32.mrf.mxu0 }
 0x36d   : > { %14424 = vst [vmem:[#allocation73_spill] sm:$0xff] %v11078_v31  ;;  %v3486_v45 = vpop.f32.mrf.mxu1 }
 0x36e   : > { %14425 = vst [vmem:[#allocation74_spill] sm:$0xff] %v11080_v15  ;;  %v3487_v22 = vadd.f32 %v3486_v45, %v2425_v4  ;;  %v5815_v4 = vrot.slane %v11082_v50, 2 }
 0x36f   : > { %14426 = vst [vmem:[#allocation75_spill] sm:$0xff] %v11082_v50 }
 0x370   : > { %5544 = vrot.lane.b32.xlu2 %v5365_v21, %s9839_s19  ;;  %6257 = vrot.lane.b32.xlu1 %v11082_v50, %s9840_s22 }
 0x371   : > { %7373 = vrot.lane.b32.xlu0 %v5365_v21, %s9844_s10 }
 0x372   : > { %v11088_v0 = vpop.f32.mrf.mxu3  ;;  %v4713_v19 = vpop.f32.mrf.mxu2 }
 0x373   : > { %14427 = vst [vmem:[#allocation76_spill] sm:$0xff] %v11088_v0  ;;  %v11090_v9 = vpop.permute.xlu2 %5985  ;;  %v5070_v15 = vadd.f32 %v4713_v19, %v3487_v22  ;;  %v11092_v31 = vpop.permute.xlu1 %6245 }
 0x374   : > { %14428 = vst [vmem:[#allocation77_spill] sm:$0xff] %v11090_v9  ;;  %v11094_v11 = vpop.permute.xlu0 %7075  ;;  %v2428_v40 = vpop.f32.mrf.mxu0 }
 0x375   : > { %14429 = vst [vmem:[#allocation78_spill] sm:$0xff] %v11092_v31  ;;  %v3489_v36 = vpop.f32.mrf.mxu1  ;;  %v5816_v7 = vrot.slane %v5070_v15, 2  ;;  %v5367_v45 = vrot.slane %v5070_v15, 1  ;;  %v9525_v31 = vld [vmem:[#allocation3 + $0x110] sm:$0xff] }
 0x376   : > { %14430 = vst [vmem:[#allocation79_spill] sm:$0xff] %v11094_v11  ;;  %8534 = vmatmul.msk.bf16.gmra.mxu0 %vm2103_vm8, %v9524_v51  ;;  %8942 = vmatmul.msk.bf16.gmra.mxu1 %vm2103_vm8, %v9442_v48 }
 0x377   : > { %8982 = vmatmul.msk.bf16.gmra.mxu3 %vm2103_vm8, %v9482_v42  ;;  %9354 = vmatmul.msk.bf16.gmra.mxu2 %vm2103_vm8, %v9606_v39  ;;  %v11102_v22 = vsel %vm5778_vm9, %v5815_v4, %v5816_v7  ;;  %v5366_v4 = vrot.slane %v11082_v50, 1 }
 0x378   : > { %14431 = vst [vmem:[#allocation80_spill] sm:$0xff] %v11102_v22  ;;  %6823 = vrot.lane.b32.xlu2 %v11067_v8, %s9841_s23  ;;  %5995 = vrot.lane.b32.xlu1 %v11102_v22, %s9838_s18 }
 0x379   : > { %7087 = vrot.lane.b32.xlu0 %v11082_v50, %s9842_s30  ;;  %v5368_v9 = vsel %vm5329_vm10, %v5366_v4, %v5367_v45  ;;  %v9607_v50 = vld [vmem:[#allocation3 + $0x160] sm:$0xff] }
 0x37a   : > { %v11110_v21 = vpop.f32.mrf.mxu3  ;;  %v4716_v51 = vpop.f32.mrf.mxu2 }
 0x37b   : > { %14432 = vst [vmem:[#allocation81_spill] sm:$0xff] %v11110_v21  ;;  %v11112_v42 = vpop.permute.xlu2 %7365  ;;  %v11114_v19 = vpop.permute.xlu1 %5983 }
 0x37c   : > { %14433 = vst [vmem:[#allocation82_spill] sm:$0xff] %v11112_v42  ;;  %v11116_v39 = vpop.permute.xlu0 %5534  ;;  %v2430_v7 = vpop.f32.mrf.mxu0  ;;  %v3490_v42 = vadd.f32 %v3489_v36, %v2428_v40 }
 0x37d   : > { %14434 = vst [vmem:[#allocation83_spill] sm:$0xff] %v11114_v19  ;;  %v3491_v48 = vpop.f32.mrf.mxu1  ;;  %v9483_v19 = vld [vmem:[#allocation3 + $0x200] sm:$0xff] }
 0x37e   : > { %14435 = vst [vmem:[#allocation84_spill] sm:$0xff] %v11116_v39  ;;  %v3492_v4 = vadd.f32 %v3491_v48, %v2430_v7  ;;  %v11129_v12 = vadd.f32 %v4716_v51, %v3490_v42 }
 0x380   : > { %6545 = vrot.lane.b32.xlu2 %v5368_v9, %s9843_s8  ;;  %7375 = vrot.lane.b32.xlu1 %v5368_v9, %s9844_s10  ;;  %14439 = vst [vmem:[#allocation88_spill] sm:$0xff] %v11129_v12  ;;  %v5818_v7 = vrot.slane %v11129_v12, 2  ;;  %v5369_v48 = vrot.slane %v11129_v12, 1 }
 0x381   : > { %5546 = vrot.lane.b32.xlu0 %v5368_v9, %s9839_s19 }
 0x382   : > { %v11123_v11 = vpop.f32.mrf.mxu3  ;;  %v4718_v15 = vpop.f32.mrf.mxu2 }
 0x383   : > { %14436 = vst [vmem:[#allocation85_spill] sm:$0xff] %v11123_v11  ;;  %v11125_v32 = vpop.permute.xlu1 %7363  ;;  %v11131_v27 = vpop.permute.xlu2 %7079  ;;  %v5072_v36 = vadd.f32 %v4718_v15, %v3492_v4 }
 0x384   : > { %14437 = vst [vmem:[#allocation86_spill] sm:$0xff] %v11125_v32  ;;  %v11127_v39 = vpop.permute.xlu0 %6813  ;;  %v2433_v49 = vpop.f32.mrf.mxu0 }
 0x385   : > { %14438 = vst [vmem:[#allocation87_spill] sm:$0xff] %v11127_v39  ;;  %v3494_v45 = vpop.f32.mrf.mxu1  ;;  %v5819_v51 = vrot.slane %v5072_v36, 2  ;;  %v9484_v39 = vld [vmem:[#allocation3 + $0x208] sm:$0xff] }
 0x386   : > { %14440 = vst [vmem:[#allocation89_spill] sm:$0xff] %v11131_v27  ;;  %8535 = vmatmul.msk.bf16.gmra.mxu0 %vm2103_vm8, %v9525_v31  ;;  %8943 = vmatmul.msk.bf16.gmra.mxu1 %vm2103_vm8, %v9443_v2  ;;  %v5370_v31 = vrot.slane %v5072_v36, 1 }
 0x387   : > { %8983 = vmatmul.msk.bf16.gmra.mxu3 %vm2103_vm8, %v9483_v19  ;;  %9355 = vmatmul.msk.bf16.gmra.mxu2 %vm2103_vm8, %v9607_v50  ;;  %v11152_v15 = vsel %vm5778_vm9, %v5818_v7, %v5819_v51  ;;  %v9444_v51 = vld [vmem:[#allocation3 + $0xc8] sm:$0xff] }
 0x388   : > { %6259 = vrot.lane.b32.xlu2 %v11129_v12, %s9840_s22  ;;  %7089 = vrot.lane.b32.xlu1 %v11129_v12, %s9842_s30  ;;  %14444 = vst [vmem:[#allocation93_spill] sm:$0xff] %v11152_v15  ;;  %v5371_v4 = vsel %vm5329_vm10, %v5369_v48, %v5370_v31  ;;  %v3495_v12 = vadd.f32 %v3494_v45, %v2433_v49  ;;  %v9608_v7 = vld [vmem:[#allocation3 + $0x168] sm:$0xff] }
 0x389   : > { %6825 = vrot.lane.b32.xlu0 %v11102_v22, %s9841_s23 }
 0x38a   : > { %v11143_v40 = vpop.f32.mrf.mxu3  ;;  %v4721_v9 = vpop.f32.mrf.mxu2 }
 0x38b   : > { %14441 = vst [vmem:[#allocation90_spill] sm:$0xff] %v11143_v40  ;;  %v11145_v42 = vpop.permute.xlu1 %7077  ;;  %v11155_v27 = vpop.permute.xlu2 %6817  ;;  %v11169_v35 = vadd.f32 %v4721_v9, %v3495_v12 }
 0x38c   : > { %14442 = vst [vmem:[#allocation91_spill] sm:$0xff] %v11145_v42  ;;  %v11147_v19 = vpop.permute.xlu0 %6535  ;;  %v2435_v2 = vpop.f32.mrf.mxu0  ;;  %v9526_v42 = vld [vmem:[#allocation3 + $0x118] sm:$0xff] }
 0x38d   : > { %14443 = vst [vmem:[#allocation92_spill] sm:$0xff] %v11147_v19  ;;  %v3496_v50 = vpop.f32.mrf.mxu1 }
 0x38e   : > { %14445 = vst [vmem:[#allocation94_spill] sm:$0xff] %v11155_v27  ;;  %v3497_v27 = vadd.f32 %v3496_v50, %v2435_v2  ;;  %v5372_v2 = vrot.slane %v11169_v35, 1  ;;  %v5821_v50 = vrot.slane %v11169_v35, 2 }
 0x38f   : > { %14449 = vst [vmem:[#allocation98_spill] sm:$0xff] %v11169_v35 }
 0x390   : > { %5997 = vrot.lane.b32.xlu2 %v11152_v15, %s9838_s18  ;;  %5548 = vrot.lane.b32.xlu1 %v5371_v4, %s9839_s19 }
 0x391   : > { %6547 = vrot.lane.b32.xlu0 %v5371_v4, %s9843_s8 }
 0x392   : > { %v11161_v36 = vpop.f32.mrf.mxu3  ;;  %v4723_v19 = vpop.f32.mrf.mxu2 }
 0x393   : > { %14446 = vst [vmem:[#allocation95_spill] sm:$0xff] %v11161_v36  ;;  %v11163_v32 = vpop.permute.xlu1 %5536  ;;  %v5074_v57 = vadd.f32 %v4723_v19, %v3497_v27  ;;  %v11180_v45 = vpop.permute.xlu2 %5538  ;;  %v9453_v36 = vld [vmem:[#allocation3 + $0x110] sm:$0xff] }
 0x394   : > { %14447 = vst [vmem:[#allocation96_spill] sm:$0xff] %v11163_v32  ;;  %v2438_v31 = vpop.f32.mrf.mxu0  ;;  %v11165_v61 = vpop.permute.xlu0 %6249  ;;  %v9485_v32 = vld [vmem:[#allocation3 + $0x210] sm:$0xff] }
 0x395   : > { %v3499_v48 = vpop.f32.mrf.mxu1  ;;  %14448 = vst [vmem:[#allocation97_spill] sm:$0xff] %v11165_v61  ;;  %v5373_v12 = vrot.slane %v5074_v57, 1  ;;  %v5822_v27 = vrot.slane %v5074_v57, 2 }
 0x396   : > { %8536 = vmatmul.msk.bf16.gmra.mxu0 %vm2103_vm8, %v9526_v42  ;;  %8944 = vmatmul.msk.bf16.gmra.mxu1 %vm2103_vm8, %v9444_v51  ;;  %14451 = vst [vmem:[#allocation100_spill] sm:$0xff] %v11180_v45  ;;  %v3500_v45 = vadd.f32 %v3499_v48, %v2438_v31 }
 0x397   : > { %8984 = vmatmul.msk.bf16.gmra.mxu3 %vm2103_vm8, %v9484_v39  ;;  %9356 = vmatmul.msk.bf16.gmra.mxu2 %vm2103_vm8, %v9608_v7  ;;  %v5374_v51 = vsel %vm5329_vm10, %v5372_v2, %v5373_v12  ;;  %v11193_v7 = vsel %vm5778_vm9, %v5821_v50, %v5822_v27  ;;  %v9445_v2 = vld [vmem:[#allocation3 + $0xd0] sm:$0xff] }
 0x398   : > { %7377 = vrot.lane.b32.xlu2 %v5371_v4, %s9844_s10  ;;  %6827 = vrot.lane.b32.xlu1 %v11152_v15, %s9841_s23  ;;  %14454 = vst [vmem:[#allocation103_spill] sm:$0xff] %v11193_v7 }
 0x399   : > { %6261 = vrot.lane.b32.xlu0 %v11169_v35, %s9840_s22 }
 0x39a   : > { %v11178_v49 = vpop.f32.mrf.mxu3  ;;  %v4726_v39 = vpop.f32.mrf.mxu2 }
 0x39b   : > { %14450 = vst [vmem:[#allocation99_spill] sm:$0xff] %v11178_v49  ;;  %v11182_v9 = vpop.permute.xlu1 %6815  ;;  %v11203_v27 = vadd.f32 %v4726_v39, %v3500_v45 }
 0x39c   : > { %14452 = vst [vmem:[#allocation101_spill] sm:$0xff] %v11182_v9  ;;  %v2440_v42 = vpop.f32.mrf.mxu0  ;;  %v11186_v4 = vpop.permute.xlu0 %7367 }
 0x39d   : > { %v3501_v19 = vpop.f32.mrf.mxu1  ;;  %14453 = vst [vmem:[#allocation102_spill] sm:$0xff] %v11186_v4  ;;  %v9527_v4 = vld [vmem:[#allocation3 + $0x120] sm:$0xff]  ;;  %v5375_v34 = vrot.slane %v11203_v27, 1 }
 0x39e   : > { %v3502_v8 = vadd.f32 %v3501_v19, %v2440_v42  ;;  %14458 = vst [vmem:[#allocation107_spill] sm:$0xff] %v11203_v27 }
 0x3a0   : > { %7091 = vrot.lane.b32.xlu2 %v11169_v35, %s9842_s30  ;;  %6549 = vrot.lane.b32.xlu1 %v5374_v51, %s9843_s8  ;;  %v9609_v35 = vld [vmem:[#allocation3 + $0x170] sm:$0xff] }
 0x3a1   : > { %5999 = vrot.lane.b32.xlu0 %v11193_v7, %s9838_s18 }
 0x3a2   : > { %v11197_v57 = vpop.f32.mrf.mxu3  ;;  %v4728_v61 = vpop.f32.mrf.mxu2 }
 0x3a3   : > { %14455 = vst [vmem:[#allocation104_spill] sm:$0xff] %v11197_v57  ;;  %v11199_v9 = vpop.permute.xlu2 %6539  ;;  %v11201_v12 = vpop.permute.xlu1 %6537  ;;  %v5076_v50 = vadd.f32 %v4728_v61, %v3502_v8 }
 0x3a4   : > { %14456 = vst [vmem:[#allocation105_spill] sm:$0xff] %v11199_v9  ;;  %v2443_v15 = vpop.f32.mrf.mxu0  ;;  %v11212_v31 = vpop.permute.xlu0 %7081 }
 0x3a5   : > { %14457 = vst [vmem:[#allocation106_spill] sm:$0xff] %v11201_v12  ;;  %v3504_v22 = vpop.f32.mrf.mxu1  ;;  %v5376_v9 = vrot.slane %v5076_v50, 1  ;;  %v9610_v12 = vld [vmem:[#allocation3 + $0x178] sm:$0xff] }
 0x3a6   : > { %8537 = vmatmul.msk.bf16.gmra.mxu0 %vm2103_vm8, %v9527_v4  ;;  %8945 = vmatmul.msk.bf16.gmra.mxu1 %vm2103_vm8, %v9445_v2  ;;  %14459 = vst [vmem:[#allocation108_spill] sm:$0xff] %v11212_v31 }
 0x3a7   : > { %8985 = vmatmul.msk.bf16.gmra.mxu3 %vm2103_vm8, %v9485_v32  ;;  %9357 = vmatmul.msk.bf16.gmra.mxu2 %vm2103_vm8, %v9609_v35  ;;  %v5825_v32 = vrot.slane %v5076_v50, 2  ;;  %v5824_v35 = vrot.slane %v11203_v27, 2  ;;  %v5377_v50 = vsel %vm5329_vm10, %v5375_v34, %v5376_v9 }
 0x3a8   : > { %5550 = vrot.lane.b32.xlu2 %v5374_v51, %s9839_s19  ;;  %6263 = vrot.lane.b32.xlu1 %v11203_v27, %s9840_s22 }
 0x3a9   : > { %7379 = vrot.lane.b32.xlu0 %v5374_v51, %s9844_s10  ;;  %v11223_v19 = vsel %vm5778_vm9, %v5824_v35, %v5825_v32  ;;  %v9446_v35 = vld [vmem:[#allocation3 + $0xd8] sm:$0xff] }
 0x3aa   : > { %v11215_v48 = vpop.f32.mrf.mxu3  ;;  %v4731_v45 = vpop.f32.mrf.mxu2  ;;  %14463 = vst [vmem:[#allocation112_spill] sm:$0xff] %v11223_v19 }
 0x3ab   : > { %14460 = vst [vmem:[#allocation109_spill] sm:$0xff] %v11215_v48  ;;  %v11217_v39 = vpop.permute.xlu2 %6253  ;;  %v11219_v61 = vpop.permute.xlu1 %7369 }
 0x3ac   : > { %14461 = vst [vmem:[#allocation110_spill] sm:$0xff] %v11217_v39  ;;  %v2445_v8 = vpop.f32.mrf.mxu0  ;;  %v9528_v39 = vld [vmem:[#allocation3 + $0x128] sm:$0xff]  ;;  %v11235_v31 = vpop.permute.xlu0 %5987 }
 0x3ad   : > { %14462 = vst [vmem:[#allocation111_spill] sm:$0xff] %v11219_v61  ;;  %v3506_v42 = vpop.f32.mrf.mxu1  ;;  %v9486_v61 = vld [vmem:[#allocation3 + $0x218] sm:$0xff] }
 0x3ae   : > { %14466 = vst [vmem:[#allocation115_spill] sm:$0xff] %v11235_v31  ;;  %v3507_v54 = vadd.f32 %v3506_v42, %v2445_v8  ;;  %v9447_v42 = vld [vmem:[#allocation3 + $0xe0] sm:$0xff] }
 0x3b0   : > { %6829 = vrot.lane.b32.xlu2 %v11193_v7, %s9841_s23  ;;  %6001 = vrot.lane.b32.xlu1 %v11223_v19, %s9838_s18 }
 0x3b1   : > { %7093 = vrot.lane.b32.xlu0 %v11203_v27, %s9842_s30 }
 0x3b2   : > { %v11231_v4 = vpop.f32.mrf.mxu3  ;;  %v4733_v51 = vpop.f32.mrf.mxu2 }
 0x3b3   : > { %14464 = vst [vmem:[#allocation113_spill] sm:$0xff] %v11231_v4  ;;  %v11233_v2 = vpop.permute.xlu2 %5991  ;;  %v11237_v32 = vpop.permute.xlu1 %6251  ;;  %v5078_v23 = vadd.f32 %v4733_v51, %v3507_v54 }
 0x3b4   : > { %14465 = vst [vmem:[#allocation114_spill] sm:$0xff] %v11233_v2  ;;  %v2448_v7 = vpop.f32.mrf.mxu0 }
 0x3b5   : > { %14467 = vst [vmem:[#allocation116_spill] sm:$0xff] %v11237_v32  ;;  %v3509_v18 = vpop.f32.mrf.mxu1  ;;  %v3505_v32 = vadd.f32 %v3504_v22, %v2443_v15  ;;  %v6503_v8 = vrot.slane %v5078_v23, 1 }
 0x3b6   : > { %8538 = vmatmul.msk.bf16.gmra.mxu0 %vm2103_vm8, %v9528_v39  ;;  %8946 = vmatmul.msk.bf16.gmra.mxu1 %vm2103_vm8, %v9446_v35  ;;  %v3510_v34 = vadd.f32 %v3509_v18, %v2448_v7  ;;  %v6783_v18 = vrot.slane %v5078_v23, 2 }
 0x3b7   : > { %8986 = vmatmul.msk.bf16.gmra.mxu3 %vm2103_vm8, %v9486_v61  ;;  %9358 = vmatmul.msk.bf16.gmra.mxu2 %vm2103_vm8, %v9610_v12  ;;  %v5077_v9 = vadd.f32 %v4731_v45, %v3505_v32 }
 0x3b8   : > { %6551 = vrot.lane.b32.xlu2 %v5377_v50, %s9843_s8  ;;  %7381 = vrot.lane.b32.xlu1 %v5377_v50, %s9844_s10 }
 0x3b9   : > { %5552 = vrot.lane.b32.xlu0 %v5377_v50, %s9839_s19 }
 0x3ba   : > { %v11248_v2 = vpop.f32.mrf.mxu3  ;;  %v4736_v27 = vpop.f32.mrf.mxu2 }
 0x3bb   : > { %14468 = vst [vmem:[#allocation117_spill] sm:$0xff] %v11248_v2  ;;  %v11250_v31 = vpop.permute.xlu2 %7371  ;;  %v11252_v39 = vpop.permute.xlu1 %5989  ;;  %v5079_v50 = vadd.f32 %v4736_v27, %v3510_v34  ;;  %v9611_v27 = vld [vmem:[#allocation3 + $0x180] sm:$0xff]  ;;  %v6502_v34 = vrot.slane %v5077_v9, 1 }
 0x3bc   : > { %14469 = vst [vmem:[#allocation118_spill] sm:$0xff] %v11250_v31  ;;  %v11254_v61 = vpop.permute.xlu0 %5540  ;;  %v2450_v35 = vpop.f32.mrf.mxu0 }
 0x3bd   : > { %14470 = vst [vmem:[#allocation119_spill] sm:$0xff] %v11252_v39  ;;  %v3511_v12 = vpop.f32.mrf.mxu1  ;;  %v9529_v39 = vld [vmem:[#allocation3 + $0x130] sm:$0xff]  ;;  %v6504_v23 = vsel %vm5329_vm10, %v6502_v34, %v6503_v8 }
 0x3be   : > { %14471 = vst [vmem:[#allocation120_spill] sm:$0xff] %v11254_v61  ;;  %v3512_v38 = vadd.f32 %v3511_v12, %v2450_v35  ;;  %v9487_v61 = vld [vmem:[#allocation3 + $0x220] sm:$0xff]  ;;  %v7614_v35 = vrot.slane %v5079_v50, 2 }
 0x3c0   : > { %6265 = vrot.lane.b32.xlu2 %v5077_v9, %s9840_s22  ;;  %7095 = vrot.lane.b32.xlu1 %v5077_v9, %s9842_s30 }
 0x3c1   : > { %6831 = vrot.lane.b32.xlu0 %v11223_v19, %s9841_s23  ;;  %v6782_v19 = vrot.slane %v5077_v9, 2 }
 0x3c2   : > { %v11260_v22 = vpop.f32.mrf.mxu3  ;;  %v4738_v15 = vpop.f32.mrf.mxu2 }
 0x3c3   : > { %14472 = vst [vmem:[#allocation121_spill] sm:$0xff] %v11260_v22  ;;  %v11262_v31 = vpop.permute.xlu2 %7085  ;;  %v5080_v7 = vadd.f32 %v4738_v15, %v3512_v38  ;;  %v11264_v54 = vpop.permute.xlu1 %7083  ;;  %v11274_v38 = vsel %vm5778_vm9, %v6782_v19, %v6783_v18 }
 0x3c4   : > { %14473 = vst [vmem:[#allocation122_spill] sm:$0xff] %v11262_v31  ;;  %v11266_v45 = vpop.permute.xlu0 %6819  ;;  %v2453_v51 = vpop.f32.mrf.mxu0 }
 0x3c5   : > { %14474 = vst [vmem:[#allocation123_spill] sm:$0xff] %v11264_v54  ;;  %v3514_v32 = vpop.f32.mrf.mxu1  ;;  %v7615_v12 = vrot.slane %v5080_v7, 2  ;;  %v7335_v19 = vrot.slane %v5080_v7, 1  ;;  %v9488_v7 = vld [vmem:[#allocation3 + $0x228] sm:$0xff] }
 0x3c6   : > { %14475 = vst [vmem:[#allocation124_spill] sm:$0xff] %v11266_v45  ;;  %8539 = vmatmul.msk.bf16.gmra.mxu0 %vm2103_vm8, %v9529_v39  ;;  %8947 = vmatmul.msk.bf16.gmra.mxu1 %vm2103_vm8, %v9447_v42 }
 0x3c7   : > { %8987 = vmatmul.msk.bf16.gmra.mxu3 %vm2103_vm8, %v9487_v61  ;;  %9359 = vmatmul.msk.bf16.gmra.mxu2 %vm2103_vm8, %v9611_v27  ;;  %14476 = vst [vmem:[#allocation125_spill] sm:$0xff] %v11274_v38  ;;  %v11277_v15 = vsel %vm5778_vm9, %v7614_v35, %v7615_v12  ;;  %v3515_v35 = vadd.f32 %v3514_v32, %v2453_v51  ;;  %v7334_v12 = vrot.slane %v5079_v50, 1  ;;  %v9612_v32 = vld [vmem:[#allocation3 + $0x188] sm:$0xff] }
 0x3c8   : > { %14477 = vst [vmem:[#allocation126_spill] sm:$0xff] %v11277_v15  ;;  %7383 = vrot.lane.b32.xlu2 %v6504_v23, %s9844_s10  ;;  %6833 = vrot.lane.b32.xlu1 %v11274_v38, %s9841_s23 }
 0x3c9   : > { %6553 = vrot.lane.b32.xlu0 %v6504_v23, %s9843_s8  ;;  %v7336_v34 = vsel %vm5329_vm10, %v7334_v12, %v7335_v19 }
 0x3ca   : > { %v11283_v39 = vpop.f32.mrf.mxu3  ;;  %v4741_v61 = vpop.f32.mrf.mxu2 }
 0x3cb   : > { %v11285_v9 = vpop.permute.xlu2 %5544  ;;  %v11287_v42 = vpop.permute.xlu1 %5542  ;;  %v11293_v31 = vadd.f32 %v4741_v61, %v3515_v35 }
 0x3cc   : > { %14478 = vst [vmem:[#allocation127_spill] sm:$0xff] %v11285_v9  ;;  %v11289_v8 = vpop.permute.xlu0 %6541  ;;  %v2455_v18 = vpop.f32.mrf.mxu0 }
 0x3cd   : > { %14479 = vst [vmem:[#allocation128_spill] sm:$0xff] %v11287_v42  ;;  %v3516_v27 = vpop.f32.mrf.mxu1 }
 0x3ce   : > { %14480 = vst [vmem:[#allocation129_spill] sm:$0xff] %v11289_v8  ;;  %v3517_v23 = vadd.f32 %v3516_v27, %v2455_v18  ;;  %v9530_v8 = vld [vmem:[#allocation3 + $0x138] sm:$0xff]  ;;  %v5378_v18 = vrot.slane %v11293_v31, 1  ;;  %v5827_v27 = vrot.slane %v11293_v31, 2 }
 0x3cf   : > { %14481 = vst [vmem:[#allocation130_spill] sm:$0xff] %v11293_v31 }
 0x3d0   : > { %7097 = vrot.lane.b32.xlu2 %v5079_v50, %s9842_s30  ;;  %v9448_v50 = vld [vmem:[#allocation3 + $0xe8] sm:$0xff] }
 0x3d1   : > { %7385 = vrot.lane.b32.xlu0 %v7336_v34, %s9844_s10 }
 0x3d2   : > { %v11296_v54 = vpop.f32.mrf.mxu3  ;;  %v4743_v9 = vpop.f32.mrf.mxu2 }
 0x3d3   : > { %v11298_v42 = vpop.permute.xlu2 %6823  ;;  %v5082_v45 = vadd.f32 %v4743_v9, %v3517_v23  ;;  %v11300_v38 = vpop.permute.xlu1 %6821 }
 0x3d4   : > { %14482 = vst [vmem:[#allocation131_spill] sm:$0xff] %v11298_v42  ;;  %v11302_v51 = vpop.permute.xlu0 %6255  ;;  %v2458_v19 = vpop.f32.mrf.mxu0 }
 0x3d5   : > { %14483 = vst [vmem:[#allocation132_spill] sm:$0xff] %v11300_v38  ;;  %v3519_v61 = vpop.f32.mrf.mxu1  ;;  %v5379_v35 = vrot.slane %v5082_v45, 1  ;;  %v5828_v12 = vrot.slane %v5082_v45, 2 }
 0x3d6   : > { %14484 = vst [vmem:[#allocation133_spill] sm:$0xff] %v11302_v51  ;;  %8540 = vmatmul.msk.bf16.gmra.mxu0 %vm2103_vm8, %v9530_v8  ;;  %v3520_v34 = vadd.f32 %v3519_v61, %v2458_v19  ;;  %8948 = vmatmul.msk.bf16.gmra.mxu1 %vm2103_vm8, %v9448_v50 }
 0x3d7   : > { %8988 = vmatmul.msk.bf16.gmra.mxu3 %vm2103_vm8, %v9488_v7  ;;  %9360 = vmatmul.msk.bf16.gmra.mxu2 %vm2103_vm8, %v9612_v32  ;;  %v5829_v9 = vsel %vm5778_vm9, %v5827_v27, %v5828_v12  ;;  %v5380_v23 = vsel %vm5329_vm10, %v5378_v18, %v5379_v35  ;;  %v9531_v12 = vld [vmem:[#allocation3 + $0x140] sm:$0xff] }
 0x3d8   : > { %6003 = vrot.lane.b32.xlu2 %v5829_v9, %s9838_s18  ;;  %5554 = vrot.lane.b32.xlu1 %v5380_v23, %s9839_s19  ;;  %v9489_v9 = vld [vmem:[#allocation3 + $0x230] sm:$0xff] }
 0x3da   : > { %v11314_v42 = vpop.f32.mrf.mxu3  ;;  %v4746_v45 = vpop.f32.mrf.mxu2 }
 0x3db   : > { %v11316_v51 = vpop.permute.xlu2 %6545  ;;  %v11318_v8 = vadd.f32 %v4746_v45, %v3520_v34  ;;  %v11320_v7 = vpop.permute.xlu1 %6543 }
 0x3dc   : > { %14485 = vst [vmem:[#allocation134_spill] sm:$0xff] %v11316_v51  ;;  %v11322_v50 = vpop.permute.xlu0 %5993  ;;  %v2460_v32 = vpop.f32.mrf.mxu0  ;;  %v9449_v51 = vld [vmem:[#allocation3 + $0xf0] sm:$0xff] }
 0x3dd   : > { %14486 = vst [vmem:[#allocation135_spill] sm:$0xff] %v11318_v8  ;;  %v3521_v19 = vpop.f32.mrf.mxu1  ;;  %6267 = vrot.lane.b32.xlu0 %v11318_v8, %s9840_s22 }
 0x3de   : > { %14487 = vst [vmem:[#allocation136_spill] sm:$0xff] %v11320_v7  ;;  %v3522_v61 = vadd.f32 %v3521_v19, %v2460_v32  ;;  %v5381_v32 = vrot.slane %v11318_v8, 1  ;;  %v5830_v19 = vrot.slane %v11318_v8, 2 }
 0x3df   : > { %14488 = vst [vmem:[#allocation137_spill] sm:$0xff] %v11322_v50  ;;  %v9613_v50 = vld [vmem:[#allocation3 + $0x190] sm:$0xff] }
 0x3e2   : > { %v11326_v18 = vpop.f32.mrf.mxu3  ;;  %v4748_v27 = vpop.f32.mrf.mxu2 }
 0x3e3   : > { %v11328_v35 = vpop.permute.xlu2 %6259  ;;  %v5084_v23 = vadd.f32 %v4748_v27, %v3522_v61  ;;  %v11330_v34 = vpop.permute.xlu1 %6257 }
 0x3e4   : > { %14489 = vst [vmem:[#allocation138_spill] sm:$0xff] %v11328_v35  ;;  %v11332_v45 = vpop.permute.xlu0 %7373  ;;  %v2463_v7 = vpop.f32.mrf.mxu0 }
 0x3e5   : > { %14490 = vst [vmem:[#allocation139_spill] sm:$0xff] %v11330_v34  ;;  %v3524_v38 = vpop.f32.mrf.mxu1  ;;  %v5382_v31 = vrot.slane %v5084_v23, 1  ;;  %v5831_v15 = vrot.slane %v5084_v23, 2 }
 0x3e6   : > { %14491 = vst [vmem:[#allocation140_spill] sm:$0xff] %v11332_v45  ;;  %8541 = vmatmul.msk.bf16.gmra.mxu0 %vm2103_vm8, %v9531_v12  ;;  %8949 = vmatmul.msk.bf16.gmra.mxu1 %vm2103_vm8, %v9449_v51  ;;  %v3525_v35 = vadd.f32 %v3524_v38, %v2463_v7 }
 0x3e7   : > { %8989 = vmatmul.msk.bf16.gmra.mxu3 %vm2103_vm8, %v9489_v9  ;;  %9361 = vmatmul.msk.bf16.gmra.mxu2 %vm2103_vm8, %v9613_v50  ;;  %v5383_v61 = vsel %vm5329_vm10, %v5381_v32, %v5382_v31  ;;  %v5832_v27 = vsel %vm5778_vm9, %v5830_v19, %v5831_v15 }
 0x3e8   : > { %5556 = vrot.lane.b32.xlu2 %v5383_v61, %s9839_s19  ;;  %6555 = vrot.lane.b32.xlu1 %v5383_v61, %s9843_s8  ;;  %v9532_v61 = vld [vmem:[#allocation3 + $0x148] sm:$0xff] }
 0x3e9   : > { %6005 = vrot.lane.b32.xlu0 %v5832_v27, %s9838_s18 }
 0x3ea   : > { %v11345_v23 = vpop.f32.mrf.mxu3  ;;  %v4751_v12 = vpop.f32.mrf.mxu2 }
 0x3eb   : > { %v11347_v34 = vpop.permute.xlu2 %5997  ;;  %v11349_v9 = vpop.permute.xlu1 %5995  ;;  %v11353_v32 = vadd.f32 %v4751_v12, %v3525_v35  ;;  %v9614_v12 = vld [vmem:[#allocation3 + $0x198] sm:$0xff] }
 0x3ec   : > { %14492 = vst [vmem:[#allocation141_spill] sm:$0xff] %v11347_v34  ;;  %v11351_v51 = vpop.permute.xlu0 %7087  ;;  %v2465_v50 = vpop.f32.mrf.mxu0  ;;  %v9490_v34 = vld [vmem:[#allocation3 + $0x238] sm:$0xff] }
 0x3ed   : > { %14493 = vst [vmem:[#allocation142_spill] sm:$0xff] %v11349_v9  ;;  %v3526_v31 = vpop.f32.mrf.mxu1  ;;  %v5384_v52 = vrot.slane %v11353_v32, 1  ;;  %v5833_v16 = vrot.slane %v11353_v32, 2 }
 0x3ee   : > { %14494 = vst [vmem:[#allocation143_spill] sm:$0xff] %v11351_v51  ;;  %v3527_v15 = vadd.f32 %v3526_v31, %v2465_v50 }
 0x3ef   : > { %14495 = vst [vmem:[#allocation144_spill] sm:$0xff] %v11353_v32 }
 0x3f0   : > { %6835 = vrot.lane.b32.xlu2 %v5832_v27, %s9841_s23  ;;  %6269 = vrot.lane.b32.xlu1 %v11353_v32, %s9840_s22  ;;  %v9450_v27 = vld [vmem:[#allocation3 + $0xf8] sm:$0xff] }
 0x3f1   : > { %7099 = vrot.lane.b32.xlu0 %v11353_v32, %s9842_s30  ;;  %v9615_v32 = vld [vmem:[#allocation3 + $0x1a0] sm:$0xff] }
 0x3f2   : > { %v11360_v38 = vpop.f32.mrf.mxu3  ;;  %v4753_v7 = vpop.f32.mrf.mxu2 }
 0x3f3   : > { %v11362_v19 = vpop.permute.xlu2 %7377  ;;  %v5086_v9 = vadd.f32 %v4753_v7, %v3527_v15  ;;  %v11364_v51 = vpop.permute.xlu1 %7375 }
 0x3f4   : > { %14496 = vst [vmem:[#allocation145_spill] sm:$0xff] %v11362_v19  ;;  %v11366_v35 = vpop.permute.xlu0 %5546  ;;  %v2468_v45 = vpop.f32.mrf.mxu0 }
 0x3f5   : > { %14497 = vst [vmem:[#allocation146_spill] sm:$0xff] %v11364_v51  ;;  %v3529_v8 = vpop.f32.mrf.mxu1  ;;  %v5385_v50 = vrot.slane %v5086_v9, 1  ;;  %v5834_v31 = vrot.slane %v5086_v9, 2  ;;  %v9491_v51 = vld [vmem:[#allocation3 + $0x240] sm:$0xff] }
 0x3f6   : > { %14498 = vst [vmem:[#allocation147_spill] sm:$0xff] %v11366_v35  ;;  %8542 = vmatmul.msk.bf16.gmra.mxu0 %vm2103_vm8, %v9532_v61  ;;  %8950 = vmatmul.msk.bf16.gmra.mxu1 %vm2103_vm8, %v9450_v27  ;;  %v3530_v61 = vadd.f32 %v3529_v8, %v2468_v45 }
 0x3f7   : > { %8990 = vmatmul.msk.bf16.gmra.mxu3 %vm2103_vm8, %v9490_v34  ;;  %9362 = vmatmul.msk.bf16.gmra.mxu2 %vm2103_vm8, %v9614_v12  ;;  %v5386_v15 = vsel %vm5329_vm10, %v5384_v52, %v5385_v50  ;;  %v11376_v7 = vsel %vm5778_vm9, %v5833_v16, %v5834_v31 }
 0x3f8   : > { %14499 = vst [vmem:[#allocation148_spill] sm:$0xff] %v11376_v7  ;;  %6557 = vrot.lane.b32.xlu2 %v5386_v15, %s9843_s8  ;;  %6007 = vrot.lane.b32.xlu1 %v11376_v7, %s9838_s18 }
 0x3f9   : > { %5558 = vrot.lane.b32.xlu0 %v5386_v15, %s9839_s19 }
 0x3fa   : > { %v11382_v9 = vpop.f32.mrf.mxu3  ;;  %v4756_v34 = vpop.f32.mrf.mxu2 }
 0x3fb   : > { %v11384_v19 = vpop.permute.xlu2 %7091  ;;  %v11386_v27 = vpop.permute.xlu1 %7089  ;;  %v11390_v50 = vadd.f32 %v4756_v34, %v3530_v61  ;;  %v9451_v34 = vld [vmem:[#allocation3 + $0x100] sm:$0xff] }
 0x3fc   : > { %14500 = vst [vmem:[#allocation149_spill] sm:$0xff] %v11384_v19  ;;  %v11388_v12 = vpop.permute.xlu0 %6825  ;;  %v2470_v52 = vpop.f32.mrf.mxu0 }
 0x3fd   : > { %14501 = vst [vmem:[#allocation150_spill] sm:$0xff] %v11386_v27  ;;  %v3531_v16 = vpop.f32.mrf.mxu1  ;;  %v9533_v27 = vld [vmem:[#allocation3 + $0x150] sm:$0xff]  ;;  %v5387_v22 = vrot.slane %v11390_v50, 1 }
 0x3fe   : > { %14502 = vst [vmem:[#allocation151_spill] sm:$0xff] %v11388_v12  ;;  %v3532_v31 = vadd.f32 %v3531_v16, %v2470_v52 }
 0x3ff   : > { %14503 = vst [vmem:[#allocation152_spill] sm:$0xff] %v11390_v50 }
 0x400   : > { %6271 = vrot.lane.b32.xlu2 %v11390_v50, %s9840_s22  ;;  %7387 = vrot.lane.b32.xlu1 %v5386_v15, %s9844_s10 }
 0x401   : > { %6837 = vrot.lane.b32.xlu0 %v11376_v7, %s9841_s23  ;;  %v5836_v7 = vrot.slane %v11390_v50, 2 }
 0x402   : > { %v11397_v8 = vpop.f32.mrf.mxu3  ;;  %v4758_v45 = vpop.f32.mrf.mxu2 }
 0x403   : > { %v11399_v19 = vpop.permute.xlu2 %5550  ;;  %v5088_v12 = vadd.f32 %v4758_v45, %v3532_v31  ;;  %v11401_v35 = vpop.permute.xlu1 %5548 }
 0x404   : > { %14504 = vst [vmem:[#allocation153_spill] sm:$0xff] %v11399_v19  ;;  %v11403_v61 = vpop.permute.xlu0 %6547  ;;  %v2473_v30 = vpop.f32.mrf.mxu0 }
 0x405   : > { %14505 = vst [vmem:[#allocation154_spill] sm:$0xff] %v11401_v35  ;;  %v3534_v15 = vpop.f32.mrf.mxu1  ;;  %v5388_v52 = vrot.slane %v5088_v12, 1  ;;  %v5837_v16 = vrot.slane %v5088_v12, 2 }
 0x406   : > { %14506 = vst [vmem:[#allocation155_spill] sm:$0xff] %v11403_v61  ;;  %8543 = vmatmul.msk.bf16.gmra.mxu0 %vm2103_vm8, %v9533_v27  ;;  %8951 = vmatmul.msk.bf16.gmra.mxu1 %vm2103_vm8, %v9451_v34  ;;  %v3535_v34 = vadd.f32 %v3534_v15, %v2473_v30  ;;  %v9534_v15 = vld [vmem:[#allocation3 + $0x158] sm:$0xff] }
 0x407   : > { %8991 = vmatmul.msk.bf16.gmra.mxu3 %vm2103_vm8, %v9491_v51  ;;  %9363 = vmatmul.msk.bf16.gmra.mxu2 %vm2103_vm8, %v9615_v32  ;;  %v11412_v31 = vsel %vm5778_vm9, %v5836_v7, %v5837_v16  ;;  %v5389_v45 = vsel %vm5329_vm10, %v5387_v22, %v5388_v52 }
 0x408   : > { %14507 = vst [vmem:[#allocation156_spill] sm:$0xff] %v11412_v31  ;;  %6009 = vrot.lane.b32.xlu2 %v11412_v31, %s9838_s18  ;;  %7101 = vrot.lane.b32.xlu1 %v11390_v50, %s9842_s30 }
 0x409   : > { %6559 = vrot.lane.b32.xlu0 %v5389_v45, %s9843_s8 }
 0x40a   : > { %v11420_v27 = vpop.f32.mrf.mxu3  ;;  %v4761_v51 = vpop.f32.mrf.mxu2 }
 0x40b   : > { %v11422_v12 = vpop.permute.xlu2 %6829  ;;  %v11426_v19 = vpop.permute.xlu1 %6827  ;;  %v11428_v22 = vadd.f32 %v4761_v51, %v3535_v34  ;;  %v9452_v51 = vld [vmem:[#allocation3 + $0x108] sm:$0xff] }
 0x40c   : > { %14508 = vst [vmem:[#allocation157_spill] sm:$0xff] %v11422_v12  ;;  %v11424_v32 = vpop.permute.xlu0 %6261  ;;  %v2475_v7 = vpop.f32.mrf.mxu0  ;;  %v9616_v34 = vld [vmem:[#allocation3 + $0x1a8] sm:$0xff] }
 0x40d   : > { %14509 = vst [vmem:[#allocation158_spill] sm:$0xff] %v11424_v32  ;;  %v3536_v16 = vpop.f32.mrf.mxu1  ;;  %v9492_v32 = vld [vmem:[#allocation3 + $0x248] sm:$0xff] }
 0x40e   : > { %14510 = vst [vmem:[#allocation159_spill] sm:$0xff] %v11426_v19  ;;  %v3537_v52 = vadd.f32 %v3536_v16, %v2475_v7 }
 0x40f   : > { %14511 = vst [vmem:[#allocation160_spill] sm:$0xff] %v11428_v22 }
 0x410   : > { %7389 = vrot.lane.b32.xlu2 %v5389_v45, %s9844_s10  ;;  %5560 = vrot.lane.b32.xlu1 %v5389_v45, %s9839_s19  ;;  %v5839_v45 = vrot.slane %v11428_v22, 2 }
 0x411   : > { %6273 = vrot.lane.b32.xlu0 %v11428_v22, %s9840_s22 }
 0x412   : > { %v11434_v61 = vpop.f32.mrf.mxu3  ;;  %v4763_v12 = vpop.f32.mrf.mxu2 }
 0x413   : > { %v11436_v30 = vpop.permute.xlu2 %6551  ;;  %v5090_v35 = vadd.f32 %v4763_v12, %v3537_v52  ;;  %v11443_v7 = vpop.permute.xlu1 %6549 }
 0x414   : > { %14512 = vst [vmem:[#allocation161_spill] sm:$0xff] %v11436_v30  ;;  %v11438_v50 = vpop.permute.xlu0 %5999  ;;  %v2478_v19 = vpop.f32.mrf.mxu0 }
 0x415   : > { %14513 = vst [vmem:[#allocation162_spill] sm:$0xff] %v11438_v50  ;;  %v3539_v2 = vpop.f32.mrf.mxu1  ;;  %v5840_v57 = vrot.slane %v5090_v35, 2  ;;  %v5391_v52 = vrot.slane %v5090_v35, 1 }
 0x416   : > { %8544 = vmatmul.msk.bf16.gmra.mxu0 %vm2103_vm8, %v9534_v15  ;;  %14514 = vst [vmem:[#allocation163_spill] sm:$0xff] %v11443_v7  ;;  %8952 = vmatmul.msk.bf16.gmra.mxu1 %vm2103_vm8, %v9452_v51  ;;  %v3540_v35 = vadd.f32 %v3539_v2, %v2478_v19 }
 0x417   : > { %8992 = vmatmul.msk.bf16.gmra.mxu3 %vm2103_vm8, %v9492_v32  ;;  %9364 = vmatmul.msk.bf16.gmra.mxu2 %vm2103_vm8, %v9616_v34  ;;  %v11448_v12 = vsel %vm5778_vm9, %v5839_v45, %v5840_v57  ;;  %v5390_v45 = vrot.slane %v11428_v22, 1 }
 0x418   : > { %14515 = vst [vmem:[#allocation164_spill] sm:$0xff] %v11448_v12  ;;  %7103 = vrot.lane.b32.xlu2 %v11428_v22, %s9842_s30  ;;  %6839 = vrot.lane.b32.xlu1 %v11412_v31, %s9841_s23  ;;  %v9535_v31 = vld [vmem:[#allocation3 + $0x160] sm:$0xff]  ;;  %v9617_v22 = vld [vmem:[#allocation3 + $0x1b0] sm:$0xff] }
 0x419   : > { %6011 = vrot.lane.b32.xlu0 %v11448_v12, %s9838_s18  ;;  %v5392_v30 = vsel %vm5329_vm10, %v5390_v45, %v5391_v52 }
 0x41a   : > { %v11456_v16 = vpop.f32.mrf.mxu3  ;;  %v4766_v32 = vpop.f32.mrf.mxu2 }
 0x41b   : > { %v11458_v15 = vpop.permute.xlu2 %6265  ;;  %v11466_v50 = vpop.permute.xlu1 %6263  ;;  %v11473_v11 = vadd.f32 %v4766_v32, %v3540_v35 }
 0x41c   : > { %14516 = vst [vmem:[#allocation165_spill] sm:$0xff] %v11458_v15  ;;  %v11460_v51 = vpop.permute.xlu0 %7379  ;;  %v2480_v34 = vpop.f32.mrf.mxu0 }
 0x41d   : > { %14517 = vst [vmem:[#allocation166_spill] sm:$0xff] %v11460_v51  ;;  %v3541_v57 = vpop.f32.mrf.mxu1  ;;  %v9493_v51 = vld [vmem:[#allocation3 + $0x250] sm:$0xff] }
 0x41e   : > { %14518 = vst [vmem:[#allocation167_spill] sm:$0xff] %v11466_v50  ;;  %v3542_v45 = vadd.f32 %v3541_v57, %v2480_v34  ;;  %v5842_v57 = vrot.slane %v11473_v11, 2  ;;  %v9494_v50 = vld [vmem:[#allocation3 + $0x258] sm:$0xff] }
 0x41f   : > { %14520 = vst [vmem:[#allocation169_spill] sm:$0xff] %v11473_v11 }
 0x420   : > { %5562 = vrot.lane.b32.xlu2 %v5392_v30, %s9839_s19  ;;  %6561 = vrot.lane.b32.xlu1 %v5392_v30, %s9843_s8 }
 0x421   : > { %7391 = vrot.lane.b32.xlu0 %v5392_v30, %s9844_s10 }
 0x422   : > { %v11469_v7 = vpop.f32.mrf.mxu3  ;;  %v4768_v15 = vpop.f32.mrf.mxu2 }
 0x423   : > { %v11475_v21 = vpop.permute.xlu2 %7383  ;;  %v5092_v30 = vadd.f32 %v4768_v15, %v3542_v45 }
 0x424   : > { %v11471_v49 = vpop.permute.xlu0 %7093  ;;  %v2483_v40 = vpop.f32.mrf.mxu0  ;;  %14521 = vst [vmem:[#allocation170_spill] sm:$0xff] %v11475_v21 }
 0x425   : > { %14519 = vst [vmem:[#allocation168_spill] sm:$0xff] %v11471_v49  ;;  %v3544_v52 = vpop.f32.mrf.mxu1  ;;  %v5843_v32 = vrot.slane %v5092_v30, 2 }
 0x426   : > { %8545 = vmatmul.msk.bf16.gmra.mxu0 %vm2103_vm8, %v9535_v31  ;;  %8953 = vmatmul.msk.bf16.gmra.mxu1 %vm2103_vm8, %v9453_v36  ;;  %v5394_v31 = vrot.slane %v5092_v30, 1 }
 0x427   : > { %8993 = vmatmul.msk.bf16.gmra.mxu3 %vm2103_vm8, %v9493_v51  ;;  %9365 = vmatmul.msk.bf16.gmra.mxu2 %vm2103_vm8, %v9617_v22  ;;  %v11489_v51 = vpop.permute.xlu1 %6001  ;;  %v5393_v22 = vrot.slane %v11473_v11, 1  ;;  %v11497_v45 = vsel %vm5778_vm9, %v5842_v57, %v5843_v32 }
 0x428   : > { %6841 = vrot.lane.b32.xlu2 %v11448_v12, %s9841_s23  ;;  %6275 = vrot.lane.b32.xlu1 %v11473_v11, %s9840_s22  ;;  %14522 = vst [vmem:[#allocation171_spill] sm:$0xff] %v11489_v51  ;;  %v3545_v51 = vadd.f32 %v3544_v52, %v2483_v40 }
 0x429   : > { %7105 = vrot.lane.b32.xlu0 %v11473_v11, %s9842_s30  ;;  %v5395_v35 = vsel %vm5329_vm10, %v5393_v22, %v5394_v31  ;;  %14524 = vst [vmem:[#allocation173_spill] sm:$0xff] %v11497_v45  ;;  %v9454_v11 = vld [vmem:[#allocation3 + $0x118] sm:$0xff] }
 0x42a   : > { %v11487_v2 = vpop.f32.mrf.mxu3  ;;  %v4771_v19 = vpop.f32.mrf.mxu2  ;;  %v9618_v31 = vld [vmem:[#allocation3 + $0x1b8] sm:$0xff] }
 0x42b   : > { %v11499_v21 = vpop.permute.xlu2 %7097  ;;  %v11507_v12 = vadd.f32 %v4771_v19, %v3545_v51 }
 0x42c   : > { %v2485_v15 = vpop.f32.mrf.mxu0  ;;  %v11491_v34 = vpop.permute.xlu0 %5552  ;;  %14525 = vst [vmem:[#allocation174_spill] sm:$0xff] %v11499_v21 }
 0x42d   : > { %v3546_v36 = vpop.f32.mrf.mxu1  ;;  %14523 = vst [vmem:[#allocation172_spill] sm:$0xff] %v11491_v34  ;;  %v9536_v34 = vld [vmem:[#allocation3 + $0x168] sm:$0xff] }
 0x42e   : > { %v3547_v57 = vadd.f32 %v3546_v36, %v2485_v15  ;;  %14526 = vst [vmem:[#allocation175_spill] sm:$0xff] %v11507_v12  ;;  %v5396_v36 = vrot.slane %v11507_v12, 1 }
 0x42f   : > { %v11509_v21 = vpop.permute.xlu1 %7381 }
 0x430   : > { %6563 = vrot.lane.b32.xlu2 %v5395_v35, %s9843_s8  ;;  %6013 = vrot.lane.b32.xlu1 %v11497_v45, %s9838_s18  ;;  %14527 = vst [vmem:[#allocation176_spill] sm:$0xff] %v11509_v21 }
 0x431   : > { %5564 = vrot.lane.b32.xlu0 %v5395_v35, %s9839_s19 }
 0x432   : > { %v11505_v30 = vpop.f32.mrf.mxu3  ;;  %v4773_v49 = vpop.f32.mrf.mxu2 }
 0x433   : > { %v5094_v0 = vadd.f32 %v4773_v49, %v3547_v57  ;;  %v11524_v52 = vpop.permute.xlu2 %6003 }
 0x434   : > { %v2488_v22 = vpop.f32.mrf.mxu0  ;;  %v11513_v13 = vpop.permute.xlu0 %6831  ;;  %14529 = vst [vmem:[#allocation178_spill] sm:$0xff] %v11524_v52  ;;  %v9455_v52 = vld [vmem:[#allocation3 + $0x120] sm:$0xff] }
 0x435   : > { %v3549_v32 = vpop.f32.mrf.mxu1  ;;  %14528 = vst [vmem:[#allocation177_spill] sm:$0xff] %v11513_v13  ;;  %v5846_v49 = vrot.slane %v5094_v0, 2  ;;  %v5397_v19 = vrot.slane %v5094_v0, 1 }
 0x436   : > { %8546 = vmatmul.msk.bf16.gmra.mxu0 %vm2103_vm8, %v9536_v34  ;;  %8954 = vmatmul.msk.bf16.gmra.mxu1 %vm2103_vm8, %v9454_v11  ;;  %v5845_v11 = vrot.slane %v11507_v12, 2 }
 0x437   : > { %8994 = vmatmul.msk.bf16.gmra.mxu3 %vm2103_vm8, %v9494_v50  ;;  %9366 = vmatmul.msk.bf16.gmra.mxu2 %vm2103_vm8, %v9618_v31  ;;  %v5398_v31 = vsel %vm5329_vm10, %v5396_v36, %v5397_v19 }
 0x438   : > { %6277 = vrot.lane.b32.xlu2 %v11507_v12, %s9840_s22  ;;  %7393 = vrot.lane.b32.xlu1 %v5395_v35, %s9844_s10  ;;  %v11529_v34 = vsel %vm5778_vm9, %v5845_v11, %v5846_v49  ;;  %v11531_v35 = vpop.permute.xlu1 %7095  ;;  %v9537_v49 = vld [vmem:[#allocation3 + $0x170] sm:$0xff]  ;;  %v9495_v11 = vld [vmem:[#allocation3 + $0x260] sm:$0xff] }
 0x439   : > { %6843 = vrot.lane.b32.xlu0 %v11497_v45, %s9841_s23  ;;  %14530 = vst [vmem:[#allocation179_spill] sm:$0xff] %v11529_v34  ;;  %v9619_v45 = vld [vmem:[#allocation3 + $0x1c0] sm:$0xff] }
 0x43a   : > { %v11522_v40 = vpop.f32.mrf.mxu3  ;;  %v4776_v50 = vpop.f32.mrf.mxu2  ;;  %14531 = vst [vmem:[#allocation180_spill] sm:$0xff] %v11531_v35  ;;  %v3550_v35 = vadd.f32 %v3549_v32, %v2488_v22 }
 0x43c   : > { %v2490_v51 = vpop.f32.mrf.mxu0  ;;  %v11538_v0 = vpop.permute.xlu0 %6553  ;;  %v11547_v19 = vadd.f32 %v4776_v50, %v3550_v35 }
 0x43d   : > { %v3551_v15 = vpop.f32.mrf.mxu1  ;;  %14532 = vst [vmem:[#allocation181_spill] sm:$0xff] %v11538_v0 }
 0x43e   : > { %v3552_v1 = vadd.f32 %v3551_v15, %v2490_v51  ;;  %14534 = vst [vmem:[#allocation183_spill] sm:$0xff] %v11547_v19 }
 0x440   : > { %6015 = vrot.lane.b32.xlu2 %v11529_v34, %s9838_s18  ;;  %7107 = vrot.lane.b32.xlu1 %v11507_v12, %s9842_s30  ;;  %v11559_v15 = vpop.permute.xlu1 %6833 }
 0x441   : > { %6565 = vrot.lane.b32.xlu0 %v5398_v31, %s9843_s8  ;;  %14536 = vst [vmem:[#allocation185_spill] sm:$0xff] %v11559_v15  ;;  %v9496_v15 = vld [vmem:[#allocation3 + $0x268] sm:$0xff] }
 0x442   : > { %v11541_v57 = vpop.f32.mrf.mxu3  ;;  %v4778_v13 = vpop.f32.mrf.mxu2 }
 0x443   : > { %v11543_v21 = vpop.permute.xlu2 %5556  ;;  %v5096_v36 = vadd.f32 %v4778_v13, %v3552_v1  ;;  %v5848_v1 = vrot.slane %v11547_v19, 2 }
 0x444   : > { %14533 = vst [vmem:[#allocation182_spill] sm:$0xff] %v11543_v21  ;;  %v2493_v60 = vpop.f32.mrf.mxu0  ;;  %v11561_v50 = vpop.permute.xlu0 %7385  ;;  %v9456_v21 = vld [vmem:[#allocation3 + $0x128] sm:$0xff] }
 0x445   : > { %v3554_v28 = vpop.f32.mrf.mxu1  ;;  %14537 = vst [vmem:[#allocation186_spill] sm:$0xff] %v11561_v50  ;;  %v9538_v50 = vld [vmem:[#allocation3 + $0x178] sm:$0xff]  ;;  %v5400_v0 = vrot.slane %v5096_v36, 1 }
 0x446   : > { %8547 = vmatmul.msk.bf16.gmra.mxu0 %vm2103_vm8, %v9537_v49  ;;  %8955 = vmatmul.msk.bf16.gmra.mxu1 %vm2103_vm8, %v9455_v52  ;;  %v5849_v52 = vrot.slane %v5096_v36, 2 }
 0x447   : > { %8995 = vmatmul.msk.bf16.gmra.mxu3 %vm2103_vm8, %v9495_v11  ;;  %9367 = vmatmul.msk.bf16.gmra.mxu2 %vm2103_vm8, %v9619_v45 }
 0x448   : > { %7395 = vrot.lane.b32.xlu2 %v5398_v31, %s9844_s10  ;;  %5566 = vrot.lane.b32.xlu1 %v5398_v31, %s9839_s19  ;;  %v11569_v13 = vsel %vm5778_vm9, %v5848_v1, %v5849_v52  ;;  %v5399_v1 = vrot.slane %v11547_v19, 1 }
 0x449   : > { %6279 = vrot.lane.b32.xlu0 %v11547_v19, %s9840_s22  ;;  %14538 = vst [vmem:[#allocation187_spill] sm:$0xff] %v11569_v13 }
 0x44a   : > { %v11555_v22 = vpop.f32.mrf.mxu3  ;;  %v4781_v32 = vpop.f32.mrf.mxu2  ;;  %v5401_v36 = vsel %vm5329_vm10, %v5399_v1, %v5400_v0 }
 0x44b   : > { %v11557_v51 = vpop.permute.xlu2 %6835  ;;  %v11577_v12 = vpop.permute.xlu1 %5554 }
 0x44c   : > { %14535 = vst [vmem:[#allocation184_spill] sm:$0xff] %v11557_v51  ;;  %v2495_v35 = vpop.f32.mrf.mxu0 }
 0x44d   : > { %v3556_v45 = vpop.f32.mrf.mxu1  ;;  %14540 = vst [vmem:[#allocation189_spill] sm:$0xff] %v11577_v12 }
 0x44e   : > { %v3557_v4 = vadd.f32 %v3556_v45, %v2495_v35  ;;  %v9621_v45 = vld [vmem:[#allocation3 + $0x1d0] sm:$0xff] }
 0x44f   : > { %v11579_v51 = vpop.permute.xlu0 %6267 }
 0x450   : > { %7109 = vrot.lane.b32.xlu2 %v11547_v19, %s9842_s30  ;;  %6845 = vrot.lane.b32.xlu1 %v11529_v34, %s9841_s23  ;;  %14541 = vst [vmem:[#allocation190_spill] sm:$0xff] %v11579_v51  ;;  %v9620_v34 = vld [vmem:[#allocation3 + $0x1c8] sm:$0xff]  ;;  %v3555_v51 = vadd.f32 %v3554_v28, %v2493_v60 }
 0x451   : > { %6017 = vrot.lane.b32.xlu0 %v11569_v13, %s9838_s18 }
 0x452   : > { %v11573_v31 = vpop.f32.mrf.mxu3  ;;  %v4783_v49 = vpop.f32.mrf.mxu2  ;;  %v5097_v1 = vadd.f32 %v4781_v32, %v3555_v51  ;;  %v9457_v51 = vld [vmem:[#allocation3 + $0x130] sm:$0xff] }
 0x453   : > { %v11575_v11 = vpop.permute.xlu2 %6557  ;;  %v5098_v48 = vadd.f32 %v4783_v49, %v3557_v4 }
 0x454   : > { %14539 = vst [vmem:[#allocation188_spill] sm:$0xff] %v11575_v11  ;;  %v2498_v58 = vpop.f32.mrf.mxu0 }
 0x455   : > { %v3559_v52 = vpop.f32.mrf.mxu1  ;;  %v6506_v35 = vrot.slane %v5098_v48, 1  ;;  %v6786_v49 = vrot.slane %v5098_v48, 2 }
 0x456   : > { %8548 = vmatmul.msk.bf16.gmra.mxu0 %vm2103_vm8, %v9538_v50  ;;  %8956 = vmatmul.msk.bf16.gmra.mxu1 %vm2103_vm8, %v9456_v21  ;;  %v3560_v0 = vadd.f32 %v3559_v52, %v2498_v58 }
 0x457   : > { %8996 = vmatmul.msk.bf16.gmra.mxu3 %vm2103_vm8, %v9496_v15  ;;  %9368 = vmatmul.msk.bf16.gmra.mxu2 %vm2103_vm8, %v9620_v34 }
 0x458   : > { %5568 = vrot.lane.b32.xlu2 %v5401_v36, %s9839_s19  ;;  %6567 = vrot.lane.b32.xlu1 %v5401_v36, %s9843_s8 }
 0x459   : > { %7397 = vrot.lane.b32.xlu0 %v5401_v36, %s9844_s10 }
 0x45a   : > { %v11590_v11 = vpop.f32.mrf.mxu3  ;;  %v4786_v19 = vpop.f32.mrf.mxu2 }
 0x45b   : > { %v11592_v12 = vpop.permute.xlu2 %6271  ;;  %v11594_v50 = vpop.permute.xlu1 %6555  ;;  %v5099_v36 = vadd.f32 %v4786_v19, %v3560_v0  ;;  %v6505_v0 = vrot.slane %v5097_v1, 1 }
 0x45c   : > { %14542 = vst [vmem:[#allocation191_spill] sm:$0xff] %v11592_v12  ;;  %v11596_v15 = vpop.permute.xlu0 %6005  ;;  %v2500_v21 = vpop.f32.mrf.mxu0 }
 0x45d   : > { %14543 = vst [vmem:[#allocation192_spill] sm:$0xff] %v11594_v50  ;;  %v3561_v34 = vpop.f32.mrf.mxu1 }
 0x45e   : > { %14544 = vst [vmem:[#allocation193_spill] sm:$0xff] %v11596_v15  ;;  %v3562_v60 = vadd.f32 %v3561_v34, %v2500_v21  ;;  %v9539_v15 = vld [vmem:[#allocation3 + $0x180] sm:$0xff]  ;;  %v7617_v21 = vrot.slane %v5099_v36, 2 }
 0x460   : > { %6847 = vrot.lane.b32.xlu2 %v11569_v13, %s9841_s23  ;;  %6281 = vrot.lane.b32.xlu1 %v5097_v1, %s9840_s22 }
 0x461   : > { %7111 = vrot.lane.b32.xlu0 %v5097_v1, %s9842_s30 }
 0x462   : > { %v11602_v28 = vpop.f32.mrf.mxu3  ;;  %v4788_v12 = vpop.f32.mrf.mxu2 }
 0x463   : > { %v11604_v50 = vpop.permute.xlu2 %6009  ;;  %v5100_v58 = vadd.f32 %v4788_v12, %v3562_v60  ;;  %v11606_v32 = vpop.permute.xlu1 %6269  ;;  %v6507_v12 = vsel %vm5329_vm10, %v6505_v0, %v6506_v35  ;;  %v7337_v0 = vrot.slane %v5099_v36, 1 }
 0x464   : > { %14545 = vst [vmem:[#allocation194_spill] sm:$0xff] %v11604_v50  ;;  %v11608_v4 = vpop.permute.xlu0 %7099  ;;  %v2503_v19 = vpop.f32.mrf.mxu0  ;;  %v6785_v50 = vrot.slane %v5097_v1, 2 }
 0x465   : > { %14546 = vst [vmem:[#allocation195_spill] sm:$0xff] %v11606_v32  ;;  %v3564_v52 = vpop.f32.mrf.mxu1  ;;  %v7618_v34 = vrot.slane %v5100_v58, 2 }
 0x466   : > { %14547 = vst [vmem:[#allocation196_spill] sm:$0xff] %v11608_v4  ;;  %8549 = vmatmul.msk.bf16.gmra.mxu0 %vm2103_vm8, %v9539_v15  ;;  %8957 = vmatmul.msk.bf16.gmra.mxu1 %vm2103_vm8, %v9457_v51  ;;  %v11621_v48 = vsel %vm5778_vm9, %v6785_v50, %v6786_v49  ;;  %v7338_v51 = vrot.slane %v5100_v58, 1 }
 0x467   : > { %8997 = vmatmul.msk.bf16.gmra.mxu3 %vm2103_vm8, %v9497_v62  ;;  %9369 = vmatmul.msk.bf16.gmra.mxu2 %vm2103_vm8, %v9621_v45  ;;  %v11616_v60 = vsel %vm5778_vm9, %v7617_v21, %v7618_v34  ;;  %14549 = vst [vmem:[#allocation198_spill] sm:$0xff] %v11621_v48 }
 0x468   : > { %14548 = vst [vmem:[#allocation197_spill] sm:$0xff] %v11616_v60  ;;  %6569 = vrot.lane.b32.xlu2 %v6507_v12, %s9843_s8  ;;  %7399 = vrot.lane.b32.xlu1 %v6507_v12, %s9844_s10  ;;  %v3565_v12 = vadd.f32 %v3564_v52, %v2503_v19  ;;  %v7339_v50 = vsel %vm5329_vm10, %v7337_v0, %v7338_v51  ;;  %v9458_v52 = vld [vmem:[#allocation3 + $0x138] sm:$0xff] }
 0x469   : > { %6849 = vrot.lane.b32.xlu0 %v11621_v48, %s9841_s23  ;;  %v9622_v51 = vld [vmem:[#allocation3 + $0x1d8] sm:$0xff] }
 0x46a   : > { %v11625_v62 = vpop.f32.mrf.mxu3  ;;  %v4791_v15 = vpop.f32.mrf.mxu2 }
 0x46b   : > { %v11627_v1 = vpop.permute.xlu2 %7389  ;;  %v11629_v35 = vpop.permute.xlu1 %6007  ;;  %v11636_v49 = vadd.f32 %v4791_v15, %v3565_v12 }
 0x46c   : > { %14550 = vst [vmem:[#allocation199_spill] sm:$0xff] %v11627_v1  ;;  %v11631_v45 = vpop.permute.xlu0 %5558  ;;  %v2505_v21 = vpop.f32.mrf.mxu0 }
 0x46d   : > { %14551 = vst [vmem:[#allocation200_spill] sm:$0xff] %v11629_v35  ;;  %v3566_v34 = vpop.f32.mrf.mxu1  ;;  %v9540_v35 = vld [vmem:[#allocation3 + $0x188] sm:$0xff]  ;;  %v5851_v15 = vrot.slane %v11636_v49, 2 }
 0x46e   : > { %14552 = vst [vmem:[#allocation201_spill] sm:$0xff] %v11631_v45  ;;  %v3567_v4 = vadd.f32 %v3566_v34, %v2505_v21  ;;  %v9498_v45 = vld [vmem:[#allocation3 + $0x278] sm:$0xff] }
 0x46f   : > { %14553 = vst [vmem:[#allocation202_spill] sm:$0xff] %v11636_v49 }
 0x470   : > { %7401 = vrot.lane.b32.xlu2 %v7339_v50, %s9844_s10  ;;  %7113 = vrot.lane.b32.xlu1 %v5099_v36, %s9842_s30  ;;  %v5402_v36 = vrot.slane %v11636_v49, 1 }
 0x472   : > { %v11638_v32 = vpop.f32.mrf.mxu3  ;;  %v4793_v58 = vpop.f32.mrf.mxu2 }
 0x473   : > { %v11640_v1 = vpop.permute.xlu2 %7103  ;;  %v5102_v60 = vadd.f32 %v4793_v58, %v3567_v4  ;;  %v11642_v48 = vpop.permute.xlu1 %7387 }
 0x474   : > { %14554 = vst [vmem:[#allocation203_spill] sm:$0xff] %v11640_v1  ;;  %v11644_v19 = vpop.permute.xlu0 %6837  ;;  %v2508_v0 = vpop.f32.mrf.mxu0 }
 0x475   : > { %14555 = vst [vmem:[#allocation204_spill] sm:$0xff] %v11642_v48  ;;  %v3569_v50 = vpop.f32.mrf.mxu1  ;;  %v5403_v21 = vrot.slane %v5102_v60, 1  ;;  %v5852_v34 = vrot.slane %v5102_v60, 2 }
 0x476   : > { %14556 = vst [vmem:[#allocation205_spill] sm:$0xff] %v11644_v19  ;;  %8550 = vmatmul.msk.bf16.gmra.mxu0 %vm2103_vm8, %v9540_v35  ;;  %v3570_v12 = vadd.f32 %v3569_v50, %v2508_v0  ;;  %8958 = vmatmul.msk.bf16.gmra.mxu1 %vm2103_vm8, %v9458_v52 }
 0x477   : > { %8998 = vmatmul.msk.bf16.gmra.mxu3 %vm2103_vm8, %v9498_v45  ;;  %9370 = vmatmul.msk.bf16.gmra.mxu2 %vm2103_vm8, %v9622_v51  ;;  %v5853_v4 = vsel %vm5778_vm9, %v5851_v15, %v5852_v34  ;;  %v5404_v58 = vsel %vm5329_vm10, %v5402_v36, %v5403_v21  ;;  %v9541_v34 = vld [vmem:[#allocation3 + $0x190] sm:$0xff] }
 0x478   : > { %6019 = vrot.lane.b32.xlu1 %v5853_v4, %s9838_s18  ;;  %5570 = vrot.lane.b32.xlu0 %v5404_v58, %s9839_s19  ;;  %v9643_v4 = vld [vmem:[#allocation3 + $0x280] sm:$0xff] }
 0x47a   : > { %v11656_v49 = vpop.f32.mrf.mxu3  ;;  %v4796_v60 = vpop.f32.mrf.mxu2 }
 0x47b   : > { %14557 = vst [vmem:[#allocation206_spill] sm:$0xff] %v11656_v49  ;;  %v11658_v1 = vpop.permute.xlu2 %5562  ;;  %v11660_v35 = vadd.f32 %v4796_v60, %v3570_v12  ;;  %v11662_v45 = vpop.permute.xlu1 %7101 }
 0x47c   : > { %14558 = vst [vmem:[#allocation207_spill] sm:$0xff] %v11658_v1  ;;  %v11664_v52 = vpop.permute.xlu0 %6559  ;;  %v2510_v51 = vpop.f32.mrf.mxu0  ;;  %v9459_v1 = vld [vmem:[#allocation3 + $0x140] sm:$0xff] }
 0x47d   : > { %14559 = vst [vmem:[#allocation208_spill] sm:$0xff] %v11660_v35  ;;  %v3571_v0 = vpop.f32.mrf.mxu1  ;;  %6283 = vrot.lane.b32.xlu2 %v11660_v35, %s9840_s22 }
 0x47e   : > { %14560 = vst [vmem:[#allocation209_spill] sm:$0xff] %v11662_v45  ;;  %v3572_v50 = vadd.f32 %v3571_v0, %v2510_v51  ;;  %v5854_v51 = vrot.slane %v11660_v35, 2  ;;  %v5405_v0 = vrot.slane %v11660_v35, 1 }
 0x47f   : > { %14561 = vst [vmem:[#allocation210_spill] sm:$0xff] %v11664_v52  ;;  %v9623_v52 = vld [vmem:[#allocation3 + $0x1e0] sm:$0xff] }
 0x482   : > { %v11668_v36 = vpop.f32.mrf.mxu3  ;;  %v4798_v15 = vpop.f32.mrf.mxu2 }
 0x483   : > { %14562 = vst [vmem:[#allocation211_spill] sm:$0xff] %v11668_v36  ;;  %v11670_v21 = vpop.permute.xlu2 %6841  ;;  %v5104_v58 = vadd.f32 %v4798_v15, %v3572_v50  ;;  %v11672_v12 = vpop.permute.xlu1 %5560 }
 0x484   : > { %14563 = vst [vmem:[#allocation212_spill] sm:$0xff] %v11670_v21  ;;  %v11674_v60 = vpop.permute.xlu0 %6273  ;;  %v2513_v45 = vpop.f32.mrf.mxu0 }
 0x485   : > { %14564 = vst [vmem:[#allocation213_spill] sm:$0xff] %v11672_v12  ;;  %v3574_v19 = vpop.f32.mrf.mxu1  ;;  %v5406_v48 = vrot.slane %v5104_v58, 1  ;;  %v5855_v13 = vrot.slane %v5104_v58, 2 }
 0x486   : > { %14565 = vst [vmem:[#allocation214_spill] sm:$0xff] %v11674_v60  ;;  %8551 = vmatmul.msk.bf16.gmra.mxu0 %vm2103_vm8, %v9541_v34  ;;  %8959 = vmatmul.msk.bf16.gmra.mxu1 %vm2103_vm8, %v9459_v1  ;;  %v3575_v35 = vadd.f32 %v3574_v19, %v2513_v45 }
 0x487   : > { %9391 = vmatmul.msk.bf16.vlgmr.msra.gmra.mxu3 %vm2103_vm8, %v9643_v4  ;;  %9371 = vmatmul.msk.bf16.gmra.mxu2 %vm2103_vm8, %v9623_v52  ;;  %v5856_v50 = vsel %vm5778_vm9, %v5854_v51, %v5855_v13  ;;  %v5407_v15 = vsel %vm5329_vm10, %v5405_v0, %v5406_v48 }
 0x488   : > { %6021 = vrot.lane.b32.xlu2 %v5856_v50, %s9838_s18  ;;  %5572 = vrot.lane.b32.xlu1 %v5407_v15, %s9839_s19 }
 0x489   : > { %6571 = vrot.lane.b32.xlu0 %v5407_v15, %s9843_s8  ;;  %v9644_v15 = vld [vmem:[#allocation3 + $0x288] sm:$0xff] }
 0x48a   : > { %v11687_v58 = vpop.f32.mrf.mxu3  ;;  %v4801_v34 = vpop.f32.mrf.mxu2 }
 0x48b   : > { %14566 = vst [vmem:[#allocation215_spill] sm:$0xff] %v11687_v58  ;;  %v11689_v21 = vpop.permute.xlu2 %6563  ;;  %v11691_v4 = vpop.permute.xlu1 %6839  ;;  %v11695_v51 = vadd.f32 %v4801_v34, %v3575_v35  ;;  %v9624_v34 = vld [vmem:[#allocation3 + $0x1e8] sm:$0xff] }
 0x48c   : > { %14567 = vst [vmem:[#allocation216_spill] sm:$0xff] %v11689_v21  ;;  %v11693_v1 = vpop.permute.xlu0 %6011  ;;  %v2515_v52 = vpop.f32.mrf.mxu0  ;;  %v9542_v21 = vld [vmem:[#allocation3 + $0x198] sm:$0xff] }
 0x48d   : > { %14568 = vst [vmem:[#allocation217_spill] sm:$0xff] %v11691_v4  ;;  %v3576_v13 = vpop.f32.mrf.mxu1  ;;  %v9460_v4 = vld [vmem:[#allocation3 + $0x148] sm:$0xff]  ;;  %v5408_v58 = vrot.slane %v11695_v51, 1 }
 0x48e   : > { %14569 = vst [vmem:[#allocation218_spill] sm:$0xff] %v11693_v1  ;;  %v3577_v48 = vadd.f32 %v3576_v13, %v2515_v52 }
 0x48f   : > { %14570 = vst [vmem:[#allocation219_spill] sm:$0xff] %v11695_v51 }
 0x490   : > { %7115 = vrot.lane.b32.xlu2 %v11695_v51, %s9842_s30  ;;  %6851 = vrot.lane.b32.xlu1 %v5856_v50, %s9841_s23 }
 0x491   : > { %6285 = vrot.lane.b32.xlu0 %v11695_v51, %s9840_s22 }
 0x492   : > { %v11702_v19 = vpop.f32.mrf.mxu3  ;;  %v4803_v45 = vpop.f32.mrf.mxu2 }
 0x493   : > { %14571 = vst [vmem:[#allocation220_spill] sm:$0xff] %v11702_v19  ;;  %v11704_v0 = vpop.permute.xlu2 %6277  ;;  %v5106_v1 = vadd.f32 %v4803_v45, %v3577_v48  ;;  %v11706_v60 = vpop.permute.xlu1 %6561  ;;  %v5857_v19 = vrot.slane %v11695_v51, 2 }
 0x494   : > { %14572 = vst [vmem:[#allocation221_spill] sm:$0xff] %v11704_v0  ;;  %v11708_v35 = vpop.permute.xlu0 %7391  ;;  %v2518_v12 = vpop.f32.mrf.mxu0 }
 0x495   : > { %14573 = vst [vmem:[#allocation222_spill] sm:$0xff] %v11706_v60  ;;  %v3579_v50 = vpop.f32.mrf.mxu1  ;;  %v5409_v52 = vrot.slane %v5106_v1, 1  ;;  %v5858_v13 = vrot.slane %v5106_v1, 2  ;;  %v9461_v60 = vld [vmem:[#allocation3 + $0x150] sm:$0xff] }
 0x496   : > { %14574 = vst [vmem:[#allocation223_spill] sm:$0xff] %v11708_v35  ;;  %8552 = vmatmul.msk.bf16.gmra.mxu0 %vm2103_vm8, %v9542_v21  ;;  %8960 = vmatmul.msk.bf16.gmra.mxu1 %vm2103_vm8, %v9460_v4  ;;  %v3580_v1 = vadd.f32 %v3579_v50, %v2518_v12 }
 0x497   : > { %9392 = vmatmul.msk.bf16.gmra.mxu3 %vm2103_vm8, %v9644_v15  ;;  %9372 = vmatmul.msk.bf16.gmra.mxu2 %vm2103_vm8, %v9624_v34  ;;  %v11716_v48 = vsel %vm5329_vm10, %v5408_v58, %v5409_v52  ;;  %v11719_v45 = vsel %vm5778_vm9, %v5857_v19, %v5858_v13 }
 0x498   : > { %14575 = vst [vmem:[#allocation224_spill] sm:$0xff] %v11716_v48  ;;  %5574 = vrot.lane.b32.xlu2 %v11716_v48, %s9839_s19  ;;  %6573 = vrot.lane.b32.xlu1 %v11716_v48, %s9843_s8 }
 0x499   : > { %14576 = vst [vmem:[#allocation225_spill] sm:$0xff] %v11719_v45  ;;  %6023 = vrot.lane.b32.xlu0 %v11719_v45, %s9838_s18 }
 0x49a   : > { %v11728_v21 = vpop.f32.mrf.mxu3  ;;  %v4806_v15 = vpop.f32.mrf.mxu2 }
 0x49b   : > { %14577 = vst [vmem:[#allocation226_spill] sm:$0xff] %v11728_v21  ;;  %v11730_v58 = vpop.permute.xlu2 %6015  ;;  %v11732_v34 = vpop.permute.xlu1 %6275  ;;  %v11736_v13 = vadd.f32 %v4806_v15, %v3580_v1  ;;  %v9625_v15 = vld [vmem:[#allocation3 + $0x1f0] sm:$0xff] }
 0x49c   : > { %14578 = vst [vmem:[#allocation227_spill] sm:$0xff] %v11730_v58  ;;  %v11734_v19 = vpop.permute.xlu0 %7105  ;;  %v2520_v4 = vpop.f32.mrf.mxu0 }
 0x49d   : > { %14579 = vst [vmem:[#allocation228_spill] sm:$0xff] %v11732_v34  ;;  %v3581_v52 = vpop.f32.mrf.mxu1  ;;  %v9543_v34 = vld [vmem:[#allocation3 + $0x1a0] sm:$0xff] }
 0x49e   : > { %14580 = vst [vmem:[#allocation229_spill] sm:$0xff] %v11734_v19  ;;  %v3582_v0 = vadd.f32 %v3581_v52, %v2520_v4  ;;  %v9645_v19 = vld [vmem:[#allocation3 + $0x290] sm:$0xff]  ;;  %v5411_v52 = vrot.slane %v11736_v13, 1 }
 0x49f   : > { %14581 = vst [vmem:[#allocation230_spill] sm:$0xff] %v11736_v13 }
 0x4a0   : > { %6853 = vrot.lane.b32.xlu2 %v11719_v45, %s9841_s23  ;;  %6287 = vrot.lane.b32.xlu1 %v11736_v13, %s9840_s22 }
 0x4a1   : > { %7117 = vrot.lane.b32.xlu0 %v11736_v13, %s9842_s30 }
 0x4a2   : > { %v11744_v12 = vpop.f32.mrf.mxu3  ;;  %v4808_v50 = vpop.f32.mrf.mxu2 }
 0x4a3   : > { %14582 = vst [vmem:[#allocation231_spill] sm:$0xff] %v11744_v12  ;;  %v11746_v58 = vpop.permute.xlu2 %7395  ;;  %v5108_v35 = vadd.f32 %v4808_v50, %v3582_v0  ;;  %v11748_v1 = vpop.permute.xlu1 %6013  ;;  %v5860_v12 = vrot.slane %v11736_v13, 2 }
 0x4a4   : > { %14583 = vst [vmem:[#allocation232_spill] sm:$0xff] %v11746_v58  ;;  %v2523_v51 = vpop.f32.mrf.mxu0  ;;  %v11750_v4 = vpop.permute.xlu0 %5564 }
 0x4a5   : > { %14584 = vst [vmem:[#allocation233_spill] sm:$0xff] %v11748_v1  ;;  %v3584_v45 = vpop.f32.mrf.mxu1  ;;  %v5412_v48 = vrot.slane %v5108_v35, 1  ;;  %v5861_v21 = vrot.slane %v5108_v35, 2  ;;  %v9544_v1 = vld [vmem:[#allocation3 + $0x1a8] sm:$0xff] }
 0x4a6   : > { %14585 = vst [vmem:[#allocation234_spill] sm:$0xff] %v11750_v4  ;;  %8553 = vmatmul.msk.bf16.gmra.mxu0 %vm2103_vm8, %v9543_v34  ;;  %8961 = vmatmul.msk.bf16.gmra.mxu1 %vm2103_vm8, %v9461_v60  ;;  %v9462_v4 = vld [vmem:[#allocation3 + $0x158] sm:$0xff] }
 0x4a7   : > { %9393 = vmatmul.msk.bf16.gmra.mxu3 %vm2103_vm8, %v9645_v19  ;;  %v11757_v0 = vsel %vm5329_vm10, %v5411_v52, %v5412_v48  ;;  %v11760_v50 = vsel %vm5778_vm9, %v5860_v12, %v5861_v21  ;;  %9373 = vmatmul.msk.bf16.gmra.mxu2 %vm2103_vm8, %v9625_v15  ;;  %v3585_v48 = vadd.f32 %v3584_v45, %v2523_v51 }
 0x4a8   : > { %14586 = vst [vmem:[#allocation235_spill] sm:$0xff] %v11757_v0  ;;  %6575 = vrot.lane.b32.xlu2 %v11757_v0, %s9843_s8  ;;  %6025 = vrot.lane.b32.xlu1 %v11760_v50, %s9838_s18 }
 0x4a9   : > { %14587 = vst [vmem:[#allocation236_spill] sm:$0xff] %v11760_v50  ;;  %5576 = vrot.lane.b32.xlu0 %v11757_v0, %s9839_s19 }
 0x4aa   : > { %v11770_v35 = vpop.f32.mrf.mxu3  ;;  %v4811_v34 = vpop.f32.mrf.mxu2 }
 0x4ab   : > { %14588 = vst [vmem:[#allocation237_spill] sm:$0xff] %v11770_v35  ;;  %v11772_v19 = vpop.permute.xlu2 %7109  ;;  %v11774_v21 = vpop.permute.xlu1 %7393  ;;  %v11776_v60 = vadd.f32 %v4811_v34, %v3585_v48 }
 0x4ac   : > { %14589 = vst [vmem:[#allocation238_spill] sm:$0xff] %v11772_v19  ;;  %v2525_v12 = vpop.f32.mrf.mxu0  ;;  %v11778_v52 = vpop.permute.xlu0 %6843  ;;  %v9646_v19 = vld [vmem:[#allocation3 + $0x298] sm:$0xff] }
 0x4ad   : > { %14590 = vst [vmem:[#allocation239_spill] sm:$0xff] %v11774_v21  ;;  %v3586_v15 = vpop.f32.mrf.mxu1 }
 0x4ae   : > { %14591 = vst [vmem:[#allocation240_spill] sm:$0xff] %v11776_v60  ;;  %v3587_v58 = vadd.f32 %v3586_v15, %v2525_v12  ;;  %v5863_v12 = vrot.slane %v11776_v60, 2  ;;  %v5414_v15 = vrot.slane %v11776_v60, 1 }
 0x4af   : > { %14592 = vst [vmem:[#allocation241_spill] sm:$0xff] %v11778_v52  ;;  %v9626_v52 = vld [vmem:[#allocation3 + $0x1f8] sm:$0xff] }
 0x4b0   : > { %6289 = vrot.lane.b32.xlu2 %v11776_v60, %s9840_s22  ;;  %7119 = vrot.lane.b32.xlu1 %v11776_v60, %s9842_s30 }
 0x4b1   : > { %6855 = vrot.lane.b32.xlu0 %v11760_v50, %s9841_s23 }
 0x4b2   : > { %v11786_v51 = vpop.f32.mrf.mxu3  ;;  %v4813_v45 = vpop.f32.mrf.mxu2 }
 0x4b3   : > { %14593 = vst [vmem:[#allocation242_spill] sm:$0xff] %v11786_v51  ;;  %v5110_v21 = vadd.f32 %v4813_v45, %v3587_v58  ;;  %v11788_v48 = vpop.permute.xlu2 %5568  ;;  %v11790_v34 = vpop.permute.xlu1 %7107 }
 0x4b4   : > { %14594 = vst [vmem:[#allocation243_spill] sm:$0xff] %v11788_v48  ;;  %v2528_v13 = vpop.f32.mrf.mxu0 }
 0x4b5   : > { %14595 = vst [vmem:[#allocation244_spill] sm:$0xff] %v11790_v34  ;;  %v3589_v0 = vpop.f32.mrf.mxu1  ;;  %v5415_v35 = vrot.slane %v5110_v21, 1  ;;  %v5864_v36 = vrot.slane %v5110_v21, 2  ;;  %v11808_v21 = vpop.permute.xlu0 %6565 }
 0x4b6   : > { %8554 = vmatmul.msk.bf16.gmra.mxu0 %vm2103_vm8, %v9544_v1  ;;  %8962 = vmatmul.msk.bf16.gmra.mxu1 %vm2103_vm8, %v9462_v4  ;;  %14598 = vst [vmem:[#allocation247_spill] sm:$0xff] %v11808_v21  ;;  %v3590_v1 = vadd.f32 %v3589_v0, %v2528_v13  ;;  %v9647_v21 = vld [vmem:[#allocation3 + $0x2a0] sm:$0xff] }
 0x4b7   : > { %9394 = vmatmul.msk.bf16.gmra.mxu3 %vm2103_vm8, %v9646_v19  ;;  %v11797_v58 = vsel %vm5778_vm9, %v5863_v12, %v5864_v36  ;;  %v11800_v45 = vsel %vm5329_vm10, %v5414_v15, %v5415_v35  ;;  %9374 = vmatmul.msk.bf16.gmra.mxu2 %vm2103_vm8, %v9626_v52 }
 0x4b8   : > { %14596 = vst [vmem:[#allocation245_spill] sm:$0xff] %v11797_v58  ;;  %6027 = vrot.lane.b32.xlu2 %v11797_v58, %s9838_s18  ;;  %5578 = vrot.lane.b32.xlu1 %v11800_v45, %s9839_s19 }
 0x4b9   : > { %14597 = vst [vmem:[#allocation246_spill] sm:$0xff] %v11800_v45  ;;  %6577 = vrot.lane.b32.xlu0 %v11800_v45, %s9843_s8 }
 0x4ba   : > { %v11812_v36 = vpop.f32.mrf.mxu3  ;;  %v4816_v35 = vpop.f32.mrf.mxu2 }
 0x4bb   : > { %14599 = vst [vmem:[#allocation248_spill] sm:$0xff] %v11812_v36  ;;  %v11814_v19 = vpop.permute.xlu1 %5566  ;;  %v11816_v4 = vadd.f32 %v4816_v35, %v3590_v1  ;;  %v11818_v15 = vpop.permute.xlu2 %6847 }
 0x4bc   : > { %14600 = vst [vmem:[#allocation249_spill] sm:$0xff] %v11814_v19  ;;  %v2530_v52 = vpop.f32.mrf.mxu0 }
 0x4bd   : > { %v3591_v12 = vpop.f32.mrf.mxu1  ;;  %14601 = vst [vmem:[#allocation250_spill] sm:$0xff] %v11816_v4  ;;  %v11828_v19 = vpop.permute.xlu0 %6279  ;;  %v5417_v45 = vrot.slane %v11816_v4, 1 }
 0x4be   : > { %14602 = vst [vmem:[#allocation251_spill] sm:$0xff] %v11818_v15  ;;  %v3592_v48 = vadd.f32 %v3591_v12, %v2530_v52  ;;  %v5866_v52 = vrot.slane %v11816_v4, 2 }
 0x4bf   : > { %14604 = vst [vmem:[#allocation253_spill] sm:$0xff] %v11828_v19 }
 0x4c0   : > { %7121 = vrot.lane.b32.xlu2 %v11816_v4, %s9842_s30  ;;  %6857 = vrot.lane.b32.xlu1 %v11797_v58, %s9841_s23 }
 0x4c1   : > { %6291 = vrot.lane.b32.xlu0 %v11816_v4, %s9840_s22  ;;  %v9648_v4 = vld [vmem:[#allocation3 + $0x2a8] sm:$0xff] }
 0x4c2   : > { %v11826_v13 = vpop.f32.mrf.mxu3  ;;  %v4818_v0 = vpop.f32.mrf.mxu2 }
 0x4c3   : > { %14603 = vst [vmem:[#allocation252_spill] sm:$0xff] %v11826_v13  ;;  %v5112_v1 = vadd.f32 %v4818_v0, %v3592_v48  ;;  %v11830_v35 = vpop.permute.xlu1 %6845  ;;  %v11841_v19 = vpop.permute.xlu2 %6569  ;;  %v9545_v13 = vld [vmem:[#allocation3 + $0x1b0] sm:$0xff] }
 0x4c4   : > { %14605 = vst [vmem:[#allocation254_spill] sm:$0xff] %v11830_v35  ;;  %v2533_v15 = vpop.f32.mrf.mxu0 }
 0x4c5   : > { %v3594_v34 = vpop.f32.mrf.mxu1  ;;  %v5418_v60 = vrot.slane %v5112_v1, 1  ;;  %v5867_v50 = vrot.slane %v5112_v1, 2  ;;  %14608 = vst [vmem:[#allocation257_spill] sm:$0xff] %v11841_v19  ;;  %v11853_v1 = vpop.permute.xlu0 %6017 }
 0x4c6   : > { %14611 = vst [vmem:[#allocation260_spill] sm:$0xff] %v11853_v1  ;;  %8555 = vmatmul.msk.bf16.gmra.mxu0 %vm2103_vm8, %v9545_v13 }
 0x4c7   : > { %9395 = vmatmul.msk.bf16.gmra.mxu3 %vm2103_vm8, %v9647_v21  ;;  %v11836_v12 = vsel %vm5329_vm10, %v5417_v45, %v5418_v60  ;;  %v11839_v58 = vsel %vm5778_vm9, %v5866_v52, %v5867_v50  ;;  %v3595_v21 = vadd.f32 %v3594_v34, %v2533_v15  ;;  %v9627_v15 = vld [vmem:[#allocation3 + $0x200] sm:$0xff] }
 0x4c8   : > { %14606 = vst [vmem:[#allocation255_spill] sm:$0xff] %v11836_v12  ;;  %5580 = vrot.lane.b32.xlu2 %v11836_v12, %s9839_s19  ;;  %6579 = vrot.lane.b32.xlu1 %v11836_v12, %s9843_s8 }
 0x4c9   : > { %14607 = vst [vmem:[#allocation256_spill] sm:$0xff] %v11839_v58  ;;  %6029 = vrot.lane.b32.xlu0 %v11839_v58, %s9838_s18  ;;  %9375 = vmatmul.msk.bf16.gmra.mxu2 %vm2103_vm8, %v9627_v15 }
 0x4ca   : > { %v11849_v48 = vpop.f32.mrf.mxu3  ;;  %v4821_v0 = vpop.f32.mrf.mxu2 }
 0x4cb   : > { %14609 = vst [vmem:[#allocation258_spill] sm:$0xff] %v11849_v48  ;;  %v11851_v60 = vpop.permute.xlu1 %6567  ;;  %v11855_v52 = vadd.f32 %v4821_v0, %v3595_v21 }
 0x4cc   : > { %14610 = vst [vmem:[#allocation259_spill] sm:$0xff] %v11851_v60  ;;  %v2535_v45 = vpop.f32.mrf.mxu0  ;;  %v11865_v60 = vpop.permute.xlu2 %7401 }
 0x4cd   : > { %v3596_v50 = vpop.f32.mrf.mxu1  ;;  %14612 = vst [vmem:[#allocation261_spill] sm:$0xff] %v11855_v52 }
 0x4ce   : > { %v3597_v19 = vadd.f32 %v3596_v50, %v2535_v45  ;;  %14614 = vst [vmem:[#allocation263_spill] sm:$0xff] %v11865_v60  ;;  %v5420_v45 = vrot.slane %v11855_v52, 1  ;;  %v5869_v50 = vrot.slane %v11855_v52, 2  ;;  %v11873_v60 = vpop.permute.xlu0 %7397 }
 0x4cf   : > { %14616 = vst [vmem:[#allocation265_spill] sm:$0xff] %v11873_v60 }
 0x4d0   : > { %6859 = vrot.lane.b32.xlu2 %v11839_v58, %s9841_s23  ;;  %6293 = vrot.lane.b32.xlu1 %v11855_v52, %s9840_s22 }
 0x4d1   : > { %7123 = vrot.lane.b32.xlu0 %v11855_v52, %s9842_s30 }
 0x4d2   : > { %v11863_v34 = vpop.f32.mrf.mxu3  ;;  %v4823_v35 = vpop.f32.mrf.mxu2 }
 0x4d3   : > { %14613 = vst [vmem:[#allocation262_spill] sm:$0xff] %v11863_v34  ;;  %v5114_v1 = vadd.f32 %v4823_v35, %v3597_v19  ;;  %v11868_v48 = vpop.permute.xlu1 %6281  ;;  %v9463_v34 = vld [vmem:[#allocation3 + $0x160] sm:$0xff] }
 0x4d4   : > { %v2538_v21 = vpop.f32.mrf.mxu0  ;;  %14615 = vst [vmem:[#allocation264_spill] sm:$0xff] %v11868_v48  ;;  %8963 = vmatmul.msk.bf16.gmra.mxu1 %vm2103_vm8, %v9463_v34 }
 0x4d5   : > { %v3599_v0 = vpop.f32.mrf.mxu1  ;;  %v5421_v58 = vrot.slane %v5114_v1, 1  ;;  %v5870_v12 = vrot.slane %v5114_v1, 2 }
 0x4d7   : > { %9396 = vmatmul.msk.bf16.gmra.mxu3 %vm2103_vm8, %v9648_v4  ;;  %v11876_v19 = vsel %vm5329_vm10, %v5420_v45, %v5421_v58  ;;  %v11879_v35 = vsel %vm5778_vm9, %v5869_v50, %v5870_v12  ;;  %v3600_v58 = vadd.f32 %v3599_v0, %v2538_v21  ;;  %v11891_v1 = vpop.permute.xlu2 %6283  ;;  %v11901_v50 = vpop.permute.xlu0 %7111 }
 0x4d8   : > { %14617 = vst [vmem:[#allocation266_spill] sm:$0xff] %v11876_v19  ;;  %6581 = vrot.lane.b32.xlu2 %v11876_v19, %s9843_s8  ;;  %6031 = vrot.lane.b32.xlu1 %v11879_v35, %s9838_s18 }
 0x4d9   : > { %14618 = vst [vmem:[#allocation267_spill] sm:$0xff] %v11879_v35  ;;  %5582 = vrot.lane.b32.xlu0 %v11876_v19, %s9839_s19 }
 0x4da   : > { %v11889_v4 = vpop.f32.mrf.mxu3  ;;  %14620 = vst [vmem:[#allocation269_spill] sm:$0xff] %v11891_v1  ;;  %v4826_v12 = vpop.f32.mrf.mxu2 }
 0x4db   : > { %14619 = vst [vmem:[#allocation268_spill] sm:$0xff] %v11889_v4  ;;  %v11893_v13 = vadd.f32 %v4826_v12, %v3600_v58  ;;  %v11895_v34 = vpop.permute.xlu1 %7399  ;;  %v9649_v58 = vld [vmem:[#allocation3 + $0x2b0] sm:$0xff] }
 0x4dc   : > { %v2540_v15 = vpop.f32.mrf.mxu0  ;;  %14622 = vst [vmem:[#allocation271_spill] sm:$0xff] %v11895_v34 }
 0x4dd   : > { %v3601_v45 = vpop.f32.mrf.mxu1  ;;  %14621 = vst [vmem:[#allocation270_spill] sm:$0xff] %v11893_v13  ;;  %v5872_v4 = vrot.slane %v11893_v13, 2  ;;  %v5423_v36 = vrot.slane %v11893_v13, 1 }
 0x4de   : > { %14623 = vst [vmem:[#allocation272_spill] sm:$0xff] %v11901_v50  ;;  %v3602_v48 = vadd.f32 %v3601_v45, %v2540_v15  ;;  %v9546_v50 = vld [vmem:[#allocation3 + $0x1b8] sm:$0xff] }
 0x4df   : > { %8556 = vmatmul.msk.bf16.gmra.mxu0 %vm2103_vm8, %v9546_v50 }
 0x4e0   : > { %6295 = vrot.lane.b32.xlu2 %v11893_v13, %s9840_s22  ;;  %7125 = vrot.lane.b32.xlu1 %v11893_v13, %s9842_s30  ;;  %v9464_v13 = vld [vmem:[#allocation3 + $0x168] sm:$0xff] }
 0x4e1   : > { %6861 = vrot.lane.b32.xlu0 %v11879_v35, %s9841_s23 }
 0x4e2   : > { %v11905_v21 = vpop.f32.mrf.mxu3  ;;  %v4828_v0 = vpop.f32.mrf.mxu2 }
 0x4e3   : > { %14624 = vst [vmem:[#allocation273_spill] sm:$0xff] %v11905_v21  ;;  %v11907_v1 = vpop.permute.xlu2 %6021  ;;  %v5116_v12 = vadd.f32 %v4828_v0, %v3602_v48  ;;  %v11922_v48 = vpop.permute.xlu1 %7113 }
 0x4e4   : > { %14625 = vst [vmem:[#allocation274_spill] sm:$0xff] %v11907_v1  ;;  %v2543_v34 = vpop.f32.mrf.mxu0  ;;  %8964 = vmatmul.msk.bf16.gmra.mxu1 %vm2103_vm8, %v9464_v13 }
 0x4e5   : > { %v3604_v60 = vpop.f32.mrf.mxu1  ;;  %v5424_v52 = vrot.slane %v5116_v12, 1  ;;  %v5873_v19 = vrot.slane %v5116_v12, 2  ;;  %14628 = vst [vmem:[#allocation277_spill] sm:$0xff] %v11922_v48  ;;  %v9650_v48 = vld [vmem:[#allocation3 + $0x2b8] sm:$0xff] }
 0x4e6   : > { %v3605_v12 = vadd.f32 %v3604_v60, %v2543_v34 }
 0x4e7   : > { %9397 = vmatmul.msk.bf16.gmra.mxu3 %vm2103_vm8, %v9649_v58  ;;  %v11913_v15 = vsel %vm5778_vm9, %v5872_v4, %v5873_v19  ;;  %v11916_v45 = vsel %vm5329_vm10, %v5423_v36, %v5424_v52  ;;  %v9628_v58 = vld [vmem:[#allocation3 + $0x208] sm:$0xff]  ;;  %v11930_v36 = vpop.permute.xlu0 %6849 }
 0x4e8   : > { %14626 = vst [vmem:[#allocation275_spill] sm:$0xff] %v11913_v15  ;;  %6033 = vrot.lane.b32.xlu2 %v11913_v15, %s9838_s18  ;;  %5584 = vrot.lane.b32.xlu1 %v11916_v45, %s9839_s19 }
 0x4e9   : > { %14627 = vst [vmem:[#allocation276_spill] sm:$0xff] %v11916_v45  ;;  %6583 = vrot.lane.b32.xlu0 %v11916_v45, %s9843_s8  ;;  %9376 = vmatmul.msk.bf16.gmra.mxu2 %vm2103_vm8, %v9628_v58 }
 0x4ea   : > { %v11926_v0 = vpop.f32.mrf.mxu3  ;;  %v4831_v19 = vpop.f32.mrf.mxu2  ;;  %14631 = vst [vmem:[#allocation280_spill] sm:$0xff] %v11930_v36 }
 0x4eb   : > { %14629 = vst [vmem:[#allocation278_spill] sm:$0xff] %v11926_v0  ;;  %v11928_v4 = vpop.permute.xlu2 %7115  ;;  %v5117_v35 = vadd.f32 %v4831_v19, %v3605_v12  ;;  %v11943_v36 = vpop.permute.xlu1 %6019  ;;  %v9652_v0 = vld [vmem:[#allocation3 + $0x2c8] sm:$0xff] }
 0x4ec   : > { %14630 = vst [vmem:[#allocation279_spill] sm:$0xff] %v11928_v4  ;;  %v2545_v52 = vpop.f32.mrf.mxu0 }
 0x4ed   : > { %v3606_v1 = vpop.f32.mrf.mxu1  ;;  %14634 = vst [vmem:[#allocation283_spill] sm:$0xff] %v11943_v36  ;;  %v6788_v51 = vrot.slane %v5117_v35, 2  ;;  %v9651_v36 = vld [vmem:[#allocation3 + $0x2c0] sm:$0xff] }
 0x4ee   : > { %v3607_v60 = vadd.f32 %v3606_v1, %v2545_v52 }
 0x4ef   : > { %v11945_v12 = vpop.permute.xlu0 %5570 }
 0x4f0   : > { %7127 = vrot.lane.b32.xlu2 %v5117_v35, %s9842_s30  ;;  %6863 = vrot.lane.b32.xlu1 %v11913_v15, %s9841_s23  ;;  %14635 = vst [vmem:[#allocation284_spill] sm:$0xff] %v11945_v12  ;;  %v6508_v15 = vrot.slane %v5117_v35, 1 }
 0x4f1   : > { %6297 = vrot.lane.b32.xlu0 %v5117_v35, %s9840_s22 }
 0x4f2   : > { %v11939_v34 = vpop.f32.mrf.mxu3  ;;  %v4833_v58 = vpop.f32.mrf.mxu2 }
 0x4f3   : > { %14632 = vst [vmem:[#allocation281_spill] sm:$0xff] %v11939_v34  ;;  %v11941_v4 = vpop.permute.xlu2 %5574  ;;  %v5118_v50 = vadd.f32 %v4833_v58, %v3607_v60 }
 0x4f4   : > { %14633 = vst [vmem:[#allocation282_spill] sm:$0xff] %v11941_v4  ;;  %v2548_v13 = vpop.f32.mrf.mxu0 }
 0x4f5   : > { %v3609_v19 = vpop.f32.mrf.mxu1  ;;  %v6509_v45 = vrot.slane %v5118_v50, 1  ;;  %v6789_v21 = vrot.slane %v5118_v50, 2 }
 0x4f6   : > { %v3610_v1 = vadd.f32 %v3609_v19, %v2548_v13 }
 0x4f7   : > { %9398 = vmatmul.msk.bf16.gmra.mxu3 %vm2103_vm8, %v9650_v48  ;;  %v11949_v52 = vsel %vm5778_vm9, %v6788_v51, %v6789_v21  ;;  %v11952_v4 = vsel %vm5329_vm10, %v6508_v15, %v6509_v45 }
 0x4f8   : > { %14636 = vst [vmem:[#allocation285_spill] sm:$0xff] %v11949_v52  ;;  %6865 = vrot.lane.b32.xlu2 %v11949_v52, %s9841_s23  ;;  %6585 = vrot.lane.b32.xlu1 %v11952_v4, %s9843_s8 }
 0x4f9   : > { %14637 = vst [vmem:[#allocation286_spill] sm:$0xff] %v11952_v4 }
 0x4fa   : > { %v11958_v60 = vpop.f32.mrf.mxu3  ;;  %v4836_v58 = vpop.f32.mrf.mxu2 }
 0x4fb   : > { %14638 = vst [vmem:[#allocation287_spill] sm:$0xff] %v11958_v60  ;;  %v11960_v50 = vpop.permute.xlu2 %6853  ;;  %v11962_v35 = vadd.f32 %v4836_v58, %v3610_v1  ;;  %v11964_v48 = vpop.permute.xlu1 %5572  ;;  %v9629_v60 = vld [vmem:[#allocation3 + $0x210] sm:$0xff] }
 0x4fc   : > { %14639 = vst [vmem:[#allocation288_spill] sm:$0xff] %v11960_v50  ;;  %v11966_v51 = vpop.permute.xlu0 %6571  ;;  %v2550_v21 = vpop.f32.mrf.mxu0  ;;  %9377 = vmatmul.msk.bf16.gmra.mxu2 %vm2103_vm8, %v9629_v60 }
 0x4fd   : > { %14640 = vst [vmem:[#allocation289_spill] sm:$0xff] %v11962_v35  ;;  %v3611_v15 = vpop.f32.mrf.mxu1  ;;  %7129 = vrot.lane.b32.xlu0 %v11962_v35, %s9842_s30 }
 0x4fe   : > { %14641 = vst [vmem:[#allocation290_spill] sm:$0xff] %v11964_v48  ;;  %v3612_v45 = vadd.f32 %v3611_v15, %v2550_v21 }
 0x4ff   : > { %14642 = vst [vmem:[#allocation291_spill] sm:$0xff] %v11966_v51  ;;  %v7620_v51 = vrot.slane %v11962_v35, 2  ;;  %v3715_v35 = vadd.f32 %v11283_v39, %v10685_v29 }
 0x502   : > { %v11970_v13 = vpop.f32.mrf.mxu3  ;;  %v4838_v19 = vpop.f32.mrf.mxu2 }
 0x503   : > { %14643 = vst [vmem:[#allocation292_spill] sm:$0xff] %v11970_v13  ;;  %v11972_v12 = vadd.f32 %v4838_v19, %v3612_v45  ;;  %v11974_v52 = vpop.permute.xlu1 %6851  ;;  %v11980_v4 = vpop.permute.xlu2 %6575 }
 0x504   : > { %14645 = vst [vmem:[#allocation294_spill] sm:$0xff] %v11974_v52  ;;  %v11976_v1 = vpop.permute.xlu0 %6285  ;;  %v2553_v58 = vpop.f32.mrf.mxu0 }
 0x505   : > { %14644 = vst [vmem:[#allocation293_spill] sm:$0xff] %v11972_v12  ;;  %v3614_v50 = vpop.f32.mrf.mxu1  ;;  %v7621_v48 = vrot.slane %v11972_v12, 2 }
 0x506   : > { %14646 = vst [vmem:[#allocation295_spill] sm:$0xff] %v11976_v1  ;;  %v3615_v34 = vadd.f32 %v3614_v50, %v2553_v58  ;;  %v9547_v50 = vld [vmem:[#allocation3 + $0x1c0] sm:$0xff]  ;;  %v9465_v58 = vld [vmem:[#allocation3 + $0x170] sm:$0xff] }
 0x507   : > { %14647 = vst [vmem:[#allocation296_spill] sm:$0xff] %v11980_v4  ;;  %9399 = vmatmul.msk.bf16.gmra.mxu3 %vm2103_vm8, %v9651_v36  ;;  %v11984_v21 = vsel %vm5778_vm9, %v7620_v51, %v7621_v48  ;;  %v3717_v36 = vadd.f32 %v11296_v54, %v10689_v37  ;;  %8557 = vmatmul.msk.bf16.gmra.mxu0 %vm2103_vm8, %v9547_v50 }
 0x508   : > { %14648 = vst [vmem:[#allocation297_spill] sm:$0xff] %v11984_v21  ;;  %8965 = vmatmul.msk.bf16.gmra.mxu1 %vm2103_vm8, %v9465_v58 }
 0x50a   : > { %v4941_v15 = vpop.f32.mrf.mxu3  ;;  %v4841_v45 = vpop.f32.mrf.mxu2 }
 0x50b   : > { %v11986_v19 = vpop.permute.xlu1 %6573  ;;  %v11995_v48 = vadd.f32 %v4941_v15, %v3715_v35  ;;  %v11997_v51 = vpop.permute.xlu2 %6289  ;;  %v11999_v4 = vadd.f32 %v4841_v45, %v3615_v34 }
 0x50c   : > { %14649 = vst [vmem:[#allocation298_spill] sm:$0xff] %v11986_v19  ;;  %v11988_v52 = vpop.permute.xlu0 %6023  ;;  %v2555_v1 = vpop.f32.mrf.mxu0 }
 0x50d   : > { %14650 = vst [vmem:[#allocation299_spill] sm:$0xff] %v11988_v52  ;;  %v3616_v13 = vpop.f32.mrf.mxu1  ;;  %v5474_v39 = vrot.slane %v11995_v48, 1  ;;  %v5923_v37 = vrot.slane %v11995_v48, 2  ;;  %v5426_v34 = vrot.slane %v11999_v4, 1 }
 0x50e   : > { %14651 = vst [vmem:[#allocation300_spill] sm:$0xff] %v11995_v48  ;;  %v3617_v19 = vadd.f32 %v3616_v13, %v2555_v1 }
 0x50f   : > { %14652 = vst [vmem:[#allocation301_spill] sm:$0xff] %v11997_v51 }
 0x510   : > { %14653 = vst [vmem:[#allocation302_spill] sm:$0xff] %v11999_v4 }
 0x512   : > { %v4943_v52 = vpop.f32.mrf.mxu3  ;;  %v4843_v21 = vpop.f32.mrf.mxu2 }
 0x513   : > { %v5162_v12 = vadd.f32 %v4943_v52, %v3717_v36  ;;  %v5122_v49 = vadd.f32 %v4843_v21, %v3617_v19  ;;  %v12001_v29 = vpop.permute.xlu1 %6287  ;;  %v12017_v50 = vpop.permute.xlu2 %6027 }
 0x514   : > { %14654 = vst [vmem:[#allocation303_spill] sm:$0xff] %v12001_v29  ;;  %v2558_v35 = vpop.f32.mrf.mxu0  ;;  %v12008_v13 = vpop.permute.xlu0 %7117 }
 0x515   : > { %v5475_v54 = vrot.slane %v5162_v12, 1  ;;  %v5924_v60 = vrot.slane %v5162_v12, 2  ;;  %v3619_v15 = vpop.f32.mrf.mxu1  ;;  %v5427_v52 = vrot.slane %v5122_v49, 1  ;;  %14655 = vst [vmem:[#allocation304_spill] sm:$0xff] %v12008_v13  ;;  %v5876_v36 = vrot.slane %v5122_v49, 2  ;;  %v9548_v13 = vld [vmem:[#allocation3 + $0x1c8] sm:$0xff] }
 0x516   : > { %v3620_v45 = vadd.f32 %v3619_v15, %v2558_v35  ;;  %14656 = vst [vmem:[#allocation305_spill] sm:$0xff] %v12017_v50  ;;  %v3722_v49 = vadd.f32 %v11326_v18, %v10707_v6 }
 0x517   : > { %9400 = vmatmul.msk.bf16.gmra.mxu3 %vm2103_vm8, %v9652_v0  ;;  %v5925_v1 = vsel %vm5778_vm9, %v5923_v37, %v5924_v60  ;;  %v5476_v21 = vsel %vm5329_vm10, %v5474_v39, %v5475_v54  ;;  %v5428_v12 = vsel %vm5329_vm10, %v5426_v34, %v5427_v52  ;;  %v3720_v0 = vadd.f32 %v11314_v42, %v10701_v55 }
 0x518   : > { %6067 = vrot.lane.b32.xlu1 %v5925_v1, %s9838_s18  ;;  %5618 = vrot.lane.b32.xlu0 %v5476_v21, %s9839_s19  ;;  %v5875_v39 = vrot.slane %v11999_v4, 2  ;;  %v9653_v21 = vld [vmem:[#allocation3 + $0x2d0] sm:$0xff] }
 0x519   : > { %5586 = vrot.lane.b32.xlu2 %v5428_v12, %s9839_s19  ;;  %8558 = vmatmul.msk.bf16.gmra.mxu0 %vm2103_vm8, %v9548_v13 }
 0x51a   : > { %v4946_v19 = vpop.f32.mrf.mxu3  ;;  %v4846_v58 = vpop.f32.mrf.mxu2  ;;  %v5877_v15 = vsel %vm5778_vm9, %v5875_v39, %v5876_v36 }
 0x51b   : > { %v12019_v48 = vadd.f32 %v4846_v58, %v3620_v45  ;;  %v12024_v60 = vpop.permute.xlu1 %6025  ;;  %v12026_v35 = vadd.f32 %v4946_v19, %v3720_v0  ;;  %v12039_v19 = vpop.permute.xlu2 %7121 }
 0x51c   : > { %v2560_v37 = vpop.f32.mrf.mxu0  ;;  %14658 = vst [vmem:[#allocation307_spill] sm:$0xff] %v12024_v60  ;;  %v12034_v55 = vpop.permute.xlu0 %5576  ;;  %v9552_v60 = vld [vmem:[#allocation3 + $0x1e8] sm:$0xff] }
 0x51d   : > { %14657 = vst [vmem:[#allocation306_spill] sm:$0xff] %v12019_v48  ;;  %v3621_v54 = vpop.f32.mrf.mxu1  ;;  %v5429_v12 = vrot.slane %v12019_v48, 1  ;;  %v5926_v0 = vrot.slane %v12026_v35, 2  ;;  %v5477_v6 = vrot.slane %v12026_v35, 1 }
 0x51e   : > { %14659 = vst [vmem:[#allocation308_spill] sm:$0xff] %v12026_v35  ;;  %v3622_v34 = vadd.f32 %v3621_v54, %v2560_v37 }
 0x51f   : > { %14660 = vst [vmem:[#allocation309_spill] sm:$0xff] %v12034_v55 }
 0x520   : > { %6299 = vrot.lane.b32.xlu1 %v12019_v48, %s9840_s22  ;;  %6035 = vrot.lane.b32.xlu0 %v5877_v15, %s9838_s18  ;;  %14661 = vst [vmem:[#allocation310_spill] sm:$0xff] %v12039_v19 }
 0x521   : > { %6331 = vrot.lane.b32.xlu2 %v12026_v35, %s9840_s22  ;;  %v9654_v35 = vld [vmem:[#allocation3 + $0x2d8] sm:$0xff] }
 0x522   : > { %v4948_v42 = vpop.f32.mrf.mxu3  ;;  %v4848_v52 = vpop.f32.mrf.mxu2 }
 0x523   : > { %v5164_v1 = vadd.f32 %v4948_v42, %v3722_v49  ;;  %v5124_v45 = vadd.f32 %v4848_v52, %v3622_v34  ;;  %v12046_v54 = vpop.permute.xlu1 %7119  ;;  %v5878_v52 = vrot.slane %v12019_v48, 2  ;;  %v9466_v48 = vld [vmem:[#allocation3 + $0x178] sm:$0xff] }
 0x524   : > { %14662 = vst [vmem:[#allocation311_spill] sm:$0xff] %v12046_v54  ;;  %v12052_v42 = vpop.permute.xlu0 %6855  ;;  %8966 = vmatmul.msk.bf16.gmra.mxu1 %vm2103_vm8, %v9466_v48  ;;  %v3725_v48 = vadd.f32 %v11345_v23, %v10720_v10 }
 0x525   : > { %v5478_v36 = vrot.slane %v5164_v1, 1  ;;  %v5927_v58 = vrot.slane %v5164_v1, 2  ;;  %v5430_v18 = vrot.slane %v5124_v45, 1  ;;  %v5879_v49 = vrot.slane %v5124_v45, 2  ;;  %14663 = vst [vmem:[#allocation312_spill] sm:$0xff] %v12052_v42  ;;  %v2563_v1 = vpop.f32.mrf.mxu0 }
 0x527   : > { %9401 = vmatmul.msk.bf16.gmra.mxu3 %vm2103_vm8, %v9653_v21  ;;  %v5928_v39 = vsel %vm5778_vm9, %v5926_v0, %v5927_v58  ;;  %v5479_v37 = vsel %vm5329_vm10, %v5477_v6, %v5478_v36  ;;  %v5431_v15 = vsel %vm5329_vm10, %v5429_v12, %v5430_v18  ;;  %v3624_v21 = vpop.f32.mrf.mxu1  ;;  %v12055_v58 = vpop.permute.xlu2 %5580  ;;  %v5880_v36 = vsel %vm5778_vm9, %v5878_v52, %v5879_v49  ;;  %v9630_v0 = vld [vmem:[#allocation3 + $0x218] sm:$0xff] }
 0x528   : > { %5620 = vrot.lane.b32.xlu1 %v5479_v37, %s9839_s19  ;;  %5588 = vrot.lane.b32.xlu0 %v5431_v15, %s9839_s19  ;;  %14664 = vst [vmem:[#allocation313_spill] sm:$0xff] %v12055_v58  ;;  %v3625_v12 = vadd.f32 %v3624_v21, %v2563_v1 }
 0x529   : > { %6069 = vrot.lane.b32.xlu2 %v5928_v39, %s9838_s18  ;;  %9378 = vmatmul.msk.bf16.gmra.mxu2 %vm2103_vm8, %v9630_v0 }
 0x52a   : > { %v4951_v34 = vpop.f32.mrf.mxu3  ;;  %v4851_v6 = vpop.f32.mrf.mxu2 }
 0x52b   : > { %v12061_v45 = vpop.permute.xlu1 %5578  ;;  %v12066_v49 = vadd.f32 %v4851_v6, %v3625_v12  ;;  %v12085_v12 = vadd.f32 %v4951_v34, %v3725_v48 }
 0x52c   : > { %14665 = vst [vmem:[#allocation314_spill] sm:$0xff] %v12061_v45  ;;  %v12064_v4 = vpop.permute.xlu0 %6577 }
 0x52d   : > { %14666 = vst [vmem:[#allocation315_spill] sm:$0xff] %v12064_v4  ;;  %v5432_v34 = vrot.slane %v12066_v49, 1  ;;  %v5929_v48 = vrot.slane %v12085_v12, 2  ;;  %v9633_v4 = vld [vmem:[#allocation3 + $0x230] sm:$0xff] }
 0x52e   : > { %14667 = vst [vmem:[#allocation316_spill] sm:$0xff] %v12066_v49 }
 0x52f   : > { %v12072_v52 = vpop.permute.xlu2 %6859  ;;  %14670 = vst [vmem:[#allocation319_spill] sm:$0xff] %v12085_v12 }
 0x530   : > { %6037 = vrot.lane.b32.xlu1 %v5880_v36, %s9838_s18  ;;  %6619 = vrot.lane.b32.xlu0 %v5479_v37, %s9843_s8  ;;  %v3626_v37 = vpop.f32.mrf.mxu1  ;;  %14668 = vst [vmem:[#allocation317_spill] sm:$0xff] %v12072_v52  ;;  %v3747_v52 = vadd.f32 %v11505_v30, %v10824_v53 }
 0x531   : > { %6587 = vrot.lane.b32.xlu2 %v5431_v15, %s9843_s8  ;;  %v2565_v15 = vpop.f32.mrf.mxu0 }
 0x532   : > { %v4953_v18 = vpop.f32.mrf.mxu3  ;;  %v3627_v21 = vadd.f32 %v3626_v37, %v2565_v15  ;;  %v4853_v13 = vpop.f32.mrf.mxu2 }
 0x533   : > { %v12079_v0 = vpop.permute.xlu1 %6857 }
 0x534   : > { %14669 = vst [vmem:[#allocation318_spill] sm:$0xff] %v12079_v0  ;;  %v12087_v6 = vpop.permute.xlu0 %6291  ;;  %v5126_v54 = vadd.f32 %v4853_v13, %v3627_v21  ;;  %v5480_v13 = vrot.slane %v12085_v12, 1 }
 0x535   : > { %14671 = vst [vmem:[#allocation320_spill] sm:$0xff] %v12087_v6 }
 0x536   : > { %v5433_v23 = vrot.slane %v5126_v54, 1 }
 0x537   : > { %9402 = vmatmul.msk.bf16.gmra.mxu3 %vm2103_vm8, %v9654_v35  ;;  %v3727_v35 = vadd.f32 %v11360_v38, %v10727_v17  ;;  %v12096_v17 = vpop.permute.xlu2 %6581  ;;  %v9655_v38 = vld [vmem:[#allocation3 + $0x2e0] sm:$0xff] }
 0x538   : > { %6899 = vrot.lane.b32.xlu1 %v5928_v39, %s9841_s23  ;;  %6867 = vrot.lane.b32.xlu0 %v5880_v36, %s9841_s23  ;;  %v9631_v39 = vld [vmem:[#allocation3 + $0x220] sm:$0xff]  ;;  %14672 = vst [vmem:[#allocation321_spill] sm:$0xff] %v12096_v17  ;;  %v9549_v36 = vld [vmem:[#allocation3 + $0x1d0] sm:$0xff] }
 0x539   : > { %6301 = vrot.lane.b32.xlu2 %v12066_v49, %s9840_s22  ;;  %v5166_v19 = vadd.f32 %v4953_v18, %v3727_v35  ;;  %9379 = vmatmul.msk.bf16.gmra.mxu2 %vm2103_vm8, %v9631_v39  ;;  %v9467_v18 = vld [vmem:[#allocation3 + $0x180] sm:$0xff]  ;;  %v12107_v35 = vsel %vm5329_vm10, %v5432_v34, %v5433_v23  ;;  %v5882_v23 = vrot.slane %v5126_v54, 2  ;;  %v5881_v34 = vrot.slane %v12066_v49, 2 }
 0x53a   : > { %v12077_v1 = vpop.f32.mrf.mxu3  ;;  %8559 = vmatmul.msk.bf16.gmra.mxu0 %vm2103_vm8, %v9549_v36  ;;  %8967 = vmatmul.msk.bf16.gmra.mxu1 %vm2103_vm8, %v9467_v18 }
 0x53b   : > { %v5481_v15 = vrot.slane %v5166_v19, 1  ;;  %v5930_v37 = vrot.slane %v5166_v19, 2  ;;  %v12101_v21 = vpop.permute.xlu1 %6579 }
 0x53c   : > { %14673 = vst [vmem:[#allocation322_spill] sm:$0xff] %v12101_v21  ;;  %v12117_v36 = vpop.permute.xlu0 %6029 }
 0x53d   : > { %v12110_v39 = vsel %vm5329_vm10, %v5480_v13, %v5481_v15  ;;  %v12115_v19 = vsel %vm5778_vm9, %v5929_v48, %v5930_v37  ;;  %14675 = vst [vmem:[#allocation324_spill] sm:$0xff] %v12117_v36  ;;  %v9632_v15 = vld [vmem:[#allocation3 + $0x228] sm:$0xff]  ;;  %v2568_v13 = vpop.f32.mrf.mxu0  ;;  %v12131_v48 = vsel %vm5778_vm9, %v5881_v34, %v5882_v23  ;;  %v9550_v23 = vld [vmem:[#allocation3 + $0x1d8] sm:$0xff] }
 0x53e   : > { %14674 = vst [vmem:[#allocation323_spill] sm:$0xff] %v12115_v19  ;;  %v9468_v34 = vld [vmem:[#allocation3 + $0x188] sm:$0xff] }
 0x53f   : > { %v12126_v18 = vpop.permute.xlu2 %6295  ;;  %14678 = vst [vmem:[#allocation327_spill] sm:$0xff] %v12131_v48 }
 0x540   : > { %7131 = vrot.lane.b32.xlu1 %v12066_v49, %s9842_s30  ;;  %6333 = vrot.lane.b32.xlu0 %v12085_v12, %s9840_s22  ;;  %14676 = vst [vmem:[#allocation325_spill] sm:$0xff] %v12126_v18  ;;  %v4856_v18 = vpop.f32.mrf.mxu2 }
 0x541   : > { %7163 = vrot.lane.b32.xlu2 %v12085_v12, %s9842_s30  ;;  %v3629_v12 = vpop.f32.mrf.mxu1 }
 0x542   : > { %v4958_v10 = vpop.f32.mrf.mxu3  ;;  %v3630_v17 = vadd.f32 %v3629_v12, %v2568_v13 }
 0x543   : > { %v12128_v37 = vpop.permute.xlu1 %6293 }
 0x544   : > { %14677 = vst [vmem:[#allocation326_spill] sm:$0xff] %v12128_v37  ;;  %v12142_v49 = vpop.permute.xlu0 %7123  ;;  %v9656_v37 = vld [vmem:[#allocation3 + $0x2e8] sm:$0xff]  ;;  %v12144_v36 = vadd.f32 %v4856_v18, %v3630_v17 }
 0x545   : > { %14679 = vst [vmem:[#allocation328_spill] sm:$0xff] %v12142_v49 }
 0x546   : > { %14680 = vst [vmem:[#allocation329_spill] sm:$0xff] %v12144_v36 }
 0x547   : > { %9403 = vmatmul.msk.bf16.gmra.mxu3 %vm2103_vm8, %v9655_v38  ;;  %v12148_v12 = vpop.permute.xlu2 %6033 }
 0x548   : > { %5590 = vrot.lane.b32.xlu1 %v12107_v35, %s9839_s19  ;;  %6071 = vrot.lane.b32.xlu0 %v12115_v19, %s9838_s18  ;;  %14681 = vst [vmem:[#allocation330_spill] sm:$0xff] %v12148_v12  ;;  %v4858_v0 = vpop.f32.mrf.mxu2 }
 0x549   : > { %5622 = vrot.lane.b32.xlu2 %v12110_v39, %s9839_s19  ;;  %9380 = vmatmul.msk.bf16.gmra.mxu2 %vm2103_vm8, %v9632_v15  ;;  %v2570_v15 = vpop.f32.mrf.mxu0  ;;  %v3631_v13 = vpop.f32.mrf.mxu1 }
 0x54a   : > { %v12123_v38 = vpop.f32.mrf.mxu3  ;;  %8560 = vmatmul.msk.bf16.gmra.mxu0 %vm2103_vm8, %v9550_v23  ;;  %8968 = vmatmul.msk.bf16.gmra.mxu1 %vm2103_vm8, %v9468_v34  ;;  %v3730_v23 = vadd.f32 %v11382_v9, %v10744_v33  ;;  %v3632_v34 = vadd.f32 %v3631_v13, %v2570_v15  ;;  %v9657_v9 = vld [vmem:[#allocation3 + $0x2f0] sm:$0xff]  ;;  %v5435_v13 = vrot.slane %v12144_v36, 1 }
 0x54b   : > { %v12157_v17 = vpop.permute.xlu1 %6031 }
 0x54c   : > { %14682 = vst [vmem:[#allocation331_spill] sm:$0xff] %v12157_v17  ;;  %v12165_v42 = vpop.permute.xlu0 %5582  ;;  %v12168_v58 = vadd.f32 %v12077_v1, %v3730_v23  ;;  %v5128_v29 = vadd.f32 %v4858_v0, %v3632_v34  ;;  %v9469_v1 = vld [vmem:[#allocation3 + $0x190] sm:$0xff] }
 0x54d   : > { %14683 = vst [vmem:[#allocation332_spill] sm:$0xff] %v12165_v42  ;;  %v9658_v42 = vld [vmem:[#allocation3 + $0x2f8] sm:$0xff] }
 0x54e   : > { %14684 = vst [vmem:[#allocation333_spill] sm:$0xff] %v12168_v58  ;;  %v5436_v15 = vrot.slane %v5128_v29, 1  ;;  %v5932_v23 = vrot.slane %v12168_v58, 2  ;;  %v5483_v34 = vrot.slane %v12168_v58, 1 }
 0x54f   : > { %v12172_v17 = vpop.permute.xlu2 %7127 }
 0x550   : > { %6621 = vrot.lane.b32.xlu1 %v12110_v39, %s9843_s8  ;;  %6589 = vrot.lane.b32.xlu0 %v12107_v35, %s9843_s8  ;;  %14685 = vst [vmem:[#allocation334_spill] sm:$0xff] %v12172_v17 }
 0x551   : > { %6039 = vrot.lane.b32.xlu2 %v12131_v48, %s9838_s18 }
 0x552   : > { %v12139_v54 = vpop.f32.mrf.mxu3 }
 0x557   : > { %9404 = vmatmul.msk.bf16.gmra.mxu3 %vm2103_vm8, %v9656_v37  ;;  %v3732_v37 = vadd.f32 %v11397_v8, %v10751_v43  ;;  %v9551_v8 = vld [vmem:[#allocation3 + $0x1e0] sm:$0xff] }
 0x558   : > { %6869 = vrot.lane.b32.xlu1 %v12131_v48, %s9841_s23  ;;  %6303 = vrot.lane.b32.xlu0 %v12144_v36, %s9840_s22  ;;  %v14920_v48 = vld [vmem:[#allocation287_spill] sm:$0xff] }
 0x559   : > { %6901 = vrot.lane.b32.xlu2 %v12115_v19, %s9841_s23  ;;  %v5168_v51 = vadd.f32 %v4958_v10, %v3732_v37  ;;  %9381 = vmatmul.msk.bf16.gmra.mxu2 %vm2103_vm8, %v9633_v4  ;;  %v12181_v10 = vpop.permute.xlu1 %7125  ;;  %v12188_v37 = vpop.permute.xlu0 %6861  ;;  %v3760_v19 = vadd.f32 %v11590_v11, %v10895_v20  ;;  %v3765_v20 = vadd.f32 %v11625_v62, %v10929_v47 }
 0x55a   : > { %v12159_v18 = vpop.f32.mrf.mxu3  ;;  %14686 = vst [vmem:[#allocation335_spill] sm:$0xff] %v12181_v10  ;;  %8561 = vmatmul.msk.bf16.gmra.mxu0 %vm2103_vm8, %v9551_v8  ;;  %8969 = vmatmul.msk.bf16.gmra.mxu1 %vm2103_vm8, %v9469_v1  ;;  %v5884_v1 = vrot.slane %v12144_v36, 2 }
 0x55b   : > { %v5933_v43 = vrot.slane %v5168_v51, 2  ;;  %v5484_v0 = vrot.slane %v5168_v51, 1  ;;  %14687 = vst [vmem:[#allocation336_spill] sm:$0xff] %v12188_v37  ;;  %v12195_v51 = vsel %vm5329_vm10, %v5435_v13, %v5436_v15  ;;  %v2573_v15 = vpop.f32.mrf.mxu0  ;;  %v3634_v13 = vpop.f32.mrf.mxu1 }
 0x55d   : > { %v12192_v4 = vsel %vm5778_vm9, %v5932_v23, %v5933_v43  ;;  %v12200_v10 = vsel %vm5329_vm10, %v5483_v34, %v5484_v0  ;;  %v5885_v43 = vrot.slane %v5128_v29, 2  ;;  %v3635_v34 = vadd.f32 %v3634_v13, %v2573_v15  ;;  %v4861_v29 = vpop.f32.mrf.mxu2 }
 0x55e   : > { %14688 = vst [vmem:[#allocation337_spill] sm:$0xff] %v12192_v4 }
 0x55f   : > { %v12216_v0 = vsel %vm5778_vm9, %v5884_v1, %v5885_v43  ;;  %v9470_v43 = vld [vmem:[#allocation3 + $0x198] sm:$0xff]  ;;  %v12229_v1 = vadd.f32 %v4861_v29, %v3635_v34 }
 0x560   : > { %6335 = vrot.lane.b32.xlu1 %v12168_v58, %s9840_s22  ;;  %7165 = vrot.lane.b32.xlu0 %v12168_v58, %s9842_s30  ;;  %v9634_v58 = vld [vmem:[#allocation3 + $0x238] sm:$0xff]  ;;  %14691 = vst [vmem:[#allocation340_spill] sm:$0xff] %v12216_v0 }
 0x561   : > { %7133 = vrot.lane.b32.xlu2 %v12144_v36, %s9842_s30  ;;  %v12211_v23 = vpop.permute.xlu1 %5584  ;;  %v12218_v17 = vpop.permute.xlu0 %6583  ;;  %14694 = vst [vmem:[#allocation343_spill] sm:$0xff] %v12229_v1 }
 0x562   : > { %v12178_v33 = vpop.f32.mrf.mxu3  ;;  %14690 = vst [vmem:[#allocation339_spill] sm:$0xff] %v12211_v23 }
 0x563   : > { %14692 = vst [vmem:[#allocation341_spill] sm:$0xff] %v12218_v17  ;;  %v2575_v15 = vpop.f32.mrf.mxu0  ;;  %v3636_v13 = vpop.f32.mrf.mxu1 }
 0x565   : > { %v4863_v34 = vpop.f32.mrf.mxu2 }
 0x567   : > { %9405 = vmatmul.msk.bf16.gmra.mxu3 %vm2103_vm8, %v9657_v9  ;;  %v12208_v9 = vpop.permute.xlu2 %6865 }
 0x568   : > { %6073 = vrot.lane.b32.xlu1 %v12192_v4, %s9838_s18  ;;  %5624 = vrot.lane.b32.xlu0 %v12200_v10, %s9839_s19  ;;  %14689 = vst [vmem:[#allocation338_spill] sm:$0xff] %v12208_v9 }
 0x569   : > { %5592 = vrot.lane.b32.xlu2 %v12195_v51, %s9839_s19  ;;  %9382 = vmatmul.msk.bf16.gmra.mxu2 %vm2103_vm8, %v9634_v58  ;;  %v12234_v17 = vpop.permute.xlu1 %6863  ;;  %v12244_v29 = vpop.permute.xlu0 %6297 }
 0x56a   : > { %v12206_v8 = vpop.f32.mrf.mxu3  ;;  %8562 = vmatmul.msk.bf16.gmra.mxu0 %vm2103_vm8, %v9552_v60  ;;  %8970 = vmatmul.msk.bf16.gmra.mxu1 %vm2103_vm8, %v9470_v43  ;;  %14695 = vst [vmem:[#allocation344_spill] sm:$0xff] %v12234_v17  ;;  %v3637_v60 = vadd.f32 %v3636_v13, %v2575_v15  ;;  %v3735_v43 = vadd.f32 %v11420_v27, %v10763_v3 }
 0x56b   : > { %14696 = vst [vmem:[#allocation345_spill] sm:$0xff] %v12244_v29 }
 0x56c   : > { %v12253_v17 = vadd.f32 %v12123_v38, %v3735_v43  ;;  %v5130_v55 = vadd.f32 %v4863_v34, %v3637_v60 }
 0x56e   : > { %14698 = vst [vmem:[#allocation347_spill] sm:$0xff] %v12253_v17  ;;  %v5439_v3 = vrot.slane %v5130_v55, 1  ;;  %v5486_v60 = vrot.slane %v12253_v17, 1  ;;  %v5935_v34 = vrot.slane %v12253_v17, 2 }
 0x570   : > { %6591 = vrot.lane.b32.xlu1 %v12195_v51, %s9843_s8  ;;  %6041 = vrot.lane.b32.xlu0 %v12216_v0, %s9838_s18 }
 0x571   : > { %6623 = vrot.lane.b32.xlu2 %v12200_v10, %s9843_s8  ;;  %v12262_v15 = vpop.permute.xlu1 %6585  ;;  %v12267_v38 = vpop.permute.xlu0 %7129 }
 0x572   : > { %v12224_v36 = vpop.f32.mrf.mxu3  ;;  %14699 = vst [vmem:[#allocation348_spill] sm:$0xff] %v12262_v15 }
 0x573   : > { %v12227_v37 = vpop.permute.xlu2 %5586  ;;  %14700 = vst [vmem:[#allocation349_spill] sm:$0xff] %v12267_v38 }
 0x574   : > { %14693 = vst [vmem:[#allocation342_spill] sm:$0xff] %v12227_v37  ;;  %v3737_v37 = vadd.f32 %v11434_v61, %v10772_v59  ;;  %v5438_v59 = vrot.slane %v12229_v1, 1 }
 0x576   : > { %v5170_v9 = vadd.f32 %v12139_v54, %v3737_v37  ;;  %v9659_v37 = vld [vmem:[#allocation3 + $0x300] sm:$0xff]  ;;  %v12274_v43 = vsel %vm5329_vm10, %v5438_v59, %v5439_v3  ;;  %v5888_v59 = vrot.slane %v5130_v55, 2  ;;  %v3757_v55 = vadd.f32 %v11573_v31, %v10876_v5 }
 0x577   : > { %9406 = vmatmul.msk.bf16.gmra.mxu3 %vm2103_vm8, %v9658_v42 }
 0x578   : > { %6305 = vrot.lane.b32.xlu1 %v12229_v1, %s9840_s22  ;;  %6903 = vrot.lane.b32.xlu0 %v12192_v4, %s9841_s23  ;;  %v5487_v61 = vrot.slane %v5170_v9, 1  ;;  %v5936_v13 = vrot.slane %v5170_v9, 2 }
 0x579   : > { %6871 = vrot.lane.b32.xlu2 %v12216_v0, %s9841_s23 }
 0x57a   : > { %v12242_v58 = vpop.f32.mrf.mxu3  ;;  %v12281_v15 = vsel %vm5778_vm9, %v5935_v34, %v5936_v13  ;;  %v5887_v13 = vrot.slane %v12229_v1, 2  ;;  %v3639_v34 = vpop.f32.mrf.mxu1 }
 0x57b   : > { %v12246_v42 = vpop.permute.xlu2 %6331  ;;  %14702 = vst [vmem:[#allocation351_spill] sm:$0xff] %v12281_v15 }
 0x57c   : > { %14697 = vst [vmem:[#allocation346_spill] sm:$0xff] %v12246_v42  ;;  %v12278_v42 = vsel %vm5329_vm10, %v5486_v60, %v5487_v61  ;;  %v2578_v60 = vpop.f32.mrf.mxu0  ;;  %v12299_v38 = vsel %vm5778_vm9, %v5887_v13, %v5888_v59 }
 0x57d   : > { %14706 = vst [vmem:[#allocation355_spill] sm:$0xff] %v12299_v38  ;;  %v3640_v49 = vadd.f32 %v3639_v34, %v2578_v60  ;;  %v9660_v34 = vld [vmem:[#allocation3 + $0x308] sm:$0xff] }
 0x580   : > { %7167 = vrot.lane.b32.xlu1 %v12253_v17, %s9842_s30  ;;  %7135 = vrot.lane.b32.xlu0 %v12229_v1, %s9842_s30  ;;  %v9471_v1 = vld [vmem:[#allocation3 + $0x1a0] sm:$0xff] }
 0x581   : > { %6337 = vrot.lane.b32.xlu2 %v12253_v17, %s9840_s22  ;;  %v3755_v17 = vadd.f32 %v11555_v22, %v10865_v44  ;;  %v9635_v44 = vld [vmem:[#allocation3 + $0x240] sm:$0xff]  ;;  %8971 = vmatmul.msk.bf16.gmra.mxu1 %vm2103_vm8, %v9471_v1  ;;  %v3742_v1 = vadd.f32 %v11469_v7, %v10799_v24 }
 0x582   : > { %v12264_v27 = vpop.f32.mrf.mxu3  ;;  %9383 = vmatmul.msk.bf16.gmra.mxu2 %vm2103_vm8, %v9635_v44 }
 0x583   : > { %v12269_v54 = vpop.permute.xlu2 %6069 }
 0x584   : > { %14701 = vst [vmem:[#allocation350_spill] sm:$0xff] %v12269_v54  ;;  %v4866_v54 = vpop.f32.mrf.mxu2 }
 0x585   : > { %v12318_v5 = vadd.f32 %v4866_v54, %v3640_v49  ;;  %v2580_v49 = vpop.f32.mrf.mxu0  ;;  %v3641_v54 = vpop.f32.mrf.mxu1 }
 0x587   : > { %9407 = vmatmul.msk.bf16.gmra.mxu3 %vm2103_vm8, %v9659_v37  ;;  %14710 = vst [vmem:[#allocation359_spill] sm:$0xff] %v12318_v5 }
 0x588   : > { %5626 = vrot.lane.b32.xlu1 %v12278_v42, %s9839_s19  ;;  %5594 = vrot.lane.b32.xlu0 %v12274_v43, %s9839_s19 }
 0x589   : > { %6075 = vrot.lane.b32.xlu2 %v12281_v15, %s9838_s18 }
 0x58a   : > { %v4981_v9 = vpop.f32.mrf.mxu3  ;;  %v12289_v3 = vpop.permute.xlu1 %6067 }
 0x58b   : > { %14703 = vst [vmem:[#allocation352_spill] sm:$0xff] %v12289_v3  ;;  %v12291_v37 = vpop.permute.xlu2 %6587  ;;  %v12293_v61 = vpop.permute.xlu0 %5618  ;;  %v12305_v3 = vadd.f32 %v4981_v9, %v3755_v17  ;;  %v9553_v9 = vld [vmem:[#allocation3 + $0x1f0] sm:$0xff] }
 0x58c   : > { %14704 = vst [vmem:[#allocation353_spill] sm:$0xff] %v12291_v37  ;;  %8563 = vmatmul.msk.bf16.gmra.mxu0 %vm2103_vm8, %v9553_v9  ;;  %v4868_v44 = vpop.f32.mrf.mxu2 }
 0x58d   : > { %14705 = vst [vmem:[#allocation354_spill] sm:$0xff] %v12293_v61  ;;  %v6797_v37 = vrot.slane %v12305_v3, 2  ;;  %v6517_v29 = vrot.slane %v12305_v3, 1 }
 0x590   : > { %6043 = vrot.lane.b32.xlu1 %v12299_v38, %s9838_s18  ;;  %6625 = vrot.lane.b32.xlu0 %v12278_v42, %s9843_s8 }
 0x591   : > { %6593 = vrot.lane.b32.xlu2 %v12274_v43, %s9843_s8 }
 0x592   : > { %v4983_v22 = vpop.f32.mrf.mxu3  ;;  %v12311_v61 = vpop.permute.xlu1 %6299 }
 0x593   : > { %14707 = vst [vmem:[#allocation356_spill] sm:$0xff] %v12311_v61  ;;  %v5178_v59 = vadd.f32 %v4983_v22, %v3757_v55  ;;  %v12313_v13 = vpop.permute.xlu2 %6301  ;;  %v12315_v60 = vpop.permute.xlu0 %6035  ;;  %v5172_v61 = vadd.f32 %v12178_v33, %v3742_v1 }
 0x594   : > { %14708 = vst [vmem:[#allocation357_spill] sm:$0xff] %v12313_v13  ;;  %v4871_v24 = vpop.f32.mrf.mxu2 }
 0x595   : > { %14709 = vst [vmem:[#allocation358_spill] sm:$0xff] %v12315_v60  ;;  %v6518_v31 = vrot.slane %v5178_v59, 1  ;;  %v6798_v17 = vrot.slane %v5178_v59, 2  ;;  %v5939_v1 = vrot.slane %v5172_v61, 2 }
 0x597   : > { %9408 = vmatmul.msk.bf16.gmra.mxu3 %vm2103_vm8, %v9660_v34  ;;  %v12325_v55 = vsel %vm5778_vm9, %v6797_v37, %v6798_v17  ;;  %v12328_v22 = vsel %vm5329_vm10, %v6517_v29, %v6518_v31  ;;  %v3642_v29 = vadd.f32 %v3641_v54, %v2580_v49  ;;  %v3740_v17 = vadd.f32 %v11456_v16, %v10789_v41  ;;  %v2583_v49 = vpop.f32.mrf.mxu0  ;;  %v3644_v41 = vpop.f32.mrf.mxu1 }
 0x598   : > { %14711 = vst [vmem:[#allocation360_spill] sm:$0xff] %v12325_v55  ;;  %6905 = vrot.lane.b32.xlu1 %v12281_v15, %s9841_s23  ;;  %6873 = vrot.lane.b32.xlu0 %v12299_v38, %s9841_s23  ;;  %v3762_v54 = vadd.f32 %v11602_v28, %v10908_v25  ;;  %v5441_v25 = vrot.slane %v12318_v5, 1  ;;  %v5490_v28 = vrot.slane %v5172_v61, 1  ;;  %v9636_v61 = vld [vmem:[#allocation3 + $0x248] sm:$0xff] }
 0x599   : > { %6307 = vrot.lane.b32.xlu2 %v12318_v5, %s9840_s22  ;;  %v12350_v9 = vadd.f32 %v12159_v18, %v3740_v17  ;;  %v5132_v13 = vadd.f32 %v4868_v44, %v3642_v29  ;;  %v9661_v17 = vld [vmem:[#allocation3 + $0x310] sm:$0xff]  ;;  %9384 = vmatmul.msk.bf16.gmra.mxu2 %vm2103_vm8, %v9636_v61 }
 0x59a   : > { %v12337_v59 = vpop.f32.mrf.mxu3  ;;  %v12339_v37 = vpop.permute.xlu1 %5620 }
 0x59b   : > { %14712 = vst [vmem:[#allocation361_spill] sm:$0xff] %v12339_v37  ;;  %v12341_v34 = vpop.permute.xlu2 %7163  ;;  %v12343_v31 = vpop.permute.xlu0 %5588  ;;  %v5442_v18 = vrot.slane %v5132_v13, 1  ;;  %v5938_v37 = vrot.slane %v12350_v9, 2 }
 0x59c   : > { %14713 = vst [vmem:[#allocation362_spill] sm:$0xff] %v12341_v34  ;;  %v5489_v34 = vrot.slane %v12350_v9, 1 }
 0x59d   : > { %14714 = vst [vmem:[#allocation363_spill] sm:$0xff] %v12343_v31  ;;  %v4873_v31 = vpop.f32.mrf.mxu2 }
 0x59e   : > { %14715 = vst [vmem:[#allocation364_spill] sm:$0xff] %v12350_v9 }
 0x5a0   : > { %7137 = vrot.lane.b32.xlu1 %v12318_v5, %s9842_s30  ;;  %6339 = vrot.lane.b32.xlu0 %v12350_v9, %s9840_s22 }
 0x5a1   : > { %7169 = vrot.lane.b32.xlu2 %v12350_v9, %s9842_s30  ;;  %v3646_v9 = vpop.f32.mrf.mxu1 }
 0x5a2   : > { %v4988_v7 = vpop.f32.mrf.mxu3  ;;  %v12361_v16 = vpop.permute.xlu1 %6037 }
 0x5a3   : > { %14716 = vst [vmem:[#allocation365_spill] sm:$0xff] %v12361_v16  ;;  %v12363_v33 = vadd.f32 %v4988_v7, %v3762_v54  ;;  %v12365_v44 = vpop.permute.xlu2 %5622  ;;  %v12367_v29 = vpop.permute.xlu0 %6619  ;;  %v12374_v16 = vsel %vm5329_vm10, %v5441_v25, %v5442_v18  ;;  %v12377_v54 = vsel %vm5329_vm10, %v5489_v34, %v5490_v28  ;;  %v12382_v7 = vsel %vm5778_vm9, %v5938_v37, %v5939_v1 }
 0x5a4   : > { %14717 = vst [vmem:[#allocation366_spill] sm:$0xff] %v12365_v44  ;;  %v5891_v28 = vrot.slane %v5132_v13, 2  ;;  %v5890_v37 = vrot.slane %v12318_v5, 2  ;;  %v2585_v1 = vpop.f32.mrf.mxu0  ;;  %v9554_v44 = vld [vmem:[#allocation3 + $0x1f8] sm:$0xff] }
 0x5a5   : > { %14718 = vst [vmem:[#allocation367_spill] sm:$0xff] %v12367_v29  ;;  %v9472_v29 = vld [vmem:[#allocation3 + $0x1a8] sm:$0xff]  ;;  %8564 = vmatmul.msk.bf16.gmra.mxu0 %vm2103_vm8, %v9554_v44 }
 0x5a6   : > { %14719 = vst [vmem:[#allocation368_spill] sm:$0xff] %v12382_v7  ;;  %8972 = vmatmul.msk.bf16.gmra.mxu1 %vm2103_vm8, %v9472_v29 }
 0x5a7   : > { %9409 = vmatmul.msk.bf16.gmra.mxu3 %vm2103_vm8, %v9661_v17 }
 0x5a8   : > { %5596 = vrot.lane.b32.xlu1 %v12374_v16, %s9839_s19  ;;  %6077 = vrot.lane.b32.xlu0 %v12382_v7, %s9838_s18 }
 0x5a9   : > { %5628 = vrot.lane.b32.xlu2 %v12377_v54, %s9839_s19  ;;  %v3649_v5 = vpop.f32.mrf.mxu1 }
 0x5aa   : > { %v12388_v17 = vpop.f32.mrf.mxu3  ;;  %v12390_v18 = vpop.permute.xlu1 %6899 }
 0x5ab   : > { %14720 = vst [vmem:[#allocation369_spill] sm:$0xff] %v12390_v18  ;;  %v12392_v25 = vpop.permute.xlu2 %6039  ;;  %v12394_v34 = vpop.permute.xlu0 %6867  ;;  %v12401_v18 = vsel %vm5778_vm9, %v5890_v37, %v5891_v28  ;;  %v9662_v28 = vld [vmem:[#allocation3 + $0x318] sm:$0xff] }
 0x5ac   : > { %14721 = vst [vmem:[#allocation370_spill] sm:$0xff] %v12392_v25  ;;  %v3645_v25 = vadd.f32 %v3644_v41, %v2583_v49  ;;  %v2588_v37 = vpop.f32.mrf.mxu0  ;;  %v4876_v49 = vpop.f32.mrf.mxu2 }
 0x5ad   : > { %14722 = vst [vmem:[#allocation371_spill] sm:$0xff] %v12394_v34  ;;  %v3650_v50 = vadd.f32 %v3649_v5, %v2588_v37  ;;  %v9555_v5 = vld [vmem:[#allocation3 + $0x200] sm:$0xff]  ;;  %v9473_v37 = vld [vmem:[#allocation3 + $0x1b0] sm:$0xff] }
 0x5ae   : > { %14723 = vst [vmem:[#allocation372_spill] sm:$0xff] %v12401_v18  ;;  %v12417_v34 = vadd.f32 %v4871_v24, %v3645_v25  ;;  %v3745_v25 = vadd.f32 %v11487_v2, %v10812_v46 }
 0x5b0   : > { %6627 = vrot.lane.b32.xlu1 %v12377_v54, %s9843_s8  ;;  %6595 = vrot.lane.b32.xlu0 %v12374_v16, %s9843_s8  ;;  %14727 = vst [vmem:[#allocation376_spill] sm:$0xff] %v12417_v34  ;;  %v12445_v21 = vadd.f32 %v12206_v8, %v3745_v25 }
 0x5b1   : > { %6045 = vrot.lane.b32.xlu2 %v12401_v18, %s9838_s18  ;;  %v12438_v60 = vpop.f32.mrf.mxu1 }
 0x5b2   : > { %v12409_v13 = vpop.f32.mrf.mxu3  ;;  %v12411_v61 = vpop.permute.xlu1 %7131  ;;  %14731 = vst [vmem:[#allocation380_spill] sm:$0xff] %v12445_v21  ;;  %v5941_v25 = vrot.slane %v12445_v21, 2 }
 0x5b3   : > { %14724 = vst [vmem:[#allocation373_spill] sm:$0xff] %v12411_v61  ;;  %v12413_v44 = vpop.permute.xlu2 %6901  ;;  %v12415_v29 = vpop.permute.xlu0 %6333 }
 0x5b4   : > { %14725 = vst [vmem:[#allocation374_spill] sm:$0xff] %v12413_v44  ;;  %v12436_v61 = vpop.f32.mrf.mxu0  ;;  %v12442_v12 = vpop.f32.mrf.mxu2 }
 0x5b5   : > { %14726 = vst [vmem:[#allocation375_spill] sm:$0xff] %v12415_v29  ;;  %8565 = vmatmul.msk.bf16.gmra.mxu0 %vm2103_vm8, %v9555_v5 }
 0x5b6   : > { %8973 = vmatmul.msk.bf16.gmra.mxu1 %vm2103_vm8, %v9473_v37  ;;  %v3750_v37 = vadd.f32 %v11522_v40, %v10835_v63 }
 0x5b7   : > { %9410 = vmatmul.msk.bf16.gmra.mxu3 %vm2103_vm8, %v9662_v28  ;;  %v3647_v28 = vadd.f32 %v3646_v9, %v2585_v1 }
 0x5b8   : > { %6875 = vrot.lane.b32.xlu1 %v12401_v18, %s9841_s23  ;;  %6309 = vrot.lane.b32.xlu0 %v12417_v34, %s9840_s22 }
 0x5b9   : > { %6907 = vrot.lane.b32.xlu2 %v12382_v7, %s9841_s23  ;;  %v12465_v1 = vpop.f32.mrf.mxu1 }
 0x5ba   : > { %v12426_v41 = vpop.f32.mrf.mxu3  ;;  %v12428_v44 = vpop.permute.xlu1 %5590 }
 0x5bb   : > { %14728 = vst [vmem:[#allocation377_spill] sm:$0xff] %v12428_v44  ;;  %v12430_v29 = vpop.permute.xlu2 %7133  ;;  %v12432_v24 = vpop.permute.xlu0 %6071  ;;  %v5134_v44 = vadd.f32 %v4873_v31, %v3647_v28  ;;  %v5444_v31 = vrot.slane %v12417_v34, 1 }
 0x5bc   : > { %14729 = vst [vmem:[#allocation378_spill] sm:$0xff] %v12430_v29  ;;  %v5174_v29 = vadd.f32 %v12224_v36, %v3747_v52  ;;  %v12463_v9 = vpop.f32.mrf.mxu0  ;;  %v12468_v28 = vpop.f32.mrf.mxu2 }
 0x5bd   : > { %14730 = vst [vmem:[#allocation379_spill] sm:$0xff] %v12432_v24  ;;  %v5445_v36 = vrot.slane %v5134_v44, 1  ;;  %v5492_v24 = vrot.slane %v12445_v21, 1 }
 0x5be   : > { %v5942_v2 = vrot.slane %v5174_v29, 2  ;;  %v5493_v52 = vrot.slane %v5174_v29, 1 }
 0x5c0   : > { %6341 = vrot.lane.b32.xlu1 %v12445_v21, %s9840_s22  ;;  %7171 = vrot.lane.b32.xlu0 %v12445_v21, %s9842_s30  ;;  %v12480_v29 = vsel %vm5329_vm10, %v5492_v24, %v5493_v52  ;;  %v9637_v52 = vld [vmem:[#allocation3 + $0x250] sm:$0xff] }
 0x5c1   : > { %7139 = vrot.lane.b32.xlu2 %v12417_v34, %s9842_s30  ;;  %v12497_v24 = vpop.f32.mrf.mxu1  ;;  %9385 = vmatmul.msk.bf16.gmra.mxu2 %vm2103_vm8, %v9637_v52 }
 0x5c2   : > { %v12454_v46 = vpop.f32.mrf.mxu3  ;;  %v12456_v53 = vpop.permute.xlu1 %6621 }
 0x5c3   : > { %14732 = vst [vmem:[#allocation381_spill] sm:$0xff] %v12456_v53  ;;  %v12458_v30 = vpop.permute.xlu2 %5592  ;;  %v12460_v8 = vpop.permute.xlu0 %6589  ;;  %v12472_v53 = vsel %vm5778_vm9, %v5941_v25, %v5942_v2  ;;  %v5893_v25 = vrot.slane %v12417_v34, 2 }
 0x5c4   : > { %14733 = vst [vmem:[#allocation382_spill] sm:$0xff] %v12458_v30  ;;  %v12475_v30 = vsel %vm5329_vm10, %v5444_v31, %v5445_v36  ;;  %v5894_v31 = vrot.slane %v5134_v44, 2  ;;  %v12495_v23 = vpop.f32.mrf.mxu0  ;;  %v12499_v6 = vpop.f32.mrf.mxu2 }
 0x5c5   : > { %14734 = vst [vmem:[#allocation383_spill] sm:$0xff] %v12460_v8 }
 0x5c6   : > { %14735 = vst [vmem:[#allocation384_spill] sm:$0xff] %v12472_v53 }
 0x5c8   : > { %6079 = vrot.lane.b32.xlu1 %v12472_v53, %s9838_s18  ;;  %5630 = vrot.lane.b32.xlu0 %v12480_v29, %s9839_s19 }
 0x5c9   : > { %5598 = vrot.lane.b32.xlu2 %v12475_v30, %s9839_s19 }
 0x5ca   : > { %v12486_v8 = vpop.f32.mrf.mxu3  ;;  %v12488_v21 = vpop.permute.xlu1 %6869 }
 0x5cb   : > { %14736 = vst [vmem:[#allocation385_spill] sm:$0xff] %v12488_v21  ;;  %v12490_v2 = vpop.permute.xlu2 %6623  ;;  %v12492_v36 = vpop.permute.xlu0 %6303  ;;  %v12519_v21 = vadd.f32 %v4876_v49, %v3650_v50 }
 0x5cc   : > { %14737 = vst [vmem:[#allocation386_spill] sm:$0xff] %v12490_v2  ;;  %v12505_v2 = vsel %vm5778_vm9, %v5893_v25, %v5894_v31  ;;  %v2598_v31 = vpop.f32.mrf.mxu0  ;;  %v3659_v25 = vpop.f32.mrf.mxu1 }
 0x5cd   : > { %14738 = vst [vmem:[#allocation387_spill] sm:$0xff] %v12492_v36  ;;  %v4886_v45 = vpop.f32.mrf.mxu2  ;;  %v3660_v15 = vadd.f32 %v3659_v25, %v2598_v31  ;;  %v3652_v31 = vadd.f32 %v12438_v60, %v12436_v61 }
 0x5ce   : > { %14739 = vst [vmem:[#allocation388_spill] sm:$0xff] %v12505_v2 }
 0x5cf   : > { %14743 = vst [vmem:[#allocation392_spill] sm:$0xff] %v12519_v21  ;;  %v12537_v5 = vadd.f32 %v4886_v45, %v3660_v15  ;;  %v5136_v40 = vadd.f32 %v12442_v12, %v3652_v31 }
 0x5d0   : > { %6597 = vrot.lane.b32.xlu1 %v12475_v30, %s9843_s8  ;;  %6047 = vrot.lane.b32.xlu0 %v12505_v2, %s9838_s18 }
 0x5d1   : > { %6629 = vrot.lane.b32.xlu2 %v12480_v29, %s9843_s8  ;;  %v7343_v45 = vrot.slane %v12537_v5, 1  ;;  %v7623_v15 = vrot.slane %v12537_v5, 2 }
 0x5d2   : > { %v12511_v44 = vpop.f32.mrf.mxu3  ;;  %v12513_v34 = vpop.permute.xlu1 %6335 }
 0x5d3   : > { %14740 = vst [vmem:[#allocation389_spill] sm:$0xff] %v12513_v34  ;;  %v12515_v36 = vpop.permute.xlu2 %6871  ;;  %v12517_v52 = vpop.permute.xlu0 %7165 }
 0x5d4   : > { %14741 = vst [vmem:[#allocation390_spill] sm:$0xff] %v12515_v36  ;;  %v2600_v25 = vpop.f32.mrf.mxu0  ;;  %v3661_v36 = vpop.f32.mrf.mxu1 }
 0x5d5   : > { %14742 = vst [vmem:[#allocation391_spill] sm:$0xff] %v12517_v52  ;;  %v3662_v7 = vadd.f32 %v3661_v36, %v2600_v25  ;;  %v4888_v4 = vpop.f32.mrf.mxu2  ;;  %v5448_v36 = vrot.slane %v5136_v40, 1 }
 0x5d7   : > { %v5140_v63 = vadd.f32 %v4888_v4, %v3662_v7 }
 0x5d8   : > { %6311 = vrot.lane.b32.xlu1 %v12519_v21, %s9840_s22  ;;  %6909 = vrot.lane.b32.xlu0 %v12472_v53, %s9841_s23  ;;  %v3752_v53 = vadd.f32 %v11541_v57, %v10847_v14 }
 0x5d9   : > { %6877 = vrot.lane.b32.xlu2 %v12505_v2, %s9841_s23  ;;  %v7344_v14 = vrot.slane %v5140_v63, 1  ;;  %v7624_v57 = vrot.slane %v5140_v63, 2 }
 0x5da   : > { %v12529_v52 = vpop.f32.mrf.mxu3  ;;  %v12531_v50 = vpop.permute.xlu1 %6073 }
 0x5db   : > { %14744 = vst [vmem:[#allocation393_spill] sm:$0xff] %v12531_v50  ;;  %v12533_v49 = vpop.permute.xlu2 %6337  ;;  %v12535_v34 = vpop.permute.xlu0 %5624  ;;  %v12546_v50 = vadd.f32 %v12242_v58, %v3750_v37  ;;  %v12567_v12 = vsel %vm5329_vm10, %v7343_v45, %v7344_v14  ;;  %v12570_v7 = vsel %vm5778_vm9, %v7623_v15, %v7624_v57  ;;  %v5447_v37 = vrot.slane %v12519_v21, 1 }
 0x5dc   : > { %14745 = vst [vmem:[#allocation394_spill] sm:$0xff] %v12533_v49  ;;  %v5176_v49 = vadd.f32 %v12264_v27, %v3752_v53  ;;  %v5897_v14 = vrot.slane %v5136_v40, 2 }
 0x5dd   : > { %14746 = vst [vmem:[#allocation395_spill] sm:$0xff] %v12535_v34  ;;  %v5495_v31 = vrot.slane %v12546_v50, 1  ;;  %v5944_v25 = vrot.slane %v12546_v50, 2  ;;  %v12584_v45 = vsel %vm5329_vm10, %v5447_v37, %v5448_v36  ;;  %v9638_v37 = vld [vmem:[#allocation3 + $0x258] sm:$0xff] }
 0x5de   : > { %14747 = vst [vmem:[#allocation396_spill] sm:$0xff] %v12546_v50  ;;  %v5496_v60 = vrot.slane %v5176_v49, 1  ;;  %v5945_v53 = vrot.slane %v5176_v49, 2  ;;  %9386 = vmatmul.msk.bf16.gmra.mxu2 %vm2103_vm8, %v9638_v37 }
 0x5df   : > { %14751 = vst [vmem:[#allocation400_spill] sm:$0xff] %v12570_v7  ;;  %v3767_v7 = vadd.f32 %v11638_v32, %v10947_v56  ;;  %v12693_v32 = vadd.f32 %v12388_v17, %v3765_v20 }
 0x5e0   : > { %7173 = vrot.lane.b32.xlu1 %v12546_v50, %s9842_s30  ;;  %7141 = vrot.lane.b32.xlu0 %v12519_v21, %s9842_s30  ;;  %v12576_v63 = vsel %vm5329_vm10, %v5495_v31, %v5496_v60 }
 0x5e1   : > { %6343 = vrot.lane.b32.xlu2 %v12546_v50, %s9840_s22  ;;  %v5182_v56 = vadd.f32 %v12409_v13, %v3767_v7  ;;  %14771 = vst [vmem:[#allocation420_spill] sm:$0xff] %v12693_v32  ;;  %v5498_v7 = vrot.slane %v12693_v32, 1 }
 0x5e2   : > { %v12558_v58 = vpop.f32.mrf.mxu3  ;;  %v12560_v27 = vpop.permute.xlu1 %6591 }
 0x5e3   : > { %14748 = vst [vmem:[#allocation397_spill] sm:$0xff] %v12560_v27  ;;  %v12562_v61 = vpop.permute.xlu2 %6075  ;;  %v12564_v4 = vpop.permute.xlu0 %6041 }
 0x5e4   : > { %14749 = vst [vmem:[#allocation398_spill] sm:$0xff] %v12562_v61  ;;  %v12579_v61 = vsel %vm5778_vm9, %v5944_v25, %v5945_v53  ;;  %v5896_v53 = vrot.slane %v12519_v21, 2  ;;  %v3655_v25 = vadd.f32 %v12465_v1, %v12463_v9  ;;  %v2603_v9 = vpop.f32.mrf.mxu0  ;;  %v3664_v1 = vpop.f32.mrf.mxu1 }
 0x5e5   : > { %14750 = vst [vmem:[#allocation399_spill] sm:$0xff] %v12564_v4 }
 0x5e6   : > { %14752 = vst [vmem:[#allocation401_spill] sm:$0xff] %v12579_v61  ;;  %v12600_v36 = vsel %vm5778_vm9, %v5896_v53, %v5897_v14  ;;  %v9556_v53 = vld [vmem:[#allocation3 + $0x208] sm:$0xff]  ;;  %v5137_v34 = vadd.f32 %v12468_v28, %v3655_v25  ;;  %v4891_v25 = vpop.f32.mrf.mxu2 }
 0x5e7   : > { %14756 = vst [vmem:[#allocation405_spill] sm:$0xff] %v12600_v36  ;;  %8566 = vmatmul.msk.bf16.gmra.mxu0 %vm2103_vm8, %v9556_v53 }
 0x5e8   : > { %5632 = vrot.lane.b32.xlu1 %v12576_v63, %s9839_s19  ;;  %5600 = vrot.lane.b32.xlu0 %v12584_v45, %s9839_s19 }
 0x5e9   : > { %6081 = vrot.lane.b32.xlu2 %v12579_v61, %s9838_s18 }
 0x5ea   : > { %v12590_v49 = vpop.f32.mrf.mxu3  ;;  %v12592_v15 = vpop.permute.xlu1 %6305 }
 0x5eb   : > { %14753 = vst [vmem:[#allocation402_spill] sm:$0xff] %v12592_v15  ;;  %v12594_v57 = vpop.permute.xlu2 %6593  ;;  %v12596_v60 = vpop.permute.xlu0 %6903  ;;  %v3665_v15 = vadd.f32 %v3664_v1, %v2603_v9  ;;  %v12676_v9 = vadd.f32 %v12337_v59, %v3760_v19 }
 0x5ec   : > { %14754 = vst [vmem:[#allocation403_spill] sm:$0xff] %v12594_v57 }
 0x5ed   : > { %14755 = vst [vmem:[#allocation404_spill] sm:$0xff] %v12596_v60  ;;  %v9474_v60 = vld [vmem:[#allocation3 + $0x1b8] sm:$0xff]  ;;  %v12678_v1 = vadd.f32 %v4891_v25, %v3665_v15  ;;  %v5947_v15 = vrot.slane %v12693_v32, 2 }
 0x5ee   : > { %8974 = vmatmul.msk.bf16.gmra.mxu1 %vm2103_vm8, %v9474_v60  ;;  %v3657_v60 = vadd.f32 %v12497_v24, %v12495_v23  ;;  %v6511_v24 = vrot.slane %v5137_v34, 1 }
 0x5ef   : > { %14769 = vst [vmem:[#allocation418_spill] sm:$0xff] %v12678_v1  ;;  %v5450_v47 = vrot.slane %v12678_v1, 1 }
 0x5f0   : > { %6049 = vrot.lane.b32.xlu1 %v12600_v36, %s9838_s18  ;;  %6631 = vrot.lane.b32.xlu0 %v12576_v63, %s9843_s8  ;;  %v5138_v53 = vadd.f32 %v12499_v6, %v3657_v60  ;;  %v3666_v6 = vpop.f32.mrf.mxu1  ;;  %v4893_v60 = vpop.f32.mrf.mxu2 }
 0x5f1   : > { %6599 = vrot.lane.b32.xlu2 %v12584_v45, %s9843_s8 }
 0x5f2   : > { %v12608_v40 = vpop.f32.mrf.mxu3  ;;  %v12610_v31 = vpop.permute.xlu1 %7167  ;;  %v6512_v23 = vrot.slane %v5138_v53, 1 }
 0x5f3   : > { %14757 = vst [vmem:[#allocation406_spill] sm:$0xff] %v12610_v31  ;;  %v12614_v50 = vpop.permute.xlu2 %6307  ;;  %v12616_v14 = vpop.permute.xlu0 %7135 }
 0x5f4   : > { %14758 = vst [vmem:[#allocation407_spill] sm:$0xff] %v12614_v50 }
 0x5f5   : > { %14759 = vst [vmem:[#allocation408_spill] sm:$0xff] %v12616_v14  ;;  %v12654_v14 = vsel %vm5329_vm10, %v6511_v24, %v6512_v23  ;;  %v6791_v23 = vrot.slane %v5137_v34, 2  ;;  %v9557_v24 = vld [vmem:[#allocation3 + $0x210] sm:$0xff] }
 0x5f7   : > { %8567 = vmatmul.msk.bf16.gmra.mxu0 %vm2103_vm8, %v9557_v24 }
 0x5f8   : > { %6911 = vrot.lane.b32.xlu1 %v12579_v61, %s9841_s23  ;;  %6879 = vrot.lane.b32.xlu0 %v12600_v36, %s9841_s23  ;;  %v4896_v11 = vpop.f32.mrf.mxu2 }
 0x5f9   : > { %6313 = vrot.lane.b32.xlu2 %v5137_v34, %s9840_s22 }
 0x5fa   : > { %v12627_v31 = vpop.f32.mrf.mxu3  ;;  %v12629_v37 = vpop.permute.xlu1 %5626 }
 0x5fb   : > { %14760 = vst [vmem:[#allocation409_spill] sm:$0xff] %v12629_v37  ;;  %v12631_v21 = vpop.permute.xlu2 %7169  ;;  %v12633_v28 = vpop.permute.xlu0 %5594 }
 0x5fc   : > { %14761 = vst [vmem:[#allocation410_spill] sm:$0xff] %v12631_v21 }
 0x5fd   : > { %14762 = vst [vmem:[#allocation411_spill] sm:$0xff] %v12633_v28  ;;  %v2605_v28 = vpop.f32.mrf.mxu0 }
 0x5fe   : > { %v3667_v4 = vadd.f32 %v3666_v6, %v2605_v28 }
 0x600   : > { %7143 = vrot.lane.b32.xlu1 %v5137_v34, %s9842_s30  ;;  %6345 = vrot.lane.b32.xlu0 %v12305_v3, %s9840_s22  ;;  %v5142_v34 = vadd.f32 %v4893_v60, %v3667_v4  ;;  %v5499_v4 = vrot.slane %v5182_v56, 1 }
 0x601   : > { %7175 = vrot.lane.b32.xlu2 %v12305_v3, %s9842_s30  ;;  %v9639_v3 = vld [vmem:[#allocation3 + $0x260] sm:$0xff] }
 0x602   : > { %v12643_v50 = vpop.f32.mrf.mxu3  ;;  %v12645_v37 = vpop.permute.xlu1 %6043  ;;  %9387 = vmatmul.msk.bf16.gmra.mxu2 %vm2103_vm8, %v9639_v3  ;;  %v5451_v62 = vrot.slane %v5142_v34, 1 }
 0x603   : > { %14763 = vst [vmem:[#allocation412_spill] sm:$0xff] %v12645_v37  ;;  %v12647_v21 = vpop.permute.xlu2 %5628  ;;  %v12649_v57 = vpop.permute.xlu0 %6625  ;;  %v6792_v37 = vrot.slane %v5138_v53, 2 }
 0x604   : > { %14764 = vst [vmem:[#allocation413_spill] sm:$0xff] %v12647_v21  ;;  %v3669_v53 = vpop.f32.mrf.mxu1  ;;  %v5452_v17 = vsel %vm5329_vm10, %v5450_v47, %v5451_v62  ;;  %v14778_v62 = vld [vmem:[#allocation206_spill] sm:$0xff] }
 0x605   : > { %14765 = vst [vmem:[#allocation414_spill] sm:$0xff] %v12649_v57  ;;  %v2608_v28 = vpop.f32.mrf.mxu0  ;;  %v12681_v6 = vsel %vm5778_vm9, %v6791_v23, %v6792_v37  ;;  %v5500_v37 = vsel %vm5329_vm10, %v5498_v7, %v5499_v4  ;;  %v3770_v4 = vadd.f32 %v14778_v62, %v10968_v26  ;;  %v5900_v7 = vrot.slane %v5142_v34, 2 }
 0x606   : > { %14770 = vst [vmem:[#allocation419_spill] sm:$0xff] %v12681_v6  ;;  %v3670_v20 = vadd.f32 %v3669_v53, %v2608_v28 }
 0x608   : > { %6633 = vrot.lane.b32.xlu1 %v12328_v22, %s9843_s8  ;;  %6601 = vrot.lane.b32.xlu0 %v12654_v14, %s9843_s8  ;;  %v12729_v53 = vadd.f32 %v4896_v11, %v3670_v20 }
 0x609   : > { %6913 = vrot.lane.b32.xlu2 %v12325_v55, %s9841_s23  ;;  %v9475_v55 = vld [vmem:[#allocation3 + $0x1c0] sm:$0xff] }
 0x60a   : > { %v12660_v21 = vpop.f32.mrf.mxu3  ;;  %v12662_v57 = vpop.permute.xlu1 %6905  ;;  %8975 = vmatmul.msk.bf16.gmra.mxu1 %vm2103_vm8, %v9475_v55 }
 0x60b   : > { %14766 = vst [vmem:[#allocation415_spill] sm:$0xff] %v12662_v57  ;;  %v12664_v27 = vpop.permute.xlu2 %6045  ;;  %v12666_v61 = vpop.permute.xlu0 %6873  ;;  %v14791_v57 = vld [vmem:[#allocation113_spill] sm:$0xff] }
 0x60c   : > { %14767 = vst [vmem:[#allocation416_spill] sm:$0xff] %v12664_v27  ;;  %v3671_v3 = vpop.f32.mrf.mxu1 }
 0x60d   : > { %14768 = vst [vmem:[#allocation417_spill] sm:$0xff] %v12666_v61  ;;  %v2610_v60 = vpop.f32.mrf.mxu0 }
 0x610   : > { %6881 = vrot.lane.b32.xlu1 %v12681_v6, %s9841_s23  ;;  %7177 = vrot.lane.b32.xlu0 %v12676_v9, %s9842_s30 }
 0x611   : > { %7145 = vrot.lane.b32.xlu2 %v12537_v5, %s9842_s30  ;;  %v5948_v5 = vrot.slane %v5182_v56, 2 }
 0x612   : > { %v12695_v19 = vpop.f32.mrf.mxu3  ;;  %v12697_v55 = vpop.permute.xlu1 %7137 }
 0x613   : > { %14772 = vst [vmem:[#allocation421_spill] sm:$0xff] %v12697_v55  ;;  %v12700_v59 = vpop.permute.xlu2 %6907  ;;  %v12702_v13 = vpop.permute.xlu0 %6339  ;;  %v5949_v25 = vsel %vm5778_vm9, %v5947_v15, %v5948_v5  ;;  %v5899_v5 = vrot.slane %v12678_v1, 2  ;;  %v3672_v15 = vadd.f32 %v3671_v3, %v2610_v60  ;;  %v5453_v3 = vrot.slane %v12729_v53, 1 }
 0x614   : > { %14773 = vst [vmem:[#allocation422_spill] sm:$0xff] %v12700_v59  ;;  %v12726_v59 = vadd.f32 %v12426_v41, %v3770_v4 }
 0x615   : > { %14774 = vst [vmem:[#allocation423_spill] sm:$0xff] %v12702_v13 }
 0x616   : > { %14781 = vst [vmem:[#allocation206_spill] sm:$0xff] %v12726_v59  ;;  %v5950_v20 = vrot.slane %v12726_v59, 2 }
 0x618   : > { %5602 = vrot.lane.b32.xlu1 %v5452_v17, %s9839_s19  ;;  %6083 = vrot.lane.b32.xlu0 %v5949_v25, %s9838_s18  ;;  %v14779_v17 = vld [vmem:[#allocation47_spill] sm:$0xff]  ;;  %v4898_v25 = vpop.f32.mrf.mxu2 }
 0x619   : > { %5634 = vrot.lane.b32.xlu2 %v5500_v37, %s9839_s19  ;;  %v14780_v37 = vld [vmem:[#allocation211_spill] sm:$0xff]  ;;  %14782 = vst [vmem:[#allocation47_spill] sm:$0xff] %v12729_v53  ;;  %v5144_v13 = vadd.f32 %v4898_v25, %v3672_v15 }
 0x61a   : > { %v12712_v23 = vpop.f32.mrf.mxu3  ;;  %v12714_v24 = vpop.permute.xlu1 %5596  ;;  %v3772_v32 = vadd.f32 %v14780_v37, %v14779_v17 }
 0x61b   : > { %14775 = vst [vmem:[#allocation424_spill] sm:$0xff] %v12714_v24  ;;  %v12716_v56 = vpop.permute.xlu2 %7139  ;;  %v12718_v47 = vpop.permute.xlu0 %6077  ;;  %v5903_v25 = vrot.slane %v5144_v13, 2 }
 0x61c   : > { %14776 = vst [vmem:[#allocation425_spill] sm:$0xff] %v12716_v56  ;;  %v5184_v28 = vadd.f32 %v12454_v46, %v3772_v32  ;;  %v5454_v32 = vrot.slane %v5144_v13, 1 }
 0x61d   : > { %14777 = vst [vmem:[#allocation426_spill] sm:$0xff] %v12718_v47  ;;  %v5901_v47 = vsel %vm5778_vm9, %v5899_v5, %v5900_v7 }
 0x61e   : > { %v5951_v41 = vrot.slane %v5184_v28, 2  ;;  %v5502_v11 = vrot.slane %v5184_v28, 1  ;;  %v5455_v4 = vsel %vm5329_vm10, %v5453_v3, %v5454_v32  ;;  %v5902_v28 = vrot.slane %v12729_v53, 2  ;;  %v2613_v32 = vpop.f32.mrf.mxu0  ;;  %v3674_v3 = vpop.f32.mrf.mxu1 }
 0x620   : > { %6347 = vrot.lane.b32.xlu1 %v12726_v59, %s9840_s22  ;;  %6315 = vrot.lane.b32.xlu0 %v12729_v53, %s9840_s22  ;;  %v5952_v62 = vsel %vm5778_vm9, %v5950_v20, %v5951_v41  ;;  %v9640_v41 = vld [vmem:[#allocation3 + $0x268] sm:$0xff]  ;;  %v14790_v20 = vld [vmem:[#allocation278_spill] sm:$0xff]  ;;  %v4901_v13 = vpop.f32.mrf.mxu2 }
 0x621   : > { %6051 = vrot.lane.b32.xlu2 %v5901_v47, %s9838_s18  ;;  %v5501_v47 = vrot.slane %v12726_v59, 1  ;;  %9388 = vmatmul.msk.bf16.gmra.mxu2 %vm2103_vm8, %v9640_v41  ;;  %v5904_v59 = vsel %vm5778_vm9, %v5902_v28, %v5903_v25  ;;  %v9558_v25 = vld [vmem:[#allocation3 + $0x218] sm:$0xff]  ;;  %v9476_v28 = vld [vmem:[#allocation3 + $0x1c8] sm:$0xff] }
 0x622   : > { %v12737_v26 = vpop.f32.mrf.mxu3  ;;  %v12739_v34 = vpop.permute.xlu1 %6627  ;;  %8568 = vmatmul.msk.bf16.gmra.mxu0 %vm2103_vm8, %v9558_v25  ;;  %8976 = vmatmul.msk.bf16.gmra.mxu1 %vm2103_vm8, %v9476_v28  ;;  %v14802_v28 = vld [vmem:[#allocation51_spill] sm:$0xff] }
 0x623   : > { %14783 = vst [vmem:[#allocation211_spill] sm:$0xff] %v12739_v34  ;;  %v12741_v60 = vpop.permute.xlu2 %5598  ;;  %v12743_v46 = vpop.permute.xlu0 %6595  ;;  %v5503_v5 = vsel %vm5329_vm10, %v5501_v47, %v5502_v11  ;;  %v14789_v11 = vld [vmem:[#allocation109_spill] sm:$0xff]  ;;  %v3675_v34 = vadd.f32 %v3674_v3, %v2613_v32 }
 0x624   : > { %14784 = vst [vmem:[#allocation427_spill] sm:$0xff] %v12741_v60  ;;  %v3805_v47 = vadd.f32 %v14790_v20, %v14789_v11 }
 0x625   : > { %14785 = vst [vmem:[#allocation428_spill] sm:$0xff] %v12743_v46  ;;  %v12778_v32 = vadd.f32 %v4901_v13, %v3675_v34 }
 0x626   : > { %v2615_v3 = vpop.f32.mrf.mxu0 }
 0x628   : > { %6085 = vrot.lane.b32.xlu1 %v5952_v62, %s9838_s18  ;;  %5636 = vrot.lane.b32.xlu0 %v5503_v5, %s9839_s19 }
 0x629   : > { %5604 = vrot.lane.b32.xlu2 %v5455_v4, %s9839_s19 }
 0x62a   : > { %v5031_v7 = vpop.f32.mrf.mxu3  ;;  %v12754_v15 = vpop.permute.xlu1 %6875 }
 0x62b   : > { %14786 = vst [vmem:[#allocation429_spill] sm:$0xff] %v12754_v15  ;;  %v12756_v17 = vpop.permute.xlu2 %6629  ;;  %v12758_v37 = vpop.permute.xlu0 %6309  ;;  %v12768_v60 = vadd.f32 %v5031_v7, %v3805_v47 }
 0x62c   : > { %14787 = vst [vmem:[#allocation430_spill] sm:$0xff] %v12756_v17  ;;  %v14792_v17 = vld [vmem:[#allocation281_spill] sm:$0xff]  ;;  %v4903_v47 = vpop.f32.mrf.mxu2 }
 0x62d   : > { %14788 = vst [vmem:[#allocation431_spill] sm:$0xff] %v12758_v37  ;;  %v3807_v1 = vadd.f32 %v14792_v17, %v14791_v57  ;;  %v6800_v17 = vrot.slane %v12768_v60, 2 }
 0x62e   : > { %14796 = vst [vmem:[#allocation281_spill] sm:$0xff] %v12778_v32 }
 0x630   : > { %6603 = vrot.lane.b32.xlu1 %v5455_v4, %s9843_s8  ;;  %6053 = vrot.lane.b32.xlu0 %v5904_v59, %s9838_s18 }
 0x631   : > { %6635 = vrot.lane.b32.xlu2 %v5503_v5, %s9843_s8  ;;  %v6520_v5 = vrot.slane %v12768_v60, 1 }
 0x632   : > { %v5033_v53 = vpop.f32.mrf.mxu3  ;;  %v12772_v41 = vpop.permute.xlu1 %6341 }
 0x633   : > { %14793 = vst [vmem:[#allocation109_spill] sm:$0xff] %v12772_v41  ;;  %v5198_v56 = vadd.f32 %v5033_v53, %v3807_v1  ;;  %v12774_v11 = vpop.permute.xlu2 %6877  ;;  %v12776_v4 = vpop.permute.xlu0 %7171 }
 0x634   : > { %14794 = vst [vmem:[#allocation278_spill] sm:$0xff] %v12774_v11  ;;  %v3676_v1 = vpop.f32.mrf.mxu1 }
 0x635   : > { %14795 = vst [vmem:[#allocation113_spill] sm:$0xff] %v12776_v4  ;;  %v6521_v57 = vrot.slane %v5198_v56, 1  ;;  %v6801_v7 = vrot.slane %v5198_v56, 2  ;;  %v3677_v34 = vadd.f32 %v3676_v1, %v2615_v3 }
 0x637   : > { %v12785_v53 = vsel %vm5329_vm10, %v6520_v5, %v6521_v57  ;;  %v12788_v20 = vsel %vm5778_vm9, %v6800_v17, %v6801_v7  ;;  %v14803_v57 = vld [vmem:[#allocation215_spill] sm:$0xff]  ;;  %v14804_v7 = vld [vmem:[#allocation56_spill] sm:$0xff] }
 0x638   : > { %14797 = vst [vmem:[#allocation432_spill] sm:$0xff] %v12785_v53  ;;  %6317 = vrot.lane.b32.xlu1 %v12778_v32, %s9840_s22  ;;  %6915 = vrot.lane.b32.xlu0 %v5952_v62, %s9841_s23  ;;  %v3775_v5 = vadd.f32 %v14803_v57, %v14802_v28  ;;  %v14805_v17 = vld [vmem:[#allocation220_spill] sm:$0xff]  ;;  %v5456_v28 = vrot.slane %v12778_v32, 1 }
 0x639   : > { %14798 = vst [vmem:[#allocation433_spill] sm:$0xff] %v12788_v20  ;;  %6883 = vrot.lane.b32.xlu2 %v5904_v59, %s9841_s23  ;;  %v3777_v4 = vadd.f32 %v14805_v17, %v14804_v7  ;;  %v5146_v59 = vadd.f32 %v4903_v47, %v3677_v34 }
 0x63a   : > { %v12794_v56 = vpop.permute.xlu1 %6079  ;;  %v12805_v41 = vadd.f32 %v12486_v8, %v3775_v5 }
 0x63b   : > { %14799 = vst [vmem:[#allocation434_spill] sm:$0xff] %v12794_v56  ;;  %v12796_v13 = vpop.permute.xlu2 %6343  ;;  %v12798_v25 = vpop.permute.xlu0 %5630  ;;  %v5186_v62 = vadd.f32 %v12511_v44, %v3777_v4  ;;  %v5457_v3 = vrot.slane %v5146_v59, 1 }
 0x63c   : > { %14800 = vst [vmem:[#allocation435_spill] sm:$0xff] %v12796_v13  ;;  %v5504_v4 = vrot.slane %v12805_v41, 1  ;;  %v5953_v47 = vrot.slane %v12805_v41, 2 }
 0x63d   : > { %14801 = vst [vmem:[#allocation436_spill] sm:$0xff] %v12798_v25  ;;  %v5505_v57 = vrot.slane %v5186_v62, 1  ;;  %v5954_v44 = vrot.slane %v5186_v62, 2  ;;  %v12824_v5 = vsel %vm5329_vm10, %v5456_v28, %v5457_v3 }
 0x63e   : > { %14806 = vst [vmem:[#allocation51_spill] sm:$0xff] %v12805_v41 }
 0x63f   : > { %v12827_v7 = vsel %vm5329_vm10, %v5504_v4, %v5505_v57  ;;  %v12830_v17 = vsel %vm5778_vm9, %v5953_v47, %v5954_v44  ;;  %v5905_v57 = vrot.slane %v12778_v32, 2  ;;  %v9641_v44 = vld [vmem:[#allocation3 + $0x270] sm:$0xff]  ;;  %v2618_v4 = vpop.f32.mrf.mxu0  ;;  %v3679_v47 = vpop.f32.mrf.mxu1 }
 0x640   : > { %7179 = vrot.lane.b32.xlu1 %v12805_v41, %s9842_s30  ;;  %7147 = vrot.lane.b32.xlu0 %v12778_v32, %s9842_s30  ;;  %14810 = vst [vmem:[#allocation437_spill] sm:$0xff] %v12830_v17  ;;  %v3680_v13 = vadd.f32 %v3679_v47, %v2618_v4 }
 0x641   : > { %6349 = vrot.lane.b32.xlu2 %v12805_v41, %s9840_s22  ;;  %v5906_v41 = vrot.slane %v5146_v59, 2  ;;  %9389 = vmatmul.msk.bf16.gmra.mxu2 %vm2103_vm8, %v9641_v44  ;;  %v4906_v59 = vpop.f32.mrf.mxu2  ;;  %v9559_v44 = vld [vmem:[#allocation3 + $0x220] sm:$0xff] }
 0x642   : > { %v12814_v1 = vpop.permute.xlu1 %6597  ;;  %8569 = vmatmul.msk.bf16.gmra.mxu0 %vm2103_vm8, %v9559_v44 }
 0x643   : > { %14807 = vst [vmem:[#allocation215_spill] sm:$0xff] %v12814_v1  ;;  %v12817_v8 = vpop.permute.xlu2 %6081  ;;  %v12819_v34 = vpop.permute.xlu0 %6047 }
 0x644   : > { %14808 = vst [vmem:[#allocation56_spill] sm:$0xff] %v12817_v8  ;;  %v12847_v8 = vsel %vm5778_vm9, %v5905_v57, %v5906_v41  ;;  %v9477_v41 = vld [vmem:[#allocation3 + $0x1d0] sm:$0xff]  ;;  %v12861_v57 = vadd.f32 %v4906_v59, %v3680_v13 }
 0x645   : > { %14809 = vst [vmem:[#allocation220_spill] sm:$0xff] %v12819_v34  ;;  %8977 = vmatmul.msk.bf16.gmra.mxu1 %vm2103_vm8, %v9477_v41  ;;  %v14822_v41 = vld [vmem:[#allocation61_spill] sm:$0xff] }
 0x646   : > { %14814 = vst [vmem:[#allocation441_spill] sm:$0xff] %v12847_v8 }
 0x647   : > { %14818 = vst [vmem:[#allocation445_spill] sm:$0xff] %v12861_v57  ;;  %v2620_v4 = vpop.f32.mrf.mxu0  ;;  %v3681_v47 = vpop.f32.mrf.mxu1 }
 0x648   : > { %5638 = vrot.lane.b32.xlu1 %v12827_v7, %s9839_s19  ;;  %5606 = vrot.lane.b32.xlu0 %v12824_v5, %s9839_s19  ;;  %v3682_v32 = vadd.f32 %v3681_v47, %v2620_v4 }
 0x649   : > { %6087 = vrot.lane.b32.xlu2 %v12830_v17, %s9838_s18  ;;  %v4908_v44 = vpop.f32.mrf.mxu2 }
 0x64a   : > { %v12838_v62 = vpop.permute.xlu1 %6311  ;;  %v5148_v1 = vadd.f32 %v4908_v44, %v3682_v32 }
 0x64b   : > { %14811 = vst [vmem:[#allocation438_spill] sm:$0xff] %v12838_v62  ;;  %v12840_v3 = vpop.permute.xlu2 %6599  ;;  %v12842_v28 = vpop.permute.xlu0 %6909  ;;  %v14825_v62 = vld [vmem:[#allocation231_spill] sm:$0xff] }
 0x64c   : > { %14812 = vst [vmem:[#allocation439_spill] sm:$0xff] %v12840_v3 }
 0x64d   : > { %14813 = vst [vmem:[#allocation440_spill] sm:$0xff] %v12842_v28 }
 0x650   : > { %6055 = vrot.lane.b32.xlu1 %v12847_v8, %s9838_s18  ;;  %6637 = vrot.lane.b32.xlu0 %v12827_v7, %s9843_s8 }
 0x651   : > { %6605 = vrot.lane.b32.xlu2 %v12824_v5, %s9843_s8 }
 0x652   : > { %v12855_v28 = vpop.permute.xlu1 %7173 }
 0x653   : > { %14815 = vst [vmem:[#allocation442_spill] sm:$0xff] %v12855_v28  ;;  %v12857_v56 = vpop.permute.xlu2 %6313  ;;  %v12859_v25 = vpop.permute.xlu0 %7141 }
 0x654   : > { %14816 = vst [vmem:[#allocation443_spill] sm:$0xff] %v12857_v56  ;;  %v14823_v56 = vld [vmem:[#allocation226_spill] sm:$0xff] }
 0x655   : > { %14817 = vst [vmem:[#allocation444_spill] sm:$0xff] %v12859_v25  ;;  %v3780_v3 = vadd.f32 %v14823_v56, %v14822_v41  ;;  %v14824_v25 = vld [vmem:[#allocation66_spill] sm:$0xff]  ;;  %v5460_v56 = vrot.slane %v5148_v1, 1 }
 0x656   : > { %v3782_v11 = vadd.f32 %v14825_v62, %v14824_v25 }
 0x657   : > { %v12882_v34 = vadd.f32 %v12529_v52, %v3780_v3  ;;  %v5459_v52 = vrot.slane %v12861_v57, 1 }
 0x658   : > { %6917 = vrot.lane.b32.xlu1 %v12830_v17, %s9841_s23  ;;  %6885 = vrot.lane.b32.xlu0 %v12847_v8, %s9841_s23  ;;  %v5188_v37 = vadd.f32 %v12558_v58, %v3782_v11 }
 0x659   : > { %6319 = vrot.lane.b32.xlu2 %v12861_v57, %s9840_s22  ;;  %14826 = vst [vmem:[#allocation61_spill] sm:$0xff] %v12882_v34  ;;  %v5507_v11 = vrot.slane %v12882_v34, 1  ;;  %v5956_v62 = vrot.slane %v12882_v34, 2  ;;  %v12901_v3 = vsel %vm5329_vm10, %v5459_v52, %v5460_v56  ;;  %v5909_v52 = vrot.slane %v5148_v1, 2 }
 0x65a   : > { %v12871_v28 = vpop.permute.xlu1 %5632  ;;  %v5508_v32 = vrot.slane %v5188_v37, 1  ;;  %v5957_v58 = vrot.slane %v5188_v37, 2 }
 0x65b   : > { %14819 = vst [vmem:[#allocation446_spill] sm:$0xff] %v12871_v28  ;;  %v12873_v13 = vpop.permute.xlu2 %7175  ;;  %v12875_v59 = vpop.permute.xlu0 %5600 }
 0x65c   : > { %14820 = vst [vmem:[#allocation447_spill] sm:$0xff] %v12873_v13  ;;  %v12904_v44 = vsel %vm5329_vm10, %v5507_v11, %v5508_v32  ;;  %v12909_v41 = vsel %vm5778_vm9, %v5956_v62, %v5957_v58  ;;  %v5908_v32 = vrot.slane %v12861_v57, 2  ;;  %v2623_v11 = vpop.f32.mrf.mxu0  ;;  %v9642_v13 = vld [vmem:[#allocation3 + $0x278] sm:$0xff] }
 0x65d   : > { %14821 = vst [vmem:[#allocation448_spill] sm:$0xff] %v12875_v59  ;;  %9390 = vmatmul.msk.bf16.gmra.mxu2 %vm2103_vm8, %v9642_v13 }
 0x65e   : > { %14830 = vst [vmem:[#allocation449_spill] sm:$0xff] %v12904_v44  ;;  %v12923_v58 = vsel %vm5778_vm9, %v5908_v32, %v5909_v52  ;;  %v9560_v52 = vld [vmem:[#allocation3 + $0x228] sm:$0xff]  ;;  %v9478_v32 = vld [vmem:[#allocation3 + $0x1d8] sm:$0xff] }
 0x65f   : > { %14831 = vst [vmem:[#allocation450_spill] sm:$0xff] %v12909_v41  ;;  %8570 = vmatmul.msk.bf16.gmra.mxu0 %vm2103_vm8, %v9560_v52  ;;  %8978 = vmatmul.msk.bf16.gmra.mxu1 %vm2103_vm8, %v9478_v32  ;;  %v14843_v52 = vld [vmem:[#allocation237_spill] sm:$0xff] }
 0x660   : > { %7149 = vrot.lane.b32.xlu1 %v12861_v57, %s9842_s30  ;;  %6351 = vrot.lane.b32.xlu0 %v12882_v34, %s9840_s22  ;;  %14835 = vst [vmem:[#allocation454_spill] sm:$0xff] %v12923_v58 }
 0x661   : > { %7181 = vrot.lane.b32.xlu2 %v12882_v34, %s9842_s30 }
 0x662   : > { %v12891_v4 = vpop.permute.xlu1 %6049 }
 0x663   : > { %14827 = vst [vmem:[#allocation226_spill] sm:$0xff] %v12891_v4  ;;  %v12893_v47 = vpop.permute.xlu2 %6913  ;;  %v12895_v25 = vpop.permute.xlu0 %6631 }
 0x664   : > { %14828 = vst [vmem:[#allocation66_spill] sm:$0xff] %v12893_v47  ;;  %v3684_v47 = vpop.f32.mrf.mxu1 }
 0x665   : > { %14829 = vst [vmem:[#allocation231_spill] sm:$0xff] %v12895_v25  ;;  %v3685_v62 = vadd.f32 %v3684_v47, %v2623_v11  ;;  %v2625_v47 = vpop.f32.mrf.mxu0 }
 0x668   : > { %5608 = vrot.lane.b32.xlu1 %v12901_v3, %s9839_s19  ;;  %6089 = vrot.lane.b32.xlu0 %v12909_v41, %s9838_s18 }
 0x669   : > { %5640 = vrot.lane.b32.xlu2 %v12904_v44, %s9839_s19 }
 0x66a   : > { %v12915_v37 = vpop.permute.xlu1 %6911 }
 0x66b   : > { %14832 = vst [vmem:[#allocation451_spill] sm:$0xff] %v12915_v37  ;;  %v12917_v34 = vpop.permute.xlu2 %7145  ;;  %v12919_v56 = vpop.permute.xlu0 %6879 }
 0x66c   : > { %14833 = vst [vmem:[#allocation452_spill] sm:$0xff] %v12917_v34  ;;  %v4911_v37 = vpop.f32.mrf.mxu2  ;;  %v3686_v11 = vpop.f32.mrf.mxu1  ;;  %v14844_v34 = vld [vmem:[#allocation76_spill] sm:$0xff] }
 0x66d   : > { %14834 = vst [vmem:[#allocation453_spill] sm:$0xff] %v12919_v56  ;;  %v12938_v57 = vadd.f32 %v4911_v37, %v3685_v62  ;;  %v14842_v62 = vld [vmem:[#allocation71_spill] sm:$0xff] }
 0x66e   : > { %v3785_v32 = vadd.f32 %v14843_v52, %v14842_v62 }
 0x670   : > { %6639 = vrot.lane.b32.xlu1 %v12904_v44, %s9843_s8  ;;  %6607 = vrot.lane.b32.xlu0 %v12901_v3, %s9843_s8  ;;  %v12959_v59 = vadd.f32 %v12590_v49, %v3785_v32 }
 0x671   : > { %6057 = vrot.lane.b32.xlu2 %v12923_v58, %s9838_s18 }
 0x672   : > { %v12931_v1 = vpop.permute.xlu1 %7143 }
 0x673   : > { %14836 = vst [vmem:[#allocation455_spill] sm:$0xff] %v12931_v1  ;;  %v12933_v25 = vpop.permute.xlu2 %5634  ;;  %v12935_v28 = vpop.permute.xlu0 %6345  ;;  %v14845_v1 = vld [vmem:[#allocation242_spill] sm:$0xff] }
 0x674   : > { %14837 = vst [vmem:[#allocation456_spill] sm:$0xff] %v12933_v25  ;;  %v3787_v56 = vadd.f32 %v14845_v1, %v14844_v34  ;;  %v4913_v4 = vpop.f32.mrf.mxu2 }
 0x675   : > { %14838 = vst [vmem:[#allocation457_spill] sm:$0xff] %v12935_v28  ;;  %v3687_v28 = vadd.f32 %v3686_v11, %v2625_v47 }
 0x676   : > { %v5190_v27 = vadd.f32 %v12608_v40, %v3787_v56  ;;  %v5462_v40 = vrot.slane %v12938_v57, 1 }
 0x677   : > { %v5150_v15 = vadd.f32 %v4913_v4, %v3687_v28  ;;  %v5959_v28 = vrot.slane %v12959_v59, 2  ;;  %v5510_v4 = vrot.slane %v12959_v59, 1 }
 0x678   : > { %6887 = vrot.lane.b32.xlu1 %v12923_v58, %s9841_s23  ;;  %6321 = vrot.lane.b32.xlu0 %v12938_v57, %s9840_s22  ;;  %v5960_v11 = vrot.slane %v5190_v27, 2  ;;  %v5511_v49 = vrot.slane %v5190_v27, 1 }
 0x679   : > { %6919 = vrot.lane.b32.xlu2 %v12909_v41, %s9841_s23  ;;  %v5463_v62 = vrot.slane %v5150_v15, 1 }
 0x67a   : > { %v12948_v13 = vpop.permute.xlu1 %6633  ;;  %v12978_v56 = vsel %vm5778_vm9, %v5959_v28, %v5960_v11  ;;  %v12986_v32 = vsel %vm5329_vm10, %v5510_v4, %v5511_v49  ;;  %v2628_v28 = vpop.f32.mrf.mxu0 }
 0x67b   : > { %14839 = vst [vmem:[#allocation458_spill] sm:$0xff] %v12948_v13  ;;  %v12950_v25 = vpop.permute.xlu2 %6051  ;;  %v12952_v37 = vpop.permute.xlu0 %6601  ;;  %v12981_v52 = vsel %vm5329_vm10, %v5462_v40, %v5463_v62  ;;  %v5912_v62 = vrot.slane %v5150_v15, 2  ;;  %v5911_v40 = vrot.slane %v12938_v57, 2 }
 0x67c   : > { %14840 = vst [vmem:[#allocation459_spill] sm:$0xff] %v12950_v25  ;;  %v3689_v13 = vpop.f32.mrf.mxu1 }
 0x67d   : > { %14841 = vst [vmem:[#allocation460_spill] sm:$0xff] %v12952_v37  ;;  %v13002_v49 = vsel %vm5778_vm9, %v5911_v40, %v5912_v62  ;;  %v3690_v4 = vadd.f32 %v3689_v13, %v2628_v28  ;;  %v14863_v37 = vld [vmem:[#allocation252_spill] sm:$0xff] }
 0x67e   : > { %14849 = vst [vmem:[#allocation242_spill] sm:$0xff] %v12978_v56 }
 0x67f   : > { %14853 = vst [vmem:[#allocation464_spill] sm:$0xff] %v13002_v49 }
 0x680   : > { %6353 = vrot.lane.b32.xlu1 %v12959_v59, %s9840_s22  ;;  %7183 = vrot.lane.b32.xlu0 %v12959_v59, %s9842_s30 }
 0x681   : > { %7151 = vrot.lane.b32.xlu2 %v12938_v57, %s9842_s30 }
 0x682   : > { %v12968_v47 = vpop.permute.xlu1 %6881 }
 0x683   : > { %14846 = vst [vmem:[#allocation71_spill] sm:$0xff] %v12968_v47  ;;  %v12970_v34 = vpop.permute.xlu2 %5604  ;;  %v12972_v1 = vpop.permute.xlu0 %7177 }
 0x684   : > { %14847 = vst [vmem:[#allocation237_spill] sm:$0xff] %v12970_v34  ;;  %v2630_v47 = vpop.f32.mrf.mxu0 }
 0x685   : > { %14848 = vst [vmem:[#allocation76_spill] sm:$0xff] %v12972_v1 }
 0x688   : > { %6091 = vrot.lane.b32.xlu1 %v12978_v56, %s9838_s18  ;;  %5642 = vrot.lane.b32.xlu0 %v12986_v32, %s9839_s19 }
 0x689   : > { %5610 = vrot.lane.b32.xlu2 %v12981_v52, %s9839_s19 }
 0x68a   : > { %v12992_v27 = vpop.permute.xlu1 %5602 }
 0x68b   : > { %14850 = vst [vmem:[#allocation461_spill] sm:$0xff] %v12992_v27  ;;  %v12994_v1 = vpop.permute.xlu2 %6635  ;;  %v12996_v11 = vpop.permute.xlu0 %6083 }
 0x68c   : > { %14851 = vst [vmem:[#allocation462_spill] sm:$0xff] %v12994_v1  ;;  %v4916_v1 = vpop.f32.mrf.mxu2  ;;  %v3691_v27 = vpop.f32.mrf.mxu1 }
 0x68d   : > { %14852 = vst [vmem:[#allocation463_spill] sm:$0xff] %v12996_v11  ;;  %v13014_v25 = vadd.f32 %v4916_v1, %v3690_v4  ;;  %v3692_v62 = vadd.f32 %v3691_v27, %v2630_v47  ;;  %v14860_v1 = vld [vmem:[#allocation81_spill] sm:$0xff]  ;;  %v14861_v4 = vld [vmem:[#allocation248_spill] sm:$0xff] }
 0x690   : > { %6609 = vrot.lane.b32.xlu1 %v12981_v52, %s9843_s8  ;;  %6059 = vrot.lane.b32.xlu0 %v13002_v49, %s9838_s18 }
 0x691   : > { %6641 = vrot.lane.b32.xlu2 %v12986_v32, %s9843_s8 }
 0x692   : > { %v13008_v11 = vpop.permute.xlu1 %6347 }
 0x693   : > { %14854 = vst [vmem:[#allocation465_spill] sm:$0xff] %v13008_v11  ;;  %v13010_v15 = vpop.permute.xlu2 %6883  ;;  %v13012_v34 = vpop.permute.xlu0 %6315 }
 0x694   : > { %14855 = vst [vmem:[#allocation466_spill] sm:$0xff] %v13010_v15  ;;  %v4918_v40 = vpop.f32.mrf.mxu2  ;;  %v3790_v15 = vadd.f32 %v14861_v4, %v14860_v1 }
 0x695   : > { %14856 = vst [vmem:[#allocation467_spill] sm:$0xff] %v13012_v34  ;;  %v14862_v34 = vld [vmem:[#allocation85_spill] sm:$0xff]  ;;  %v5152_v55 = vadd.f32 %v4918_v40, %v3692_v62 }
 0x696   : > { %v3792_v46 = vadd.f32 %v14863_v37, %v14862_v34  ;;  %v13033_v24 = vadd.f32 %v12627_v31, %v3790_v15  ;;  %v5465_v37 = vrot.slane %v13014_v25, 1 }
 0x697   : > { %v5466_v47 = vrot.slane %v5152_v55, 1 }
 0x698   : > { %6323 = vrot.lane.b32.xlu1 %v13014_v25, %s9840_s22  ;;  %6921 = vrot.lane.b32.xlu0 %v12978_v56, %s9841_s23  ;;  %v5192_v61 = vadd.f32 %v12643_v50, %v3792_v46  ;;  %v5513_v46 = vrot.slane %v13033_v24, 1  ;;  %v5962_v62 = vrot.slane %v13033_v24, 2 }
 0x699   : > { %6889 = vrot.lane.b32.xlu2 %v13002_v49, %s9841_s23  ;;  %v13052_v40 = vsel %vm5329_vm10, %v5465_v37, %v5466_v47 }
 0x69a   : > { %v13022_v13 = vpop.permute.xlu1 %6085  ;;  %v5514_v34 = vrot.slane %v5192_v61, 1  ;;  %v5963_v50 = vrot.slane %v5192_v61, 2 }
 0x69b   : > { %14857 = vst [vmem:[#allocation468_spill] sm:$0xff] %v13022_v13  ;;  %v13024_v28 = vpop.permute.xlu2 %6349  ;;  %v13026_v11 = vpop.permute.xlu0 %5636 }
 0x69c   : > { %14858 = vst [vmem:[#allocation469_spill] sm:$0xff] %v13024_v28  ;;  %v13055_v1 = vsel %vm5329_vm10, %v5513_v46, %v5514_v34  ;;  %v13058_v4 = vsel %vm5778_vm9, %v5962_v62, %v5963_v50  ;;  %v5914_v34 = vrot.slane %v13014_v25, 2  ;;  %v2633_v50 = vpop.f32.mrf.mxu0  ;;  %v3694_v46 = vpop.f32.mrf.mxu1 }
 0x69d   : > { %14859 = vst [vmem:[#allocation470_spill] sm:$0xff] %v13026_v11  ;;  %v3695_v28 = vadd.f32 %v3694_v46, %v2633_v50 }
 0x69e   : > { %14867 = vst [vmem:[#allocation252_spill] sm:$0xff] %v13058_v4 }
 0x6a0   : > { %7185 = vrot.lane.b32.xlu1 %v13033_v24, %s9842_s30  ;;  %7153 = vrot.lane.b32.xlu0 %v13014_v25, %s9842_s30 }
 0x6a1   : > { %6355 = vrot.lane.b32.xlu2 %v13033_v24, %s9840_s22 }
 0x6a2   : > { %v13042_v27 = vpop.permute.xlu1 %6603 }
 0x6a3   : > { %14864 = vst [vmem:[#allocation81_spill] sm:$0xff] %v13042_v27  ;;  %v13045_v31 = vpop.permute.xlu2 %6087  ;;  %v13047_v15 = vpop.permute.xlu0 %6053  ;;  %v14881_v27 = vld [vmem:[#allocation262_spill] sm:$0xff] }
 0x6a4   : > { %14865 = vst [vmem:[#allocation248_spill] sm:$0xff] %v13045_v31  ;;  %v5915_v31 = vrot.slane %v5152_v55, 2  ;;  %v4921_v55 = vpop.f32.mrf.mxu2 }
 0x6a5   : > { %14866 = vst [vmem:[#allocation85_spill] sm:$0xff] %v13047_v15  ;;  %v14880_v15 = vld [vmem:[#allocation95_spill] sm:$0xff] }
 0x6a6   : > { %v13074_v62 = vsel %vm5778_vm9, %v5914_v34, %v5915_v31  ;;  %v2635_v31 = vpop.f32.mrf.mxu0  ;;  %v3696_v34 = vpop.f32.mrf.mxu1 }
 0x6a7   : > { %14871 = vst [vmem:[#allocation474_spill] sm:$0xff] %v13074_v62  ;;  %v3697_v46 = vadd.f32 %v3696_v34, %v2635_v31 }
 0x6a8   : > { %5644 = vrot.lane.b32.xlu1 %v13055_v1, %s9839_s19  ;;  %5612 = vrot.lane.b32.xlu0 %v13052_v40, %s9839_s19 }
 0x6a9   : > { %6093 = vrot.lane.b32.xlu2 %v13058_v4, %s9838_s18 }
 0x6aa   : > { %v13066_v61 = vpop.permute.xlu1 %6317 }
 0x6ab   : > { %14868 = vst [vmem:[#allocation471_spill] sm:$0xff] %v13066_v61  ;;  %v13068_v47 = vpop.permute.xlu2 %6605  ;;  %v13070_v37 = vpop.permute.xlu0 %6915 }
 0x6ac   : > { %14869 = vst [vmem:[#allocation472_spill] sm:$0xff] %v13068_v47  ;;  %v13088_v47 = vadd.f32 %v4921_v55, %v3695_v28  ;;  %v4923_v28 = vpop.f32.mrf.mxu2  ;;  %v14878_v55 = vld [vmem:[#allocation90_spill] sm:$0xff] }
 0x6ad   : > { %14870 = vst [vmem:[#allocation473_spill] sm:$0xff] %v13070_v37  ;;  %v5154_v56 = vadd.f32 %v4923_v28, %v3697_v46 }
 0x6b0   : > { %6061 = vrot.lane.b32.xlu1 %v13074_v62, %s9838_s18  ;;  %6643 = vrot.lane.b32.xlu0 %v13055_v1, %s9843_s8 }
 0x6b1   : > { %6611 = vrot.lane.b32.xlu2 %v13052_v40, %s9843_s8 }
 0x6b2   : > { %v13082_v13 = vpop.permute.xlu1 %7179 }
 0x6b3   : > { %14872 = vst [vmem:[#allocation475_spill] sm:$0xff] %v13082_v13  ;;  %v13084_v37 = vpop.permute.xlu2 %6319  ;;  %v13086_v11 = vpop.permute.xlu0 %7147 }
 0x6b4   : > { %14873 = vst [vmem:[#allocation476_spill] sm:$0xff] %v13084_v37 }
 0x6b5   : > { %14874 = vst [vmem:[#allocation477_spill] sm:$0xff] %v13086_v11  ;;  %v14879_v11 = vld [vmem:[#allocation258_spill] sm:$0xff] }
 0x6b6   : > { %v3795_v61 = vadd.f32 %v14879_v11, %v14878_v55  ;;  %v5469_v11 = vrot.slane %v5154_v56, 1 }
 0x6b8   : > { %6923 = vrot.lane.b32.xlu1 %v13058_v4, %s9841_s23  ;;  %6891 = vrot.lane.b32.xlu0 %v13074_v62, %s9841_s23  ;;  %v3797_v4 = vadd.f32 %v14881_v27, %v14880_v15  ;;  %v13107_v17 = vadd.f32 %v12660_v21, %v3795_v61  ;;  %v5468_v21 = vrot.slane %v13088_v47, 1 }
 0x6b9   : > { %6325 = vrot.lane.b32.xlu2 %v13088_v47, %s9840_s22 }
 0x6ba   : > { %v13096_v50 = vpop.permute.xlu1 %5638  ;;  %v5194_v41 = vadd.f32 %v12695_v19, %v3797_v4  ;;  %v5516_v4 = vrot.slane %v13107_v17, 1  ;;  %v5965_v61 = vrot.slane %v13107_v17, 2  ;;  %v13126_v46 = vsel %vm5329_vm10, %v5468_v21, %v5469_v11 }
 0x6bb   : > { %14875 = vst [vmem:[#allocation478_spill] sm:$0xff] %v13096_v50  ;;  %v13098_v13 = vpop.permute.xlu2 %7181  ;;  %v13100_v37 = vpop.permute.xlu0 %5606  ;;  %v5918_v21 = vrot.slane %v5154_v56, 2 }
 0x6bc   : > { %14876 = vst [vmem:[#allocation479_spill] sm:$0xff] %v13098_v13  ;;  %v5517_v15 = vrot.slane %v5194_v41, 1  ;;  %v5966_v19 = vrot.slane %v5194_v41, 2  ;;  %v3699_v13 = vpop.f32.mrf.mxu1 }
 0x6bd   : > { %14877 = vst [vmem:[#allocation480_spill] sm:$0xff] %v13100_v37 }
 0x6be   : > { %v13129_v28 = vsel %vm5329_vm10, %v5516_v4, %v5517_v15  ;;  %v13134_v55 = vsel %vm5778_vm9, %v5965_v61, %v5966_v19  ;;  %v5917_v15 = vrot.slane %v13088_v47, 2  ;;  %v2638_v4 = vpop.f32.mrf.mxu0 }
 0x6bf   : > { %14885 = vst [vmem:[#allocation262_spill] sm:$0xff] %v13129_v28  ;;  %v3700_v61 = vadd.f32 %v3699_v13, %v2638_v4 }
 0x6c0   : > { %7155 = vrot.lane.b32.xlu1 %v13088_v47, %s9842_s30  ;;  %6357 = vrot.lane.b32.xlu0 %v13107_v17, %s9840_s22  ;;  %14886 = vst [vmem:[#allocation481_spill] sm:$0xff] %v13134_v55  ;;  %v13148_v19 = vsel %vm5778_vm9, %v5917_v15, %v5918_v21 }
 0x6c1   : > { %7187 = vrot.lane.b32.xlu2 %v13107_v17, %s9842_s30  ;;  %14890 = vst [vmem:[#allocation485_spill] sm:$0xff] %v13148_v19 }
 0x6c2   : > { %v13116_v31 = vpop.permute.xlu1 %6055 }
 0x6c3   : > { %14882 = vst [vmem:[#allocation90_spill] sm:$0xff] %v13116_v31  ;;  %v13118_v34 = vpop.permute.xlu2 %5640  ;;  %v13120_v27 = vpop.permute.xlu0 %6637  ;;  %v14900_v31 = vld [vmem:[#allocation273_spill] sm:$0xff] }
 0x6c4   : > { %14883 = vst [vmem:[#allocation258_spill] sm:$0xff] %v13118_v34  ;;  %v3701_v13 = vpop.f32.mrf.mxu1 }
 0x6c5   : > { %14884 = vst [vmem:[#allocation95_spill] sm:$0xff] %v13120_v27 }
 0x6c6   : > { %v2640_v21 = vpop.f32.mrf.mxu0 }
 0x6c8   : > { %5614 = vrot.lane.b32.xlu1 %v13126_v46, %s9839_s19  ;;  %6095 = vrot.lane.b32.xlu0 %v13134_v55, %s9838_s18 }
 0x6c9   : > { %5646 = vrot.lane.b32.xlu2 %v13129_v28, %s9839_s19 }
 0x6ca   : > { %v13140_v41 = vpop.permute.xlu1 %6917 }
 0x6cb   : > { %14887 = vst [vmem:[#allocation482_spill] sm:$0xff] %v13140_v41  ;;  %v13142_v34 = vpop.permute.xlu2 %6057  ;;  %v13144_v11 = vpop.permute.xlu0 %6885 }
 0x6cc   : > { %14888 = vst [vmem:[#allocation483_spill] sm:$0xff] %v13142_v34  ;;  %v4926_v41 = vpop.f32.mrf.mxu2 }
 0x6cd   : > { %14889 = vst [vmem:[#allocation484_spill] sm:$0xff] %v13144_v11  ;;  %v13162_v34 = vadd.f32 %v4926_v41, %v3700_v61  ;;  %v14898_v41 = vld [vmem:[#allocation268_spill] sm:$0xff] }
 0x6ce   : > { %v14899_v11 = vld [vmem:[#allocation104_spill] sm:$0xff] }
 0x6cf   : > { %v3802_v37 = vadd.f32 %v14900_v31, %v14899_v11 }
 0x6d0   : > { %6645 = vrot.lane.b32.xlu1 %v13129_v28, %s9843_s8  ;;  %6613 = vrot.lane.b32.xlu0 %v13126_v46, %s9843_s8 }
 0x6d1   : > { %6063 = vrot.lane.b32.xlu2 %v13148_v19, %s9838_s18 }
 0x6d2   : > { %v13156_v27 = vpop.permute.xlu1 %7149 }
 0x6d3   : > { %14891 = vst [vmem:[#allocation486_spill] sm:$0xff] %v13156_v27  ;;  %v13158_v56 = vpop.permute.xlu2 %6919  ;;  %v13160_v50 = vpop.permute.xlu0 %6351  ;;  %v3702_v27 = vadd.f32 %v3701_v13, %v2640_v21 }
 0x6d4   : > { %14892 = vst [vmem:[#allocation487_spill] sm:$0xff] %v13158_v56 }
 0x6d5   : > { %14893 = vst [vmem:[#allocation488_spill] sm:$0xff] %v13160_v50  ;;  %v14897_v50 = vld [vmem:[#allocation99_spill] sm:$0xff] }
 0x6d6   : > { %v3800_v61 = vadd.f32 %v14898_v41, %v14897_v50 }
 0x6d8   : > { %6893 = vrot.lane.b32.xlu1 %v13148_v19, %s9841_s23  ;;  %6327 = vrot.lane.b32.xlu0 %v13162_v34, %s9840_s22  ;;  %v4928_v19 = vpop.f32.mrf.mxu2  ;;  %v13181_v58 = vadd.f32 %v12712_v23, %v3800_v61 }
 0x6d9   : > { %6925 = vrot.lane.b32.xlu2 %v13134_v55, %s9841_s23  ;;  %v5196_v55 = vadd.f32 %v12737_v26, %v3802_v37  ;;  %v5156_v62 = vadd.f32 %v4928_v19, %v3702_v27  ;;  %v5471_v26 = vrot.slane %v13162_v34, 1 }
 0x6da   : > { %v13170_v15 = vpop.permute.xlu1 %5608  ;;  %v5968_v37 = vrot.slane %v13181_v58, 2  ;;  %v5519_v27 = vrot.slane %v13181_v58, 1 }
 0x6db   : > { %14894 = vst [vmem:[#allocation489_spill] sm:$0xff] %v13170_v15  ;;  %v13172_v4 = vpop.permute.xlu2 %7151  ;;  %v13174_v56 = vpop.permute.xlu0 %6089  ;;  %v5969_v21 = vrot.slane %v5196_v55, 2  ;;  %v5520_v23 = vrot.slane %v5196_v55, 1  ;;  %v5472_v13 = vrot.slane %v5156_v62, 1 }
 0x6dc   : > { %14895 = vst [vmem:[#allocation490_spill] sm:$0xff] %v13172_v4 }
 0x6dd   : > { %14896 = vst [vmem:[#allocation491_spill] sm:$0xff] %v13174_v56  ;;  %v13200_v19 = vsel %vm5778_vm9, %v5968_v37, %v5969_v21  ;;  %v13203_v41 = vsel %vm5329_vm10, %v5471_v26, %v5472_v13  ;;  %v13208_v61 = vsel %vm5329_vm10, %v5519_v27, %v5520_v23  ;;  %v5921_v13 = vrot.slane %v5156_v62, 2  ;;  %v2643_v37 = vpop.f32.mrf.mxu0 }
 0x6de   : > { %14903 = vst [vmem:[#allocation104_spill] sm:$0xff] %v13200_v19  ;;  %v5920_v26 = vrot.slane %v13162_v34, 2 }
 0x6df   : > { %14904 = vst [vmem:[#allocation273_spill] sm:$0xff] %v13208_v61 }
 0x6e0   : > { %6359 = vrot.lane.b32.xlu1 %v13181_v58, %s9840_s22  ;;  %7189 = vrot.lane.b32.xlu0 %v13181_v58, %s9842_s30  ;;  %v13224_v23 = vsel %vm5778_vm9, %v5920_v26, %v5921_v13  ;;  %v4931_v27 = vpop.f32.mrf.mxu2 }
 0x6e1   : > { %7157 = vrot.lane.b32.xlu2 %v13162_v34, %s9842_s30  ;;  %14908 = vst [vmem:[#allocation495_spill] sm:$0xff] %v13224_v23 }
 0x6e2   : > { %v13190_v50 = vpop.permute.xlu1 %6639 }
 0x6e3   : > { %14901 = vst [vmem:[#allocation99_spill] sm:$0xff] %v13190_v50  ;;  %v13192_v31 = vpop.permute.xlu2 %5610  ;;  %v13194_v11 = vpop.permute.xlu0 %6607 }
 0x6e4   : > { %14902 = vst [vmem:[#allocation268_spill] sm:$0xff] %v13194_v11  ;;  %v3704_v50 = vpop.f32.mrf.mxu1  ;;  %v5758_v38 = vadd.f32 %v13192_v31, %v12938_v57 }
 0x6e5   : > { %v3705_v4 = vadd.f32 %v3704_v50, %v2643_v37  ;;  %v2645_v37 = vpop.f32.mrf.mxu0 }
 0x6e7   : > { %v5157_v50 = vadd.f32 %v4931_v27, %v3705_v4 }
 0x6e8   : > { %6097 = vrot.lane.b32.xlu1 %v13200_v19, %s9838_s18  ;;  %5648 = vrot.lane.b32.xlu0 %v13208_v61, %s9839_s19  ;;  %v4933_v15 = vpop.f32.mrf.mxu2 }
 0x6e9   : > { %5616 = vrot.lane.b32.xlu2 %v13203_v41, %s9839_s19  ;;  %s8039_s19 = sshll.u32 %s10017_s21, 4  ;;  %s8040_s19 = int_to_ptr.vmem [resolvable:$true] %s8039_s19 }
 0x6ea   : > { %v13214_v55 = vpop.permute.xlu1 %6887 }
 0x6eb   : > { %14905 = vst [vmem:[#allocation492_spill] sm:$0xff] %v13214_v55  ;;  %v13216_v56 = vpop.permute.xlu2 %6641  ;;  %v13218_v21 = vpop.permute.xlu0 %6321 }
 0x6ec   : > { %14906 = vst [vmem:[#allocation493_spill] sm:$0xff] %v13216_v56  ;;  %v3706_v55 = vpop.f32.mrf.mxu1 }
 0x6ed   : > { %14907 = vst [vmem:[#allocation494_spill] sm:$0xff] %v13218_v21  ;;  %v2648_v6 = vpop.f32.mrf.mxu0 }
 0x6f0   : > { %6615 = vrot.lane.b32.xlu1 %v13203_v41, %s9843_s8  ;;  %6065 = vrot.lane.b32.xlu0 %v13224_v23, %s9838_s18  ;;  %v4936_v18 = vpop.f32.mrf.mxu2  ;;  %s8037_s18 = scalar_lea.hbm %s14227_s7, %s9665_s12 }
 0x6f1   : > { %6647 = vrot.lane.b32.xlu2 %v13208_v61, %s9843_s8 }
 0x6f2   : > { %v13230_v56 = vpop.permute.xlu1 %6353 }
 0x6f3   : > { %14909 = vst [vmem:[#allocation496_spill] sm:$0xff] %v13230_v56  ;;  %v13232_v62 = vpop.permute.xlu2 %6889  ;;  %v13234_v21 = vpop.permute.xlu0 %7183  ;;  %v3707_v56 = vadd.f32 %v3706_v55, %v2645_v37 }
 0x6f4   : > { %14910 = vst [vmem:[#allocation497_spill] sm:$0xff] %v13232_v62  ;;  %v3709_v8 = vpop.f32.mrf.mxu1 }
 0x6f5   : > { %14911 = vst [vmem:[#allocation498_spill] sm:$0xff] %v13234_v21  ;;  %v5158_v62 = vadd.f32 %v4933_v15, %v3707_v56  ;;  %v14913_v56 = vld [vmem:[#allocation235_spill] sm:$0xff] }
 0x6f7   : > { %v6795_v37 = vrot.slane %v5158_v62, 2 }
 0x6f8   : > { %6329 = vrot.lane.b32.xlu1 %v5157_v50, %s9840_s22  ;;  %6927 = vrot.lane.b32.xlu0 %v13200_v19, %s9841_s23  ;;  %v6515_v19 = vrot.slane %v5158_v62, 1 }
 0x6f9   : > { %6895 = vrot.lane.b32.xlu2 %v13224_v23, %s9841_s23  ;;  %v6514_v23 = vrot.slane %v5157_v50, 1 }
 0x6fa   : > { %v6092_v13 = vpop.permute.xlu1 %6091 }
 0x6fb   : > { %v13241_v26 = vpop.permute.xlu2 %6355  ;;  %v5643_v11 = vpop.permute.xlu0 %5642  ;;  %v13253_v49 = vsel %vm5329_vm10, %v6514_v23, %v6515_v19  ;;  %v3710_v23 = vadd.f32 %v3709_v8, %v2648_v6  ;;  %v14922_v6 = vld [vmem:[#allocation224_spill] sm:$0xff] }
 0x6fd   : > { %v13276_v2 = vadd.f32 %v4936_v18, %v3710_v23  ;;  %v3711_v18 = vpop.f32.mrf.mxu1 }
 0x700   : > { %7191 = vrot.lane.b32.xlu1 %v12768_v60, %s9842_s30  ;;  %7159 = vrot.lane.b32.xlu0 %v5157_v50, %s9842_s30 }
 0x701   : > { %6361 = vrot.lane.b32.xlu2 %v12768_v60, %s9840_s22  ;;  %s8041_s22 = sshll.u32 %s8037_s18, 4  ;;  %s8042_s22 = int_to_ptr.hbm [resolvable:$true] %s8041_s22 }
 0x702   : > { %v13248_v4 = vpop.permute.xlu1 %6609 }
 0x703   : > { %14912 = vst [vmem:[#allocation499_spill] sm:$0xff] %v13248_v4  ;;  %v13250_v27 = vpop.permute.xlu2 %6093  ;;  %v6060_v21 = vpop.permute.xlu0 %6059  ;;  %v6794_v4 = vrot.slane %v5157_v50, 2 }
 0x705   : > { %v13266_v19 = vsel %vm5778_vm9, %v6794_v4, %v6795_v37 }
 0x706   : > { %14915 = vst [vmem:[#allocation500_spill] sm:$0xff] %v13266_v19 }
 0x708   : > { %7405 = vrot.lane.b32.xlu1 %v14913_v56, %s9844_s10  ;;  %6649 = vrot.lane.b32.xlu0 %v12785_v53, %s9843_s8  ;;  %v14916_v56 = vld [vmem:[#allocation246_spill] sm:$0xff] }
 0x709   : > { %6617 = vrot.lane.b32.xlu2 %v13253_v49, %s9843_s8 }
 0x70a   : > { %v6324_v60 = vpop.permute.xlu1 %6323 }
 0x70b   : > { %v6612_v15 = vpop.permute.xlu2 %6611  ;;  %v13261_v55 = vpop.permute.xlu0 %6921 }
 0x70c   : > { %14914 = vst [vmem:[#allocation235_spill] sm:$0xff] %v13261_v55  ;;  %v5036_v55 = vpop.f32.mrf.mxu3 }
 0x710   : > { %6929 = vrot.lane.b32.xlu1 %v12788_v20, %s9841_s23  ;;  %6897 = vrot.lane.b32.xlu0 %v13266_v19, %s9841_s23  ;;  %v14919_v20 = vld [vmem:[#allocation117_spill] sm:$0xff]  ;;  %v5774_v19 = vadd.f32 %v5643_v11, %v12959_v59  ;;  %s8024_s23 = scalar_lea.sflag [#allocation6], %s242_s15 }
 0x711   : > { %7407 = vrot.lane.b32.xlu2 %v14916_v56, %s9844_s10  ;;  %v3810_v4 = vadd.f32 %v14920_v48, %v14919_v20  ;;  %v14923_v48 = vld [vmem:[#allocation266_spill] sm:$0xff] }
 0x712   : > { %v13272_v36 = vpop.permute.xlu1 %7185  ;;  %v6223_v11 = vadd.f32 %v6092_v13, %v5774_v19 }
 0x713   : > { %14917 = vst [vmem:[#allocation246_spill] sm:$0xff] %v13272_v36  ;;  %v6326_v62 = vpop.permute.xlu2 %6325  ;;  %v13274_v50 = vpop.permute.xlu0 %7153  ;;  %v13280_v37 = vadd.f32 %v5036_v55, %v3810_v4  ;;  %v14924_v55 = vld [vmem:[#allocation276_spill] sm:$0xff]  ;;  %v14925_v4 = vld [vmem:[#allocation255_spill] sm:$0xff] }
 0x714   : > { %14918 = vst [vmem:[#allocation501_spill] sm:$0xff] %v13274_v50  ;;  %v2650_v50 = vpop.f32.mrf.mxu0  ;;  %v6487_v57 = vadd.f32 %v13241_v26, %v6223_v11 }
 0x715   : > { %14921 = vst [vmem:[#allocation117_spill] sm:$0xff] %v13280_v37  ;;  %v3712_v23 = vadd.f32 %v3711_v18, %v2650_v50  ;;  %v14926_v50 = vld [vmem:[#allocation293_spill] sm:$0xff] }
 0x716   : > { %v7341_v59 = vrot.slane %v14926_v50, 1 }
 0x718   : > { %7161 = vrot.lane.b32.xlu1 %v13276_v2, %s9842_s30  ;;  %7403 = vrot.lane.b32.xlu0 %v14922_v6, %s9844_s10  ;;  %v4938_v6 = vpop.f32.mrf.mxu2 }
 0x719   : > { %7193 = vrot.lane.b32.xlu2 %v13280_v37, %s9842_s30  ;;  %v13298_v37 = vadd.f32 %v4938_v6, %v3712_v23  ;;  %s9761_s30 = sshra.s32 %s8042_s22, 4  ;;  %s9762_s30 = int_to_ptr.hbm [resolvable:$true] %s9761_s30 }
 0x71a   : > { %v5645_v8 = vpop.permute.xlu1 %5644  ;;  %s9763_s8 = scalar_lea.hbm %s9762_s30, 32  ;;  %p9768_p7 = scmp.lt.s32.totalorder %s9762_s30, %s14227_s7 }
 0x71b   : > { %v7188_v56 = vpop.permute.xlu2 %7187  ;;  %v5613_v36 = vpop.permute.xlu0 %5612  ;;  %v7627_v44 = vrot.slane %v13298_v37, 2  ;;  %p9764_p3 = scmp.ne.s32.totalorder %s9762_s30, %s9763_s8 }
 0x71c   : > { %v5759_v20 = vadd.f32 %v5613_v36, %v13014_v25  ;;  %v6207_v36 = vadd.f32 %v6060_v21, %v5758_v38  ;;  %v14927_v25 = vld [vmem:[#allocation289_spill] sm:$0xff] }
 0x71d   : > { %v7340_v53 = vrot.slane %v14927_v25, 1  ;;  %p9765_p5 = pnand %p9764_p3, %p9926_p4 }
 0x71e   : > { %v6471_v61 = vadd.f32 %v6324_v60, %v6207_v36 }
 0x71f   : > { %v7342_v31 = vsel %vm5329_vm10, %v7340_v53, %v7341_v59  ;;  %p9766_p6 = pneg %p9765_p5 }
 0x720   : > { %7411 = vrot.lane.b32.xlu1 %v14923_v48, %s9844_s10  ;;  %7409 = vrot.lane.b32.xlu0 %v14925_v4, %s9844_s10  ;;  %v7626_v4 = vrot.slane %v13276_v2, 2  ;;  %v6759_v21 = vadd.f32 %v6612_v15, %v6471_v61  ;;  %v5775_v61 = vadd.f32 %v5645_v8, %v13033_v24 }
 0x721   : > { %7413 = vrot.lane.b32.xlu2 %v14924_v55, %s9844_s10 }
 0x722   : > { %v6062_v0 = vpop.permute.xlu1 %6061  ;;  %v13312_v13 = vsel %vm5778_vm9, %v7626_v4, %v7627_v44  ;;  %v6224_v59 = vadd.f32 %v13250_v27, %v5775_v61  ;;  %v5038_v61 = vpop.f32.mrf.mxu3 }
 0x723   : > { %v5647_v18 = vpop.permute.xlu2 %5646  ;;  %v6208_v48 = vadd.f32 %v6062_v0, %v5759_v20  ;;  %v6644_v28 = vpop.permute.xlu0 %6643  ;;  %v14928_v0 = vld [vmem:[#allocation286_spill] sm:$0xff] }
 0x724   : > { %v6775_v23 = vadd.f32 %v6644_v28, %v6487_v57 }
 0x725   : > { %v6472_v55 = vadd.f32 %v6326_v62, %v6208_v48 }
 0x728   : > { %7417 = vrot.lane.b32.xlu1 %v7342_v31, %s9844_s10  ;;  %7415 = vrot.lane.b32.xlu0 %v14928_v0, %s9844_s10 }
 0x729   : > { %7419 = vrot.lane.b32.xlu2 %v12107_v35, %s9844_s10 }
 0x72a   : > { %v6924_v38 = vpop.permute.xlu1 %6923 }
 0x72b   : > { %v6064_v60 = vpop.permute.xlu2 %6063  ;;  %v7055_v19 = vadd.f32 %v6924_v38, %v6775_v23  ;;  %v6892_v62 = vpop.permute.xlu0 %6891 }
 0x72c   : > { %v7039_v26 = vadd.f32 %v6892_v62, %v6759_v21 }
 0x72d   : > { %v13314_v20 = vadd.f32 %v7188_v56, %v7055_v19 }
 0x730   : > { %7423 = vrot.lane.b32.xlu1 %v12274_v43, %s9844_s10  ;;  %7421 = vrot.lane.b32.xlu0 %v12195_v51, %s9844_s10  ;;  %v5776_v43 = vadd.f32 %v5647_v18, %v13107_v17  ;;  %v7347_v18 = vrot.slane %v13298_v37, 1 }
 0x731   : > { %7425 = vrot.lane.b32.xlu2 %v12374_v16, %s9844_s10 }
 0x732   : > { %v7156_v35 = vpop.permute.xlu1 %7155 }
 0x733   : > { %v6926_v53 = vpop.permute.xlu2 %6925  ;;  %v13322_v28 = vadd.f32 %v7156_v35, %v7039_v26  ;;  %v6358_v44 = vpop.permute.xlu0 %6357 }
 0x738   : > { %7429 = vrot.lane.b32.xlu1 %v12584_v45, %s9844_s10  ;;  %7427 = vrot.lane.b32.xlu0 %v12475_v30, %s9844_s10  ;;  %v6488_v45 = vadd.f32 %v6358_v44, %v6224_v59 }
 0x739   : > { %7431 = vrot.lane.b32.xlu2 %v12654_v14, %s9844_s10 }
 0x73a   : > { %v5615_v16 = vpop.permute.xlu1 %5614 }
 0x73b   : > { %v7158_v51 = vpop.permute.xlu2 %7157  ;;  %v5760_v15 = vadd.f32 %v5615_v16, %v13088_v47  ;;  %v6096_v56 = vpop.permute.xlu0 %6095 }
 0x73c   : > { %v6225_v6 = vadd.f32 %v6096_v56, %v5776_v43 }
 0x73d   : > { %v6209_v50 = vadd.f32 %v6064_v60, %v5760_v15  ;;  %v7349_v60 = vrot.slane %v12676_v9, 1  ;;  %v14931_v15 = vld [vmem:[#allocation292_spill] sm:$0xff] }
 0x740   : > { %7435 = vrot.lane.b32.xlu1 %v12824_v5, %s9844_s10  ;;  %7433 = vrot.lane.b32.xlu0 %v12567_v12, %s9844_s10  ;;  %v7346_v12 = vrot.slane %v13276_v2, 1 }
 0x741   : > { %7437 = vrot.lane.b32.xlu2 %v12901_v3, %s9844_s10 }
 0x742   : > { %v6646_v30 = vpop.permute.xlu1 %6645  ;;  %v7348_v25 = vsel %vm5329_vm10, %v7346_v12, %v7347_v18 }
 0x743   : > { %v5617_v14 = vpop.permute.xlu2 %5616  ;;  %v6776_v24 = vadd.f32 %v6646_v30, %v6488_v45  ;;  %v6614_v17 = vpop.permute.xlu0 %6613 }
 0x744   : > { %v6760_v47 = vadd.f32 %v6614_v17, %v6472_v55  ;;  %v14935_v17 = vld [vmem:[#allocation117_spill] sm:$0xff] }
 0x745   : > { %v7056_v8 = vadd.f32 %v6926_v53, %v6776_v24  ;;  %v14929_v53 = vld [vmem:[#allocation449_spill] sm:$0xff] }
 0x748   : > { %7441 = vrot.lane.b32.xlu1 %v13052_v40, %s9844_s10  ;;  %7439 = vrot.lane.b32.xlu0 %v12981_v52, %s9844_s10 }
 0x749   : > { %7443 = vrot.lane.b32.xlu2 %v13126_v46, %s9844_s10 }
 0x74a   : > { %v6894_v5 = vpop.permute.xlu1 %6893 }
 0x74b   : > { %v6648_v3 = vpop.permute.xlu2 %6647  ;;  %v7040_v27 = vadd.f32 %v6894_v5, %v6760_v47  ;;  %v6328_v11 = vpop.permute.xlu0 %6327  ;;  %v7352_v47 = vrot.slane %v14935_v17, 1 }
 0x74c   : > { %v6473_v48 = vadd.f32 %v6328_v11, %v6209_v50  ;;  %v14934_v50 = vld [vmem:[#allocation262_spill] sm:$0xff] }
 0x74d   : > { %v13348_v36 = vadd.f32 %v7158_v51, %v7040_v27  ;;  %v14930_v51 = vld [vmem:[#allocation121_spill] sm:$0xff] }
 0x74e   : > { %v3812_v56 = vadd.f32 %v14931_v15, %v14930_v51 }
 0x750   : > { %7447 = vrot.lane.b32.xlu1 %v13253_v49, %s9844_s10  ;;  %7445 = vrot.lane.b32.xlu0 %v13203_v41, %s9844_s10 }
 0x751   : > { %7449 = vrot.lane.b32.xlu2 %v7348_v25, %s9844_s10 }
 0x752   : > { %v6360_v52 = vpop.permute.xlu1 %6359 }
 0x753   : > { %v6896_v40 = vpop.permute.xlu2 %6895  ;;  %v6489_v46 = vadd.f32 %v6360_v52, %v6225_v6  ;;  %v7190_v55 = vpop.permute.xlu0 %7189  ;;  %v13394_v6 = vadd.f32 %v5038_v61, %v3812_v56  ;;  %v14938_v52 = vld [vmem:[#allocation19_spill] sm:$0xff]  ;;  %v14955_v56 = vld [vmem:[#allocation164_spill] sm:$0xff] }
 0x754   : > { %v13356_v2 = vadd.f32 %v7190_v55, %v7056_v8  ;;  %v14936_v8 = vld [vmem:[#allocation13_spill] sm:$0xff] }
 0x755   : > { %v6777_v37 = vadd.f32 %v6648_v3, %v6489_v46  ;;  %v14937_v3 = vld [vmem:[#allocation16_spill] sm:$0xff]  ;;  %v14940_v46 = vld [vmem:[#allocation17_spill] sm:$0xff] }
 0x758   : > { %7453 = vrot.lane.b32.xlu1 %v12200_v10, %s9844_s10  ;;  %7451 = vrot.lane.b32.xlu0 %v12110_v39, %s9844_s10  ;;  %v5761_v10 = vadd.f32 %v5617_v14, %v13162_v34  ;;  %v7350_v39 = vrot.slane %v12363_v33, 1  ;;  %v7353_v14 = vrot.slane %v13394_v6, 1 }
 0x759   : > { %7455 = vrot.lane.b32.xlu2 %v12278_v42, %s9844_s10 }
 0x75a   : > { %v6098_v49 = vpop.permute.xlu1 %6097  ;;  %v7354_v5 = vsel %vm5329_vm10, %v7352_v47, %v7353_v14  ;;  %v14959_v14 = vld [vmem:[#allocation187_spill] sm:$0xff] }
 0x75b   : > { %v6362_v4 = vpop.permute.xlu2 %6361  ;;  %v5649_v57 = vpop.permute.xlu0 %5648  ;;  %v14961_v47 = vld [vmem:[#allocation179_spill] sm:$0xff] }
 0x75c   : > { %v5777_v41 = vadd.f32 %v5649_v57, %v13181_v58  ;;  %v14941_v57 = vld [vmem:[#allocation38_spill] sm:$0xff] }
 0x75e   : > { %v6226_v31 = vadd.f32 %v6098_v49, %v5777_v41  ;;  %v14942_v41 = vld [vmem:[#allocation34_spill] sm:$0xff] }
 0x760   : > { %7459 = vrot.lane.b32.xlu1 %v12480_v29, %s9844_s10  ;;  %v6490_v23 = vadd.f32 %v6362_v4, %v6226_v31  ;;  %7457 = vrot.lane.b32.xlu0 %v12377_v54, %s9844_s10  ;;  %v7351_v29 = vsel %vm5329_vm10, %v7349_v60, %v7350_v39  ;;  %v14943_v31 = vld [vmem:[#allocation27_spill] sm:$0xff]  ;;  %v14944_v39 = vld [vmem:[#allocation70_spill] sm:$0xff] }
 0x761   : > { %7461 = vrot.lane.b32.xlu2 %v12576_v63, %s9844_s10 }
 0x762   : > { %v6616_v42 = vpop.permute.xlu1 %6615 }
 0x763   : > { %v6618_v0 = vpop.permute.xlu2 %6617  ;;  %v6761_v38 = vadd.f32 %v6616_v42, %v6473_v48  ;;  %v6066_v21 = vpop.permute.xlu0 %6065 }
 0x764   : > { %v6210_v58 = vadd.f32 %v6066_v21, %v5761_v10 }
 0x765   : > { %v7041_v19 = vadd.f32 %v6896_v40, %v6761_v38  ;;  %v14939_v40 = vld [vmem:[#allocation23_spill] sm:$0xff]  ;;  %v14946_v38 = vld [vmem:[#allocation60_spill] sm:$0xff] }
 0x768   : > { %7465 = vrot.lane.b32.xlu1 %v7351_v29, %s9844_s10  ;;  %7463 = vrot.lane.b32.xlu0 %v12328_v22, %s9844_s10  ;;  %v14948_v29 = vld [vmem:[#allocation112_spill] sm:$0xff] }
 0x769   : > { %7467 = vrot.lane.b32.xlu2 %v12827_v7, %s9844_s10 }
 0x76a   : > { %v6330_v54 = vpop.permute.xlu1 %6329 }
 0x76b   : > { %v13380_v63 = vpop.permute.xlu2 %7407  ;;  %v6474_v34 = vadd.f32 %v6330_v54, %v6210_v58  ;;  %v6928_v62 = vpop.permute.xlu0 %6927  ;;  %v14949_v54 = vld [vmem:[#allocation93_spill] sm:$0xff] }
 0x76c   : > { %v7057_v26 = vadd.f32 %v6928_v62, %v6777_v37 }
 0x76d   : > { %v6762_v35 = vadd.f32 %v6618_v0, %v6474_v34  ;;  %v14945_v0 = vld [vmem:[#allocation80_spill] sm:$0xff] }
 0x770   : > { %7471 = vrot.lane.b32.xlu1 %v12986_v32, %s9844_s10  ;;  %7469 = vrot.lane.b32.xlu0 %v14929_v53, %s9844_s10  ;;  %v14932_v32 = vld [vmem:[#allocation273_spill] sm:$0xff]  ;;  %v14951_v53 = vld [vmem:[#allocation126_spill] sm:$0xff] }
 0x771   : > { %7473 = vrot.lane.b32.xlu2 %v13055_v1, %s9844_s10  ;;  %v14933_v1 = vld [vmem:[#allocation432_spill] sm:$0xff] }
 0x772   : > { %v7192_v7 = vpop.permute.xlu1 %7191 }
 0x773   : > { %v7194_v44 = vpop.permute.xlu2 %7193  ;;  %v13388_v43 = vadd.f32 %v7192_v7, %v7057_v26  ;;  %v7160_v22 = vpop.permute.xlu0 %7159  ;;  %v14952_v7 = vld [vmem:[#allocation148_spill] sm:$0xff] }
 0x774   : > { %v13390_v16 = vadd.f32 %v7160_v22, %v7041_v19  ;;  %v14947_v19 = vld [vmem:[#allocation103_spill] sm:$0xff] }
 0x778   : > { %7477 = vrot.lane.b32.xlu1 %v14932_v32, %s9844_s10  ;;  %7475 = vrot.lane.b32.xlu0 %v14934_v50, %s9844_s10  ;;  %v14957_v32 = vld [vmem:[#allocation156_spill] sm:$0xff] }
 0x779   : > { %7479 = vrot.lane.b32.xlu2 %v14933_v1, %s9844_s10 }
 0x77a   : > { %v13402_v59 = vpop.permute.xlu1 %7405 }
 0x77b   : > { %v13404_v45 = vpop.permute.xlu2 %7413  ;;  %v6650_v30 = vpop.permute.xlu0 %6649 }
 0x77c   : > { %v6778_v24 = vadd.f32 %v6650_v30, %v6490_v23 }
 0x780   : > { %7635 = vrot.lane.b32.xlu1 %v14936_v8, %s9845_s20  ;;  %7481 = vrot.lane.b32.xlu0 %v7354_v5, %s9844_s10 }
 0x781   : > { %7637 = vrot.lane.b32.xlu2 %v14937_v3, %s9845_s20 }
 0x782   : > { %v6930_v27 = vpop.permute.xlu1 %6929 }
 0x783   : > { %v13414_v11 = vpop.permute.xlu2 %7419  ;;  %v7058_v12 = vadd.f32 %v6930_v27, %v6778_v24  ;;  %v6898_v18 = vpop.permute.xlu0 %6897  ;;  %v14960_v24 = vld [vmem:[#allocation198_spill] sm:$0xff]  ;;  %v14965_v27 = vld [vmem:[#allocation225_spill] sm:$0xff] }
 0x784   : > { %v7042_v48 = vadd.f32 %v6898_v18, %v6762_v35  ;;  %v14967_v18 = vld [vmem:[#allocation197_spill] sm:$0xff] }
 0x785   : > { %v13416_v25 = vadd.f32 %v7194_v44, %v7058_v12  ;;  %v14953_v44 = vld [vmem:[#allocation125_spill] sm:$0xff]  ;;  %v14966_v12 = vld [vmem:[#allocation236_spill] sm:$0xff] }
 0x788   : > { %7641 = vrot.lane.b32.xlu1 %v14938_v52, %s9845_s20  ;;  %7639 = vrot.lane.b32.xlu0 %v14940_v46, %s9845_s20 }
 0x789   : > { %7643 = vrot.lane.b32.xlu2 %v14939_v40, %s9845_s20 }
 0x78a   : > { %v7162_v55 = vpop.permute.xlu1 %7161 }
 0x78b   : > { %v13424_v37 = vpop.permute.xlu2 %7425  ;;  %v7306_v49 = vadd.f32 %v7162_v55, %v7042_v48  ;;  %v13426_v4 = vpop.permute.xlu0 %7403 }
 0x790   : > { %7647 = vrot.lane.b32.xlu1 %v14941_v57, %s9845_s20  ;;  %7645 = vrot.lane.b32.xlu0 %v14943_v31, %s9845_s20  ;;  %v14972_v57 = vld [vmem:[#allocation267_spill] sm:$0xff] }
 0x791   : > { %7649 = vrot.lane.b32.xlu2 %v14942_v41, %s9845_s20  ;;  %v14973_v41 = vld [vmem:[#allocation245_spill] sm:$0xff] }
 0x792   : > { %v13434_v23 = vpop.permute.xlu1 %7411 }
 0x793   : > { %v13436_v10 = vpop.permute.xlu2 %7431  ;;  %v13438_v42 = vpop.permute.xlu0 %7409 }
 0x798   : > { %7653 = vrot.lane.b32.xlu1 %v14944_v39, %s9845_s20  ;;  %7651 = vrot.lane.b32.xlu0 %v14946_v38, %s9845_s20  ;;  %v14979_v38 = vld [vmem:[#allocation275_spill] sm:$0xff] }
 0x799   : > { %7655 = vrot.lane.b32.xlu2 %v14945_v0, %s9845_s20 }
 0x79a   : > { %v13446_v21 = vpop.permute.xlu1 %7417 }
 0x79b   : > { %v13448_v58 = vpop.permute.xlu2 %7437  ;;  %v13450_v60 = vpop.permute.xlu0 %7415 }
 0x7a0   : > { %7659 = vrot.lane.b32.xlu1 %v14947_v19, %s9845_s20  ;;  %7657 = vrot.lane.b32.xlu0 %v14949_v54, %s9845_s20 }
 0x7a1   : > { %7661 = vrot.lane.b32.xlu2 %v14948_v29, %s9845_s20 }
 0x7a2   : > { %v13458_v34 = vpop.permute.xlu1 %7423 }
 0x7a3   : > { %v7444_v62 = vpop.permute.xlu2 %7443  ;;  %v13460_v26 = vpop.permute.xlu0 %7421 }
 0x7a4   : > { %v13463_v35 = vadd.f32 %v7444_v62, %v13322_v28  ;;  %v14956_v28 = vld [vmem:[#allocation173_spill] sm:$0xff] }
 0x7a6   : > { %14950 = vst [vmem:[#allocation287_spill] sm:$0xff] %v13463_v35 }
 0x7a8   : > { %7665 = vrot.lane.b32.xlu1 %v14951_v53, %s9845_s20  ;;  %7663 = vrot.lane.b32.xlu0 %v14953_v44, %s9845_s20  ;;  %v14983_v53 = vld [vmem:[#allocation340_spill] sm:$0xff]  ;;  %v14985_v44 = vld [vmem:[#allocation327_spill] sm:$0xff] }
 0x7a9   : > { %7667 = vrot.lane.b32.xlu2 %v14952_v7, %s9845_s20  ;;  %v14984_v7 = vld [vmem:[#allocation355_spill] sm:$0xff] }
 0x7aa   : > { %v13471_v22 = vpop.permute.xlu1 %7429 }
 0x7ab   : > { %v7450_v61 = vpop.permute.xlu2 %7449  ;;  %v13473_v51 = vpop.permute.xlu0 %7427 }
 0x7ac   : > { %v13475_v15 = vadd.f32 %v7450_v61, %v7306_v49  ;;  %v14971_v49 = vld [vmem:[#allocation256_spill] sm:$0xff] }
 0x7ae   : > { %14954 = vst [vmem:[#allocation224_spill] sm:$0xff] %v13475_v15 }
 0x7b0   : > { %7671 = vrot.lane.b32.xlu1 %v14955_v56, %s9845_s20  ;;  %7669 = vrot.lane.b32.xlu0 %v14957_v32, %s9845_s20  ;;  %v14988_v32 = vld [vmem:[#allocation388_spill] sm:$0xff] }
 0x7b1   : > { %7673 = vrot.lane.b32.xlu2 %v14956_v28, %s9845_s20 }
 0x7b2   : > { %v13483_v1 = vpop.permute.xlu1 %7435 }
 0x7b3   : > { %v13485_v50 = vpop.permute.xlu2 %7455  ;;  %v13487_v30 = vpop.permute.xlu0 %7433 }
 0x7b4   : > { %14958 = vst [vmem:[#allocation266_spill] sm:$0xff] %v13485_v50  ;;  %v15041_v50 = vld [vmem:[#allocation282_spill] sm:$0xff] }
 0x7b8   : > { %7677 = vrot.lane.b32.xlu1 %v14959_v14, %s9845_s20  ;;  %7675 = vrot.lane.b32.xlu0 %v14961_v47, %s9845_s20  ;;  %v14990_v14 = vld [vmem:[#allocation372_spill] sm:$0xff] }
 0x7b9   : > { %7679 = vrot.lane.b32.xlu2 %v14960_v24, %s9845_s20 }
 0x7ba   : > { %v13495_v8 = vpop.permute.xlu1 %7441 }
 0x7bb   : > { %14962 = vst [vmem:[#allocation276_spill] sm:$0xff] %v13495_v8  ;;  %v13497_v5 = vpop.permute.xlu2 %7461  ;;  %v13499_v3 = vpop.permute.xlu0 %7439 }
 0x7bc   : > { %14963 = vst [vmem:[#allocation255_spill] sm:$0xff] %v13497_v5  ;;  %v15029_v5 = vld [vmem:[#allocation328_spill] sm:$0xff] }
 0x7bd   : > { %14964 = vst [vmem:[#allocation293_spill] sm:$0xff] %v13499_v3  ;;  %v15068_v3 = vld [vmem:[#allocation178_spill] sm:$0xff] }
 0x7c0   : > { %7683 = vrot.lane.b32.xlu1 %v14965_v27, %s9845_s20  ;;  %7681 = vrot.lane.b32.xlu0 %v14967_v18, %s9845_s20  ;;  %v14994_v18 = vld [vmem:[#allocation441_spill] sm:$0xff] }
 0x7c1   : > { %7685 = vrot.lane.b32.xlu2 %v14966_v12, %s9845_s20  ;;  %v14993_v12 = vld [vmem:[#allocation400_spill] sm:$0xff] }
 0x7c2   : > { %v7448_v48 = vpop.permute.xlu1 %7447 }
 0x7c3   : > { %v13507_v52 = vpop.permute.xlu2 %7467  ;;  %v13510_v40 = vadd.f32 %v7448_v48, %v13390_v16  ;;  %v7446_v46 = vpop.permute.xlu0 %7445  ;;  %v14977_v16 = vld [vmem:[#allocation285_spill] sm:$0xff]  ;;  %v14995_v48 = vld [vmem:[#allocation419_spill] sm:$0xff] }
 0x7c4   : > { %14968 = vst [vmem:[#allocation289_spill] sm:$0xff] %v13507_v52  ;;  %v13513_v55 = vadd.f32 %v7446_v46, %v13348_v36  ;;  %v14978_v36 = vld [vmem:[#allocation297_spill] sm:$0xff] }
 0x7c5   : > { %14969 = vst [vmem:[#allocation286_spill] sm:$0xff] %v13510_v40 }
 0x7c6   : > { %14970 = vst [vmem:[#allocation449_spill] sm:$0xff] %v13513_v55  ;;  %v15048_v55 = vld [vmem:[#allocation301_spill] sm:$0xff] }
 0x7c8   : > { %7689 = vrot.lane.b32.xlu1 %v14971_v49, %s9845_s20  ;;  %7687 = vrot.lane.b32.xlu0 %v14973_v41, %s9845_s20 }
 0x7c9   : > { %7691 = vrot.lane.b32.xlu2 %v14972_v57, %s9845_s20 }
 0x7ca   : > { %v13521_v31 = vpop.permute.xlu1 %7453 }
 0x7cb   : > { %14974 = vst [vmem:[#allocation121_spill] sm:$0xff] %v13521_v31  ;;  %v13523_v39 = vpop.permute.xlu2 %7473  ;;  %v13525_v0 = vpop.permute.xlu0 %7451 }
 0x7cc   : > { %14975 = vst [vmem:[#allocation292_spill] sm:$0xff] %v13523_v39 }
 0x7cd   : > { %14976 = vst [vmem:[#allocation273_spill] sm:$0xff] %v13525_v0  ;;  %v15051_v0 = vld [vmem:[#allocation315_spill] sm:$0xff] }
 0x7d0   : > { %7695 = vrot.lane.b32.xlu1 %v14977_v16, %s9845_s20  ;;  %7693 = vrot.lane.b32.xlu0 %v14979_v38, %s9845_s20  ;;  %v14999_v38 = vld [vmem:[#allocation474_spill] sm:$0xff] }
 0x7d1   : > { %7697 = vrot.lane.b32.xlu2 %v14978_v36, %s9845_s20  ;;  %v14998_v36 = vld [vmem:[#allocation464_spill] sm:$0xff] }
 0x7d2   : > { %v13533_v19 = vpop.permute.xlu1 %7459 }
 0x7d3   : > { %14980 = vst [vmem:[#allocation432_spill] sm:$0xff] %v13533_v19  ;;  %v7480_v29 = vpop.permute.xlu2 %7479  ;;  %v13535_v54 = vpop.permute.xlu0 %7457 }
 0x7d4   : > { %14981 = vst [vmem:[#allocation262_spill] sm:$0xff] %v13535_v54  ;;  %v13538_v62 = vadd.f32 %v7480_v29, %v13388_v43  ;;  %v14989_v43 = vld [vmem:[#allocation405_spill] sm:$0xff]  ;;  %v15000_v29 = vld [vmem:[#allocation454_spill] sm:$0xff] }
 0x7d6   : > { %14982 = vst [vmem:[#allocation117_spill] sm:$0xff] %v13538_v62 }
 0x7d8   : > { %7701 = vrot.lane.b32.xlu1 %v14983_v53, %s9845_s20  ;;  %7699 = vrot.lane.b32.xlu0 %v14985_v44, %s9845_s20 }
 0x7d9   : > { %7703 = vrot.lane.b32.xlu2 %v14984_v7, %s9845_s20 }
 0x7da   : > { %v13546_v61 = vpop.permute.xlu1 %7465 }
 0x7db   : > { %14986 = vst [vmem:[#allocation13_spill] sm:$0xff] %v13546_v61  ;;  %v13548_v56 = vpop.permute.xlu2 %7637  ;;  %v13550_v28 = vpop.permute.xlu0 %7463 }
 0x7dc   : > { %14987 = vst [vmem:[#allocation16_spill] sm:$0xff] %v13550_v28 }
 0x7e0   : > { %7707 = vrot.lane.b32.xlu1 %v14988_v32, %s9845_s20  ;;  %7705 = vrot.lane.b32.xlu0 %v14990_v14, %s9845_s20  ;;  %v15003_v32 = vld [vmem:[#allocation500_spill] sm:$0xff] }
 0x7e1   : > { %7709 = vrot.lane.b32.xlu2 %v14989_v43, %s9845_s20  ;;  %v15004_v43 = vld [vmem:[#allocation485_spill] sm:$0xff] }
 0x7e2   : > { %v13558_v24 = vpop.permute.xlu1 %7471 }
 0x7e3   : > { %14991 = vst [vmem:[#allocation19_spill] sm:$0xff] %v13558_v24  ;;  %v13560_v47 = vpop.permute.xlu2 %7643  ;;  %v13562_v27 = vpop.permute.xlu0 %7469  ;;  %v15018_v24 = vld [vmem:[#allocation270_spill] sm:$0xff] }
 0x7e4   : > { %14992 = vst [vmem:[#allocation23_spill] sm:$0xff] %v13562_v27 }
 0x7e8   : > { %7713 = vrot.lane.b32.xlu1 %v14993_v12, %s9845_s20  ;;  %7711 = vrot.lane.b32.xlu0 %v14995_v48, %s9845_s20  ;;  %v15006_v48 = vld [vmem:[#allocation323_spill] sm:$0xff] }
 0x7e9   : > { %7715 = vrot.lane.b32.xlu2 %v14994_v18, %s9845_s20 }
 0x7ea   : > { %v7478_v46 = vpop.permute.xlu1 %7477 }
 0x7eb   : > { %v13570_v49 = vpop.permute.xlu2 %7649  ;;  %v13573_v57 = vadd.f32 %v7478_v46, %v13356_v2  ;;  %v7476_v41 = vpop.permute.xlu0 %7475 }
 0x7ec   : > { %v13576_v16 = vadd.f32 %v7476_v41, %v13314_v20  ;;  %v15002_v20 = vld [vmem:[#allocation495_spill] sm:$0xff] }
 0x7ed   : > { %14996 = vst [vmem:[#allocation17_spill] sm:$0xff] %v13573_v57 }
 0x7ee   : > { %14997 = vst [vmem:[#allocation38_spill] sm:$0xff] %v13576_v16 }
 0x7f0   : > { %7719 = vrot.lane.b32.xlu1 %v14998_v36, %s9845_s20  ;;  %7717 = vrot.lane.b32.xlu0 %v15000_v29, %s9845_s20  ;;  %v15009_v29 = vld [vmem:[#allocation384_spill] sm:$0xff] }
 0x7f1   : > { %7721 = vrot.lane.b32.xlu2 %v14999_v38, %s9845_s20  ;;  %v15008_v38 = vld [vmem:[#allocation368_spill] sm:$0xff] }
 0x7f2   : > { %v13584_v53 = vpop.permute.xlu1 %7635 }
 0x7f3   : > { %v13586_v7 = vpop.permute.xlu2 %7655  ;;  %v7482_v44 = vpop.permute.xlu0 %7481 }
 0x7f4   : > { %v13589_v2 = vadd.f32 %v7482_v44, %v13416_v25  ;;  %v15007_v25 = vld [vmem:[#allocation337_spill] sm:$0xff]  ;;  %v15010_v44 = vld [vmem:[#allocation351_spill] sm:$0xff] }
 0x7f6   : > { %15001 = vst [vmem:[#allocation34_spill] sm:$0xff] %v13589_v2  ;;  %v15014_v2 = vld [vmem:[#allocation314_spill] sm:$0xff] }
 0x7f8   : > { %7725 = vrot.lane.b32.xlu1 %v15002_v20, %s9845_s20  ;;  %7723 = vrot.lane.b32.xlu0 %v15004_v43, %s9845_s20  ;;  %v7630_v43 = vrot.slane %v12363_v33, 2 }
 0x7f9   : > { %7727 = vrot.lane.b32.xlu2 %v15003_v32, %s9845_s20 }
 0x7fa   : > { %v13597_v14 = vpop.permute.xlu1 %7641 }
 0x7fb   : > { %v13599_v12 = vpop.permute.xlu2 %7661  ;;  %v13601_v18 = vpop.permute.xlu0 %7639 }
 0x7fc   : > { %15005 = vst [vmem:[#allocation27_spill] sm:$0xff] %v13599_v12  ;;  %v15064_v12 = vld [vmem:[#allocation325_spill] sm:$0xff] }
 0x800   : > { %7731 = vrot.lane.b32.xlu1 %v15006_v48, %s9845_s20  ;;  %7729 = vrot.lane.b32.xlu0 %v13312_v13, %s9845_s20  ;;  %v7629_v48 = vrot.slane %v12676_v9, 2  ;;  %v15016_v9 = vld [vmem:[#allocation305_spill] sm:$0xff] }
 0x801   : > { %7733 = vrot.lane.b32.xlu2 %v15007_v25, %s9845_s20 }
 0x802   : > { %v13609_v46 = vpop.permute.xlu1 %7647  ;;  %v7631_v25 = vsel %vm5778_vm9, %v7629_v48, %v7630_v43  ;;  %v15017_v43 = vld [vmem:[#allocation320_spill] sm:$0xff] }
 0x803   : > { %v13611_v41 = vpop.permute.xlu2 %7667  ;;  %v13613_v36 = vpop.permute.xlu0 %7645 }
 0x808   : > { %7737 = vrot.lane.b32.xlu1 %v15008_v38, %s9845_s20  ;;  %7735 = vrot.lane.b32.xlu0 %v15010_v44, %s9845_s20  ;;  %v15011_v38 = vld [vmem:[#allocation360_spill] sm:$0xff] }
 0x809   : > { %7739 = vrot.lane.b32.xlu2 %v15009_v29, %s9845_s20  ;;  %v15012_v29 = vld [vmem:[#allocation401_spill] sm:$0xff]  ;;  %v15013_v44 = vld [vmem:[#allocation240_spill] sm:$0xff] }
 0x80a   : > { %v13621_v20 = vpop.permute.xlu1 %7653  ;;  %v5742_v62 = vadd.f32 %v15014_v2, %v15013_v44  ;;  %v15022_v2 = vld [vmem:[#allocation437_spill] sm:$0xff]  ;;  %v15023_v44 = vld [vmem:[#allocation322_spill] sm:$0xff] }
 0x80b   : > { %v13623_v32 = vpop.permute.xlu2 %7673  ;;  %v13625_v13 = vpop.permute.xlu0 %7651 }
 0x80c   : > { %v6191_v39 = vadd.f32 %v15016_v9, %v5742_v62 }
 0x80e   : > { %v6455_v48 = vadd.f32 %v15017_v43, %v6191_v39  ;;  %v15026_v39 = vld [vmem:[#allocation330_spill] sm:$0xff] }
 0x810   : > { %7743 = vrot.lane.b32.xlu1 %v15011_v38, %s9845_s20  ;;  %7741 = vrot.lane.b32.xlu0 %v15012_v29, %s9845_s20  ;;  %v15019_v38 = vld [vmem:[#allocation339_spill] sm:$0xff]  ;;  %v15021_v29 = vld [vmem:[#allocation242_spill] sm:$0xff]  ;;  %v6743_v52 = vadd.f32 %v15023_v44, %v6455_v48  ;;  %v15032_v48 = vld [vmem:[#allocation104_spill] sm:$0xff] }
 0x811   : > { %7745 = vrot.lane.b32.xlu2 %v7631_v25, %s9845_s20  ;;  %v5745_v27 = vadd.f32 %v15019_v38, %v15018_v24  ;;  %v15020_v25 = vld [vmem:[#allocation450_spill] sm:$0xff]  ;;  %v15027_v24 = vld [vmem:[#allocation317_spill] sm:$0xff]  ;;  %v15033_v44 = vld [vmem:[#allocation252_spill] sm:$0xff] }
 0x812   : > { %v13637_v57 = vpop.permute.xlu1 %7659  ;;  %v7023_v43 = vadd.f32 %v15027_v24, %v6743_v52  ;;  %v15028_v38 = vld [vmem:[#allocation345_spill] sm:$0xff]  ;;  %v7633_v52 = vrot.slane %v13394_v6, 2 }
 0x813   : > { %15015 = vst [vmem:[#allocation70_spill] sm:$0xff] %v13637_v57  ;;  %v13639_v16 = vpop.permute.xlu2 %7679  ;;  %v13641_v33 = vpop.permute.xlu0 %7657  ;;  %v6194_v9 = vadd.f32 %v15026_v39, %v5745_v27  ;;  %v15039_v6 = vld [vmem:[#allocation433_spill] sm:$0xff] }
 0x814   : > { %v7287_v19 = vadd.f32 %v15029_v5, %v7023_v43  ;;  %v15034_v5 = vld [vmem:[#allocation338_spill] sm:$0xff] }
 0x816   : > { %v7575_v15 = vadd.f32 %v13434_v23, %v7287_v19  ;;  %v15040_v19 = vld [vmem:[#allocation219_spill] sm:$0xff] }
 0x817   : > { %v5740_v40 = vadd.f32 %v15041_v50, %v15040_v19  ;;  %v15049_v19 = vld [vmem:[#allocation261_spill] sm:$0xff] }
 0x818   : > { %7749 = vrot.lane.b32.xlu1 %v15020_v25, %s9845_s20  ;;  %7747 = vrot.lane.b32.xlu0 %v15022_v2, %s9845_s20  ;;  %v6458_v25 = vadd.f32 %v15028_v38, %v6194_v9  ;;  %v15031_v2 = vld [vmem:[#allocation481_spill] sm:$0xff]  ;;  %v7632_v38 = vrot.slane %v14935_v17, 2  ;;  %v15042_v17 = vld [vmem:[#allocation307_spill] sm:$0xff] }
 0x819   : > { %7751 = vrot.lane.b32.xlu2 %v15021_v29, %s9845_s20  ;;  %v15030_v29 = vld [vmem:[#allocation348_spill] sm:$0xff] }
 0x81a   : > { %v13654_v61 = vpop.permute.xlu1 %7665  ;;  %v6746_v54 = vadd.f32 %v15030_v29, %v6458_v25  ;;  %v15036_v25 = vld [vmem:[#allocation230_spill] sm:$0xff]  ;;  %v15037_v29 = vld [vmem:[#allocation309_spill] sm:$0xff] }
 0x81b   : > { %15024 = vst [vmem:[#allocation80_spill] sm:$0xff] %v13654_v61  ;;  %v13656_v28 = vpop.permute.xlu2 %7685  ;;  %v13658_v62 = vpop.permute.xlu0 %7663 }
 0x81c   : > { %15025 = vst [vmem:[#allocation60_spill] sm:$0xff] %v13658_v62  ;;  %v7026_v24 = vadd.f32 %v15034_v5, %v6746_v54  ;;  %v15054_v62 = vld [vmem:[#allocation296_spill] sm:$0xff] }
 0x820   : > { %7755 = vrot.lane.b32.xlu1 %v15031_v2, %s9845_s20  ;;  %7753 = vrot.lane.b32.xlu0 %v15033_v44, %s9845_s20  ;;  %v5741_v2 = vadd.f32 %v15037_v29, %v15036_v25  ;;  %v15038_v44 = vld [vmem:[#allocation349_spill] sm:$0xff]  ;;  %v15045_v29 = vld [vmem:[#allocation303_spill] sm:$0xff] }
 0x821   : > { %7757 = vrot.lane.b32.xlu2 %v15032_v48, %s9845_s20  ;;  %v7634_v48 = vsel %vm5778_vm9, %v7632_v38, %v7633_v52  ;;  %v7290_v23 = vadd.f32 %v15038_v44, %v7026_v24  ;;  %v15043_v52 = vld [vmem:[#allocation299_spill] sm:$0xff]  ;;  %v15046_v44 = vld [vmem:[#allocation10_spill] sm:$0xff] }
 0x822   : > { %v13672_v27 = vpop.permute.xlu1 %7671  ;;  %v6189_v38 = vadd.f32 %v15043_v52, %v5740_v40  ;;  %v15056_v52 = vld [vmem:[#allocation318_spill] sm:$0xff] }
 0x823   : > { %v7692_v39 = vpop.permute.xlu2 %7691  ;;  %v13675_v9 = vpop.permute.xlu0 %7669 }
 0x824   : > { %v13678_v43 = vadd.f32 %v7692_v39, %v7575_v15  ;;  %v7578_v15 = vadd.f32 %v13446_v21, %v7290_v23  ;;  %v6190_v39 = vadd.f32 %v15042_v17, %v5741_v2  ;;  %v15050_v21 = vld [vmem:[#allocation332_spill] sm:$0xff]  ;;  %v15052_v2 = vld [vmem:[#allocation250_spill] sm:$0xff]  ;;  %v15053_v17 = vld [vmem:[#allocation313_spill] sm:$0xff] }
 0x825   : > { %v5744_v23 = vadd.f32 %v15050_v21, %v15049_v19  ;;  %v5743_v35 = vadd.f32 %v15053_v17, %v15052_v2  ;;  %v15059_v19 = vld [vmem:[#allocation324_spill] sm:$0xff]  ;;  %v15062_v2 = vld [vmem:[#allocation326_spill] sm:$0xff] }
 0x826   : > { %15035 = vst [vmem:[#allocation103_spill] sm:$0xff] %v13678_v43  ;;  %v6454_v50 = vadd.f32 %v15048_v55, %v6190_v39  ;;  %v15058_v55 = vld [vmem:[#allocation312_spill] sm:$0xff] }
 0x827   : > { %v6192_v21 = vadd.f32 %v15059_v19, %v5743_v35  ;;  %v15070_v19 = vld [vmem:[#allocation11_spill] sm:$0xff] }
 0x828   : > { %7761 = vrot.lane.b32.xlu1 %v7634_v48, %s9845_s20  ;;  %7759 = vrot.lane.b32.xlu0 %v15039_v6, %s9845_s20  ;;  %v6453_v48 = vadd.f32 %v15045_v29, %v6189_v38  ;;  %v15047_v6 = vld [vmem:[#allocation26_spill] sm:$0xff]  ;;  %v6742_v61 = vadd.f32 %v15051_v0, %v6454_v50  ;;  %v15057_v29 = vld [vmem:[#allocation331_spill] sm:$0xff]  ;;  %v15061_v50 = vld [vmem:[#allocation189_spill] sm:$0xff]  ;;  %s9767_s20 = scalar_lea.hbm %s14227_s7, 64 }
 0x829   : > { %v5714_v31 = vadd.f32 %v15047_v6, %v15046_v44  ;;  %v6193_v44 = vadd.f32 %v15057_v29, %v5744_v23  ;;  %v15060_v0 = vld [vmem:[#allocation130_spill] sm:$0xff]  ;;  %v6456_v17 = vadd.f32 %v15062_v2, %v6192_v21  ;;  %v15067_v23 = vld [vmem:[#allocation33_spill] sm:$0xff]  ;;  %p9769_p9 = scmp.lt.s32.totalorder %s9767_s20, %s9763_s8 }
 0x82a   : > { %v13691_v54 = vpop.permute.xlu1 %7677  ;;  %v6741_v8 = vadd.f32 %v15054_v62, %v6453_v48  ;;  %v7022_v38 = vadd.f32 %v15056_v52, %v6742_v61  ;;  %v15063_v62 = vld [vmem:[#allocation21_spill] sm:$0xff]  ;;  %v15066_v61 = vld [vmem:[#allocation311_spill] sm:$0xff] }
 0x82b   : > { %v7698_v5 = vpop.permute.xlu2 %7697  ;;  %v13694_v25 = vpop.permute.xlu0 %7675  ;;  %v6457_v43 = vadd.f32 %v15064_v12, %v6193_v44  ;;  %v15072_v21 = vld [vmem:[#allocation321_spill] sm:$0xff]  ;;  %v15073_v44 = vld [vmem:[#allocation344_spill] sm:$0xff]  ;;  %p9770_p10 = por %p9769_p9, %p9768_p7 }
 0x82c   : > { %v13697_v24 = vadd.f32 %v7698_v5, %v7578_v15  ;;  %v15055_v15 = vld [vmem:[#allocation29_spill] sm:$0xff]  ;;  %v7021_v39 = vadd.f32 %v15058_v55, %v6741_v8  ;;  %v6744_v2 = vadd.f32 %v15072_v21, %v6456_v17  ;;  %v15079_v17 = vld [vmem:[#allocation182_spill] sm:$0xff] }
 0x82d   : > { %v6163_v5 = vadd.f32 %v15055_v15, %v5714_v31  ;;  %v15065_v31 = vld [vmem:[#allocation310_spill] sm:$0xff]  ;;  %v15069_v8 = vld [vmem:[#allocation341_spill] sm:$0xff]  ;;  %p9771_p11 = pnand %p9770_p10, %p9766_p6 }
 0x82e   : > { %15044 = vst [vmem:[#allocation112_spill] sm:$0xff] %v13697_v24  ;;  %v5730_v24 = vadd.f32 %v15061_v50, %v15060_v0  ;;  %v7286_v15 = vadd.f32 %v15065_v31, %v7022_v38  ;;  %v7285_v52 = vadd.f32 %v15066_v61, %v7021_v39  ;;  %v6745_v55 = vadd.f32 %v15069_v8, %v6457_v43  ;;  %v15071_v0 = vld [vmem:[#allocation30_spill] sm:$0xff]  ;;  %v15075_v43 = vld [vmem:[#allocation32_spill] sm:$0xff]  ;;  %v15078_v8 = vld [vmem:[#allocation135_spill] sm:$0xff] }
 0x82f   : > { %v6427_v48 = vadd.f32 %v15063_v62, %v6163_v5  ;;  %v5715_v50 = vadd.f32 %v15071_v0, %v15070_v19  ;;  %v15077_v61 = vld [vmem:[#allocation22_spill] sm:$0xff]  ;;  %v5731_v19 = vadd.f32 %v15079_v17, %v15078_v8  ;;  %v15089_v17 = vld [vmem:[#allocation45_spill] sm:$0xff] }
 0x830   : > { %v6179_v57 = vadd.f32 %v15068_v3, %v5730_v24  ;;  %v7574_v35 = vadd.f32 %v13438_v42, %v7286_v15  ;;  %v7573_v5 = vadd.f32 %v13380_v63, %v7285_v52  ;;  %v7025_v38 = vadd.f32 %v15073_v44, %v6745_v55  ;;  %v15076_v42 = vld [vmem:[#allocation190_spill] sm:$0xff]  ;;  %v15080_v63 = vld [vmem:[#allocation192_spill] sm:$0xff] }
 0x831   : > { %v6715_v29 = vadd.f32 %v15067_v23, %v6427_v48  ;;  %v15074_v48 = vld [vmem:[#allocation336_spill] sm:$0xff]  ;;  %v6164_v23 = vadd.f32 %v15077_v61, %v5715_v50  ;;  %v15081_v0 = vld [vmem:[#allocation334_spill] sm:$0xff] }
 0x832   : > { %v13709_v40 = vpop.permute.xlu1 %7683  ;;  %v7024_v31 = vadd.f32 %v15074_v48, %v6744_v2  ;;  %v6443_v15 = vadd.f32 %v15076_v42, %v6179_v57  ;;  %v7289_v55 = vadd.f32 %v15081_v0, %v7025_v38  ;;  %v15084_v2 = vld [vmem:[#allocation25_spill] sm:$0xff]  ;;  %v15086_v57 = vld [vmem:[#allocation12_spill] sm:$0xff] }
 0x833   : > { %v13714_v6 = vpop.permute.xlu0 %7681  ;;  %v6995_v24 = vadd.f32 %v15075_v43, %v6715_v29  ;;  %v15087_v43 = vld [vmem:[#allocation36_spill] sm:$0xff]  ;;  %v15088_v42 = vld [vmem:[#allocation41_spill] sm:$0xff] }
 0x834   : > { %v6731_v52 = vadd.f32 %v15080_v63, %v6443_v15  ;;  %v7577_v29 = vadd.f32 %v13450_v60, %v7289_v55  ;;  %v5716_v50 = vadd.f32 %v15087_v43, %v15086_v57  ;;  %v15090_v63 = vld [vmem:[#allocation195_spill] sm:$0xff]  ;;  %v15091_v0 = vld [vmem:[#allocation184_spill] sm:$0xff]  ;;  %v15092_v60 = vld [vmem:[#allocation42_spill] sm:$0xff] }
 0x835   : > { %v15097_v43 = vld [vmem:[#allocation44_spill] sm:$0xff] }
 0x836   : > { %v6165_v55 = vadd.f32 %v15092_v60, %v5716_v50  ;;  %v15104_v60 = vld [vmem:[#allocation342_spill] sm:$0xff] }
 0x83a   : > { %v7690_v12 = vpop.permute.xlu1 %7689 }
 0x83b   : > { %v13734_v62 = vadd.f32 %v7690_v12, %v7574_v35  ;;  %v7688_v39 = vpop.permute.xlu0 %7687  ;;  %v15082_v35 = vld [vmem:[#allocation37_spill] sm:$0xff]  ;;  %v15083_v12 = vld [vmem:[#allocation335_spill] sm:$0xff] }
 0x83c   : > { %v13737_v3 = vadd.f32 %v7688_v39, %v7573_v5  ;;  %v6428_v21 = vadd.f32 %v15082_v35, %v6164_v23  ;;  %v7288_v44 = vadd.f32 %v15083_v12, %v7024_v31  ;;  %v7259_v5 = vadd.f32 %v15084_v2, %v6995_v24  ;;  %v15085_v39 = vld [vmem:[#allocation193_spill] sm:$0xff]  ;;  %v15093_v12 = vld [vmem:[#allocation196_spill] sm:$0xff] }
 0x83d   : > { %v6180_v48 = vadd.f32 %v15085_v39, %v5731_v19  ;;  %v7011_v31 = vadd.f32 %v15091_v0, %v6731_v52  ;;  %v15094_v39 = vld [vmem:[#allocation144_spill] sm:$0xff]  ;;  %v15102_v0 = vld [vmem:[#allocation205_spill] sm:$0xff] }
 0x83e   : > { %v6716_v61 = vadd.f32 %v15088_v42, %v6428_v21  ;;  %v7576_v8 = vadd.f32 %v13404_v45, %v7288_v44  ;;  %v7547_v38 = vadd.f32 %v15089_v17, %v7259_v5  ;;  %v15095_v21 = vld [vmem:[#allocation201_spill] sm:$0xff]  ;;  %v15096_v44 = vld [vmem:[#allocation28_spill] sm:$0xff] }
 0x83f   : > { %v6444_v23 = vadd.f32 %v15090_v63, %v6180_v48  ;;  %v7275_v2 = vadd.f32 %v15093_v12, %v7011_v31  ;;  %v5732_v57 = vadd.f32 %v15095_v21, %v15094_v39  ;;  %v6429_v48 = vadd.f32 %v15097_v43, %v6165_v55  ;;  %v15098_v42 = vld [vmem:[#allocation204_spill] sm:$0xff]  ;;  %v15107_v55 = vld [vmem:[#allocation31_spill] sm:$0xff]  ;;  %v15110_v43 = vld [vmem:[#allocation358_spill] sm:$0xff] }
 0x840   : > { %v7827_v45 = vadd.f32 %v13584_v53, %v7547_v38  ;;  %v6996_v5 = vadd.f32 %v15096_v44, %v6716_v61  ;;  %v15101_v63 = vld [vmem:[#allocation200_spill] sm:$0xff]  ;;  %v15105_v38 = vld [vmem:[#allocation14_spill] sm:$0xff]  ;;  %v15106_v61 = vld [vmem:[#allocation49_spill] sm:$0xff] }
 0x841   : > { %v7563_v52 = vadd.f32 %v15098_v42, %v7275_v2  ;;  %v6181_v50 = vadd.f32 %v15101_v63, %v5732_v57  ;;  %v5717_v39 = vadd.f32 %v15106_v61, %v15105_v38  ;;  %v6717_v21 = vadd.f32 %v15107_v55, %v6429_v48  ;;  %v15108_v2 = vld [vmem:[#allocation58_spill] sm:$0xff]  ;;  %v15111_v57 = vld [vmem:[#allocation53_spill] sm:$0xff]  ;;  %v15118_v61 = vld [vmem:[#allocation356_spill] sm:$0xff] }
 0x842   : > { %v7696_v15 = vpop.permute.xlu1 %7695  ;;  %v15117_v38 = vld [vmem:[#allocation210_spill] sm:$0xff]  ;;  %v15119_v55 = vld [vmem:[#allocation199_spill] sm:$0xff] }
 0x843   : > { %v13758_v35 = vadd.f32 %v7696_v15, %v7577_v29  ;;  %v7694_v24 = vpop.permute.xlu0 %7693  ;;  %v15099_v29 = vld [vmem:[#allocation188_spill] sm:$0xff]  ;;  %v7843_v53 = vadd.f32 %v13611_v41, %v7563_v52  ;;  %v6166_v42 = vadd.f32 %v15111_v57, %v5717_v39  ;;  %v15115_v41 = vld [vmem:[#allocation213_spill] sm:$0xff]  ;;  %v15124_v57 = vld [vmem:[#allocation363_spill] sm:$0xff] }
 0x844   : > { %v13760_v19 = vadd.f32 %v7694_v24, %v7576_v8  ;;  %v6732_v15 = vadd.f32 %v15099_v29, %v6444_v23  ;;  %v15100_v8 = vld [vmem:[#allocation50_spill] sm:$0xff]  ;;  %v15109_v23 = vld [vmem:[#allocation209_spill] sm:$0xff] }
 0x845   : > { %v7260_v17 = vadd.f32 %v15100_v8, %v6996_v5  ;;  %v15103_v24 = vld [vmem:[#allocation302_spill] sm:$0xff]  ;;  %v15113_v8 = vld [vmem:[#allocation191_spill] sm:$0xff] }
 0x846   : > { %v7012_v31 = vadd.f32 %v15102_v0, %v6732_v15  ;;  %v5746_v12 = vadd.f32 %v15104_v60, %v15103_v24  ;;  %v15112_v29 = vld [vmem:[#allocation54_spill] sm:$0xff]  ;;  %v6445_v63 = vadd.f32 %v15113_v8, %v6181_v50  ;;  %v15114_v0 = vld [vmem:[#allocation152_spill] sm:$0xff]  ;;  %v15116_v60 = vld [vmem:[#allocation63_spill] sm:$0xff] }
 0x847   : > { %7891 = vxpose.xlu2.b32.start [1/16] (narrow) %v7827_v45, 8  ;;  %v7548_v44 = vadd.f32 %v15108_v2, %v7260_v17  ;;  %v6997_v15 = vadd.f32 %v15112_v29, %v6717_v21  ;;  %v5733_v52 = vadd.f32 %v15115_v41, %v15114_v0  ;;  %v15121_v2 = vld [vmem:[#allocation194_spill] sm:$0xff]  ;;  %v15126_v8 = vld [vmem:[#allocation365_spill] sm:$0xff]  ;;  %v15128_v41 = vld [vmem:[#allocation48_spill] sm:$0xff] }
 0x848   : > { %v7276_v45 = vadd.f32 %v15109_v23, %v7012_v31  ;;  %v6195_v5 = vadd.f32 %v15110_v43, %v5746_v12  ;;  %v6733_v17 = vadd.f32 %v15117_v38, %v6445_v63  ;;  %v15122_v23 = vld [vmem:[#allocation217_spill] sm:$0xff]  ;;  %v15123_v43 = vld [vmem:[#allocation306_spill] sm:$0xff] }
 0x849   : > { %v7828_v24 = vadd.f32 %v13548_v56, %v7548_v44  ;;  %v7261_v48 = vadd.f32 %v15116_v60, %v6997_v15  ;;  %v6182_v21 = vadd.f32 %v15121_v2, %v5733_v52  ;;  %v5747_v29 = vadd.f32 %v15124_v57, %v15123_v43  ;;  %v15125_v44 = vld [vmem:[#allocation59_spill] sm:$0xff]  ;;  %v15127_v0 = vld [vmem:[#allocation353_spill] sm:$0xff]  ;;  %v15131_v52 = vld [vmem:[#allocation68_spill] sm:$0xff] }
 0x84a   : > { %7923 = vxpose.xlu0.b32.start [1/16] (narrow) %v7843_v53, 8  ;;  %v6459_v31 = vadd.f32 %v15118_v61, %v6195_v5  ;;  %v7564_v12 = vadd.f32 %v15119_v55, %v7276_v45  ;;  %v15120_v53 = vld [vmem:[#allocation35_spill] sm:$0xff]  ;;  %v7013_v50 = vadd.f32 %v15122_v23, %v6733_v17  ;;  %v15132_v17 = vld [vmem:[#allocation214_spill] sm:$0xff]  ;;  %v15136_v43 = vld [vmem:[#allocation160_spill] sm:$0xff] }
 0x84b   : > { %v6430_v39 = vadd.f32 %v15120_v53, %v6166_v42  ;;  %v6196_v63 = vadd.f32 %v15126_v8, %v5747_v29  ;;  %v7549_v45 = vadd.f32 %v15128_v41, %v7261_v48  ;;  %v15130_v42 = vld [vmem:[#allocation40_spill] sm:$0xff]  ;;  %v6446_v61 = vadd.f32 %v15132_v17, %v6182_v21  ;;  %v15133_v55 = vld [vmem:[#allocation203_spill] sm:$0xff]  ;;  %v15138_v48 = vld [vmem:[#allocation222_spill] sm:$0xff] }
 0x84c   : > { %v7844_v56 = vadd.f32 %v13675_v9, %v7564_v12  ;;  %v6747_v5 = vadd.f32 %v15127_v0, %v6459_v31  ;;  %v7277_v53 = vadd.f32 %v15133_v55, %v7013_v50  ;;  %v15134_v2 = vld [vmem:[#allocation371_spill] sm:$0xff]  ;;  %v15140_v8 = vld [vmem:[#allocation373_spill] sm:$0xff]  ;;  %v15142_v21 = vld [vmem:[#allocation64_spill] sm:$0xff] }
 0x84d   : > { %v6718_v15 = vadd.f32 %v15125_v44, %v6430_v39  ;;  %v7829_v12 = vadd.f32 %v13601_v18, %v7549_v45  ;;  %v15135_v39 = vld [vmem:[#allocation43_spill] sm:$0xff]  ;;  %v6734_v29 = vadd.f32 %v15138_v48, %v6446_v61  ;;  %v7700_v45 = vpop.permute.xlu0 %7699 }
 0x84e   : > { %v7027_v9 = vadd.f32 %v15134_v2, %v6747_v5  ;;  %v15137_v31 = vld [vmem:[#allocation207_spill] sm:$0xff] }
 0x84f   : > { %7892 = vxpose.xlu2.b32.cont [2/16] (narrow) %v7828_v24, 8  ;;  %v15129_v24 = vld [vmem:[#allocation15_spill] sm:$0xff]  ;;  %v6998_v38 = vadd.f32 %v15131_v52, %v6718_v15  ;;  %v5734_v57 = vadd.f32 %v15137_v31, %v15136_v43  ;;  %v15141_v15 = vld [vmem:[#allocation357_spill] sm:$0xff] }
 0x850   : > { %v5718_v60 = vadd.f32 %v15130_v42, %v15129_v24  ;;  %v7291_v0 = vadd.f32 %v15140_v8, %v7027_v9  ;;  %v6460_v41 = vadd.f32 %v15141_v15, %v6196_v63  ;;  %v15143_v24 = vld [vmem:[#allocation52_spill] sm:$0xff]  ;;  %v15144_v42 = vld [vmem:[#allocation218_spill] sm:$0xff]  ;;  %v15146_v52 = vld [vmem:[#allocation377_spill] sm:$0xff] }
 0x851   : > { %v7262_v5 = vadd.f32 %v15143_v24, %v6998_v38  ;;  %v6183_v18 = vadd.f32 %v15144_v42, %v5734_v57  ;;  %v15147_v55 = vld [vmem:[#allocation383_spill] sm:$0xff]  ;;  %v15148_v9 = vld [vmem:[#allocation18_spill] sm:$0xff]  ;;  %v15152_v38 = vld [vmem:[#allocation228_spill] sm:$0xff] }
 0x852   : > { %7924 = vxpose.xlu0.b32.cont [2/16] (narrow) %v7844_v56, 8  ;;  %v6167_v23 = vadd.f32 %v15135_v39, %v5718_v60  ;;  %v15139_v56 = vld [vmem:[#allocation223_spill] sm:$0xff]  ;;  %v15145_v60 = vld [vmem:[#allocation316_spill] sm:$0xff]  ;;  %v6748_v2 = vadd.f32 %v15147_v55, %v6460_v41  ;;  %v7579_v61 = vadd.f32 %v13414_v11, %v7291_v0  ;;  %v15149_v39 = vld [vmem:[#allocation57_spill] sm:$0xff] }
 0x853   : > { %v7565_v44 = vadd.f32 %v15139_v56, %v7277_v53  ;;  %v5748_v17 = vadd.f32 %v15146_v52, %v15145_v60  ;;  %v5719_v63 = vadd.f32 %v15149_v39, %v15148_v9  ;;  %v6447_v48 = vadd.f32 %v15152_v38, %v6183_v18  ;;  %v15153_v57 = vld [vmem:[#allocation212_spill] sm:$0xff]  ;;  %v15154_v8 = vld [vmem:[#allocation385_spill] sm:$0xff]  ;;  %v15157_v0 = vld [vmem:[#allocation234_spill] sm:$0xff] }
 0x854   : > { %v6431_v50 = vadd.f32 %v15142_v21, %v6167_v23  ;;  %v15151_v23 = vld [vmem:[#allocation74_spill] sm:$0xff]  ;;  %v7014_v56 = vadd.f32 %v15153_v57, %v6734_v29  ;;  %v7028_v15 = vadd.f32 %v15154_v8, %v6748_v2  ;;  %v7859_v21 = vadd.f32 %v7700_v45, %v7579_v61  ;;  %v15155_v41 = vld [vmem:[#allocation69_spill] sm:$0xff]  ;;  %v15162_v9 = vld [vmem:[#allocation20_spill] sm:$0xff]  ;;  %v7702_v8 = vpop.permute.xlu1 %7701 }
 0x855   : > { %v7845_v53 = vadd.f32 %v13672_v27, %v7565_v44  ;;  %v7550_v31 = vadd.f32 %v15151_v23, %v7262_v5  ;;  %v6168_v24 = vadd.f32 %v15155_v41, %v5719_v63  ;;  %v15156_v11 = vld [vmem:[#allocation169_spill] sm:$0xff]  ;;  %v15159_v60 = vld [vmem:[#allocation370_spill] sm:$0xff]  ;;  %v15163_v2 = vld [vmem:[#allocation84_spill] sm:$0xff] }
 0x856   : > { %v5735_v27 = vadd.f32 %v15157_v0, %v15156_v11  ;;  %v15158_v44 = vld [vmem:[#allocation229_spill] sm:$0xff]  ;;  %v6197_v52 = vadd.f32 %v15159_v60, %v5748_v17  ;;  %v15160_v5 = vld [vmem:[#allocation78_spill] sm:$0xff]  ;;  %v5720_v45 = vadd.f32 %v15163_v2, %v15162_v9  ;;  %v15164_v61 = vld [vmem:[#allocation239_spill] sm:$0xff] }
 0x857   : > { %7893 = vxpose.xlu2.b32.cont [3/16] (narrow) %v7829_v12, 8  ;;  %v15150_v12 = vld [vmem:[#allocation73_spill] sm:$0xff]  ;;  %v7278_v42 = vadd.f32 %v15158_v44, %v7014_v56  ;;  %v6432_v18 = vadd.f32 %v15160_v5, %v6168_v24  ;;  %v15161_v55 = vld [vmem:[#allocation62_spill] sm:$0xff]  ;;  %v15165_v39 = vld [vmem:[#allocation216_spill] sm:$0xff] }
 0x858   : > { %v6719_v43 = vadd.f32 %v15150_v12, %v6431_v50  ;;  %v7830_v50 = vadd.f32 %v13597_v14, %v7550_v31  ;;  %v6735_v63 = vadd.f32 %v15165_v39, %v6447_v48  ;;  %v15166_v12 = vld [vmem:[#allocation387_spill] sm:$0xff]  ;;  %v15167_v38 = vld [vmem:[#allocation378_spill] sm:$0xff]  ;;  %v15169_v14 = vld [vmem:[#allocation233_spill] sm:$0xff] }
 0x859   : > { %v6461_v23 = vadd.f32 %v15166_v12, %v6197_v52  ;;  %v7292_v57 = vadd.f32 %v15167_v38, %v7028_v15  ;;  %v15168_v17 = vld [vmem:[#allocation79_spill] sm:$0xff]  ;;  %v6184_v31 = vadd.f32 %v15169_v14, %v5735_v27  ;;  %v15174_v52 = vld [vmem:[#allocation86_spill] sm:$0xff]  ;;  %v15181_v12 = vld [vmem:[#allocation221_spill] sm:$0xff] }
 0x85a   : > { %7925 = vxpose.xlu0.b32.cont [3/16] (narrow) %v7845_v53, 8  ;;  %v6999_v29 = vadd.f32 %v15161_v55, %v6719_v43  ;;  %v7566_v53 = vadd.f32 %v15164_v61, %v7278_v42  ;;  %v15171_v43 = vld [vmem:[#allocation397_spill] sm:$0xff]  ;;  %v15172_v44 = vld [vmem:[#allocation83_spill] sm:$0xff] }
 0x85b   : > { %v6749_v24 = vadd.f32 %v15171_v43, %v6461_v23  ;;  %v7580_v11 = vadd.f32 %v13460_v26, %v7292_v57  ;;  %v6169_v48 = vadd.f32 %v15172_v44, %v5720_v45  ;;  %v15173_v42 = vld [vmem:[#allocation67_spill] sm:$0xff]  ;;  %v15176_v55 = vld [vmem:[#allocation329_spill] sm:$0xff]  ;;  %v15183_v23 = vld [vmem:[#allocation390_spill] sm:$0xff] }
 0x85c   : > { %v7263_v56 = vadd.f32 %v15168_v17, %v6999_v29  ;;  %v7846_v0 = vadd.f32 %v13623_v32, %v7566_v53  ;;  %v6720_v60 = vadd.f32 %v15173_v42, %v6432_v18  ;;  %v15177_v29 = vld [vmem:[#allocation382_spill] sm:$0xff]  ;;  %v15178_v2 = vld [vmem:[#allocation87_spill] sm:$0xff]  ;;  %v6448_v32 = vadd.f32 %v15181_v12, %v6184_v31  ;;  %v15190_v42 = vld [vmem:[#allocation408_spill] sm:$0xff] }
 0x85d   : > { %7955 = vxpose.xlu1.b32.start [1/16] (narrow) %v7859_v21, 8  ;;  %v15170_v21 = vld [vmem:[#allocation241_spill] sm:$0xff]  ;;  %v5749_v27 = vadd.f32 %v15177_v29, %v15176_v55  ;;  %v7860_v9 = vadd.f32 %v7702_v8, %v7580_v11  ;;  %v15179_v39 = vld [vmem:[#allocation175_spill] sm:$0xff]  ;;  %v7029_v18 = vadd.f32 %v15183_v23, %v6749_v24  ;;  %v15186_v8 = vld [vmem:[#allocation24_spill] sm:$0xff]  ;;  %v7704_v55 = vpop.permute.xlu2 %7703 }
 0x85e   : > { %v7015_v41 = vadd.f32 %v15170_v21, %v6735_v63  ;;  %v7551_v15 = vadd.f32 %v15174_v52, %v7263_v56  ;;  %v7000_v61 = vadd.f32 %v15178_v2, %v6720_v60  ;;  %v15180_v63 = vld [vmem:[#allocation249_spill] sm:$0xff]  ;;  %v15182_v53 = vld [vmem:[#allocation399_spill] sm:$0xff]  ;;  %v15185_v56 = vld [vmem:[#allocation72_spill] sm:$0xff] }
 0x85f   : > { %7894 = vxpose.xlu2.b32.cont [4/16] (narrow) %v7830_v50, 8  ;;  %v15175_v50 = vld [vmem:[#allocation244_spill] sm:$0xff]  ;;  %v5736_v26 = vadd.f32 %v15180_v63, %v15179_v39  ;;  %v6198_v45 = vadd.f32 %v15182_v53, %v5749_v27  ;;  %v15184_v57 = vld [vmem:[#allocation91_spill] sm:$0xff]  ;;  %v6433_v14 = vadd.f32 %v15185_v56, %v6169_v48  ;;  %v7293_v31 = vadd.f32 %v15190_v42, %v7029_v18  ;;  %v15194_v29 = vld [vmem:[#allocation254_spill] sm:$0xff] }
 0x860   : > { %v7279_v5 = vadd.f32 %v15175_v50, %v7015_v41  ;;  %v7831_v38 = vadd.f32 %v13560_v47, %v7551_v15  ;;  %v7264_v17 = vadd.f32 %v15184_v57, %v7000_v61  ;;  %v15187_v21 = vld [vmem:[#allocation96_spill] sm:$0xff]  ;;  %v15188_v43 = vld [vmem:[#allocation247_spill] sm:$0xff]  ;;  %v15197_v63 = vld [vmem:[#allocation77_spill] sm:$0xff] }
 0x861   : > { %v5721_v41 = vadd.f32 %v15187_v21, %v15186_v8  ;;  %v6736_v11 = vadd.f32 %v15188_v43, %v6448_v32  ;;  %v15191_v60 = vld [vmem:[#allocation232_spill] sm:$0xff]  ;;  %v15193_v47 = vld [vmem:[#allocation227_spill] sm:$0xff]  ;;  %v7581_v61 = vadd.f32 %v13458_v34, %v7293_v31  ;;  %v15198_v32 = vld [vmem:[#allocation101_spill] sm:$0xff] }
 0x862   : > { %7926 = vxpose.xlu0.b32.cont [4/16] (narrow) %v7846_v0, 8  ;;  %v15189_v0 = vld [vmem:[#allocation402_spill] sm:$0xff]  ;;  %v7567_v52 = vadd.f32 %v15191_v60, %v7279_v5  ;;  %v15192_v24 = vld [vmem:[#allocation92_spill] sm:$0xff]  ;;  %v6185_v15 = vadd.f32 %v15193_v47, %v5736_v26  ;;  %v15195_v48 = vld [vmem:[#allocation343_spill] sm:$0xff] }
 0x863   : > { %v6462_v44 = vadd.f32 %v15189_v0, %v6198_v45  ;;  %v6721_v50 = vadd.f32 %v15192_v24, %v6433_v14  ;;  %v7016_v27 = vadd.f32 %v15194_v29, %v6736_v11  ;;  %v6170_v12 = vadd.f32 %v15197_v63, %v5721_v41  ;;  %v15199_v5 = vld [vmem:[#allocation412_spill] sm:$0xff]  ;;  %v15200_v23 = vld [vmem:[#allocation403_spill] sm:$0xff]  ;;  %v15202_v56 = vld [vmem:[#allocation253_spill] sm:$0xff]  ;;  %v7706_v63 = vpop.permute.xlu0 %7705 }
 0x864   : > { %v7847_v39 = vadd.f32 %v13694_v25, %v7567_v52  ;;  %v7861_v57 = vadd.f32 %v7704_v55, %v7581_v61  ;;  %v6449_v14 = vadd.f32 %v15202_v56, %v6185_v15  ;;  %v15203_v8 = vld [vmem:[#allocation238_spill] sm:$0xff]  ;;  %v15204_v43 = vld [vmem:[#allocation417_spill] sm:$0xff]  ;;  %v15207_v31 = vld [vmem:[#allocation183_spill] sm:$0xff] }
 0x865   : > { %7956 = vxpose.xlu1.b32.cont [2/16] (narrow) %v7860_v9, 8  ;;  %v15196_v9 = vld [vmem:[#allocation411_spill] sm:$0xff]  ;;  %v7001_v53 = vadd.f32 %v15198_v32, %v6721_v50  ;;  %v6750_v18 = vadd.f32 %v15200_v23, %v6462_v44  ;;  %v7280_v21 = vadd.f32 %v15203_v8, %v7016_v27  ;;  %v15205_v41 = vld [vmem:[#allocation97_spill] sm:$0xff]  ;;  %v15216_v61 = vld [vmem:[#allocation260_spill] sm:$0xff] }
 0x866   : > { %v5750_v2 = vadd.f32 %v15196_v9, %v15195_v48  ;;  %v6434_v11 = vadd.f32 %v15205_v41, %v6170_v12  ;;  %v15206_v0 = vld [vmem:[#allocation89_spill] sm:$0xff]  ;;  %v15208_v60 = vld [vmem:[#allocation243_spill] sm:$0xff]  ;;  %v15214_v48 = vld [vmem:[#allocation100_spill] sm:$0xff] }
 0x867   : > { %7895 = vxpose.xlu2.b32.cont [5/16] (narrow) %v7831_v38, 8  ;;  %v15201_v38 = vld [vmem:[#allocation82_spill] sm:$0xff]  ;;  %v7030_v34 = vadd.f32 %v15204_v43, %v6750_v18  ;;  %v7265_v42 = vadd.f32 %v15206_v0, %v7001_v53  ;;  %v5737_v44 = vadd.f32 %v15208_v60, %v15207_v31  ;;  %v15209_v52 = vld [vmem:[#allocation259_spill] sm:$0xff]  ;;  %v15210_v24 = vld [vmem:[#allocation265_spill] sm:$0xff] }
 0x868   : > { %v6199_v45 = vadd.f32 %v15199_v5, %v5750_v2  ;;  %v7552_v26 = vadd.f32 %v15201_v38, %v7264_v17  ;;  %v6737_v17 = vadd.f32 %v15209_v52, %v6449_v14  ;;  %v7568_v50 = vadd.f32 %v15210_v24, %v7280_v21  ;;  %v15211_v47 = vld [vmem:[#allocation421_spill] sm:$0xff]  ;;  %v15212_v55 = vld [vmem:[#allocation407_spill] sm:$0xff]  ;;  %v15215_v9 = vld [vmem:[#allocation106_spill] sm:$0xff] }
 0x869   : > { %v7294_v15 = vadd.f32 %v15211_v47, %v7030_v34  ;;  %v15213_v27 = vld [vmem:[#allocation39_spill] sm:$0xff]  ;;  %v6722_v2 = vadd.f32 %v15215_v9, %v6434_v11  ;;  %v15218_v32 = vld [vmem:[#allocation424_spill] sm:$0xff]  ;;  %v15222_v14 = vld [vmem:[#allocation102_spill] sm:$0xff] }
 0x86a   : > { %7927 = vxpose.xlu0.b32.cont [5/16] (narrow) %v7847_v39, 8  ;;  %v7832_v25 = vadd.f32 %v13613_v36, %v7552_v26  ;;  %v6463_v29 = vadd.f32 %v15212_v55, %v6199_v45  ;;  %v5722_v36 = vadd.f32 %v15214_v48, %v15213_v27  ;;  %v6186_v39 = vadd.f32 %v15216_v61, %v5737_v44  ;;  %v15217_v12 = vld [vmem:[#allocation359_spill] sm:$0xff]  ;;  %v15219_v5 = vld [vmem:[#allocation428_spill] sm:$0xff]  ;;  %v15224_v34 = vld [vmem:[#allocation429_spill] sm:$0xff] }
 0x86b   : > { %v5751_v53 = vadd.f32 %v15218_v32, %v15217_v12  ;;  %v7582_v18 = vadd.f32 %v13424_v37, %v7294_v15  ;;  %v7848_v38 = vadd.f32 %v13691_v54, %v7568_v50  ;;  %v15220_v26 = vld [vmem:[#allocation115_spill] sm:$0xff]  ;;  %v7553_v8 = vadd.f32 %v15222_v14, %v7265_v42  ;;  %v15225_v11 = vld [vmem:[#allocation94_spill] sm:$0xff]  ;;  %v15226_v31 = vld [vmem:[#allocation116_spill] sm:$0xff] }
 0x86c   : > { %v6751_v23 = vadd.f32 %v15219_v5, %v6463_v29  ;;  %v6171_v45 = vadd.f32 %v15220_v26, %v5722_v36  ;;  %v15223_v21 = vld [vmem:[#allocation251_spill] sm:$0xff]  ;;  %v7002_v0 = vadd.f32 %v15225_v11, %v6722_v2  ;;  %v15227_v44 = vld [vmem:[#allocation272_spill] sm:$0xff]  ;;  %v15228_v52 = vld [vmem:[#allocation202_spill] sm:$0xff] }
 0x86d   : > { %7957 = vxpose.xlu1.b32.cont [3/16] (narrow) %v7861_v57, 8  ;;  %v15221_v57 = vld [vmem:[#allocation264_spill] sm:$0xff]  ;;  %v7017_v43 = vadd.f32 %v15223_v21, %v6737_v17  ;;  %v7862_v41 = vadd.f32 %v7706_v63, %v7582_v18  ;;  %v7833_v15 = vadd.f32 %v13609_v46, %v7553_v8  ;;  %v15231_v42 = vld [vmem:[#allocation257_spill] sm:$0xff]  ;;  %v15232_v55 = vld [vmem:[#allocation271_spill] sm:$0xff]  ;;  %v7708_v46 = vpop.permute.xlu1 %7707 }
 0x86e   : > { %v6450_v56 = vadd.f32 %v15221_v57, %v6186_v39  ;;  %v6435_v60 = vadd.f32 %v15226_v31, %v6171_v45  ;;  %v15229_v54 = vld [vmem:[#allocation284_spill] sm:$0xff]  ;;  %v15233_v27 = vld [vmem:[#allocation431_spill] sm:$0xff]  ;;  %v15234_v36 = vld [vmem:[#allocation425_spill] sm:$0xff] }
 0x86f   : > { %7896 = vxpose.xlu2.b32.cont [6/16] (narrow) %v7832_v25, 8  ;;  %v7031_v25 = vadd.f32 %v15224_v34, %v6751_v23  ;;  %v7281_v37 = vadd.f32 %v15227_v44, %v7017_v43  ;;  %v5738_v24 = vadd.f32 %v15229_v54, %v15228_v52  ;;  %v15230_v50 = vld [vmem:[#allocation416_spill] sm:$0xff]  ;;  %v15236_v39 = vld [vmem:[#allocation46_spill] sm:$0xff]  ;;  %v15238_v32 = vld [vmem:[#allocation105_spill] sm:$0xff] }
 0x870   : > { %v6200_v47 = vadd.f32 %v15230_v50, %v5751_v53  ;;  %v6738_v17 = vadd.f32 %v15231_v42, %v6450_v56  ;;  %v15235_v2 = vld [vmem:[#allocation108_spill] sm:$0xff]  ;;  %v6723_v5 = vadd.f32 %v15238_v32, %v6435_v60  ;;  %v15240_v18 = vld [vmem:[#allocation283_spill] sm:$0xff]  ;;  %v15243_v21 = vld [vmem:[#allocation277_spill] sm:$0xff]  ;;  %v7710_v32 = vpop.permute.xlu2 %7709 }
 0x871   : > { %v7569_v29 = vadd.f32 %v15232_v55, %v7281_v37  ;;  %v7295_v9 = vadd.f32 %v15234_v36, %v7031_v25  ;;  %v7266_v61 = vadd.f32 %v15235_v2, %v7002_v0  ;;  %v15237_v63 = vld [vmem:[#allocation120_spill] sm:$0xff]  ;;  %v15241_v26 = vld [vmem:[#allocation215_spill] sm:$0xff]  ;;  %v15248_v37 = vld [vmem:[#allocation269_spill] sm:$0xff] }
 0x872   : > { %7928 = vxpose.xlu0.b32.cont [6/16] (narrow) %v7848_v38, 8  ;;  %v6464_v48 = vadd.f32 %v15233_v27, %v6200_v47  ;;  %v5723_v12 = vadd.f32 %v15237_v63, %v15236_v39  ;;  %v15239_v53 = vld [vmem:[#allocation280_spill] sm:$0xff]  ;;  %v6187_v38 = vadd.f32 %v15240_v18, %v5738_v24  ;;  %v15244_v34 = vld [vmem:[#allocation111_spill] sm:$0xff]  ;;  %v15258_v63 = vld [vmem:[#allocation110_spill] sm:$0xff] }
 0x873   : > { %v7018_v23 = vadd.f32 %v15239_v53, %v6738_v17  ;;  %v7583_v57 = vadd.f32 %v13473_v51, %v7295_v9  ;;  %v7849_v56 = vadd.f32 %v13639_v16, %v7569_v29  ;;  %v15242_v14 = vld [vmem:[#allocation124_spill] sm:$0xff]  ;;  %v7554_v25 = vadd.f32 %v15244_v34, %v7266_v61  ;;  %v15246_v11 = vld [vmem:[#allocation427_spill] sm:$0xff]  ;;  %v15250_v51 = vld [vmem:[#allocation278_spill] sm:$0xff] }
 0x874   : > { %v6752_v45 = vadd.f32 %v15241_v26, %v6464_v48  ;;  %v7003_v8 = vadd.f32 %v15242_v14, %v6723_v5  ;;  %v15247_v60 = vld [vmem:[#allocation119_spill] sm:$0xff]  ;;  %v6451_v52 = vadd.f32 %v15248_v37, %v6187_v38  ;;  %v15249_v54 = vld [vmem:[#allocation220_spill] sm:$0xff]  ;;  %v15254_v29 = vld [vmem:[#allocation290_spill] sm:$0xff] }
 0x875   : > { %7958 = vxpose.xlu1.b32.cont [4/16] (narrow) %v7862_v41, 8  ;;  %v7282_v43 = vadd.f32 %v15243_v21, %v7018_v23  ;;  %v15245_v41 = vld [vmem:[#allocation376_spill] sm:$0xff]  ;;  %v7863_v31 = vadd.f32 %v7708_v46, %v7583_v57  ;;  %v6172_v44 = vadd.f32 %v15247_v60, %v5723_v12  ;;  %v7834_v16 = vadd.f32 %v13570_v49, %v7554_v25  ;;  %v15251_v47 = vld [vmem:[#allocation123_spill] sm:$0xff]  ;;  %v15256_v9 = vld [vmem:[#allocation438_spill] sm:$0xff] }
 0x876   : > { %v5752_v0 = vadd.f32 %v15246_v11, %v15245_v41  ;;  %v7032_v50 = vadd.f32 %v15250_v51, %v6752_v45  ;;  %v15252_v42 = vld [vmem:[#allocation263_spill] sm:$0xff]  ;;  %v15253_v55 = vld [vmem:[#allocation208_spill] sm:$0xff]  ;;  %v15259_v5 = vld [vmem:[#allocation294_spill] sm:$0xff] }
 0x877   : > { %7897 = vxpose.xlu2.b32.cont [7/16] (narrow) %v7833_v15, 8  ;;  %v7267_v15 = vadd.f32 %v15251_v47, %v7003_v8  ;;  %v7570_v17 = vadd.f32 %v15252_v42, %v7282_v43  ;;  %v5739_v27 = vadd.f32 %v15254_v29, %v15253_v55  ;;  %v15255_v48 = vld [vmem:[#allocation291_spill] sm:$0xff]  ;;  %v15257_v61 = vld [vmem:[#allocation444_spill] sm:$0xff]  ;;  %v6436_v12 = vadd.f32 %v15258_v63, %v6172_v44  ;;  %v15265_v8 = vld [vmem:[#allocation118_spill] sm:$0xff] }
 0x878   : > { %v6201_v24 = vadd.f32 %v15249_v54, %v5752_v0  ;;  %v6739_v36 = vadd.f32 %v15255_v48, %v6451_v52  ;;  %v7296_v39 = vadd.f32 %v15257_v61, %v7032_v50  ;;  %v15260_v53 = vld [vmem:[#allocation392_spill] sm:$0xff]  ;;  %v15262_v26 = vld [vmem:[#allocation55_spill] sm:$0xff]  ;;  %v15266_v43 = vld [vmem:[#allocation274_spill] sm:$0xff] }
 0x879   : > { %v15261_v23 = vld [vmem:[#allocation448_spill] sm:$0xff]  ;;  %v7850_v38 = vadd.f32 %v13714_v6, %v7570_v17  ;;  %v7555_v21 = vadd.f32 %v15265_v8, %v7267_v15  ;;  %v6188_v34 = vadd.f32 %v15266_v43, %v5739_v27  ;;  %v15267_v25 = vld [vmem:[#allocation226_spill] sm:$0xff]  ;;  %v15268_v11 = vld [vmem:[#allocation439_spill] sm:$0xff] }
 0x87a   : > { %7929 = vxpose.xlu0.b32.cont [7/16] (narrow) %v7849_v56, 8  ;;  %v6465_v2 = vadd.f32 %v15256_v9, %v6201_v24  ;;  %v7019_v49 = vadd.f32 %v15259_v5, %v6739_v36  ;;  %v5753_v46 = vadd.f32 %v15261_v23, %v15260_v53  ;;  %v7584_v18 = vadd.f32 %v13471_v22, %v7296_v39  ;;  %v15263_v45 = vld [vmem:[#allocation128_spill] sm:$0xff]  ;;  %v15264_v56 = vld [vmem:[#allocation129_spill] sm:$0xff]  ;;  %v15270_v22 = vld [vmem:[#allocation295_spill] sm:$0xff] }
 0x87b   : > { %v5724_v57 = vadd.f32 %v15263_v45, %v15262_v26  ;;  %v6724_v14 = vadd.f32 %v15264_v56, %v6436_v12  ;;  %v15269_v60 = vld [vmem:[#allocation132_spill] sm:$0xff]  ;;  %v6452_v37 = vadd.f32 %v15270_v22, %v6188_v34  ;;  %v15271_v6 = vld [vmem:[#allocation453_spill] sm:$0xff]  ;;  %v15272_v54 = vld [vmem:[#allocation279_spill] sm:$0xff]  ;;  %v7835_v51 = vadd.f32 %v13625_v13, %v7555_v21  ;;  %v7712_v13 = vpop.permute.xlu0 %7711 }
 0x87c   : > { %v6202_v41 = vadd.f32 %v15267_v25, %v5753_v46  ;;  %v6753_v0 = vadd.f32 %v15268_v11, %v6465_v2  ;;  %v7283_v24 = vadd.f32 %v15272_v54, %v7019_v49  ;;  %v15273_v50 = vld [vmem:[#allocation114_spill] sm:$0xff]  ;;  %v15275_v42 = vld [vmem:[#allocation455_spill] sm:$0xff]  ;;  %v15277_v48 = vld [vmem:[#allocation65_spill] sm:$0xff] }
 0x87d   : > { %7959 = vxpose.xlu1.b32.cont [5/16] (narrow) %v7863_v31, 8  ;;  %v7864_v31 = vadd.f32 %v7710_v32, %v7584_v18  ;;  %v7004_v44 = vadd.f32 %v15269_v60, %v6724_v14  ;;  %v15274_v47 = vld [vmem:[#allocation298_spill] sm:$0xff]  ;;  %v15276_v55 = vld [vmem:[#allocation443_spill] sm:$0xff]  ;;  %v15279_v2 = vld [vmem:[#allocation133_spill] sm:$0xff] }
 0x87e   : > { %v7033_v52 = vadd.f32 %v15271_v6, %v6753_v0  ;;  %v6740_v15 = vadd.f32 %v15274_v47, %v6452_v37  ;;  %v6466_v29 = vadd.f32 %v15276_v55, %v6202_v41  ;;  %v7571_v27 = vadd.f32 %v13426_v4, %v7283_v24  ;;  %v15278_v36 = vld [vmem:[#allocation127_spill] sm:$0xff]  ;;  %v15280_v39 = vld [vmem:[#allocation122_spill] sm:$0xff]  ;;  %v15281_v12 = vld [vmem:[#allocation460_spill] sm:$0xff] }
 0x87f   : > { %7898 = vxpose.xlu2.b32.cont [8/16] (narrow) %v7834_v16, 8  ;;  %v6173_v16 = vadd.f32 %v15273_v50, %v5724_v57  ;;  %v5725_v9 = vadd.f32 %v15278_v36, %v15277_v48  ;;  %v7268_v63 = vadd.f32 %v15280_v39, %v7004_v44  ;;  %v15282_v5 = vld [vmem:[#allocation418_spill] sm:$0xff]  ;;  %v15283_v49 = vld [vmem:[#allocation461_spill] sm:$0xff]  ;;  %v15284_v18 = vld [vmem:[#allocation136_spill] sm:$0xff] }
 0x880   : > { %v7297_v17 = vadd.f32 %v15275_v42, %v7033_v52  ;;  %v6754_v32 = vadd.f32 %v15281_v12, %v6466_v29  ;;  %v5754_v53 = vadd.f32 %v15283_v49, %v15282_v5  ;;  %v7851_v46 = vadd.f32 %v13709_v40, %v7571_v27  ;;  %v15286_v45 = vld [vmem:[#allocation140_spill] sm:$0xff]  ;;  %v15288_v8 = vld [vmem:[#allocation71_spill] sm:$0xff]  ;;  %v15305_v12 = vld [vmem:[#allocation85_spill] sm:$0xff] }
 0x881   : > { %v6437_v61 = vadd.f32 %v15279_v2, %v6173_v16  ;;  %v7556_v57 = vadd.f32 %v15286_v45, %v7268_v63  ;;  %v15287_v56 = vld [vmem:[#allocation288_spill] sm:$0xff]  ;;  %v15289_v34 = vld [vmem:[#allocation139_spill] sm:$0xff]  ;;  %v7714_v16 = vpop.permute.xlu1 %7713  ;;  %v15303_v2 = vld [vmem:[#allocation237_spill] sm:$0xff] }
 0x882   : > { %7930 = vxpose.xlu0.b32.cont [8/16] (narrow) %v7850_v38, 8  ;;  %v7585_v23 = vadd.f32 %v13436_v10, %v7297_v17  ;;  %v15285_v38 = vld [vmem:[#allocation137_spill] sm:$0xff]  ;;  %v7020_v14 = vadd.f32 %v15287_v56, %v6740_v15  ;;  %v7034_v21 = vadd.f32 %v15288_v8, %v6754_v32  ;;  %v15290_v41 = vld [vmem:[#allocation304_spill] sm:$0xff]  ;;  %v15291_v0 = vld [vmem:[#allocation459_spill] sm:$0xff] }
 0x883   : > { %v6725_v4 = vadd.f32 %v15284_v18, %v6437_v61  ;;  %v6174_v26 = vadd.f32 %v15285_v38, %v5725_v9  ;;  %v6203_v10 = vadd.f32 %v15291_v0, %v5754_v53  ;;  %v7836_v40 = vadd.f32 %v13621_v20, %v7556_v57  ;;  %v15293_v44 = vld [vmem:[#allocation467_spill] sm:$0xff]  ;;  %v15294_v6 = vld [vmem:[#allocation452_spill] sm:$0xff]  ;;  %v15299_v17 = vld [vmem:[#allocation81_spill] sm:$0xff]  ;;  %v7716_v38 = vpop.permute.xlu2 %7715 }
 0x884   : > { %v7865_v43 = vadd.f32 %v7712_v13, %v7585_v23  ;;  %v7284_v11 = vadd.f32 %v15290_v41, %v7020_v14  ;;  %v7298_v52 = vadd.f32 %v15294_v6, %v7034_v21  ;;  %v15295_v54 = vld [vmem:[#allocation143_spill] sm:$0xff]  ;;  %v15304_v63 = vld [vmem:[#allocation142_spill] sm:$0xff]  ;;  %v15309_v18 = vld [vmem:[#allocation477_spill] sm:$0xff] }
 0x885   : > { %7960 = vxpose.xlu1.b32.cont [6/16] (narrow) %v7864_v31, 8  ;;  %v6438_v25 = vadd.f32 %v15289_v34, %v6174_v26  ;;  %v15292_v31 = vld [vmem:[#allocation131_spill] sm:$0xff]  ;;  %v6467_v22 = vadd.f32 %v15293_v44, %v6203_v10  ;;  %v15306_v5 = vld [vmem:[#allocation466_spill] sm:$0xff]  ;;  %v15311_v57 = vld [vmem:[#allocation281_spill] sm:$0xff] }
 0x886   : > { %v7005_v60 = vadd.f32 %v15292_v31, %v6725_v4  ;;  %v7572_v37 = vadd.f32 %v13402_v59, %v7284_v11  ;;  %v15297_v47 = vld [vmem:[#allocation75_spill] sm:$0xff]  ;;  %v7586_v55 = vadd.f32 %v13487_v30, %v7298_v52  ;;  %v15301_v59 = vld [vmem:[#allocation146_spill] sm:$0xff]  ;;  %v15312_v56 = vld [vmem:[#allocation480_spill] sm:$0xff] }
 0x887   : > { %7899 = vxpose.xlu2.b32.cont [9/16] (narrow) %v7835_v51, 8  ;;  %v15296_v51 = vld [vmem:[#allocation134_spill] sm:$0xff]  ;;  %v15298_v15 = vld [vmem:[#allocation147_spill] sm:$0xff]  ;;  %v6755_v20 = vadd.f32 %v15299_v17, %v6467_v22  ;;  %v5756_v14 = vadd.f32 %v15312_v56, %v15311_v57  ;;  %v15313_v21 = vld [vmem:[#allocation88_spill] sm:$0xff] }
 0x888   : > { %v7269_v24 = vadd.f32 %v15295_v54, %v7005_v60  ;;  %v6726_v50 = vadd.f32 %v15296_v51, %v6438_v25  ;;  %v5726_v42 = vadd.f32 %v15298_v15, %v15297_v47  ;;  %v7852_v29 = vadd.f32 %v13656_v28, %v7572_v37  ;;  %v15300_v27 = vld [vmem:[#allocation151_spill] sm:$0xff]  ;;  %v15307_v30 = vld [vmem:[#allocation150_spill] sm:$0xff]  ;;  %v15320_v37 = vld [vmem:[#allocation484_spill] sm:$0xff] }
 0x889   : > { %v15302_v9 = vld [vmem:[#allocation47_spill] sm:$0xff]  ;;  %v7866_v39 = vadd.f32 %v7714_v16, %v7586_v55  ;;  %v7035_v49 = vadd.f32 %v15306_v5, %v6755_v20  ;;  %v15310_v26 = vld [vmem:[#allocation138_spill] sm:$0xff]  ;;  %v15321_v52 = vld [vmem:[#allocation141_spill] sm:$0xff] }
 0x88a   : > { %7931 = vxpose.xlu0.b32.cont [9/16] (narrow) %v7851_v46, 8  ;;  %v7006_v48 = vadd.f32 %v15300_v27, %v6726_v50  ;;  %v7557_v36 = vadd.f32 %v15301_v59, %v7269_v24  ;;  %v5755_v61 = vadd.f32 %v15303_v2, %v15302_v9  ;;  %v6175_v13 = vadd.f32 %v15304_v63, %v5726_v42  ;;  %v15308_v23 = vld [vmem:[#allocation471_spill] sm:$0xff]  ;;  %v15317_v0 = vld [vmem:[#allocation90_spill] sm:$0xff]  ;;  %v15323_v50 = vld [vmem:[#allocation476_spill] sm:$0xff] }
 0x88b   : > { %v7299_v4 = vadd.f32 %v15309_v18, %v7035_v49  ;;  %v15316_v41 = vld [vmem:[#allocation155_spill] sm:$0xff]  ;;  %v6205_v10 = vadd.f32 %v15317_v0, %v5756_v14  ;;  %v15322_v24 = vld [vmem:[#allocation486_spill] sm:$0xff]  ;;  %v15325_v15 = vld [vmem:[#allocation153_spill] sm:$0xff] }
 0x88c   : > { %v6204_v32 = vadd.f32 %v15305_v12, %v5755_v61  ;;  %v7837_v53 = vadd.f32 %v13586_v7, %v7557_v36  ;;  %v7270_v28 = vadd.f32 %v15307_v30, %v7006_v48  ;;  %v6439_v45 = vadd.f32 %v15310_v26, %v6175_v13  ;;  %v15315_v7 = vld [vmem:[#allocation145_spill] sm:$0xff]  ;;  %v15319_v44 = vld [vmem:[#allocation159_spill] sm:$0xff]  ;;  %v15324_v47 = vld [vmem:[#allocation98_spill] sm:$0xff] }
 0x88d   : > { %7961 = vxpose.xlu1.b32.cont [7/16] (narrow) %v7865_v43, 8  ;;  %v7587_v8 = vadd.f32 %v13483_v1, %v7299_v4  ;;  %v15314_v43 = vld [vmem:[#allocation154_spill] sm:$0xff]  ;;  %v6469_v16 = vadd.f32 %v15323_v50, %v6205_v10  ;;  %v5728_v42 = vadd.f32 %v15325_v15, %v15324_v47  ;;  %v15327_v55 = vld [vmem:[#allocation149_spill] sm:$0xff]  ;;  %v15331_v2 = vld [vmem:[#allocation163_spill] sm:$0xff] }
 0x88e   : > { %v6468_v46 = vadd.f32 %v15308_v23, %v6204_v32  ;;  %v5727_v34 = vadd.f32 %v15314_v43, %v15313_v21  ;;  %v7558_v25 = vadd.f32 %v15315_v7, %v7270_v28  ;;  %v6727_v11 = vadd.f32 %v15316_v41, %v6439_v45  ;;  %v15326_v17 = vld [vmem:[#allocation158_spill] sm:$0xff]  ;;  %v15328_v27 = vld [vmem:[#allocation445_spill] sm:$0xff]  ;;  %v15334_v32 = vld [vmem:[#allocation492_spill] sm:$0xff]  ;;  %v7720_v21 = vpop.permute.xlu1 %7719 }
 0x88f   : > { %7900 = vxpose.xlu2.b32.cont [10/16] (narrow) %v7836_v40, 8  ;;  %v15318_v40 = vld [vmem:[#allocation472_spill] sm:$0xff]  ;;  %v7867_v60 = vadd.f32 %v7716_v38, %v7587_v8  ;;  %v15329_v48 = vld [vmem:[#allocation489_spill] sm:$0xff]  ;;  %v15333_v13 = vld [vmem:[#allocation166_spill] sm:$0xff] }
 0x890   : > { %v6756_v31 = vadd.f32 %v15318_v40, %v6468_v46  ;;  %v7007_v22 = vadd.f32 %v15319_v44, %v6727_v11  ;;  %v7838_v1 = vadd.f32 %v13641_v33, %v7558_v25  ;;  %v6176_v54 = vadd.f32 %v15321_v52, %v5727_v34  ;;  %v15330_v33 = vld [vmem:[#allocation268_spill] sm:$0xff]  ;;  %v15336_v28 = vld [vmem:[#allocation483_spill] sm:$0xff]  ;;  %v15337_v46 = vld [vmem:[#allocation70_spill] sm:$0xff] }
 0x891   : > { %v5757_v59 = vadd.f32 %v15329_v48, %v15328_v27  ;;  %v6757_v36 = vadd.f32 %v15330_v33, %v6469_v16  ;;  %v15338_v4 = vld [vmem:[#allocation157_spill] sm:$0xff]  ;;  %v15339_v38 = vld [vmem:[#allocation107_spill] sm:$0xff]  ;;  %v15340_v26 = vld [vmem:[#allocation172_spill] sm:$0xff] }
 0x892   : > { %7932 = vxpose.xlu0.b32.cont [10/16] (narrow) %v7852_v29, 8  ;;  %v7036_v6 = vadd.f32 %v15320_v37, %v6756_v31  ;;  %v6440_v20 = vadd.f32 %v15326_v17, %v6176_v54  ;;  %v7271_v29 = vadd.f32 %v15327_v55, %v7007_v22  ;;  %v5729_v45 = vadd.f32 %v15340_v26, %v15339_v38  ;;  %v15341_v57 = vld [vmem:[#allocation494_spill] sm:$0xff]  ;;  %v15343_v43 = vld [vmem:[#allocation168_spill] sm:$0xff]  ;;  %v15344_v34 = vld [vmem:[#allocation161_spill] sm:$0xff]  ;;  %v7722_v17 = vpop.permute.xlu2 %7721 }
 0x893   : > { %v7037_v5 = vadd.f32 %v15334_v32, %v6757_v36  ;;  %v6206_v23 = vadd.f32 %v15336_v28, %v5757_v59  ;;  %v15342_v14 = vld [vmem:[#allocation490_spill] sm:$0xff]  ;;  %v15345_v25 = vld [vmem:[#allocation499_spill] sm:$0xff]  ;;  %v15346_v11 = vld [vmem:[#allocation293_spill] sm:$0xff] }
 0x894   : > { %v7300_v51 = vadd.f32 %v15322_v24, %v7036_v6  ;;  %v6728_v61 = vadd.f32 %v15331_v2, %v6440_v20  ;;  %v7559_v12 = vadd.f32 %v15333_v13, %v7271_v29  ;;  %v15347_v10 = vld [vmem:[#allocation176_spill] sm:$0xff]  ;;  %v15348_v31 = vld [vmem:[#allocation171_spill] sm:$0xff]  ;;  %v15349_v44 = vld [vmem:[#allocation177_spill] sm:$0xff] }
 0x895   : > { %7962 = vxpose.xlu1.b32.cont [8/16] (narrow) %v7866_v39, 8  ;;  %v15332_v39 = vld [vmem:[#allocation162_spill] sm:$0xff]  ;;  %v6470_v56 = vadd.f32 %v15341_v57, %v6206_v23  ;;  %v7301_v8 = vadd.f32 %v15342_v14, %v7037_v5  ;;  %v15350_v6 = vld [vmem:[#allocation103_spill] sm:$0xff]  ;;  %v15354_v16 = vld [vmem:[#allocation165_spill] sm:$0xff] }
 0x896   : > { %v7588_v9 = vadd.f32 %v13448_v58, %v7300_v51  ;;  %v6177_v63 = vadd.f32 %v15332_v39, %v5728_v42  ;;  %v7839_v18 = vadd.f32 %v15337_v46, %v7559_v12  ;;  %v7008_v58 = vadd.f32 %v15338_v4, %v6728_v61  ;;  %v15352_v54 = vld [vmem:[#allocation27_spill] sm:$0xff]  ;;  %v15353_v51 = vld [vmem:[#allocation180_spill] sm:$0xff]  ;;  %v15355_v15 = vld [vmem:[#allocation501_spill] sm:$0xff]  ;;  %v7726_v32 = vpop.permute.xlu1 %7725 }
 0x897   : > { %7901 = vxpose.xlu2.b32.cont [11/16] (narrow) %v7837_v53, 8  ;;  %v15335_v53 = vld [vmem:[#allocation167_spill] sm:$0xff]  ;;  %v6758_v41 = vadd.f32 %v15345_v25, %v6470_v56  ;;  %v7589_v0 = vadd.f32 %v15346_v11, %v7301_v8  ;;  %v15356_v20 = vld [vmem:[#allocation181_spill] sm:$0xff]  ;;  %v15357_v55 = vld [vmem:[#allocation300_spill] sm:$0xff] }
 0x898   : > { %v6441_v30 = vadd.f32 %v15335_v53, %v6177_v63  ;;  %v15358_v29 = vld [vmem:[#allocation354_spill] sm:$0xff]  ;;  %v15359_v48 = vld [vmem:[#allocation276_spill] sm:$0xff]  ;;  %v15361_v2 = vld [vmem:[#allocation185_spill] sm:$0xff] }
 0x899   : > { %v7869_v37 = vadd.f32 %v7720_v21, %v7589_v0  ;;  %v5762_v27 = vadd.f32 %v15358_v29, %v15357_v55  ;;  %v15360_v33 = vld [vmem:[#allocation170_spill] sm:$0xff]  ;;  %v15362_v39 = vld [vmem:[#allocation352_spill] sm:$0xff]  ;;  %v15368_v4 = vld [vmem:[#allocation361_spill] sm:$0xff] }
 0x89a   : > { %7933 = vxpose.xlu0.b32.cont [11/16] (narrow) %v13737_v3, 8  ;;  %v7718_v3 = vpop.permute.xlu0 %7717  ;;  %v6729_v7 = vadd.f32 %v15344_v34, %v6441_v30  ;;  %v15363_v13 = vld [vmem:[#allocation60_spill] sm:$0xff]  ;;  %v15365_v30 = vld [vmem:[#allocation346_spill] sm:$0xff]  ;;  %v15370_v26 = vld [vmem:[#allocation287_spill] sm:$0xff] }
 0x89b   : > { %v7868_v49 = vadd.f32 %v7718_v3, %v7588_v9  ;;  %v6211_v63 = vadd.f32 %v15362_v39, %v5762_v27  ;;  %v15366_v23 = vld [vmem:[#allocation186_spill] sm:$0xff]  ;;  %v15371_v57 = vld [vmem:[#allocation369_spill] sm:$0xff]  ;;  %v15372_v14 = vld [vmem:[#allocation80_spill] sm:$0xff] }
 0x89c   : > { %v7009_v22 = vadd.f32 %v15349_v44, %v6729_v7  ;;  %v15373_v21 = vld [vmem:[#allocation350_spill] sm:$0xff]  ;;  %v15374_v34 = vld [vmem:[#allocation375_spill] sm:$0xff]  ;;  %v15376_v0 = vld [vmem:[#allocation381_spill] sm:$0xff] }
 0x89d   : > { %7963 = vxpose.xlu1.b32.cont [9/16] (narrow) %v7867_v60, 8  ;;  %v6178_v60 = vadd.f32 %v15348_v31, %v5729_v45  ;;  %v6475_v28 = vadd.f32 %v15365_v30, %v6211_v63  ;;  %v15375_v25 = vld [vmem:[#allocation362_spill] sm:$0xff]  ;;  %v15379_v44 = vld [vmem:[#allocation112_spill] sm:$0xff]  ;;  %v15388_v29 = vld [vmem:[#allocation121_spill] sm:$0xff] }
 0x89e   : > { %v7273_v50 = vadd.f32 %v15353_v51, %v7009_v22  ;;  %v7732_v11 = vpop.permute.xlu1 %7731  ;;  %v15380_v22 = vld [vmem:[#allocation319_spill] sm:$0xff]  ;;  %v15392_v39 = vld [vmem:[#allocation404_spill] sm:$0xff]  ;;  %v15396_v30 = vld [vmem:[#allocation409_spill] sm:$0xff] }
 0x89f   : > { %7902 = vxpose.xlu2.b32.cont [12/16] (narrow) %v7838_v1, 8  ;;  %v15351_v1 = vld [vmem:[#allocation497_spill] sm:$0xff]  ;;  %v6442_v47 = vadd.f32 %v15354_v16, %v6178_v60 }
 0x8a0   : > { %v7038_v52 = vadd.f32 %v15351_v1, %v6758_v41  ;;  %v7561_v36 = vadd.f32 %v15360_v33, %v7273_v50  ;;  %v15378_v60 = vld [vmem:[#allocation449_spill] sm:$0xff] }
 0x8a1   : > { %v6730_v3 = vadd.f32 %v15356_v20, %v6442_v47  ;;  %v15384_v16 = vld [vmem:[#allocation389_spill] sm:$0xff]  ;;  %v15387_v20 = vld [vmem:[#allocation395_spill] sm:$0xff] }
 0x8a2   : > { %7934 = vxpose.xlu0.b32.cont [12/16] (narrow) %v13734_v62, 8  ;;  %v7272_v62 = vadd.f32 %v15343_v43, %v7008_v58  ;;  %v7302_v42 = vadd.f32 %v15355_v15, %v7038_v52  ;;  %v7841_v12 = vadd.f32 %v15363_v13, %v7561_v36  ;;  %v7724_v5 = vpop.permute.xlu0 %7723  ;;  %v15382_v52 = vld [vmem:[#allocation379_spill] sm:$0xff]  ;;  %v15390_v33 = vld [vmem:[#allocation393_spill] sm:$0xff]  ;;  %v15393_v13 = vld [vmem:[#allocation406_spill] sm:$0xff] }
 0x8a3   : > { %v7010_v61 = vadd.f32 %v15361_v2, %v6730_v3  ;;  %v7871_v45 = vadd.f32 %v7724_v5, %v15370_v26  ;;  %v15385_v15 = vld [vmem:[#allocation391_spill] sm:$0xff] }
 0x8a4   : > { %v7560_v40 = vadd.f32 %v15347_v10, %v7272_v62  ;;  %v7590_v59 = vadd.f32 %v15359_v48, %v7302_v42  ;;  %v7728_v62 = vpop.permute.xlu2 %7727  ;;  %v15389_v48 = vld [vmem:[#allocation286_spill] sm:$0xff] }
 0x8a5   : > { %7964 = vxpose.xlu1.b32.cont [10/16] (narrow) %v7868_v49, 8  ;;  %v15364_v49 = vld [vmem:[#allocation174_spill] sm:$0xff] }
 0x8a6   : > { %v7840_v24 = vadd.f32 %v15352_v54, %v7560_v40  ;;  %v7870_v9 = vadd.f32 %v7722_v17, %v7590_v59  ;;  %v7274_v53 = vadd.f32 %v15364_v49, %v7010_v61  ;;  %v15377_v40 = vld [vmem:[#allocation273_spill] sm:$0xff]  ;;  %v7873_v59 = vadd.f32 %v7728_v62, %v15389_v48  ;;  %v7738_v62 = vpop.permute.xlu1 %7737  ;;  %v15419_v48 = vld [vmem:[#allocation435_spill] sm:$0xff] }
 0x8a7   : > { %7903 = vxpose.xlu2.b32.cont [13/16] (narrow) %v7839_v18, 8  ;;  %v15367_v18 = vld [vmem:[#allocation308_spill] sm:$0xff]  ;;  %v15386_v17 = vld [vmem:[#allocation333_spill] sm:$0xff] }
 0x8a8   : > { %v7562_v46 = vadd.f32 %v15366_v23, %v7274_v53  ;;  %v5763_v58 = vadd.f32 %v15368_v4, %v15367_v18  ;;  %v5765_v3 = vadd.f32 %v15387_v20, %v15386_v17  ;;  %v15395_v53 = vld [vmem:[#allocation347_spill] sm:$0xff]  ;;  %v15397_v23 = vld [vmem:[#allocation414_spill] sm:$0xff] }
 0x8a9   : > { %v15398_v18 = vld [vmem:[#allocation266_spill] sm:$0xff] }
 0x8aa   : > { %7935 = vxpose.xlu0.b32.cont [13/16] (narrow) %v15350_v6, 8  ;;  %v7842_v8 = vadd.f32 %v15372_v14, %v7562_v46  ;;  %v6212_v43 = vadd.f32 %v15373_v21, %v5763_v58  ;;  %v7730_v50 = vpop.permute.xlu0 %7729  ;;  %v6214_v36 = vadd.f32 %v15390_v33, %v5765_v3  ;;  %v15399_v58 = vld [vmem:[#allocation224_spill] sm:$0xff]  ;;  %v15402_v14 = vld [vmem:[#allocation423_spill] sm:$0xff]  ;;  %v15403_v21 = vld [vmem:[#allocation410_spill] sm:$0xff] }
 0x8ab   : > { %v15417_v3 = vld [vmem:[#allocation440_spill] sm:$0xff] }
 0x8ac   : > { %v6476_v7 = vadd.f32 %v15374_v34, %v6212_v43  ;;  %v7734_v55 = vpop.permute.xlu2 %7733  ;;  %v15404_v34 = vld [vmem:[#allocation211_spill] sm:$0xff] }
 0x8ad   : > { %7965 = vxpose.xlu1.b32.cont [11/16] (narrow) %v7869_v37, 8  ;;  %v15381_v37 = vld [vmem:[#allocation366_spill] sm:$0xff] }
 0x8ae   : > { %v6764_v10 = vadd.f32 %v15376_v0, %v6476_v7  ;;  %v5764_v6 = vadd.f32 %v15381_v37, %v15380_v22  ;;  %v15407_v0 = vld [vmem:[#allocation413_spill] sm:$0xff] }
 0x8af   : > { %7904 = vxpose.xlu2.b32.cont [14/16] (narrow) %v7840_v24, 8  ;;  %v15383_v24 = vld [vmem:[#allocation374_spill] sm:$0xff]  ;;  %v15410_v22 = vld [vmem:[#allocation109_spill] sm:$0xff] }
 0x8b0   : > { %v6213_v54 = vadd.f32 %v15382_v52, %v5764_v6  ;;  %v7044_v51 = vadd.f32 %v15383_v24, %v6764_v10  ;;  %v15411_v6 = vld [vmem:[#allocation113_spill] sm:$0xff]  ;;  %v15412_v52 = vld [vmem:[#allocation380_spill] sm:$0xff] }
 0x8b2   : > { %7936 = vxpose.xlu0.b32.cont [14/16] (narrow) %v13760_v19, 8  ;;  %v15369_v19 = vld [vmem:[#allocation367_spill] sm:$0xff]  ;;  %v6477_v47 = vadd.f32 %v15384_v16, %v6213_v54  ;;  %v7308_v42 = vadd.f32 %v15385_v15, %v7044_v51  ;;  %v7736_v49 = vpop.permute.xlu0 %7735  ;;  %v15413_v54 = vld [vmem:[#allocation436_spill] sm:$0xff] }
 0x8b3   : > { %v6763_v38 = vadd.f32 %v15369_v19, %v6475_v28  ;;  %v5766_v28 = vadd.f32 %v15396_v30, %v15395_v53  ;;  %v7874_v19 = vadd.f32 %v7730_v50, %v15399_v58  ;;  %v5768_v24 = vadd.f32 %v15413_v54, %v15412_v52  ;;  %v15414_v50 = vld [vmem:[#allocation432_spill] sm:$0xff]  ;;  %v15426_v30 = vld [vmem:[#allocation457_spill] sm:$0xff]  ;;  %v15442_v52 = vld [vmem:[#allocation475_spill] sm:$0xff] }
 0x8b4   : > { %v7596_v27 = vadd.f32 %v15388_v29, %v7308_v42  ;;  %v7740_v51 = vpop.permute.xlu2 %7739  ;;  %v15416_v42 = vld [vmem:[#allocation430_spill] sm:$0xff] }
 0x8b5   : > { %7966 = vxpose.xlu1.b32.cont [12/16] (narrow) %v7870_v9, 8  ;;  %v7043_v56 = vadd.f32 %v15371_v57, %v6763_v38  ;;  %v15391_v9 = vld [vmem:[#allocation386_spill] sm:$0xff]  ;;  %v15400_v38 = vld [vmem:[#allocation415_spill] sm:$0xff] }
 0x8b6   : > { %v6765_v2 = vadd.f32 %v15391_v9, %v6477_v47  ;;  %v7876_v61 = vadd.f32 %v7734_v55, %v7596_v27  ;;  %v15401_v57 = vld [vmem:[#allocation398_spill] sm:$0xff] }
 0x8b7   : > { %7905 = vxpose.xlu2.b32.cont [15/16] (narrow) %v7841_v12, 8  ;;  %v7307_v41 = vadd.f32 %v15375_v25, %v7043_v56  ;;  %v6215_v56 = vadd.f32 %v15401_v57, %v5766_v28  ;;  %v15405_v25 = vld [vmem:[#allocation262_spill] sm:$0xff] }
 0x8b8   : > { %v7045_v63 = vadd.f32 %v15392_v39, %v6765_v2  ;;  %v15415_v47 = vld [vmem:[#allocation434_spill] sm:$0xff] }
 0x8b9   : > { %v7595_v31 = vadd.f32 %v15377_v40, %v7307_v41  ;;  %v6217_v15 = vadd.f32 %v15415_v47, %v5768_v24  ;;  %v15418_v29 = vld [vmem:[#allocation442_spill] sm:$0xff]  ;;  %v15443_v24 = vld [vmem:[#allocation469_spill] sm:$0xff] }
 0x8ba   : > { %7937 = vxpose.xlu0.b32.cont [15/16] (narrow) %v13758_v35, 8  ;;  %v7872_v35 = vadd.f32 %v7726_v32, %v15378_v60  ;;  %v7309_v12 = vadd.f32 %v15393_v13, %v7045_v63  ;;  %v15394_v32 = vld [vmem:[#allocation394_spill] sm:$0xff]  ;;  %v7742_v33 = vpop.permute.xlu0 %7741  ;;  %v15423_v63 = vld [vmem:[#allocation255_spill] sm:$0xff] }
 0x8bb   : > { %v7875_v1 = vadd.f32 %v7732_v11, %v7595_v31  ;;  %v6478_v5 = vadd.f32 %v15394_v32, %v6214_v36  ;;  %v15406_v11 = vld [vmem:[#allocation364_spill] sm:$0xff]  ;;  %v15408_v31 = vld [vmem:[#allocation426_spill] sm:$0xff] }
 0x8bc   : > { %v7597_v4 = vadd.f32 %v15398_v18, %v7309_v12  ;;  %v5767_v10 = vadd.f32 %v15407_v0, %v15406_v11  ;;  %v15420_v36 = vld [vmem:[#allocation396_spill] sm:$0xff]  ;;  %v15421_v9 = vld [vmem:[#allocation446_spill] sm:$0xff]  ;;  %v15424_v12 = vld [vmem:[#allocation451_spill] sm:$0xff]  ;;  %v7744_v18 = vpop.permute.xlu1 %7743 }
 0x8bd   : > { %7967 = vxpose.xlu1.b32.cont [13/16] (narrow) %v7871_v45, 8  ;;  %v6766_v46 = vadd.f32 %v15397_v23, %v6478_v5  ;;  %v5769_v2 = vadd.f32 %v15421_v9, %v15420_v36  ;;  %v15427_v23 = vld [vmem:[#allocation447_spill] sm:$0xff]  ;;  %v15437_v11 = vld [vmem:[#allocation470_spill] sm:$0xff]  ;;  %v15450_v36 = vld [vmem:[#allocation488_spill] sm:$0xff] }
 0x8be   : > { %v7877_v45 = vadd.f32 %v7736_v49, %v7597_v4  ;;  %v6216_v60 = vadd.f32 %v15408_v31, %v5767_v10  ;;  %v15425_v49 = vld [vmem:[#allocation56_spill] sm:$0xff]  ;;  %v15428_v4 = vld [vmem:[#allocation458_spill] sm:$0xff]  ;;  %v7746_v10 = vpop.permute.xlu2 %7745 }
 0x8bf   : > { %7906 = vxpose.xlu2.b32.end [16/16] (narrow) %v7842_v8, 8  ;;  %v7046_v26 = vadd.f32 %v15400_v38, %v6766_v46  ;;  %v6479_v8 = vadd.f32 %v15402_v14, %v6215_v56  ;;  %v6218_v53 = vadd.f32 %v15425_v49, %v5769_v2  ;;  %v15432_v14 = vld [vmem:[#allocation66_spill] sm:$0xff]  ;;  %v15451_v2 = vld [vmem:[#allocation479_spill] sm:$0xff] }
 0x8c0   : > { %v6480_v37 = vadd.f32 %v15410_v22, %v6216_v60  ;;  %v15439_v60 = vld [vmem:[#allocation468_spill] sm:$0xff]  ;;  %v15445_v47 = vld [vmem:[#allocation478_spill] sm:$0xff] }
 0x8c1   : > { %v7310_v43 = vadd.f32 %v15403_v21, %v7046_v26  ;;  %v6767_v7 = vadd.f32 %v15404_v34, %v6479_v8  ;;  %v6482_v28 = vadd.f32 %v15426_v30, %v6218_v53  ;;  %v15430_v26 = vld [vmem:[#allocation420_spill] sm:$0xff]  ;;  %v15433_v21 = vld [vmem:[#allocation463_spill] sm:$0xff] }
 0x8c2   : > { %7938 = vxpose.xlu0.b32.end [16/16] (narrow) %v15379_v44, 8  ;;  %v6768_v17 = vadd.f32 %v15416_v42, %v6480_v37  ;;  %v15446_v42 = vld [vmem:[#allocation95_spill] sm:$0xff] }
 0x8c3   : > { %v7598_v41 = vadd.f32 %v15405_v25, %v7310_v43  ;;  %v6770_v58 = vadd.f32 %v15428_v4, %v6482_v28 }
 0x8c4   : > { %v7048_v55 = vadd.f32 %v15417_v3, %v6768_v17 }
 0x8c5   : > { %7968 = vxpose.xlu1.b32.cont [14/16] (narrow) %v7872_v35, 8  ;;  %v7878_v40 = vadd.f32 %v7738_v62, %v7598_v41  ;;  %v15409_v35 = vld [vmem:[#allocation422_spill] sm:$0xff]  ;;  %v7050_v8 = vadd.f32 %v15432_v14, %v6770_v58  ;;  %v15434_v62 = vld [vmem:[#allocation76_spill] sm:$0xff] }
 0x8c6   : > { %v7047_v44 = vadd.f32 %v15409_v35, %v6767_v7  ;;  %v7312_v27 = vadd.f32 %v15418_v29, %v7048_v55  ;;  %v15435_v7 = vld [vmem:[#allocation465_spill] sm:$0xff]  ;;  %v15436_v41 = vld [vmem:[#allocation206_spill] sm:$0xff]  ;;  %v7750_v55 = vpop.permute.xlu1 %7749  ;;  %v7752_v53 = vpop.permute.xlu2 %7751  ;;  %v15458_v58 = vld [vmem:[#allocation496_spill] sm:$0xff] }
 0x8c7   : > { %7987 = vxpose.xlu2.b32.start [1/16] (narrow) %v7875_v1, 8  ;;  %v7314_v34 = vadd.f32 %v15434_v62, %v7050_v8  ;;  %v5771_v0 = vadd.f32 %v15437_v11, %v15436_v41  ;;  %v15448_v29 = vld [vmem:[#allocation482_spill] sm:$0xff]  ;;  %v15464_v11 = vld [vmem:[#allocation292_spill] sm:$0xff] }
 0x8c8   : > { %v7311_v1 = vadd.f32 %v15411_v6, %v7047_v44  ;;  %v7600_v13 = vadd.f32 %v15423_v63, %v7312_v27  ;;  %v15440_v44 = vld [vmem:[#allocation462_spill] sm:$0xff]  ;;  %v15441_v6 = vld [vmem:[#allocation473_spill] sm:$0xff] }
 0x8c9   : > { %v6220_v35 = vadd.f32 %v15439_v60, %v5771_v0  ;;  %v15465_v60 = vld [vmem:[#allocation38_spill] sm:$0xff] }
 0x8ca   : > { %v7599_v16 = vadd.f32 %v15414_v50, %v7311_v1  ;;  %v7880_v5 = vadd.f32 %v7742_v33, %v7600_v13  ;;  %v7748_v50 = vpop.permute.xlu0 %7747  ;;  %v15453_v13 = vld [vmem:[#allocation23_spill] sm:$0xff] }
 0x8cc   : > { %v7879_v20 = vadd.f32 %v7740_v51, %v7599_v16  ;;  %v6484_v51 = vadd.f32 %v15443_v24, %v6220_v35  ;;  %v15444_v16 = vld [vmem:[#allocation51_spill] sm:$0xff] }
 0x8cd   : > { %7969 = vxpose.xlu1.b32.cont [15/16] (narrow) %v7873_v59, 8  ;;  %v6481_v59 = vadd.f32 %v15419_v48, %v6217_v15  ;;  %v5772_v15 = vadd.f32 %v15445_v47, %v15444_v16 }
 0x8ce   : > { %v6772_v17 = vadd.f32 %v15446_v42, %v6484_v51  ;;  %v7756_v28 = vpop.permute.xlu1 %7755  ;;  %v7758_v62 = vpop.permute.xlu2 %7757 }
 0x8cf   : > { %7988 = vxpose.xlu2.b32.cont [2/16] (narrow) %v7876_v61, 8  ;;  %v15422_v61 = vld [vmem:[#allocation231_spill] sm:$0xff]  ;;  %v7887_v35 = vadd.f32 %v7756_v28, %v15465_v60 }
 0x8d0   : > { %v6769_v39 = vadd.f32 %v15422_v61, %v6481_v59  ;;  %v7052_v27 = vadd.f32 %v15448_v29, %v6772_v17  ;;  %v15449_v59 = vld [vmem:[#allocation248_spill] sm:$0xff] }
 0x8d1   : > { %v6221_v33 = vadd.f32 %v15449_v59, %v5772_v15 }
 0x8d2   : > { %v7049_v32 = vadd.f32 %v15424_v12, %v6769_v39  ;;  %v7316_v61 = vadd.f32 %v15451_v2, %v7052_v27  ;;  %v15452_v39 = vld [vmem:[#allocation99_spill] sm:$0xff]  ;;  %v7754_v41 = vpop.permute.xlu0 %7753 }
 0x8d3   : > { %v6485_v9 = vadd.f32 %v15450_v36, %v6221_v33 }
 0x8d4   : > { %v7313_v46 = vadd.f32 %v15427_v23, %v7049_v32  ;;  %v7604_v12 = vadd.f32 %v15453_v13, %v7316_v61  ;;  %v15454_v32 = vld [vmem:[#allocation61_spill] sm:$0xff]  ;;  %v15456_v23 = vld [vmem:[#allocation491_spill] sm:$0xff] }
 0x8d5   : > { %7970 = vxpose.xlu1.b32.end [16/16] (narrow) %v7874_v19, 8  ;;  %v15429_v19 = vld [vmem:[#allocation16_spill] sm:$0xff]  ;;  %v6773_v63 = vadd.f32 %v15452_v39, %v6485_v9 }
 0x8d6   : > { %v7601_v38 = vadd.f32 %v15429_v19, %v7313_v46  ;;  %v7884_v30 = vadd.f32 %v7750_v55, %v7604_v12 }
 0x8d7   : > { %7989 = vxpose.xlu2.b32.cont [3/16] (narrow) %v7877_v45, 8  ;;  %v15431_v45 = vld [vmem:[#allocation456_spill] sm:$0xff] }
 0x8d8   : > { %v5770_v57 = vadd.f32 %v15431_v45, %v15430_v26  ;;  %v7881_v56 = vadd.f32 %v7744_v18, %v7601_v38  ;;  %v15457_v18 = vld [vmem:[#allocation487_spill] sm:$0xff]  ;;  %v15459_v38 = vld [vmem:[#allocation498_spill] sm:$0xff] }
 0x8d9   : > { %v7053_v4 = vadd.f32 %v15457_v18, %v6773_v63  ;;  %v15460_v45 = vld [vmem:[#allocation19_spill] sm:$0xff] }
 0x8da   : > { %v6219_v43 = vadd.f32 %v15433_v21, %v5770_v57  ;;  %v15462_v21 = vld [vmem:[#allocation235_spill] sm:$0xff] }
 0x8db   : > { %v7317_v26 = vadd.f32 %v15459_v38, %v7053_v4 }
 0x8dc   : > { %v6483_v25 = vadd.f32 %v15435_v7, %v6219_v43  ;;  %v15463_v7 = vld [vmem:[#allocation246_spill] sm:$0xff] }
 0x8dd   : > { %v7605_v57 = vadd.f32 %v15460_v45, %v7317_v26 }
 0x8de   : > { %v6771_v22 = vadd.f32 %v15440_v44, %v6483_v25  ;;  %v15466_v44 = vld [vmem:[#allocation17_spill] sm:$0xff] }
 0x8df   : > { %7990 = vxpose.xlu2.b32.cont [4/16] (narrow) %v7878_v40, 8  ;;  %v15438_v40 = vld [vmem:[#allocation13_spill] sm:$0xff]  ;;  %v7885_v8 = vadd.f32 %v7752_v53, %v7605_v57 }
 0x8e0   : > { %v7602_v31 = vadd.f32 %v15438_v40, %v7314_v34  ;;  %v7051_v1 = vadd.f32 %v15441_v6, %v6771_v22  ;;  %v7762_v34 = vpop.permute.xlu1 %7761  ;;  %v7907_v40 = vpop.trf.xlu2  ;;  %v7888_v22 = vadd.f32 %v7758_v62, %v15466_v44  ;;  %v15467_v6 = vld [vmem:[#allocation117_spill] sm:$0xff] }
 0x8e1   : > { %8019 = vst [vmem:[%s10017_s21] sm:$0xff] %v7907_v40 }
 0x8e2   : > { %v7882_v37 = vadd.f32 %v7746_v10, %v7602_v31  ;;  %v7315_v54 = vadd.f32 %v15442_v52, %v7051_v1  ;;  %v15468_v52 = vld [vmem:[#allocation34_spill] sm:$0xff] }
 0x8e7   : > { %7991 = vxpose.xlu2.b32.cont [5/16] (narrow) %v7879_v20, 8  ;;  %v15447_v20 = vld [vmem:[#allocation289_spill] sm:$0xff] }
 0x8e8   : > { %v7603_v3 = vadd.f32 %v15447_v20, %v7315_v54  ;;  %v7890_v54 = vadd.f32 %v7762_v34, %v15468_v52 }
 0x8ea   : > { %v7883_v48 = vadd.f32 %v7748_v50, %v7603_v3 }
 0x8ef   : > { %7992 = vxpose.xlu2.b32.cont [6/16] (narrow) %v7880_v5, 8  ;;  %v15455_v5 = vld [vmem:[#allocation258_spill] sm:$0xff] }
 0x8f0   : > { %v5773_v49 = vadd.f32 %v15455_v5, %v15454_v32 }
 0x8f2   : > { %v6222_v46 = vadd.f32 %v15456_v23, %v5773_v49 }
 0x8f4   : > { %v6486_v19 = vadd.f32 %v15458_v58, %v6222_v46 }
 0x8f7   : > { %7993 = vxpose.xlu2.b32.cont [7/16] (narrow) %v7881_v56, 8  ;;  %v15461_v56 = vld [vmem:[#allocation493_spill] sm:$0xff] }
 0x8f8   : > { %v6774_v14 = vadd.f32 %v15461_v56, %v6486_v19 }
 0x8fa   : > { %v7054_v43 = vadd.f32 %v15462_v21, %v6774_v14 }
 0x8fc   : > { %v7318_v25 = vadd.f32 %v15463_v7, %v7054_v43 }
 0x8fe   : > { %v7606_v0 = vadd.f32 %v15464_v11, %v7318_v25 }
 0x8ff   : > { %7994 = vxpose.xlu2.b32.cont [8/16] (narrow) %v7882_v37, 8  ;;  %v7760_v37 = vpop.permute.xlu0 %7759 }
 0x900   : > { %v7886_v10 = vadd.f32 %v7754_v41, %v7606_v0  ;;  %v7889_v1 = vadd.f32 %v7760_v37, %v15467_v6 }
 0x901   : > { %v7971_v31 = vpop.trf.xlu1 }
 0x902   : > { %8021 = vst [vmem:[%s10017_s21 + $0x10] sm:$0xff] %v7971_v31 }
 0x907   : > { %7995 = vxpose.xlu2.b32.cont [9/16] (narrow) %v7883_v48, 8  ;;  %v7939_v24 = vpop.trf.xlu0 }
 0x908   : > { %8020 = vst [vmem:[%s10017_s21 + $0x8] sm:$0xff] %v7939_v24 }
 0x90f   : > { %7996 = vxpose.xlu2.b32.cont [10/16] (narrow) %v7884_v30, 8 }
 0x917   : > { %7997 = vxpose.xlu2.b32.cont [11/16] (narrow) %v7885_v8, 8 }
 0x91f   : > { %7998 = vxpose.xlu2.b32.cont [12/16] (narrow) %v7886_v10, 8 }
 0x927   : > { %7999 = vxpose.xlu2.b32.cont [13/16] (narrow) %v7887_v35, 8 }
 0x92f   : > { %8000 = vxpose.xlu2.b32.cont [14/16] (narrow) %v7888_v22, 8 }
 0x937   : > { %8001 = vxpose.xlu2.b32.cont [15/16] (narrow) %v7889_v1, 8 }
 0x93f   : > { %8002 = vxpose.xlu2.b32.end [16/16] (narrow) %v7890_v54, 8 }
 0x960   : > { %v8003_v51 = vpop.trf.xlu2 }
 0x961   : > { %8022 = vst [vmem:[%s10017_s21 + $0x18] sm:$0xff] %v8003_v51 }
 0x962   : > { %9774 = shalt.err (!%p9771_p11)
}
 0x963   : > { %9675 = dma.vmem_to_hbm [thread:$0]  (%p9926_p4), %s8040_s19, 512, %s8042_s22, %s8024_s23  }
 0x964 PF: > { %p9681_p12 = scmp.ge.s32.totalorder %s9831_s29, 2  ;;  %s8053_s15 = sand.u32 1, %s9811_s24  }
 0x965   : > { %s8054_s21 = scalar_lea.sflag [#allocation6], %s8053_s15 }
 0x966   : > { %p9678_p13 = pnand %p9681_p12, %p9933_p8 }
 0x968   : > { %p9679_p0 = pneg %p9678_p13 }
 0x96a   : > { %9806 = dma.done.wait (%p9679_p0), %s8054_s21, 512  }
 0x96b   : > { %9808 = vsyncadd (%p9679_p0), %s8054_s21, 4294966784  ;;  %s20_s29 = sadd.s32 1, %s9831_s29   ;;  %s15469_s24 = smov %s9815_s25 }
 0x96c   : > { %p17_p1 = scmp.ge.s32.totalorder %s20_s29, 4   ;;  %s15470_s25 = smov %s9819_s26 }
 0x96d   : > { %s15471_s26 = smov %s9939_s14  ;;  %s15472_s27 = smov %s9827_s28 }
 0x96e   : > { %s15473_s28 = smov %s15475_s9  ;;  %19 = sbr.rel (!%p17_p1) target bundleno = 4 (0x4), region = 125 }
 0x973   :  { %8060 = vsyncpa [#allocation6], 1 }
 0x974   :  { %8062 = vsyncpa [#allocation6 + $0x1], 1 }
 0x975   :  { %8063 = vsyncmov [#allocation4] }
 0x978   :  { %s8064_s11 = vpop.sfrf %8063 }
 0x979   :  { %p9416_p4 = scmp.ne.s32.totalorder %s8064_s11, 0 }
 0x97b   :  { %8068 = shalt.err (%p9416_p4)  }

</bundles_post_ra>
